<compile_context>
chip_gen: v7x
topology: tpu7x:2x2x1
jax: 0.10.0
libtpu: 0.0.40
codegen_flags: <defaults>
</compile_context>

<pallas_src>
import functools

import jax
import jax.numpy as jnp
from jax import lax
from jax.experimental import pallas as pl
from jax.experimental.pallas import tpu as pltpu


CPAD = 128      # conv channel dims zero-padded to one full lane tile
NCLS_PAD = 128  # classifier output padded to one full lane tile


# ------------------------------ Pallas kernel --------------------------------

def _convnet_kernel(x0_ref, w0_ref, b0_ref, w1_ref, b1_ref, w2_ref, b2_ref,
                    w3_ref, b3_ref, wl_ref, bl_ref, o_ref, y2_ref,
                    *, h, w, p, bblk):
    """Whole ConvNetSmall forward for `bblk` images (grid runs over batch blocks).

    Activations are flat (M, 128) slabs with M = bblk*h*w.  Each 3x3 conv is 9
    shifted GEMMs where the shift is a pltpu.roll along the flat row axis and
    image/row boundaries are handled with iota-derived masks (no padded buffers).
    """
    hw = h * w
    m = bblk * hw

    # Boundary masks, (m, 1) f32, built once and shared by conv1/conv2.
    # (w and h*w are powers of two -- asserted in the wrapper.)
    idx = lax.broadcasted_iota(jnp.int32, (m, 1), 0)
    col = idx & (w - 1)            # x position within an image row
    row = idx & (hw - 1)           # flat position within an image
    xm = {0: (col > 0).astype(jnp.float32),
          2: (col < w - 1).astype(jnp.float32)}
    ym = {0: (row >= w).astype(jnp.float32),
          2: (row < (h - 1) * w).astype(jnp.float32)}

    def conv3x3_relu(src, w_ref, b_ref):
        # src: (m, CPAD) flat slab.  Returns relu(conv3x3(src) + b), (m, CPAD).
        # Pre-build the three x-shifted (masked) slabs; only these two +-1
        # shifts are sublane-misaligned.
        shifted = []
        for dx in range(3):
            sx = dx - 1
            v = src if sx == 0 else pltpu.roll(src, shift=(-sx) % m, axis=0)
            if dx in xm:
                v = v * xm[dx]
            shifted.append(v)
        groups = []
        for dy in range(3):
            sy = (dy - 1) * w          # multiple of 8 -> cheap roll
            acc = None
            for dx in range(3):
                v = shifted[dx]
                if sy != 0:
                    v = pltpu.roll(v, shift=(-sy) % m, axis=0)
                d = jnp.dot(v, w_ref[3 * dy + dx],
                            preferred_element_type=jnp.float32)
                acc = d if acc is None else acc + d
            if dy in ym:               # row-validity mask commutes with the GEMM
                acc = acc * ym[dy]
            groups.append(acc)
        # Three partial accumulators combined at the end (shorter dep chain).
        return jnp.maximum(groups[0] + groups[1] + groups[2] + b_ref[...], 0.0)

    # conv0 + relu0: ONE GEMM over the host-built im2col slab (K = 9*cin -> 128).
    a0 = jnp.maximum(
        jnp.dot(x0_ref[...], w0_ref[...], preferred_element_type=jnp.float32)
        + b0_ref[...], 0.0)

    a1 = conv3x3_relu(a0, w1_ref, b1_ref)       # conv1 + relu1
    h2 = conv3x3_relu(a1, w2_ref, b2_ref)       # conv2 (stride 1) + relu2

    # Fused stride-2 decimation + MaxPool2d(3):
    #   pooled[b, py, px] = max_{ky,kx in 0..2} h2[b, 6*py+2*ky, 6*px+2*kx]
    y2_ref[...] = h2.reshape(bblk, h, w, CPAD)   # one aligned store
    pieces = []
    for py in range(p):
        rowmax = None
        for ky in range(3):
            plane = y2_ref[:, 6 * py + 2 * ky, :, :]          # (bblk, w, CPAD)
            rowmax = plane if rowmax is None else jnp.maximum(rowmax, plane)
        for px in range(p):
            c0 = 6 * px
            win = jnp.maximum(jnp.maximum(rowmax[:, c0, :],
                                          rowmax[:, c0 + 2, :]),
                              rowmax[:, c0 + 4, :])           # (bblk, CPAD)
            pieces.append(win)
    pooled = pieces[0] if len(pieces) == 1 else jnp.concatenate(pieces, axis=-1)
    # pooled: (bblk, p*p*CPAD) in (py, px, C) lane order.

    # conv3 (1x1 output) + relu3 + AdaptiveAvgPool2d(1) (identity) + Flatten +
    # Linear.  conv3 is ONE GEMM against the folded (p*p*CPAD, CPAD) weight.
    h3 = jnp.maximum(
        jnp.dot(pooled, w3_ref[...], preferred_element_type=jnp.float32)
        + b3_ref[...], 0.0)
    o_ref[...] = (jnp.dot(h3, wl_ref[...], preferred_element_type=jnp.float32)
                  + bl_ref[...])


# ------------------------------ wrapper / glue --------------------------------

def _pad2(a, rows, cols):
    return jnp.pad(a, ((0, rows - a.shape[0]), (0, cols - a.shape[1])))


def _prep_conv_w(w):
    # (3, 3, cin, cout) HWIO -> (9, CPAD, CPAD); tap t = 3*dy + dx.
    k = w.reshape(9, w.shape[2], w.shape[3])
    return jnp.pad(k, ((0, 0), (0, CPAD - k.shape[1]), (0, CPAD - k.shape[2])))


def _prep_bias(b, n):
    return jnp.pad(b, (0, n - b.shape[0])).reshape(1, n)


@jax.jit
def convnet_small_forward(x_nchw, params):
    n, cin, h, w = x_nchw.shape
    num_classes = params["bl"].shape[0]

    # Geometry this fused kernel supports (conv3 output must be 1x1, e.g. 16x16).
    h2s = h // 2                       # conv2 stride-2 output size
    p = (h2s - 3) // 3 + 1             # MaxPool2d(3) output size
    assert h == w and h % 2 == 0 and (w & (w - 1)) == 0
    assert p >= 1 and (p - 1) // 2 + 1 == 1 and 6 * (p - 1) + 4 < h
    assert 9 * cin <= CPAD and num_classes <= NCLS_PAD
    for name in ("w0", "w1", "w2", "w3"):
        assert params[name].shape[-1] <= CPAD and params[name].shape[-2] <= CPAD
    assert params["wl"].shape[0] <= CPAD

    # Images per grid step (folded into the GEMM M dimension).
    bblk = 1
    for cand in (4, 2):
        if n % cand == 0:
            bblk = cand
            break
    g = n // bblk
    m_blk = bblk * h * w

    # conv0 im2col slab, built host-side: lane t*cin + c = x[y+dy-1, x+dx-1, c].
    x = jnp.transpose(x_nchw, (0, 2, 3, 1))
    xp = jnp.pad(x, ((0, 0), (1, 1), (1, 1), (0, 0)))
    taps = [xp[:, dy:dy + h, dx:dx + w, :] for dy in range(3) for dx in range(3)]
    x0 = jnp.concatenate(taps, axis=-1).reshape(n * h * w, 9 * cin)
    x0 = jnp.pad(x0, ((0, 0), (0, CPAD - 9 * cin)))

    # Zero-padded channels stay exactly zero through every bias+ReLU, so the
    # padded lanes never change the result.
    w0 = _pad2(params["w0"].reshape(9 * cin, -1), CPAD, CPAD)
    w1 = _prep_conv_w(params["w1"])
    w2 = _prep_conv_w(params["w2"])
    b0 = _prep_bias(params["b0"], CPAD)
    b1 = _prep_bias(params["b1"], CPAD)
    b2 = _prep_bias(params["b2"], CPAD)
    b3 = _prep_bias(params["b3"], CPAD)
    wl = _pad2(params["wl"], CPAD, NCLS_PAD)
    bl = _prep_bias(params["bl"], NCLS_PAD)

    # conv3 head folded into one weight: only taps (dy, dx) in {1,2}^2 see the
    # p x p pooled map; row-block order matches the in-kernel (py, px) concat.
    w3 = params["w3"]
    blocks = []
    for py in range(p):
        for px in range(p):
            blocks.append(_pad2(w3[py + 1, px + 1], CPAD, CPAD))
    w3cat = jnp.concatenate(blocks, axis=0)        # (p*p*CPAD, CPAD)

    kernel = functools.partial(_convnet_kernel, h=h, w=w, p=p, bblk=bblk)

    in_specs = [
        pl.BlockSpec((m_blk, CPAD), lambda i: (i, 0)),          # conv0 im2col
        pl.BlockSpec((CPAD, CPAD), lambda i: (0, 0)),           # w0 (fused)
        pl.BlockSpec((1, CPAD), lambda i: (0, 0)),              # b0
        pl.BlockSpec((9, CPAD, CPAD), lambda i: (0, 0, 0)),     # w1 taps
        pl.BlockSpec((1, CPAD), lambda i: (0, 0)),              # b1
        pl.BlockSpec((9, CPAD, CPAD), lambda i: (0, 0, 0)),     # w2 taps
        pl.BlockSpec((1, CPAD), lambda i: (0, 0)),              # b2
        pl.BlockSpec((p * p * CPAD, CPAD), lambda i: (0, 0)),   # w3 (folded)
        pl.BlockSpec((1, CPAD), lambda i: (0, 0)),              # b3
        pl.BlockSpec((CPAD, NCLS_PAD), lambda i: (0, 0)),       # linear weight
        pl.BlockSpec((1, NCLS_PAD), lambda i: (0, 0)),          # linear bias
    ]

    out = pl.pallas_call(
        kernel,
        out_shape=jax.ShapeDtypeStruct((g, bblk, NCLS_PAD), jnp.float32),
        grid=(g,),
        in_specs=in_specs,
        out_specs=pl.BlockSpec((None, bblk, NCLS_PAD), lambda i: (i, 0, 0)),
        scratch_shapes=[
            pltpu.VMEM((bblk, h, w, CPAD), jnp.float32),   # conv2 stride-1 out
        ],
        compiler_params=pltpu.CompilerParams(
            dimension_semantics=("parallel",),
            vmem_limit_bytes=32 * 1024 * 1024),
    )(x0, w0, b0, w1, b1, w2, b2, w3cat, b3, wl, bl)

    return out.reshape(n, NCLS_PAD)[:, :num_classes]


# -------------------------------- reference -----------------------------------

def reference_forward(x_nchw, params):
    x = jnp.transpose(x_nchw, (0, 2, 3, 1))

    def conv(x, w, b, stride):
        y = lax.conv_general_dilated(
            x, w, (stride, stride), ((1, 1), (1, 1)),
            dimension_numbers=("NHWC", "HWIO", "NHWC"))
        return jnp.maximum(y + b, 0.0)

    x = conv(x, params["w0"], params["b0"], 1)
    x = conv(x, params["w1"], params["b1"], 1)
    x = conv(x, params["w2"], params["b2"], 2)
    x = lax.reduce_window(x, -jnp.inf, lax.max, (1, 3, 3, 1), (1, 3, 3, 1), "VALID")
    x = conv(x, params["w3"], params["b3"], 2)
    x = jnp.mean(x, axis=(1, 2))
    return x @ params["wl"] + params["bl"]


# --------------------------------- params -------------------------------------

def init_params(key, width=32, num_classes=10, num_channels=3):
    ks = jax.random.split(key, 10)

    def conv_w(k, cin, cout):
        return (jax.random.normal(k, (3, 3, cin, cout), jnp.float32)
                / jnp.sqrt(9.0 * cin))

    p = {}
    p["w0"] = conv_w(ks[0], num_channels, 1 * width)
    p["b0"] = 0.01 * jax.random.normal(ks[1], (1 * width,), jnp.float32)
    p["w1"] = conv_w(ks[2], 1 * width, 2 * width)
    p["b1"] = 0.01 * jax.random.normal(ks[3], (2 * width,), jnp.float32)
    p["w2"] = conv_w(ks[4], 2 * width, 4 * width)
    p["b2"] = 0.01 * jax.random.normal(ks[5], (4 * width,), jnp.float32)
    p["w3"] = conv_w(ks[6], 4 * width, 4 * width)
    p["b3"] = 0.01 * jax.random.normal(ks[7], (4 * width,), jnp.float32)
    p["wl"] = (jax.random.normal(ks[8], (4 * width, num_classes), jnp.float32)
               / jnp.sqrt(4.0 * width))
    p["bl"] = 0.01 * jax.random.normal(ks[9], (num_classes,), jnp.float32)
    return p


# ---------------------------------- main ---------------------------------------

if __name__ == "__main__":
    key = jax.random.PRNGKey(0)
    k_params, k_x = jax.random.split(key)
    params = init_params(k_params, width=32, num_classes=10, num_channels=3)

    # PyTorch-convention NCHW input: batch=2, channels=3, spatial=16x16.
    x = jax.random.normal(k_x, (2, 3, 16, 16), jnp.float32)

    out = jax.block_until_ready(convnet_small_forward(x, params))
    ref = jax.block_until_ready(reference_forward(x, params))

    assert out.shape == (2, 10), out.shape
    max_err = float(jnp.max(jnp.abs(out - ref)))
    assert jnp.allclose(out, ref, atol=2e-4, rtol=2e-4), ("mismatch", max_err)

    print("KERNEL_OK")
</pallas_src>

<mosaic_0001>
module attributes {stable_mosaic.version = 11 : i64} {
  func.func @_convnet_kernel(%arg0: i32, %arg1: memref<512x128xf32, #tpu.memory_space<vmem>>, %arg2: memref<128x128xf32, #tpu.memory_space<vmem>>, %arg3: memref<1x128xf32, #tpu.memory_space<vmem>>, %arg4: memref<9x128x128xf32, #tpu.memory_space<vmem>>, %arg5: memref<1x128xf32, #tpu.memory_space<vmem>>, %arg6: memref<9x128x128xf32, #tpu.memory_space<vmem>>, %arg7: memref<1x128xf32, #tpu.memory_space<vmem>>, %arg8: memref<512x128xf32, #tpu.memory_space<vmem>>, %arg9: memref<1x128xf32, #tpu.memory_space<vmem>>, %arg10: memref<128x128xf32, #tpu.memory_space<vmem>>, %arg11: memref<1x128xf32, #tpu.memory_space<vmem>>, %arg12: memref<1x2x128xf32, #tpu.memory_space<vmem>>, %arg13: memref<2x16x16x128xf32, #tpu.memory_space<vmem>>) attributes {dimension_semantics = [#tpu.dimension_semantics<parallel>], iteration_bounds = array<i64: 1>, scalar_prefetch = 0 : i64, scratch_operands = 1 : i64, tpu.core_type = #tpu.core_type<tc>, window_params = [{transform_indices = @transform_0, window_bounds = array<i64: 512, 128>}, {pipeline_mode = #tpu.pipeline_mode<synchronous>, transform_indices = @transform_1, window_bounds = array<i64: 128, 128>}, {pipeline_mode = #tpu.pipeline_mode<synchronous>, transform_indices = @transform_2, window_bounds = array<i64: 1, 128>}, {pipeline_mode = #tpu.pipeline_mode<synchronous>, transform_indices = @transform_3, window_bounds = array<i64: 9, 128, 128>}, {pipeline_mode = #tpu.pipeline_mode<synchronous>, transform_indices = @transform_4, window_bounds = array<i64: 1, 128>}, {pipeline_mode = #tpu.pipeline_mode<synchronous>, transform_indices = @transform_5, window_bounds = array<i64: 9, 128, 128>}, {pipeline_mode = #tpu.pipeline_mode<synchronous>, transform_indices = @transform_6, window_bounds = array<i64: 1, 128>}, {pipeline_mode = #tpu.pipeline_mode<synchronous>, transform_indices = @transform_7, window_bounds = array<i64: 512, 128>}, {pipeline_mode = #tpu.pipeline_mode<synchronous>, transform_indices = @transform_8, window_bounds = array<i64: 1, 128>}, {pipeline_mode = #tpu.pipeline_mode<synchronous>, transform_indices = @transform_9, window_bounds = array<i64: 128, 128>}, {pipeline_mode = #tpu.pipeline_mode<synchronous>, transform_indices = @transform_10, window_bounds = array<i64: 1, 128>}, {transform_indices = @transform_11, window_bounds = array<i64: 1, 2, 128>}]} {
    %0 = tpu.iota {dimensions = array<i32: 0>} : vector<512x1xi32>
    %c15_i32 = arith.constant 15 : i32
    %1 = vector.broadcast %c15_i32 : i32 to vector<512x1xi32>
    %2 = arith.andi %0, %1 : vector<512x1xi32>
    %c255_i32 = arith.constant 255 : i32
    %3 = vector.broadcast %c255_i32 : i32 to vector<512x1xi32>
    %4 = arith.andi %0, %3 : vector<512x1xi32>
    %c0_i32 = arith.constant 0 : i32
    %5 = vector.broadcast %c0_i32 : i32 to vector<512x1xi32>
    %6 = arith.cmpi sgt, %2, %5 : vector<512x1xi32>
    %7 = arith.extui %6 : vector<512x1xi1> to vector<512x1xi32>
    %8 = arith.sitofp %7 : vector<512x1xi32> to vector<512x1xf32>
    %c15_i32_0 = arith.constant 15 : i32
    %9 = vector.broadcast %c15_i32_0 : i32 to vector<512x1xi32>
    %10 = arith.cmpi slt, %2, %9 : vector<512x1xi32>
    %11 = arith.extui %10 : vector<512x1xi1> to vector<512x1xi32>
    %12 = arith.sitofp %11 : vector<512x1xi32> to vector<512x1xf32>
    %c16_i32 = arith.constant 16 : i32
    %13 = vector.broadcast %c16_i32 : i32 to vector<512x1xi32>
    %14 = arith.cmpi sge, %4, %13 : vector<512x1xi32>
    %15 = arith.extui %14 : vector<512x1xi1> to vector<512x1xi32>
    %16 = arith.sitofp %15 : vector<512x1xi32> to vector<512x1xf32>
    %c240_i32 = arith.constant 240 : i32
    %17 = vector.broadcast %c240_i32 : i32 to vector<512x1xi32>
    %18 = arith.cmpi slt, %4, %17 : vector<512x1xi32>
    %19 = arith.extui %18 : vector<512x1xi1> to vector<512x1xi32>
    %20 = arith.sitofp %19 : vector<512x1xi32> to vector<512x1xf32>
    %c0 = arith.constant 0 : index
    %c0_1 = arith.constant 0 : index
    %21 = vector.load %arg1[%c0, %c0_1] : memref<512x128xf32, #tpu.memory_space<vmem>>, vector<512x128xf32>
    %c0_2 = arith.constant 0 : index
    %c0_3 = arith.constant 0 : index
    %22 = vector.load %arg2[%c0_2, %c0_3] : memref<128x128xf32, #tpu.memory_space<vmem>>, vector<128x128xf32>
    %cst = arith.constant dense<0.000000e+00> : vector<512x128xf32>
    %23 = tpu.matmul %21, %22, %cst {dimension_numbers = #tpu.dot_dimension_numbers<[1], [0], [0], [1], [0, 0, 1, 1], [], []>} : vector<512x128xf32>, vector<128x128xf32>, vector<512x128xf32> -> vector<512x128xf32>
    %c0_4 = arith.constant 0 : index
    %c0_5 = arith.constant 0 : index
    %24 = vector.load %arg3[%c0_4, %c0_5] : memref<1x128xf32, #tpu.memory_space<vmem>>, vector<1x128xf32>
    %25 = vector.broadcast %24 : vector<1x128xf32> to vector<512x128xf32>
    %26 = arith.addf %23, %25 : vector<512x128xf32>
    %cst_6 = arith.constant 0.000000e+00 : f32
    %27 = vector.broadcast %cst_6 : f32 to vector<512x128xf32>
    %28 = arith.maximumf %26, %27 : vector<512x128xf32>
    %c1_i32 = arith.constant 1 : i32
    %29 = tpu.dynamic_rotate %28 by %c1_i32 dim 0 : vector<512x128xf32>, i32 -> vector<512x128xf32>
    %30 = vector.broadcast %8 : vector<512x1xf32> to vector<512x128xf32>
    %31 = arith.mulf %29, %30 : vector<512x128xf32>
    %c511_i32 = arith.constant 511 : i32
    %32 = tpu.dynamic_rotate %28 by %c511_i32 dim 0 : vector<512x128xf32>, i32 -> vector<512x128xf32>
    %33 = vector.broadcast %12 : vector<512x1xf32> to vector<512x128xf32>
    %34 = arith.mulf %32, %33 : vector<512x128xf32>
    %c16_i32_7 = arith.constant 16 : i32
    %35 = tpu.dynamic_rotate %31 by %c16_i32_7 dim 0 : vector<512x128xf32>, i32 -> vector<512x128xf32>
    %c0_8 = arith.constant 0 : index
    %c0_9 = arith.constant 0 : index
    %c0_10 = arith.constant 0 : index
    %36 = vector.load %arg4[%c0_8, %c0_9, %c0_10] : memref<9x128x128xf32, #tpu.memory_space<vmem>>, vector<1x128x128xf32>
    %37 = vector.shape_cast %36 : vector<1x128x128xf32> to vector<128x128xf32>
    %cst_11 = arith.constant dense<0.000000e+00> : vector<512x128xf32>
    %38 = tpu.matmul %35, %37, %cst_11 {dimension_numbers = #tpu.dot_dimension_numbers<[1], [0], [0], [1], [0, 0, 1, 1], [], []>} : vector<512x128xf32>, vector<128x128xf32>, vector<512x128xf32> -> vector<512x128xf32>
    %c16_i32_12 = arith.constant 16 : i32
    %39 = tpu.dynamic_rotate %28 by %c16_i32_12 dim 0 : vector<512x128xf32>, i32 -> vector<512x128xf32>
    %c1 = arith.constant 1 : index
    %c0_13 = arith.constant 0 : index
    %c0_14 = arith.constant 0 : index
    %40 = vector.load %arg4[%c1, %c0_13, %c0_14] : memref<9x128x128xf32, #tpu.memory_space<vmem>>, vector<1x128x128xf32>
    %41 = vector.shape_cast %40 : vector<1x128x128xf32> to vector<128x128xf32>
    %cst_15 = arith.constant dense<0.000000e+00> : vector<512x128xf32>
    %42 = tpu.matmul %39, %41, %cst_15 {dimension_numbers = #tpu.dot_dimension_numbers<[1], [0], [0], [1], [0, 0, 1, 1], [], []>} : vector<512x128xf32>, vector<128x128xf32>, vector<512x128xf32> -> vector<512x128xf32>
    %43 = arith.addf %38, %42 : vector<512x128xf32>
    %c16_i32_16 = arith.constant 16 : i32
    %44 = tpu.dynamic_rotate %34 by %c16_i32_16 dim 0 : vector<512x128xf32>, i32 -> vector<512x128xf32>
    %c2 = arith.constant 2 : index
    %c0_17 = arith.constant 0 : index
    %c0_18 = arith.constant 0 : index
    %45 = vector.load %arg4[%c2, %c0_17, %c0_18] : memref<9x128x128xf32, #tpu.memory_space<vmem>>, vector<1x128x128xf32>
    %46 = vector.shape_cast %45 : vector<1x128x128xf32> to vector<128x128xf32>
    %cst_19 = arith.constant dense<0.000000e+00> : vector<512x128xf32>
    %47 = tpu.matmul %44, %46, %cst_19 {dimension_numbers = #tpu.dot_dimension_numbers<[1], [0], [0], [1], [0, 0, 1, 1], [], []>} : vector<512x128xf32>, vector<128x128xf32>, vector<512x128xf32> -> vector<512x128xf32>
    %48 = arith.addf %43, %47 : vector<512x128xf32>
    %49 = vector.broadcast %16 : vector<512x1xf32> to vector<512x128xf32>
    %50 = arith.mulf %48, %49 : vector<512x128xf32>
    %c3 = arith.constant 3 : index
    %c0_20 = arith.constant 0 : index
    %c0_21 = arith.constant 0 : index
    %51 = vector.load %arg4[%c3, %c0_20, %c0_21] : memref<9x128x128xf32, #tpu.memory_space<vmem>>, vector<1x128x128xf32>
    %52 = vector.shape_cast %51 : vector<1x128x128xf32> to vector<128x128xf32>
    %cst_22 = arith.constant dense<0.000000e+00> : vector<512x128xf32>
    %53 = tpu.matmul %31, %52, %cst_22 {dimension_numbers = #tpu.dot_dimension_numbers<[1], [0], [0], [1], [0, 0, 1, 1], [], []>} : vector<512x128xf32>, vector<128x128xf32>, vector<512x128xf32> -> vector<512x128xf32>
    %c4 = arith.constant 4 : index
    %c0_23 = arith.constant 0 : index
    %c0_24 = arith.constant 0 : index
    %54 = vector.load %arg4[%c4, %c0_23, %c0_24] : memref<9x128x128xf32, #tpu.memory_space<vmem>>, vector<1x128x128xf32>
    %55 = vector.shape_cast %54 : vector<1x128x128xf32> to vector<128x128xf32>
    %cst_25 = arith.constant dense<0.000000e+00> : vector<512x128xf32>
    %56 = tpu.matmul %28, %55, %cst_25 {dimension_numbers = #tpu.dot_dimension_numbers<[1], [0], [0], [1], [0, 0, 1, 1], [], []>} : vector<512x128xf32>, vector<128x128xf32>, vector<512x128xf32> -> vector<512x128xf32>
    %57 = arith.addf %53, %56 : vector<512x128xf32>
    %c5 = arith.constant 5 : index
    %c0_26 = arith.constant 0 : index
    %c0_27 = arith.constant 0 : index
    %58 = vector.load %arg4[%c5, %c0_26, %c0_27] : memref<9x128x128xf32, #tpu.memory_space<vmem>>, vector<1x128x128xf32>
    %59 = vector.shape_cast %58 : vector<1x128x128xf32> to vector<128x128xf32>
    %cst_28 = arith.constant dense<0.000000e+00> : vector<512x128xf32>
    %60 = tpu.matmul %34, %59, %cst_28 {dimension_numbers = #tpu.dot_dimension_numbers<[1], [0], [0], [1], [0, 0, 1, 1], [], []>} : vector<512x128xf32>, vector<128x128xf32>, vector<512x128xf32> -> vector<512x128xf32>
    %61 = arith.addf %57, %60 : vector<512x128xf32>
    %c496_i32 = arith.constant 496 : i32
    %62 = tpu.dynamic_rotate %31 by %c496_i32 dim 0 : vector<512x128xf32>, i32 -> vector<512x128xf32>
    %c6 = arith.constant 6 : index
    %c0_29 = arith.constant 0 : index
    %c0_30 = arith.constant 0 : index
    %63 = vector.load %arg4[%c6, %c0_29, %c0_30] : memref<9x128x128xf32, #tpu.memory_space<vmem>>, vector<1x128x128xf32>
    %64 = vector.shape_cast %63 : vector<1x128x128xf32> to vector<128x128xf32>
    %cst_31 = arith.constant dense<0.000000e+00> : vector<512x128xf32>
    %65 = tpu.matmul %62, %64, %cst_31 {dimension_numbers = #tpu.dot_dimension_numbers<[1], [0], [0], [1], [0, 0, 1, 1], [], []>} : vector<512x128xf32>, vector<128x128xf32>, vector<512x128xf32> -> vector<512x128xf32>
    %c496_i32_32 = arith.constant 496 : i32
    %66 = tpu.dynamic_rotate %28 by %c496_i32_32 dim 0 : vector<512x128xf32>, i32 -> vector<512x128xf32>
    %c7 = arith.constant 7 : index
    %c0_33 = arith.constant 0 : index
    %c0_34 = arith.constant 0 : index
    %67 = vector.load %arg4[%c7, %c0_33, %c0_34] : memref<9x128x128xf32, #tpu.memory_space<vmem>>, vector<1x128x128xf32>
    %68 = vector.shape_cast %67 : vector<1x128x128xf32> to vector<128x128xf32>
    %cst_35 = arith.constant dense<0.000000e+00> : vector<512x128xf32>
    %69 = tpu.matmul %66, %68, %cst_35 {dimension_numbers = #tpu.dot_dimension_numbers<[1], [0], [0], [1], [0, 0, 1, 1], [], []>} : vector<512x128xf32>, vector<128x128xf32>, vector<512x128xf32> -> vector<512x128xf32>
    %70 = arith.addf %65, %69 : vector<512x128xf32>
    %c496_i32_36 = arith.constant 496 : i32
    %71 = tpu.dynamic_rotate %34 by %c496_i32_36 dim 0 : vector<512x128xf32>, i32 -> vector<512x128xf32>
    %c8 = arith.constant 8 : index
    %c0_37 = arith.constant 0 : index
    %c0_38 = arith.constant 0 : index
    %72 = vector.load %arg4[%c8, %c0_37, %c0_38] : memref<9x128x128xf32, #tpu.memory_space<vmem>>, vector<1x128x128xf32>
    %73 = vector.shape_cast %72 : vector<1x128x128xf32> to vector<128x128xf32>
    %cst_39 = arith.constant dense<0.000000e+00> : vector<512x128xf32>
    %74 = tpu.matmul %71, %73, %cst_39 {dimension_numbers = #tpu.dot_dimension_numbers<[1], [0], [0], [1], [0, 0, 1, 1], [], []>} : vector<512x128xf32>, vector<128x128xf32>, vector<512x128xf32> -> vector<512x128xf32>
    %75 = arith.addf %70, %74 : vector<512x128xf32>
    %76 = vector.broadcast %20 : vector<512x1xf32> to vector<512x128xf32>
    %77 = arith.mulf %75, %76 : vector<512x128xf32>
    %78 = arith.addf %50, %61 : vector<512x128xf32>
    %79 = arith.addf %78, %77 : vector<512x128xf32>
    %c0_40 = arith.constant 0 : index
    %c0_41 = arith.constant 0 : index
    %80 = vector.load %arg5[%c0_40, %c0_41] : memref<1x128xf32, #tpu.memory_space<vmem>>, vector<1x128xf32>
    %81 = vector.broadcast %80 : vector<1x128xf32> to vector<512x128xf32>
    %82 = arith.addf %79, %81 : vector<512x128xf32>
    %cst_42 = arith.constant 0.000000e+00 : f32
    %83 = vector.broadcast %cst_42 : f32 to vector<512x128xf32>
    %84 = arith.maximumf %82, %83 : vector<512x128xf32>
    %c1_i32_43 = arith.constant 1 : i32
    %85 = tpu.dynamic_rotate %84 by %c1_i32_43 dim 0 : vector<512x128xf32>, i32 -> vector<512x128xf32>
    %86 = vector.broadcast %8 : vector<512x1xf32> to vector<512x128xf32>
    %87 = arith.mulf %85, %86 : vector<512x128xf32>
    %c511_i32_44 = arith.constant 511 : i32
    %88 = tpu.dynamic_rotate %84 by %c511_i32_44 dim 0 : vector<512x128xf32>, i32 -> vector<512x128xf32>
    %89 = vector.broadcast %12 : vector<512x1xf32> to vector<512x128xf32>
    %90 = arith.mulf %88, %89 : vector<512x128xf32>
    %c16_i32_45 = arith.constant 16 : i32
    %91 = tpu.dynamic_rotate %87 by %c16_i32_45 dim 0 : vector<512x128xf32>, i32 -> vector<512x128xf32>
    %c0_46 = arith.constant 0 : index
    %c0_47 = arith.constant 0 : index
    %c0_48 = arith.constant 0 : index
    %92 = vector.load %arg6[%c0_46, %c0_47, %c0_48] : memref<9x128x128xf32, #tpu.memory_space<vmem>>, vector<1x128x128xf32>
    %93 = vector.shape_cast %92 : vector<1x128x128xf32> to vector<128x128xf32>
    %cst_49 = arith.constant dense<0.000000e+00> : vector<512x128xf32>
    %94 = tpu.matmul %91, %93, %cst_49 {dimension_numbers = #tpu.dot_dimension_numbers<[1], [0], [0], [1], [0, 0, 1, 1], [], []>} : vector<512x128xf32>, vector<128x128xf32>, vector<512x128xf32> -> vector<512x128xf32>
    %c16_i32_50 = arith.constant 16 : i32
    %95 = tpu.dynamic_rotate %84 by %c16_i32_50 dim 0 : vector<512x128xf32>, i32 -> vector<512x128xf32>
    %c1_51 = arith.constant 1 : index
    %c0_52 = arith.constant 0 : index
    %c0_53 = arith.constant 0 : index
    %96 = vector.load %arg6[%c1_51, %c0_52, %c0_53] : memref<9x128x128xf32, #tpu.memory_space<vmem>>, vector<1x128x128xf32>
    %97 = vector.shape_cast %96 : vector<1x128x128xf32> to vector<128x128xf32>
    %cst_54 = arith.constant dense<0.000000e+00> : vector<512x128xf32>
    %98 = tpu.matmul %95, %97, %cst_54 {dimension_numbers = #tpu.dot_dimension_numbers<[1], [0], [0], [1], [0, 0, 1, 1], [], []>} : vector<512x128xf32>, vector<128x128xf32>, vector<512x128xf32> -> vector<512x128xf32>
    %99 = arith.addf %94, %98 : vector<512x128xf32>
    %c16_i32_55 = arith.constant 16 : i32
    %100 = tpu.dynamic_rotate %90 by %c16_i32_55 dim 0 : vector<512x128xf32>, i32 -> vector<512x128xf32>
    %c2_56 = arith.constant 2 : index
    %c0_57 = arith.constant 0 : index
    %c0_58 = arith.constant 0 : index
    %101 = vector.load %arg6[%c2_56, %c0_57, %c0_58] : memref<9x128x128xf32, #tpu.memory_space<vmem>>, vector<1x128x128xf32>
    %102 = vector.shape_cast %101 : vector<1x128x128xf32> to vector<128x128xf32>
    %cst_59 = arith.constant dense<0.000000e+00> : vector<512x128xf32>
    %103 = tpu.matmul %100, %102, %cst_59 {dimension_numbers = #tpu.dot_dimension_numbers<[1], [0], [0], [1], [0, 0, 1, 1], [], []>} : vector<512x128xf32>, vector<128x128xf32>, vector<512x128xf32> -> vector<512x128xf32>
    %104 = arith.addf %99, %103 : vector<512x128xf32>
    %105 = vector.broadcast %16 : vector<512x1xf32> to vector<512x128xf32>
    %106 = arith.mulf %104, %105 : vector<512x128xf32>
    %c3_60 = arith.constant 3 : index
    %c0_61 = arith.constant 0 : index
    %c0_62 = arith.constant 0 : index
    %107 = vector.load %arg6[%c3_60, %c0_61, %c0_62] : memref<9x128x128xf32, #tpu.memory_space<vmem>>, vector<1x128x128xf32>
    %108 = vector.shape_cast %107 : vector<1x128x128xf32> to vector<128x128xf32>
    %cst_63 = arith.constant dense<0.000000e+00> : vector<512x128xf32>
    %109 = tpu.matmul %87, %108, %cst_63 {dimension_numbers = #tpu.dot_dimension_numbers<[1], [0], [0], [1], [0, 0, 1, 1], [], []>} : vector<512x128xf32>, vector<128x128xf32>, vector<512x128xf32> -> vector<512x128xf32>
    %c4_64 = arith.constant 4 : index
    %c0_65 = arith.constant 0 : index
    %c0_66 = arith.constant 0 : index
    %110 = vector.load %arg6[%c4_64, %c0_65, %c0_66] : memref<9x128x128xf32, #tpu.memory_space<vmem>>, vector<1x128x128xf32>
    %111 = vector.shape_cast %110 : vector<1x128x128xf32> to vector<128x128xf32>
    %cst_67 = arith.constant dense<0.000000e+00> : vector<512x128xf32>
    %112 = tpu.matmul %84, %111, %cst_67 {dimension_numbers = #tpu.dot_dimension_numbers<[1], [0], [0], [1], [0, 0, 1, 1], [], []>} : vector<512x128xf32>, vector<128x128xf32>, vector<512x128xf32> -> vector<512x128xf32>
    %113 = arith.addf %109, %112 : vector<512x128xf32>
    %c5_68 = arith.constant 5 : index
    %c0_69 = arith.constant 0 : index
    %c0_70 = arith.constant 0 : index
    %114 = vector.load %arg6[%c5_68, %c0_69, %c0_70] : memref<9x128x128xf32, #tpu.memory_space<vmem>>, vector<1x128x128xf32>
    %115 = vector.shape_cast %114 : vector<1x128x128xf32> to vector<128x128xf32>
    %cst_71 = arith.constant dense<0.000000e+00> : vector<512x128xf32>
    %116 = tpu.matmul %90, %115, %cst_71 {dimension_numbers = #tpu.dot_dimension_numbers<[1], [0], [0], [1], [0, 0, 1, 1], [], []>} : vector<512x128xf32>, vector<128x128xf32>, vector<512x128xf32> -> vector<512x128xf32>
    %117 = arith.addf %113, %116 : vector<512x128xf32>
    %c496_i32_72 = arith.constant 496 : i32
    %118 = tpu.dynamic_rotate %87 by %c496_i32_72 dim 0 : vector<512x128xf32>, i32 -> vector<512x128xf32>
    %c6_73 = arith.constant 6 : index
    %c0_74 = arith.constant 0 : index
    %c0_75 = arith.constant 0 : index
    %119 = vector.load %arg6[%c6_73, %c0_74, %c0_75] : memref<9x128x128xf32, #tpu.memory_space<vmem>>, vector<1x128x128xf32>
    %120 = vector.shape_cast %119 : vector<1x128x128xf32> to vector<128x128xf32>
    %cst_76 = arith.constant dense<0.000000e+00> : vector<512x128xf32>
    %121 = tpu.matmul %118, %120, %cst_76 {dimension_numbers = #tpu.dot_dimension_numbers<[1], [0], [0], [1], [0, 0, 1, 1], [], []>} : vector<512x128xf32>, vector<128x128xf32>, vector<512x128xf32> -> vector<512x128xf32>
    %c496_i32_77 = arith.constant 496 : i32
    %122 = tpu.dynamic_rotate %84 by %c496_i32_77 dim 0 : vector<512x128xf32>, i32 -> vector<512x128xf32>
    %c7_78 = arith.constant 7 : index
    %c0_79 = arith.constant 0 : index
    %c0_80 = arith.constant 0 : index
    %123 = vector.load %arg6[%c7_78, %c0_79, %c0_80] : memref<9x128x128xf32, #tpu.memory_space<vmem>>, vector<1x128x128xf32>
    %124 = vector.shape_cast %123 : vector<1x128x128xf32> to vector<128x128xf32>
    %cst_81 = arith.constant dense<0.000000e+00> : vector<512x128xf32>
    %125 = tpu.matmul %122, %124, %cst_81 {dimension_numbers = #tpu.dot_dimension_numbers<[1], [0], [0], [1], [0, 0, 1, 1], [], []>} : vector<512x128xf32>, vector<128x128xf32>, vector<512x128xf32> -> vector<512x128xf32>
    %126 = arith.addf %121, %125 : vector<512x128xf32>
    %c496_i32_82 = arith.constant 496 : i32
    %127 = tpu.dynamic_rotate %90 by %c496_i32_82 dim 0 : vector<512x128xf32>, i32 -> vector<512x128xf32>
    %c8_83 = arith.constant 8 : index
    %c0_84 = arith.constant 0 : index
    %c0_85 = arith.constant 0 : index
    %128 = vector.load %arg6[%c8_83, %c0_84, %c0_85] : memref<9x128x128xf32, #tpu.memory_space<vmem>>, vector<1x128x128xf32>
    %129 = vector.shape_cast %128 : vector<1x128x128xf32> to vector<128x128xf32>
    %cst_86 = arith.constant dense<0.000000e+00> : vector<512x128xf32>
    %130 = tpu.matmul %127, %129, %cst_86 {dimension_numbers = #tpu.dot_dimension_numbers<[1], [0], [0], [1], [0, 0, 1, 1], [], []>} : vector<512x128xf32>, vector<128x128xf32>, vector<512x128xf32> -> vector<512x128xf32>
    %131 = arith.addf %126, %130 : vector<512x128xf32>
    %132 = vector.broadcast %20 : vector<512x1xf32> to vector<512x128xf32>
    %133 = arith.mulf %131, %132 : vector<512x128xf32>
    %134 = arith.addf %106, %117 : vector<512x128xf32>
    %135 = arith.addf %134, %133 : vector<512x128xf32>
    %c0_87 = arith.constant 0 : index
    %c0_88 = arith.constant 0 : index
    %136 = vector.load %arg7[%c0_87, %c0_88] : memref<1x128xf32, #tpu.memory_space<vmem>>, vector<1x128xf32>
    %137 = vector.broadcast %136 : vector<1x128xf32> to vector<512x128xf32>
    %138 = arith.addf %135, %137 : vector<512x128xf32>
    %cst_89 = arith.constant 0.000000e+00 : f32
    %139 = vector.broadcast %cst_89 : f32 to vector<512x128xf32>
    %140 = arith.maximumf %138, %139 : vector<512x128xf32>
    %141 = vector.shape_cast %140 : vector<512x128xf32> to vector<2x16x16x128xf32>
    %c0_90 = arith.constant 0 : index
    %c0_91 = arith.constant 0 : index
    %c0_92 = arith.constant 0 : index
    %c0_93 = arith.constant 0 : index
    %142 = vector.load %arg13[%c0_90, %c0_91, %c0_92, %c0_93] : memref<2x16x16x128xf32, #tpu.memory_space<vmem>>, vector<2x16x16x128xf32>
    tpu.vector_store %arg13[%c0_90, %c0_91, %c0_92, %c0_93], %141 {strides = array<i32>} : memref<2x16x16x128xf32, #tpu.memory_space<vmem>>, vector<2x16x16x128xf32>,
    %c0_94 = arith.constant 0 : index
    %c0_95 = arith.constant 0 : index
    %c0_96 = arith.constant 0 : index
    %c0_97 = arith.constant 0 : index
    %143 = vector.load %arg13[%c0_94, %c0_95, %c0_96, %c0_97] : memref<2x16x16x128xf32, #tpu.memory_space<vmem>>, vector<2x1x16x128xf32>
    %144 = vector.shape_cast %143 : vector<2x1x16x128xf32> to vector<2x16x128xf32>
    %c0_98 = arith.constant 0 : index
    %c2_99 = arith.constant 2 : index
    %c0_100 = arith.constant 0 : index
    %c0_101 = arith.constant 0 : index
    %145 = vector.load %arg13[%c0_98, %c2_99, %c0_100, %c0_101] : memref<2x16x16x128xf32, #tpu.memory_space<vmem>>, vector<2x1x16x128xf32>
    %146 = vector.shape_cast %145 : vector<2x1x16x128xf32> to vector<2x16x128xf32>
    %147 = arith.maximumf %144, %146 : vector<2x16x128xf32>
    %c0_102 = arith.constant 0 : index
    %c4_103 = arith.constant 4 : index
    %c0_104 = arith.constant 0 : index
    %c0_105 = arith.constant 0 : index
    %148 = vector.load %arg13[%c0_102, %c4_103, %c0_104, %c0_105] : memref<2x16x16x128xf32, #tpu.memory_space<vmem>>, vector<2x1x16x128xf32>
    %149 = vector.shape_cast %148 : vector<2x1x16x128xf32> to vector<2x16x128xf32>
    %150 = arith.maximumf %147, %149 : vector<2x16x128xf32>
    %151 = vector.extract_strided_slice %150 {offsets = [0, 0, 0], sizes = [2, 1, 128], strides = [1, 1, 1]} : vector<2x16x128xf32> to vector<2x1x128xf32>
    %152 = vector.shape_cast %151 : vector<2x1x128xf32> to vector<2x128xf32>
    %153 = vector.extract_strided_slice %150 {offsets = [0, 2, 0], sizes = [2, 1, 128], strides = [1, 1, 1]} : vector<2x16x128xf32> to vector<2x1x128xf32>
    %154 = vector.shape_cast %153 : vector<2x1x128xf32> to vector<2x128xf32>
    %155 = arith.maximumf %152, %154 : vector<2x128xf32>
    %156 = vector.extract_strided_slice %150 {offsets = [0, 4, 0], sizes = [2, 1, 128], strides = [1, 1, 1]} : vector<2x16x128xf32> to vector<2x1x128xf32>
    %157 = vector.shape_cast %156 : vector<2x1x128xf32> to vector<2x128xf32>
    %158 = arith.maximumf %155, %157 : vector<2x128xf32>
    %159 = vector.extract_strided_slice %150 {offsets = [0, 6, 0], sizes = [2, 1, 128], strides = [1, 1, 1]} : vector<2x16x128xf32> to vector<2x1x128xf32>
    %160 = vector.shape_cast %159 : vector<2x1x128xf32> to vector<2x128xf32>
    %161 = vector.extract_strided_slice %150 {offsets = [0, 8, 0], sizes = [2, 1, 128], strides = [1, 1, 1]} : vector<2x16x128xf32> to vector<2x1x128xf32>
    %162 = vector.shape_cast %161 : vector<2x1x128xf32> to vector<2x128xf32>
    %163 = arith.maximumf %160, %162 : vector<2x128xf32>
    %164 = vector.extract_strided_slice %150 {offsets = [0, 10, 0], sizes = [2, 1, 128], strides = [1, 1, 1]} : vector<2x16x128xf32> to vector<2x1x128xf32>
    %165 = vector.shape_cast %164 : vector<2x1x128xf32> to vector<2x128xf32>
    %166 = arith.maximumf %163, %165 : vector<2x128xf32>
    %c0_106 = arith.constant 0 : index
    %c6_107 = arith.constant 6 : index
    %c0_108 = arith.constant 0 : index
    %c0_109 = arith.constant 0 : index
    %167 = vector.load %arg13[%c0_106, %c6_107, %c0_108, %c0_109] : memref<2x16x16x128xf32, #tpu.memory_space<vmem>>, vector<2x1x16x128xf32>
    %168 = vector.shape_cast %167 : vector<2x1x16x128xf32> to vector<2x16x128xf32>
    %c0_110 = arith.constant 0 : index
    %c8_111 = arith.constant 8 : index
    %c0_112 = arith.constant 0 : index
    %c0_113 = arith.constant 0 : index
    %169 = vector.load %arg13[%c0_110, %c8_111, %c0_112, %c0_113] : memref<2x16x16x128xf32, #tpu.memory_space<vmem>>, vector<2x1x16x128xf32>
    %170 = vector.shape_cast %169 : vector<2x1x16x128xf32> to vector<2x16x128xf32>
    %171 = arith.maximumf %168, %170 : vector<2x16x128xf32>
    %c0_114 = arith.constant 0 : index
    %c10 = arith.constant 10 : index
    %c0_115 = arith.constant 0 : index
    %c0_116 = arith.constant 0 : index
    %172 = vector.load %arg13[%c0_114, %c10, %c0_115, %c0_116] : memref<2x16x16x128xf32, #tpu.memory_space<vmem>>, vector<2x1x16x128xf32>
    %173 = vector.shape_cast %172 : vector<2x1x16x128xf32> to vector<2x16x128xf32>
    %174 = arith.maximumf %171, %173 : vector<2x16x128xf32>
    %175 = vector.extract_strided_slice %174 {offsets = [0, 0, 0], sizes = [2, 1, 128], strides = [1, 1, 1]} : vector<2x16x128xf32> to vector<2x1x128xf32>
    %176 = vector.shape_cast %175 : vector<2x1x128xf32> to vector<2x128xf32>
    %177 = vector.extract_strided_slice %174 {offsets = [0, 2, 0], sizes = [2, 1, 128], strides = [1, 1, 1]} : vector<2x16x128xf32> to vector<2x1x128xf32>
    %178 = vector.shape_cast %177 : vector<2x1x128xf32> to vector<2x128xf32>
    %179 = arith.maximumf %176, %178 : vector<2x128xf32>
    %180 = vector.extract_strided_slice %174 {offsets = [0, 4, 0], sizes = [2, 1, 128], strides = [1, 1, 1]} : vector<2x16x128xf32> to vector<2x1x128xf32>
    %181 = vector.shape_cast %180 : vector<2x1x128xf32> to vector<2x128xf32>
    %182 = arith.maximumf %179, %181 : vector<2x128xf32>
    %183 = vector.extract_strided_slice %174 {offsets = [0, 6, 0], sizes = [2, 1, 128], strides = [1, 1, 1]} : vector<2x16x128xf32> to vector<2x1x128xf32>
    %184 = vector.shape_cast %183 : vector<2x1x128xf32> to vector<2x128xf32>
    %185 = vector.extract_strided_slice %174 {offsets = [0, 8, 0], sizes = [2, 1, 128], strides = [1, 1, 1]} : vector<2x16x128xf32> to vector<2x1x128xf32>
    %186 = vector.shape_cast %185 : vector<2x1x128xf32> to vector<2x128xf32>
    %187 = arith.maximumf %184, %186 : vector<2x128xf32>
    %188 = vector.extract_strided_slice %174 {offsets = [0, 10, 0], sizes = [2, 1, 128], strides = [1, 1, 1]} : vector<2x16x128xf32> to vector<2x1x128xf32>
    %189 = vector.shape_cast %188 : vector<2x1x128xf32> to vector<2x128xf32>
    %190 = arith.maximumf %187, %189 : vector<2x128xf32>
    %191 = tpu.concatenate %158, %166, %182, %190 in 1 : vector<2x128xf32>, vector<2x128xf32>, vector<2x128xf32>, vector<2x128xf32> -> vector<2x512xf32>
    %c0_117 = arith.constant 0 : index
    %c0_118 = arith.constant 0 : index
    %192 = vector.load %arg8[%c0_117, %c0_118] : memref<512x128xf32, #tpu.memory_space<vmem>>, vector<512x128xf32>
    %cst_119 = arith.constant dense<0.000000e+00> : vector<2x128xf32>
    %193 = tpu.matmul %191, %192, %cst_119 {dimension_numbers = #tpu.dot_dimension_numbers<[1], [0], [0], [1], [0, 0, 1, 1], [], []>} : vector<2x512xf32>, vector<512x128xf32>, vector<2x128xf32> -> vector<2x128xf32>
    %c0_120 = arith.constant 0 : index
    %c0_121 = arith.constant 0 : index
    %194 = vector.load %arg9[%c0_120, %c0_121] : memref<1x128xf32, #tpu.memory_space<vmem>>, vector<1x128xf32>
    %195 = vector.broadcast %194 : vector<1x128xf32> to vector<2x128xf32>
    %196 = arith.addf %193, %195 : vector<2x128xf32>
    %cst_122 = arith.constant 0.000000e+00 : f32
    %197 = vector.broadcast %cst_122 : f32 to vector<2x128xf32>
    %198 = arith.maximumf %196, %197 : vector<2x128xf32>
    %c0_123 = arith.constant 0 : index
    %c0_124 = arith.constant 0 : index
    %199 = vector.load %arg10[%c0_123, %c0_124] : memref<128x128xf32, #tpu.memory_space<vmem>>, vector<128x128xf32>
    %cst_125 = arith.constant dense<0.000000e+00> : vector<2x128xf32>
    %200 = tpu.matmul %198, %199, %cst_125 {dimension_numbers = #tpu.dot_dimension_numbers<[1], [0], [0], [1], [0, 0, 1, 1], [], []>} : vector<2x128xf32>, vector<128x128xf32>, vector<2x128xf32> -> vector<2x128xf32>
    %c0_126 = arith.constant 0 : index
    %c0_127 = arith.constant 0 : index
    %201 = vector.load %arg11[%c0_126, %c0_127] : memref<1x128xf32, #tpu.memory_space<vmem>>, vector<1x128xf32>
    %202 = vector.broadcast %201 : vector<1x128xf32> to vector<2x128xf32>
    %203 = arith.addf %200, %202 : vector<2x128xf32>
    %c0_128 = arith.constant 0 : index
    %c0_129 = arith.constant 0 : index
    %c0_130 = arith.constant 0 : index
    %204 = vector.load %arg12[%c0_128, %c0_129, %c0_130] : memref<1x2x128xf32, #tpu.memory_space<vmem>>, vector<1x2x128xf32>
    %205 = vector.shape_cast %204 : vector<1x2x128xf32> to vector<2x128xf32>
    %206 = vector.shape_cast %203 : vector<2x128xf32> to vector<1x2x128xf32>
    tpu.vector_store %arg12[%c0_128, %c0_129, %c0_130], %206 {strides = array<i32>} : memref<1x2x128xf32, #tpu.memory_space<vmem>>, vector<1x2x128xf32>,
    return
  }
  func.func @transform_0(%arg0: i32) -> (i32, i32) {
    %c0_i32 = arith.constant 0 : i32
    %c0_i32_0 = arith.constant 0 : i32
    return %arg0, %c0_i32 : i32, i32
  }
  func.func @transform_1(%arg0: i32) -> (i32, i32) {
    %c0_i32 = arith.constant 0 : i32
    %c0_i32_0 = arith.constant 0 : i32
    %c0_i32_1 = arith.constant 0 : i32
    return %c0_i32, %c0_i32_0 : i32, i32
  }
  func.func @transform_2(%arg0: i32) -> (i32, i32) {
    %c0_i32 = arith.constant 0 : i32
    %c0_i32_0 = arith.constant 0 : i32
    %c0_i32_1 = arith.constant 0 : i32
    return %c0_i32, %c0_i32_0 : i32, i32
  }
  func.func @transform_3(%arg0: i32) -> (i32, i32, i32) {
    %c0_i32 = arith.constant 0 : i32
    %c0_i32_0 = arith.constant 0 : i32
    %c0_i32_1 = arith.constant 0 : i32
    %c0_i32_2 = arith.constant 0 : i32
    return %c0_i32, %c0_i32_0, %c0_i32_1 : i32, i32, i32
  }
  func.func @transform_4(%arg0: i32) -> (i32, i32) {
    %c0_i32 = arith.constant 0 : i32
    %c0_i32_0 = arith.constant 0 : i32
    %c0_i32_1 = arith.constant 0 : i32
    return %c0_i32, %c0_i32_0 : i32, i32
  }
  func.func @transform_5(%arg0: i32) -> (i32, i32, i32) {
    %c0_i32 = arith.constant 0 : i32
    %c0_i32_0 = arith.constant 0 : i32
    %c0_i32_1 = arith.constant 0 : i32
    %c0_i32_2 = arith.constant 0 : i32
    return %c0_i32, %c0_i32_0, %c0_i32_1 : i32, i32, i32
  }
  func.func @transform_6(%arg0: i32) -> (i32, i32) {
    %c0_i32 = arith.constant 0 : i32
    %c0_i32_0 = arith.constant 0 : i32
    %c0_i32_1 = arith.constant 0 : i32
    return %c0_i32, %c0_i32_0 : i32, i32
  }
  func.func @transform_7(%arg0: i32) -> (i32, i32) {
    %c0_i32 = arith.constant 0 : i32
    %c0_i32_0 = arith.constant 0 : i32
    %c0_i32_1 = arith.constant 0 : i32
    return %c0_i32, %c0_i32_0 : i32, i32
  }
  func.func @transform_8(%arg0: i32) -> (i32, i32) {
    %c0_i32 = arith.constant 0 : i32
    %c0_i32_0 = arith.constant 0 : i32
    %c0_i32_1 = arith.constant 0 : i32
    return %c0_i32, %c0_i32_0 : i32, i32
  }
  func.func @transform_9(%arg0: i32) -> (i32, i32) {
    %c0_i32 = arith.constant 0 : i32
    %c0_i32_0 = arith.constant 0 : i32
    %c0_i32_1 = arith.constant 0 : i32
    return %c0_i32, %c0_i32_0 : i32, i32
  }
  func.func @transform_10(%arg0: i32) -> (i32, i32) {
    %c0_i32 = arith.constant 0 : i32
    %c0_i32_0 = arith.constant 0 : i32
    %c0_i32_1 = arith.constant 0 : i32
    return %c0_i32, %c0_i32_0 : i32, i32
  }
  func.func @transform_11(%arg0: i32) -> (i32, i32, i32) {
    %c0_i32 = arith.constant 0 : i32
    %c0_i32_0 = arith.constant 0 : i32
    %c0_i32_1 = arith.constant 0 : i32
    return %arg0, %c0_i32, %c0_i32_0 : i32, i32, i32
  }
}

</mosaic_0001>

<bundles_post_ra>
// kernel: convnet_small_forward.1
= control target key start
LH: loop header
LB: loop body
LE: loop exit
PB: predicated region body
PF: predicated region fallthrough
CT: control target
= control target key end

     0   :  { %s22201_s0 = inlined_call_operand.vmem [shape: f32[512,128], index: 0, kind: input, shape index: {}]   ;;  %s22202_s1 = inlined_call_operand.vmem [shape: f32[128,128], index: 1, kind: input, shape index: {}]   ;;  %s22203_s2 = inlined_call_operand.vmem [shape: f32[1,128], index: 2, kind: input, shape index: {}]   ;;  %s22204_s3 = inlined_call_operand.vmem [shape: f32[9,128,128], index: 3, kind: input, shape index: {}]   ;;  %s22205_s4 = inlined_call_operand.vmem [shape: f32[1,128], index: 4, kind: input, shape index: {}]   ;;  %s22206_s5 = inlined_call_operand.vmem [shape: f32[9,128,128], index: 5, kind: input, shape index: {}]   ;;  %s22207_s6 = inlined_call_operand.vmem [shape: f32[1,128], index: 6, kind: input, shape index: {}]   ;;  %s22208_s7 = inlined_call_operand.vmem [shape: f32[512,128], index: 7, kind: input, shape index: {}]   ;;  %s22209_s8 = inlined_call_operand.vmem [shape: f32[1,128], index: 8, kind: input, shape index: {}]   ;;  %s22210_s9 = inlined_call_operand.vmem [shape: f32[128,128], index: 9, kind: input, shape index: {}]   ;;  %s22211_s10 = inlined_call_operand.vmem [shape: f32[1,128], index: 10, kind: input, shape index: {}]   ;;  %s22212_s11 = inlined_call_operand.hbm [shape: f32[1,2,128], index: 11, kind: output, shape index: {}]  }
   0x1   :  { %v1064_v0 = vld [vmem:[%s22202_s1] sm:$0xff]  ;;  %v1065_v1 = vld [vmem:[%s22202_s1 + $0x8] sm:$0xff]  ;;  %v1066_v2 = vld [vmem:[%s22202_s1 + $0x10] sm:$0xff] }
   0x2   :  { %v15613_v3 = vpack.c.bf16 %v1065_v1, %v1064_v0  ;;  %v1067_v4 = vld [vmem:[%s22202_s1 + $0x18] sm:$0xff]  ;;  %v1068_v6 = vld [vmem:[%s22202_s1 + $0x20] sm:$0xff]  ;;  %v1069_v7 = vld [vmem:[%s22202_s1 + $0x28] sm:$0xff] }
   0x3   :  { %v15617_v5 = vpack.c.bf16 %v1067_v4, %v1066_v2  ;;  %v15621_v8 = vpack.c.bf16 %v1069_v7, %v1068_v6  ;;  %v1000_v9 = vld [vmem:[%s22201_s0] sm:$0xff]  ;;  %v1070_v10 = vld [vmem:[%s22202_s1 + $0x30] sm:$0xff]  ;;  %v1071_v11 = vld [vmem:[%s22202_s1 + $0x38] sm:$0xff] }
   0x4   :  { %15614 = vmatprep.subr.bf16.mxu0 %v15613_v3  ;;  %13178 = vmatprep.mubr.f32.mxu0 %v1000_v9  ;;  %v15625_v12 = vpack.c.bf16 %v1071_v11, %v1070_v10  ;;  %v1072_v13 = vld [vmem:[%s22202_s1 + $0x40] sm:$0xff]  ;;  %v1073_v14 = vld [vmem:[%s22202_s1 + $0x48] sm:$0xff]  ;;  %v1074_v16 = vld [vmem:[%s22202_s1 + $0x50] sm:$0xff] }
   0x5   :  { %15616 = vmatpush3.bf16.msra.mxu0 %v15613_v3  ;;  %v15629_v15 = vpack.c.bf16 %v1073_v14, %v1072_v13  ;;  %v1075_v17 = vld [vmem:[%s22202_s1 + $0x58] sm:$0xff]  ;;  %v1076_v19 = vld [vmem:[%s22202_s1 + $0x60] sm:$0xff]  ;;  %v1077_v20 = vld [vmem:[%s22202_s1 + $0x68] sm:$0xff] }
   0x6   :  { %15618 = vmatprep.subr.bf16.mxu0 %v15617_v5  ;;  %v15633_v18 = vpack.c.bf16 %v1075_v17, %v1074_v16  ;;  %v15637_v21 = vpack.c.bf16 %v1077_v20, %v1076_v19  ;;  %v1078_v22 = vld [vmem:[%s22202_s1 + $0x70] sm:$0xff]  ;;  %v1079_v23 = vld [vmem:[%s22202_s1 + $0x78] sm:$0xff] }
   0x7   :  { %v15641_v24 = vpack.c.bf16 %v1079_v23, %v1078_v22 }
   0x9   :  { %15620 = vmatpush3.bf16.msra.mxu0 %v15617_v5 }
   0xa   :  { %15622 = vmatprep.subr.bf16.mxu0 %v15621_v8 }
   0xd   :  { %15624 = vmatpush3.bf16.msra.mxu0 %v15621_v8 }
   0xe   :  { %15626 = vmatprep.subr.bf16.mxu0 %v15625_v12 }
  0x11   :  { %15628 = vmatpush3.bf16.msra.mxu0 %v15625_v12 }
  0x12   :  { %15630 = vmatprep.subr.bf16.mxu0 %v15629_v15 }
  0x15   :  { %15632 = vmatpush3.bf16.msra.mxu0 %v15629_v15 }
  0x16   :  { %15634 = vmatprep.subr.bf16.mxu0 %v15633_v18 }
  0x19   :  { %15636 = vmatpush3.bf16.msra.mxu0 %v15633_v18 }
  0x1a   :  { %15638 = vmatprep.subr.bf16.mxu0 %v15637_v21 }
  0x1b   :  { %16 = vsyncpa [#allocation4], 0  ;;  %v1001_v25 = vld [vmem:[%s22201_s0 + $0x8] sm:$0xff]  ;;  %v1002_v26 = vld [vmem:[%s22201_s0 + $0x10] sm:$0xff]  ;;  %s17040_s13 = smov [#allocation3]  }
  0x1c   :  { %v1003_v27 = vld [vmem:[%s22201_s0 + $0x18] sm:$0xff]  ;;  %v1004_v28 = vld [vmem:[%s22201_s0 + $0x20] sm:$0xff]  ;;  %v1005_v29 = vld [vmem:[%s22201_s0 + $0x28] sm:$0xff]  ;;  %s11206_s14 = sshll.u32 %s17040_s13, 4  ;;  %s11207_s14 = int_to_ptr.vmem [resolvable:$true] %s11206_s14 }
  0x1d   :  { %15640 = vmatpush3.bf16.msra.mxu0 %v15637_v21  ;;  %v1006_v30 = vld [vmem:[%s22201_s0 + $0x30] sm:$0xff]  ;;  %v1007_v31 = vld [vmem:[%s22201_s0 + $0x38] sm:$0xff]  ;;  %v1008_v32 = vld [vmem:[%s22201_s0 + $0x40] sm:$0xff]  ;;  %s17013_s15 = scalar_lea.vmem %s11207_s14, 32  ;;  %p17018_p1 = scmp.lt.s32.totalorder %s11207_s14, %s11207_s14 }
  0x1e   :  { %15642 = vmatprep.subr.bf16.mxu0 %v15641_v24  ;;  %v1009_v33 = vld [vmem:[%s22201_s0 + $0x48] sm:$0xff]  ;;  %v1010_v34 = vld [vmem:[%s22201_s0 + $0x50] sm:$0xff]  ;;  %v1011_v35 = vld [vmem:[%s22201_s0 + $0x58] sm:$0xff]  ;;  %p17014_p0 = scmp.ne.s32.totalorder %s11207_s14, %s17013_s15  ;;  %p17019_p2 = scmp.lt.s32.totalorder %s17013_s15, %s17013_s15 }
  0x1f   :  { %v1012_v36 = vld [vmem:[%s22201_s0 + $0x60] sm:$0xff]  ;;  %v1013_v37 = vld [vmem:[%s22201_s0 + $0x68] sm:$0xff]  ;;  %v1014_v38 = vld [vmem:[%s22201_s0 + $0x70] sm:$0xff] }
  0x20   :  { %v1015_v39 = vld [vmem:[%s22201_s0 + $0x78] sm:$0xff]  ;;  %v1016_v40 = vld [vmem:[%s22201_s0 + $0x80] sm:$0xff]  ;;  %v1017_v41 = vld [vmem:[%s22201_s0 + $0x88] sm:$0xff]  ;;  %p17020_p3 = por %p17019_p2, %p17018_p1 }
  0x21   :  { %15644 = vmatpush3.bf16.msra.mxu0 %v15641_v24  ;;  %v1018_v42 = vld [vmem:[%s22201_s0 + $0x90] sm:$0xff]  ;;  %v1019_v43 = vld [vmem:[%s22201_s0 + $0x98] sm:$0xff]  ;;  %v1020_v44 = vld [vmem:[%s22201_s0 + $0xa0] sm:$0xff] }
  0x22   :  { %v1021_v45 = vld [vmem:[%s22201_s0 + $0xa8] sm:$0xff]  ;;  %v1022_v46 = vld [vmem:[%s22201_s0 + $0xb0] sm:$0xff]  ;;  %v1023_v47 = vld [vmem:[%s22201_s0 + $0xb8] sm:$0xff]  ;;  %p17021_p4 = pnand %p17020_p3, %p17014_p0 }
  0x23   :  { %v1024_v48 = vld [vmem:[%s22201_s0 + $0xc0] sm:$0xff]  ;;  %v1025_v49 = vld [vmem:[%s22201_s0 + $0xc8] sm:$0xff]  ;;  %v1026_v50 = vld [vmem:[%s22201_s0 + $0xd0] sm:$0xff] }
  0x24   :  { %13179 = vmatmul.mubr.f32.vlgmr.msra.gmra.mrb[0].mxu0 %v1001_v25  ;;  %v1027_v51 = vld [vmem:[%s22201_s0 + $0xd8] sm:$0xff]  ;;  %v1028_v52 = vld [vmem:[%s22201_s0 + $0xe0] sm:$0xff]  ;;  %v1029_v53 = vld [vmem:[%s22201_s0 + $0xe8] sm:$0xff] }
  0x25   :  { %13181 = vmatprep.mubr.f32.mxu0 %v1002_v26  ;;  %v1030_v54 = vld [vmem:[%s22201_s0 + $0xf0] sm:$0xff]  ;;  %v1031_v55 = vld [vmem:[%s22201_s0 + $0xf8] sm:$0xff]  ;;  %v1032_v56 = vld [vmem:[%s22201_s0 + $0x100] sm:$0xff] }
  0x26   :  { %v1033_v57 = vld [vmem:[%s22201_s0 + $0x108] sm:$0xff]  ;;  %v1034_v58 = vld [vmem:[%s22201_s0 + $0x110] sm:$0xff]  ;;  %v1035_v59 = vld [vmem:[%s22201_s0 + $0x118] sm:$0xff] }
  0x27   :  { %v1036_v60 = vld [vmem:[%s22201_s0 + $0x120] sm:$0xff]  ;;  %v1037_v61 = vld [vmem:[%s22201_s0 + $0x128] sm:$0xff]  ;;  %v1038_v62 = vld [vmem:[%s22201_s0 + $0x130] sm:$0xff] }
  0x28   :  { %13182 = vmatmul.mubr.f32.gmra.mrb[2].mxu0 %v1003_v27  ;;  %v1039_v63 = vld [vmem:[%s22201_s0 + $0x138] sm:$0xff]  ;;  %v1040_v0 = vld [vmem:[%s22201_s0 + $0x140] sm:$0xff]  ;;  %v1041_v1 = vld [vmem:[%s22201_s0 + $0x148] sm:$0xff] }
  0x29   :  { %13184 = vmatprep.mubr.f32.mxu0 %v1004_v28  ;;  %v1042_v2 = vld [vmem:[%s22201_s0 + $0x150] sm:$0xff]  ;;  %v1043_v3 = vld [vmem:[%s22201_s0 + $0x158] sm:$0xff]  ;;  %v1044_v4 = vld [vmem:[%s22201_s0 + $0x160] sm:$0xff] }
  0x2a   :  { %v1045_v5 = vld [vmem:[%s22201_s0 + $0x168] sm:$0xff]  ;;  %v1046_v6 = vld [vmem:[%s22201_s0 + $0x170] sm:$0xff]  ;;  %v1047_v7 = vld [vmem:[%s22201_s0 + $0x178] sm:$0xff] }
  0x2b   :  { %v1048_v8 = vld [vmem:[%s22201_s0 + $0x180] sm:$0xff]  ;;  %v1049_v9 = vld [vmem:[%s22201_s0 + $0x188] sm:$0xff]  ;;  %v1050_v10 = vld [vmem:[%s22201_s0 + $0x190] sm:$0xff] }
  0x2c   :  { %13185 = vmatmul.mubr.f32.gmra.mrb[4].mxu0 %v1005_v29  ;;  %v1051_v11 = vld [vmem:[%s22201_s0 + $0x198] sm:$0xff]  ;;  %v1052_v12 = vld [vmem:[%s22201_s0 + $0x1a0] sm:$0xff]  ;;  %v1053_v13 = vld [vmem:[%s22201_s0 + $0x1a8] sm:$0xff] }
  0x2d   :  { %13187 = vmatprep.mubr.f32.mxu0 %v1006_v30  ;;  %v1054_v14 = vld [vmem:[%s22201_s0 + $0x1b0] sm:$0xff]  ;;  %v1055_v15 = vld [vmem:[%s22201_s0 + $0x1b8] sm:$0xff]  ;;  %v1056_v16 = vld [vmem:[%s22201_s0 + $0x1c0] sm:$0xff] }
  0x2e   :  { %v1057_v17 = vld [vmem:[%s22201_s0 + $0x1c8] sm:$0xff]  ;;  %v1058_v18 = vld [vmem:[%s22201_s0 + $0x1d0] sm:$0xff]  ;;  %v1059_v19 = vld [vmem:[%s22201_s0 + $0x1d8] sm:$0xff] }
  0x2f   :  { %v1060_v20 = vld [vmem:[%s22201_s0 + $0x1e0] sm:$0xff]  ;;  %v1061_v21 = vld [vmem:[%s22201_s0 + $0x1e8] sm:$0xff]  ;;  %v1062_v22 = vld [vmem:[%s22201_s0 + $0x1f0] sm:$0xff] }
  0x30   :  { %13188 = vmatmul.mubr.f32.gmra.mrb[6].mxu0 %v1007_v31  ;;  %v1063_v23 = vld [vmem:[%s22201_s0 + $0x1f8] sm:$0xff]  ;;  %v11279_v24 = vld [vmem:[%s22204_s3 + $0x80] sm:$0xff]  ;;  %v11280_v25 = vld [vmem:[%s22204_s3 + $0x88] sm:$0xff] }
  0x31   :  { %13190 = vmatprep.mubr.f32.mxu0 %v1008_v32  ;;  %v15645_v26 = vpack.c.bf16 %v11280_v25, %v11279_v24  ;;  %v11281_v27 = vld [vmem:[%s22204_s3 + $0x90] sm:$0xff]  ;;  %v11282_v28 = vld [vmem:[%s22204_s3 + $0x98] sm:$0xff]  ;;  %v11283_v30 = vld [vmem:[%s22204_s3 + $0xa0] sm:$0xff] }
  0x32   :  { %v15649_v29 = vpack.c.bf16 %v11282_v28, %v11281_v27  ;;  %v11284_v31 = vld [vmem:[%s22204_s3 + $0xa8] sm:$0xff] }
  0x33   :  { %15646 = vmatprep.subr.bf16.mxu1 %v15645_v26  ;;  %v15653_v32 = vpack.c.bf16 %v11284_v31, %v11283_v30 }
  0x34   :  { %13191 = vmatmul.mubr.f32.gmra.mrb[8].mxu0 %v1009_v33  ;;  %15648 = vmatpush3.bf16.msra.mxu1 %v15645_v26  ;;  %v11285_v33 = vld [vmem:[%s22204_s3 + $0xb0] sm:$0xff] }
  0x35   :  { %13193 = vmatprep.mubr.f32.mxu0 %v1010_v34  ;;  %15650 = vmatprep.subr.bf16.mxu1 %v15649_v29  ;;  %v11286_v34 = vld [vmem:[%s22204_s3 + $0xb8] sm:$0xff] }
  0x38   :  { %13194 = vmatmul.mubr.f32.gmra.mrb[10].mxu0 %v1011_v35  ;;  %15652 = vmatpush3.bf16.msra.mxu1 %v15649_v29  ;;  %v15657_v35 = vpack.c.bf16 %v11286_v34, %v11285_v33 }
  0x39   :  { %13196 = vmatprep.mubr.f32.mxu0 %v1012_v36  ;;  %15654 = vmatprep.subr.bf16.mxu1 %v15653_v32  ;;  %v11287_v36 = vld [vmem:[%s22204_s3 + $0xc0] sm:$0xff] }
  0x3c   :  { %13197 = vmatmul.mubr.f32.gmra.mrb[12].mxu0 %v1013_v37  ;;  %15656 = vmatpush3.bf16.msra.mxu1 %v15653_v32  ;;  %v11288_v37 = vld [vmem:[%s22204_s3 + $0xc8] sm:$0xff] }
  0x3d   :  { %13199 = vmatprep.mubr.f32.mxu0 %v1014_v38  ;;  %15658 = vmatprep.subr.bf16.mxu1 %v15657_v35  ;;  %v15661_v38 = vpack.c.bf16 %v11288_v37, %v11287_v36 }
  0x40   :  { %13200 = vmatmul.mubr.f32.gmra.mrb[14].mxu0 %v1015_v39  ;;  %15660 = vmatpush3.bf16.msra.mxu1 %v15657_v35  ;;  %v11289_v39 = vld [vmem:[%s22204_s3 + $0xd0] sm:$0xff] }
  0x41   :  { %13202 = vmatprep.mubr.f32.mxu0 %v1016_v40  ;;  %15662 = vmatprep.subr.bf16.mxu1 %v15661_v38  ;;  %v11290_v40 = vld [vmem:[%s22204_s3 + $0xd8] sm:$0xff] }
  0x44   :  { %13203 = vmatmul.mubr.f32.gmra.mrb[16].mxu0 %v1017_v41  ;;  %15664 = vmatpush3.bf16.msra.mxu1 %v15661_v38  ;;  %v15665_v41 = vpack.c.bf16 %v11290_v40, %v11289_v39 }
  0x45   :  { %13205 = vmatprep.mubr.f32.mxu0 %v1018_v42  ;;  %v11291_v42 = vld [vmem:[%s22204_s3 + $0xe0] sm:$0xff] }
  0x46   :  { %15666 = vmatprep.subr.bf16.mxu1 %v15665_v41 }
  0x48   :  { %13206 = vmatmul.mubr.f32.gmra.mrb[18].mxu0 %v1019_v43  ;;  %15668 = vmatpush3.bf16.msra.mxu1 %v15665_v41  ;;  %v11292_v43 = vld [vmem:[%s22204_s3 + $0xe8] sm:$0xff] }
  0x49   :  { %13208 = vmatprep.mubr.f32.mxu0 %v1020_v44  ;;  %v15669_v44 = vpack.c.bf16 %v11292_v43, %v11291_v42 }
  0x4b   :  { %15670 = vmatprep.subr.bf16.mxu1 %v15669_v44 }
  0x4c   :  { %13209 = vmatmul.mubr.f32.gmra.mrb[20].mxu0 %v1021_v45  ;;  %15672 = vmatpush3.bf16.msra.mxu1 %v15669_v44  ;;  %v11293_v45 = vld [vmem:[%s22204_s3 + $0xf0] sm:$0xff] }
  0x4d   :  { %13211 = vmatprep.mubr.f32.mxu0 %v1022_v46  ;;  %v11294_v46 = vld [vmem:[%s22204_s3 + $0xf8] sm:$0xff] }
  0x50   :  { %13212 = vmatmul.mubr.f32.gmra.mrb[22].mxu0 %v1023_v47  ;;  %v15673_v47 = vpack.c.bf16 %v11294_v46, %v11293_v45 }
  0x51   :  { %13214 = vmatprep.mubr.f32.mxu0 %v1024_v48 }
  0x52   :  { %15674 = vmatprep.subr.bf16.mxu1 %v15673_v47 }
  0x53   :  { %15676 = vmatpush3.bf16.msra.mxu1 %v15673_v47 }
  0x54   :  { %13215 = vmatmul.mubr.f32.gmra.mrb[24].mxu0 %v1025_v49 }
  0x55   :  { %13217 = vmatprep.mubr.f32.mxu0 %v1026_v50  ;;  %v1922_v50 = vld [vmem:[%s22204_s3] sm:$0xff] }
  0x58   :  { %13218 = vmatmul.mubr.f32.gmra.mrb[26].mxu0 %v1027_v51  ;;  %v1923_v51 = vld [vmem:[%s22204_s3 + $0x8] sm:$0xff] }
  0x59   :  { %13220 = vmatprep.mubr.f32.mxu0 %v1028_v52  ;;  %v17399_v52 = vpack.c.bf16 %v1923_v51, %v1922_v50  ;;  %v17525_v51 = vld [vmem:[%s22203_s2] ss:$0 sm:$0xff] }
  0x5b   :  { %15678 = vmatprep.subr.bf16.mxu1 %v17399_v52 }
  0x5c   :  { %13221 = vmatmul.mubr.f32.gmra.mrb[28].mxu0 %v1029_v53 }
  0x5d   :  { %13223 = vmatprep.mubr.f32.mxu0 %v1030_v54 }
  0x60   :  { %13224 = vmatmul.mubr.f32.gmra.mrb[30].mxu0 %v1031_v55 }
  0x61   :  { %13226 = vmatprep.mubr.f32.mxu0 %v1032_v56 }
  0x64   :  { %13227 = vmatmul.mubr.f32.gmra.mrb[32].mxu0 %v1033_v57 }
  0x65   :  { %13229 = vmatprep.mubr.f32.mxu0 %v1034_v58 }
  0x68   :  { %13230 = vmatmul.mubr.f32.gmra.mrb[34].mxu0 %v1035_v59 }
  0x69   :  { %13232 = vmatprep.mubr.f32.mxu0 %v1036_v60 }
  0x6c   :  { %13233 = vmatmul.mubr.f32.gmra.mrb[36].mxu0 %v1037_v61 }
  0x6d   :  { %13235 = vmatprep.mubr.f32.mxu0 %v1038_v62 }
  0x70   :  { %13236 = vmatmul.mubr.f32.gmra.mrb[38].mxu0 %v1039_v63 }
  0x71   :  { %13238 = vmatprep.mubr.f32.mxu0 %v1040_v0 }
  0x74   :  { %13239 = vmatmul.mubr.f32.gmra.mrb[40].mxu0 %v1041_v1 }
  0x75   :  { %13241 = vmatprep.mubr.f32.mxu0 %v1042_v2 }
  0x78   :  { %13242 = vmatmul.mubr.f32.gmra.mrb[42].mxu0 %v1043_v3 }
  0x79   :  { %13244 = vmatprep.mubr.f32.mxu0 %v1044_v4 }
  0x7c   :  { %13245 = vmatmul.mubr.f32.gmra.mrb[44].mxu0 %v1045_v5 }
  0x7d   :  { %13247 = vmatprep.mubr.f32.mxu0 %v1046_v6 }
  0x80   :  { %13248 = vmatmul.mubr.f32.gmra.mrb[46].mxu0 %v1047_v7 }
  0x81   :  { %13250 = vmatprep.mubr.f32.mxu0 %v1048_v8 }
  0x84   :  { %13251 = vmatmul.mubr.f32.gmra.mrb[48].mxu0 %v1049_v9 }
  0x85   :  { %13253 = vmatprep.mubr.f32.mxu0 %v1050_v10 }
  0x88   :  { %13254 = vmatmul.mubr.f32.gmra.mrb[50].mxu0 %v1051_v11 }
  0x89   :  { %13256 = vmatprep.mubr.f32.mxu0 %v1052_v12 }
  0x8c   :  { %13257 = vmatmul.mubr.f32.gmra.mrb[52].mxu0 %v1053_v13 }
  0x8d   :  { %13259 = vmatprep.mubr.f32.mxu0 %v1054_v14 }
  0x90   :  { %13260 = vmatmul.mubr.f32.gmra.mrb[54].mxu0 %v1055_v15 }
  0x91   :  { %13262 = vmatprep.mubr.f32.mxu0 %v1056_v16 }
  0x94   :  { %13263 = vmatmul.mubr.f32.gmra.mrb[56].mxu0 %v1057_v17 }
  0x95   :  { %13265 = vmatprep.mubr.f32.mxu0 %v1058_v18 }
  0x98   :  { %13266 = vmatmul.mubr.f32.gmra.mrb[58].mxu0 %v1059_v19 }
  0x99   :  { %13268 = vmatprep.mubr.f32.mxu0 %v1060_v20 }
  0x9c   :  { %13269 = vmatmul.mubr.f32.gmra.mrb[60].mxu0 %v1061_v21 }
  0x9d   :  { %13271 = vmatprep.mubr.f32.mxu0 %v1062_v22 }
  0xa0   :  { %13272 = vmatmul.mubr.f32.gmra.mrb[62].mxu0 %v1063_v23 }
  0xf7   :  { %v17389_v48 = vpop.f32.mrb[0].mxu0 }
  0xf8   :  { %v17391_v49 = vpop.f32.mrb[1].mxu0 }
  0xfb   :  { %v17401_v53 = vpop.f32.mrb[2].mxu0 }
  0xfc   :  { %v17403_v54 = vpop.f32.mrb[3].mxu0 }
  0xff   :  { %v17406_v55 = vpop.f32.mrb[4].mxu0 }
 0x100   :  { %v17408_v56 = vpop.f32.mrb[5].mxu0 }
 0x103   :  { %v17410_v57 = vpop.f32.mrb[6].mxu0 }
 0x104   :  { %v17412_v58 = vpop.f32.mrb[7].mxu0 }
 0x107   :  { %v17414_v59 = vpop.f32.mrb[8].mxu0 }
 0x108   :  { %v17416_v60 = vpop.f32.mrb[9].mxu0 }
 0x10b   :  { %v17418_v61 = vpop.f32.mrb[10].mxu0 }
 0x10c   :  { %v17420_v62 = vpop.f32.mrb[11].mxu0 }
 0x10f   :  { %v17422_v63 = vpop.f32.mrb[12].mxu0 }
 0x110   :  { %v17424_v0 = vpop.f32.mrb[13].mxu0 }
 0x113   :  { %v17426_v1 = vpop.f32.mrb[14].mxu0 }
 0x114   :  { %v17428_v2 = vpop.f32.mrb[15].mxu0 }
 0x117   :  { %v17430_v3 = vpop.f32.mrb[16].mxu0 }
 0x118   :  { %v17432_v4 = vpop.f32.mrb[17].mxu0 }
 0x11b   :  { %v17434_v5 = vpop.f32.mrb[18].mxu0 }
 0x11c   :  { %v17436_v6 = vpop.f32.mrb[19].mxu0 }
 0x11f   :  { %v17438_v7 = vpop.f32.mrb[20].mxu0 }
 0x120   :  { %v17440_v8 = vpop.f32.mrb[21].mxu0 }
 0x123   :  { %v17442_v9 = vpop.f32.mrb[22].mxu0 }
 0x124   :  { %v17444_v10 = vpop.f32.mrb[23].mxu0 }
 0x127   :  { %v17446_v11 = vpop.f32.mrb[24].mxu0 }
 0x128   :  { %v17448_v12 = vpop.f32.mrb[25].mxu0 }
 0x12b   :  { %v17450_v13 = vpop.f32.mrb[26].mxu0 }
 0x12c   :  { %v17452_v14 = vpop.f32.mrb[27].mxu0 }
 0x12f   :  { %v17454_v15 = vpop.f32.mrb[28].mxu0 }
 0x130   :  { %v17456_v16 = vpop.f32.mrb[29].mxu0 }
 0x133   :  { %v17458_v17 = vpop.f32.mrb[30].mxu0 }
 0x134   :  { %v17460_v18 = vpop.f32.mrb[31].mxu0 }
 0x137   :  { %v17462_v19 = vpop.f32.mrb[32].mxu0 }
 0x138   :  { %v17464_v20 = vpop.f32.mrb[33].mxu0 }
 0x13b   :  { %v17466_v21 = vpop.f32.mrb[34].mxu0 }
 0x13c   :  { %v17468_v22 = vpop.f32.mrb[35].mxu0 }
 0x13f   :  { %v17470_v23 = vpop.f32.mrb[36].mxu0 }
 0x140   :  { %v17472_v24 = vpop.f32.mrb[37].mxu0 }
 0x143   :  { %v17474_v25 = vpop.f32.mrb[38].mxu0 }
 0x144   :  { %v17476_v26 = vpop.f32.mrb[39].mxu0 }
 0x147   :  { %v17478_v27 = vpop.f32.mrb[40].mxu0 }
 0x148   :  { %v17480_v28 = vpop.f32.mrb[41].mxu0 }
 0x14b   :  { %v17482_v29 = vpop.f32.mrb[42].mxu0 }
 0x14c   :  { %v17484_v30 = vpop.f32.mrb[43].mxu0 }
 0x14f   :  { %v17486_v31 = vpop.f32.mrb[44].mxu0 }
 0x150   :  { %v17488_v32 = vpop.f32.mrb[45].mxu0 }
 0x153   :  { %v17490_v33 = vpop.f32.mrb[46].mxu0 }
 0x154   :  { %v17492_v34 = vpop.f32.mrb[47].mxu0 }
 0x157   :  { %v17494_v35 = vpop.f32.mrb[48].mxu0 }
 0x158   :  { %v17496_v36 = vpop.f32.mrb[49].mxu0 }
 0x15b   :  { %v17498_v37 = vpop.f32.mrb[50].mxu0 }
 0x15c   :  { %22891 = vst [vmem:[#allocation6_spill] sm:$0xff] %v17498_v37  ;;  %v17500_v38 = vpop.f32.mrb[51].mxu0 }
 0x15f   :  { %v17502_v39 = vpop.f32.mrb[52].mxu0 }
 0x160   :  { %22892 = vst [vmem:[#allocation7_spill] sm:$0xff] %v17502_v39  ;;  %v17504_v40 = vpop.f32.mrb[53].mxu0 }
 0x161   :  { %22893 = vst [vmem:[#allocation8_spill] sm:$0xff] %v17504_v40 }
 0x163   :  { %v17506_v41 = vpop.f32.mrb[54].mxu0 }
 0x164   :  { %22894 = vst [vmem:[#allocation9_spill] sm:$0xff] %v17506_v41  ;;  %v17508_v42 = vpop.f32.mrb[55].mxu0 }
 0x165   :  { %22895 = vst [vmem:[#allocation10_spill] sm:$0xff] %v17508_v42 }
 0x167   :  { %v17510_v43 = vpop.f32.mrb[56].mxu0 }
 0x168   :  { %22896 = vst [vmem:[#allocation11_spill] sm:$0xff] %v17510_v43  ;;  %v17512_v44 = vpop.f32.mrb[57].mxu0  ;;  %v1154_v43 = vadd.f32 %v17525_v51, %v17391_v49  ;;  %v1164_v49 = vadd.f32 %v17525_v51, %v17403_v54  ;;  %v1169_v54 = vadd.f32 %v17401_v53, %v17525_v51 }
 0x169   :  { %22897 = vst [vmem:[#allocation12_spill] sm:$0xff] %v17512_v44  ;;  %v1159_v44 = vadd.f32 %v17389_v48, %v17525_v51 }
 0x16a   :  { %v17543_v37 = vmax.f32 %v1154_v43, 0.0  ;;  %v17561_v43 = vmax.f32 %v1164_v49, 0.0  ;;  %v17573_v53 = vmax.f32 %v1169_v54, 0.0  ;;  %v1189_v54 = vadd.f32 %v17410_v57, %v17525_v51 }
 0x16b   :  { %v17514_v45 = vpop.f32.mrb[58].mxu0  ;;  %v17557_v48 = vmax.f32 %v1159_v44, 0.0  ;;  %v1179_v44 = vadd.f32 %v17406_v55, %v17525_v51 }
 0x16c   :  { %22898 = vst [vmem:[#allocation13_spill] sm:$0xff] %v17514_v45  ;;  %v17516_v46 = vpop.f32.mrb[59].mxu0  ;;  %22904 = vst [vmem:[#allocation19_spill] sm:$0xff] %v17543_v37  ;;  %v17605_v57 = vmax.f32 %v1189_v54, 0.0  ;;  %v1209_v54 = vadd.f32 %v17418_v61, %v17525_v51 }
 0x16d   :  { %22899 = vst [vmem:[#allocation14_spill] sm:$0xff] %v17516_v46  ;;  %v1924_v46 = vld [vmem:[%s22204_s3 + $0x10] sm:$0xff]  ;;  %22905 = vst [vmem:[#allocation20_spill] sm:$0xff] %v17557_v48  ;;  %v17589_v55 = vmax.f32 %v1179_v44, 0.0  ;;  %v1199_v44 = vadd.f32 %v17414_v59, %v17525_v51 }
 0x16e   :  { %22906 = vst [vmem:[#allocation21_spill] sm:$0xff] %v17561_v43  ;;  %v17637_v61 = vmax.f32 %v1209_v54, 0.0  ;;  %v1229_v54 = vadd.f32 %v17426_v1, %v17525_v51 }
 0x16f   :  { %v17518_v47 = vpop.f32.mrb[60].mxu0  ;;  %v17621_v59 = vmax.f32 %v1199_v44, 0.0  ;;  %v1219_v44 = vadd.f32 %v17422_v63, %v17525_v51 }
 0x170   :  { %22900 = vst [vmem:[#allocation15_spill] sm:$0xff] %v17518_v47  ;;  %v17520_v50 = vpop.f32.mrb[61].mxu0 }
 0x171   :  { %22901 = vst [vmem:[#allocation16_spill] sm:$0xff] %v17520_v50  ;;  %v1925_v50 = vld [vmem:[%s22204_s3 + $0x18] sm:$0xff]  ;;  %v17653_v63 = vmax.f32 %v1219_v44, 0.0  ;;  %v1244_v44 = vadd.f32 %v17525_v51, %v17436_v6  ;;  %v1259_v6 = vadd.f32 %v17438_v7, %v17525_v51 }
 0x172   :  { %v15681_v40 = vpack.c.bf16 %v1925_v50, %v1924_v46  ;;  %v1174_v46 = vadd.f32 %v17525_v51, %v17408_v56  ;;  %v1928_v50 = vld [vmem:[%s22204_s3 + $0x30] sm:$0xff] }
 0x173   :  { %v13273_v41 = vpop.f32.mrb[62].mxu0 }
 0x174   :  { %v1469_v42 = vadd.f32 %v13273_v41, %v17525_v51  ;;  %v1463_v39 = vpop.f32.mrb[63].mxu0  ;;  %v17577_v49 = vmax.f32 %v1174_v46, 0.0 }
 0x175   :  { %v1464_v45 = vadd.f32 %v17525_v51, %v1463_v39  ;;  %v1926_v39 = vld [vmem:[%s22204_s3 + $0x20] sm:$0xff] }
 0x176   :  { %v17541_v41 = vmax.f32 %v1469_v42, 0.0  ;;  %22907 = vst [vmem:[#allocation22_spill] sm:$0xff] %v17577_v49 }
 0x177   :  { %v17537_v47 = vmax.f32 %v1464_v45, 0.0  ;;  %v1927_v45 = vld [vmem:[%s22204_s3 + $0x28] sm:$0xff] }
 0x178   :  { %22903 = vst [vmem:[#allocation18_spill] sm:$0xff] %v17541_v41  ;;  %v15685_v42 = vpack.c.bf16 %v1927_v45, %v1926_v39  ;;  %v1184_v39 = vadd.f32 %v17525_v51, %v17412_v58  ;;  %v1930_v45 = vld [vmem:[%s22204_s3 + $0x40] sm:$0xff] }
 0x179   :  { %22902 = vst [vmem:[#allocation17_spill] sm:$0xff] %v17537_v47  ;;  %13306 = vmatprep.mubr.f32.mxu1 %v17537_v47 }
 0x17a   :  { %13307 = vmatmul.mubr.f32.vlgmr.msra.gmra.mrb[0].mxu1 %v17541_v41  ;;  %v17593_v46 = vmax.f32 %v1184_v39, 0.0 }
 0x17b   :  { %15680 = vmatpush3.bf16.msra.mxu1 %v17399_v52  ;;  %13309 = vmatprep.mubr.f32.mxu1 %v17543_v37  ;;  %v1929_v52 = vld [vmem:[%s22204_s3 + $0x38] sm:$0xff] }
 0x17c   :  { %15682 = vmatprep.subr.bf16.mxu1 %v15681_v40  ;;  %v15689_v56 = vpack.c.bf16 %v1929_v52, %v1928_v50  ;;  %22908 = vst [vmem:[#allocation23_spill] sm:$0xff] %v17593_v46  ;;  %v1194_v50 = vadd.f32 %v17525_v51, %v17416_v60  ;;  %v1932_v52 = vld [vmem:[%s22204_s3 + $0x50] sm:$0xff] }
 0x17e   :  { %13310 = vmatmul.mubr.f32.gmra.mrb[2].mxu1 %v17557_v48  ;;  %v17609_v39 = vmax.f32 %v1194_v50, 0.0 }
 0x17f   :  { %13312 = vmatprep.mubr.f32.mxu1 %v17561_v43  ;;  %15684 = vmatpush3.bf16.msra.mxu1 %v15681_v40  ;;  %v1931_v40 = vld [vmem:[%s22204_s3 + $0x48] sm:$0xff] }
 0x180   :  { %15686 = vmatprep.subr.bf16.mxu1 %v15685_v42  ;;  %v15693_v58 = vpack.c.bf16 %v1931_v40, %v1930_v45  ;;  %v1204_v45 = vadd.f32 %v17525_v51, %v17420_v62  ;;  %v1934_v40 = vld [vmem:[%s22204_s3 + $0x60] sm:$0xff] }
 0x182   :  { %13313 = vmatmul.mubr.f32.gmra.mrb[4].mxu1 %v17573_v53  ;;  %v17625_v50 = vmax.f32 %v1204_v45, 0.0 }
 0x183   :  { %13315 = vmatprep.mubr.f32.mxu1 %v17577_v49  ;;  %15688 = vmatpush3.bf16.msra.mxu1 %v15685_v42  ;;  %v1933_v42 = vld [vmem:[%s22204_s3 + $0x58] sm:$0xff] }
 0x184   :  { %15690 = vmatprep.subr.bf16.mxu1 %v15689_v56  ;;  %v15697_v60 = vpack.c.bf16 %v1933_v42, %v1932_v52  ;;  %v1214_v52 = vadd.f32 %v17525_v51, %v17424_v0  ;;  %v1936_v42 = vld [vmem:[%s22204_s3 + $0x70] sm:$0xff] }
 0x186   :  { %13316 = vmatmul.mubr.f32.gmra.mrb[6].mxu1 %v17589_v55  ;;  %v17641_v45 = vmax.f32 %v1214_v52, 0.0 }
 0x187   :  { %13318 = vmatprep.mubr.f32.mxu1 %v17593_v46  ;;  %15692 = vmatpush3.bf16.msra.mxu1 %v15689_v56  ;;  %v1935_v56 = vld [vmem:[%s22204_s3 + $0x68] sm:$0xff] }
 0x188   :  { %15694 = vmatprep.subr.bf16.mxu1 %v15693_v58  ;;  %v15701_v62 = vpack.c.bf16 %v1935_v56, %v1934_v40  ;;  %v1224_v40 = vadd.f32 %v17525_v51, %v17428_v2  ;;  %v11295_v56 = vld [vmem:[%s22204_s3 + $0x100] sm:$0xff] }
 0x18a   :  { %13319 = vmatmul.mubr.f32.gmra.mrb[8].mxu1 %v17605_v57  ;;  %v17659_v52 = vmax.f32 %v1224_v40, 0.0  ;;  %v17680_v40 = vmax.f32 %v1244_v44, 0.0 }
 0x18b   :  { %13321 = vmatprep.mubr.f32.mxu1 %v17609_v39  ;;  %15696 = vmatpush3.bf16.msra.mxu1 %v15693_v58  ;;  %v1937_v58 = vld [vmem:[%s22204_s3 + $0x78] sm:$0xff] }
 0x18c   :  { %15698 = vmatprep.subr.bf16.mxu1 %v15697_v60  ;;  %v15705_v0 = vpack.c.bf16 %v1937_v58, %v1936_v42  ;;  %v1234_v42 = vadd.f32 %v17525_v51, %v17432_v4  ;;  %v17665_v58 = vmax.f32 %v1229_v54, 0.0  ;;  %v1264_v54 = vadd.f32 %v17525_v51, %v17444_v10 }
 0x18d   :  { %v1279_v10 = vadd.f32 %v17446_v11, %v17525_v51 }
 0x18e   :  { %13322 = vmatmul.mubr.f32.gmra.mrb[10].mxu1 %v17621_v59  ;;  %v17670_v1 = vmax.f32 %v1234_v42, 0.0  ;;  %v17700_v42 = vmax.f32 %v1264_v54, 0.0 }
 0x18f   :  { %13324 = vmatprep.mubr.f32.mxu1 %v17625_v50  ;;  %15700 = vmatpush3.bf16.msra.mxu1 %v15697_v60  ;;  %v11296_v60 = vld [vmem:[%s22204_s3 + $0x108] sm:$0xff] }
 0x190   :  { %15702 = vmatprep.subr.bf16.mxu1 %v15701_v62  ;;  %v17657_v2 = vpack.c.bf16 %v11296_v60, %v11295_v56 }
 0x192   :  { %13325 = vmatmul.mubr.f32.gmra.mrb[12].mxu1 %v17637_v61 }
 0x193   :  { %13327 = vmatprep.mubr.f32.mxu1 %v17641_v45  ;;  %15704 = vmatpush3.bf16.msra.mxu1 %v15701_v62  ;;  %v1239_v62 = vadd.f32 %v17430_v3, %v17525_v51  ;;  %v1254_v3 = vadd.f32 %v17525_v51, %v17440_v8  ;;  %v1269_v8 = vadd.f32 %v17442_v9, %v17525_v51  ;;  %v17716_v9 = vmax.f32 %v1279_v10, 0.0 }
 0x194   :  { %15706 = vmatprep.subr.bf16.mxu1 %v15705_v0  ;;  %v1314_v10 = vadd.f32 %v17525_v51, %v17464_v20  ;;  %v1329_v20 = vadd.f32 %v17466_v21, %v17525_v51 }
 0x195   :  { %v17676_v4 = vmax.f32 %v1239_v62, 0.0  ;;  %v17690_v60 = vmax.f32 %v1254_v3, 0.0  ;;  %v1274_v62 = vadd.f32 %v17525_v51, %v17448_v12  ;;  %v17706_v7 = vmax.f32 %v1269_v8, 0.0 }
 0x196   :  { %13328 = vmatmul.mubr.f32.gmra.mrb[14].mxu1 %v17653_v63  ;;  %v1289_v12 = vadd.f32 %v17450_v13, %v17525_v51  ;;  %v1304_v8 = vadd.f32 %v17525_v51, %v17460_v18  ;;  %v1319_v18 = vadd.f32 %v17462_v19, %v17525_v51  ;;  %v17766_v19 = vmax.f32 %v1329_v20, 0.0 }
 0x197   :  { %13330 = vmatprep.mubr.f32.mxu1 %v17659_v52  ;;  %15708 = vmatpush3.bf16.msra.mxu1 %v15705_v0  ;;  %v1249_v0 = vadd.f32 %v17434_v5, %v17525_v51  ;;  %v17696_v5 = vmax.f32 %v1259_v6, 0.0  ;;  %v17710_v44 = vmax.f32 %v1274_v62, 0.0  ;;  %v1294_v6 = vadd.f32 %v17525_v51, %v17456_v16 }
 0x198   :  { %15710 = vmatprep.subr.bf16.mxu1 %v17657_v2  ;;  %v17726_v11 = vmax.f32 %v1289_v12, 0.0  ;;  %v1309_v16 = vadd.f32 %v17458_v17, %v17525_v51  ;;  %v17740_v62 = vmax.f32 %v1304_v8, 0.0  ;;  %v1324_v12 = vadd.f32 %v17525_v51, %v17468_v22 }
 0x199   :  { %v17686_v56 = vmax.f32 %v1249_v0, 0.0  ;;  %v1284_v0 = vadd.f32 %v17525_v51, %v17452_v14  ;;  %v1299_v14 = vadd.f32 %v17454_v15, %v17525_v51  ;;  %v17730_v54 = vmax.f32 %v1294_v6, 0.0 }
 0x19a   :  { %13331 = vmatmul.mubr.f32.gmra.mrb[16].mxu1 %v17665_v58  ;;  %v17746_v15 = vmax.f32 %v1309_v16, 0.0  ;;  %v17756_v17 = vmax.f32 %v1319_v18, 0.0  ;;  %v17760_v6 = vmax.f32 %v1324_v12, 0.0  ;;  %v1339_v22 = vadd.f32 %v17470_v23, %v17525_v51 }
 0x19b   :  { %13333 = vmatprep.mubr.f32.mxu1 %v17670_v1  ;;  %v17720_v3 = vmax.f32 %v1284_v0, 0.0  ;;  %v17736_v13 = vmax.f32 %v1299_v14, 0.0  ;;  %v17750_v0 = vmax.f32 %v1314_v10, 0.0  ;;  %v1334_v14 = vadd.f32 %v17525_v51, %v17472_v24 }
 0x19c   :  { %v1344_v16 = vadd.f32 %v17525_v51, %v17476_v26  ;;  %v17776_v21 = vmax.f32 %v1339_v22, 0.0  ;;  %v1349_v24 = vadd.f32 %v17474_v25, %v17525_v51  ;;  %v1354_v18 = vadd.f32 %v17525_v51, %v17480_v28 }
 0x19d   :  { %v17770_v8 = vmax.f32 %v1334_v14, 0.0  ;;  %v1359_v26 = vadd.f32 %v17478_v27, %v17525_v51  ;;  %v1364_v20 = vadd.f32 %v17525_v51, %v17484_v30  ;;  %v1369_v28 = vadd.f32 %v17482_v29, %v17525_v51 }
 0x19e   :  { %13334 = vmatmul.mubr.f32.gmra.mrb[18].mxu1 %v17676_v4  ;;  %v17780_v10 = vmax.f32 %v1344_v16, 0.0  ;;  %v17786_v23 = vmax.f32 %v1349_v24, 0.0  ;;  %v17790_v12 = vmax.f32 %v1354_v18, 0.0  ;;  %v1374_v22 = vadd.f32 %v17525_v51, %v17488_v32 }
 0x19f   :  { %13336 = vmatprep.mubr.f32.mxu1 %v17680_v40  ;;  %v17796_v25 = vmax.f32 %v1359_v26, 0.0  ;;  %v17800_v14 = vmax.f32 %v1364_v20, 0.0  ;;  %v17806_v27 = vmax.f32 %v1369_v28, 0.0  ;;  %v1379_v30 = vadd.f32 %v17486_v31, %v17525_v51 }
 0x1a0   :  { %v17810_v16 = vmax.f32 %v1374_v22, 0.0  ;;  %v1384_v24 = vadd.f32 %v17525_v51, %v17492_v34  ;;  %v1389_v32 = vadd.f32 %v17490_v33, %v17525_v51  ;;  %v1394_v26 = vadd.f32 %v17525_v51, %v17496_v36  ;;  %v22916_v36 = vld [vmem:[#allocation6_spill] sm:$0xff] }
 0x1a1   :  { %22909 = vst [vmem:[#allocation24_spill] sm:$0xff] %v17800_v14  ;;  %22910 = vst [vmem:[#allocation25_spill] sm:$0xff] %v17806_v27  ;;  %v17816_v29 = vmax.f32 %v1379_v30, 0.0  ;;  %v1399_v34 = vadd.f32 %v17494_v35, %v17525_v51  ;;  %v1404_v28 = vadd.f32 %v17525_v51, %v17500_v38  ;;  %v1409_v22 = vadd.f32 %v22916_v36, %v17525_v51  ;;  %v22920_v38 = vld [vmem:[#allocation7_spill] sm:$0xff] }
 0x1a2   :  { %13337 = vmatmul.mubr.f32.gmra.mrb[20].mxu1 %v17686_v56  ;;  %v17820_v18 = vmax.f32 %v1384_v24, 0.0  ;;  %v17826_v31 = vmax.f32 %v1389_v32, 0.0  ;;  %v17830_v20 = vmax.f32 %v1394_v26, 0.0  ;;  %v22918_v24 = vld [vmem:[#allocation8_spill] sm:$0xff]  ;;  %v1419_v26 = vadd.f32 %v22920_v38, %v17525_v51 }
 0x1a3   :  { %13339 = vmatprep.mubr.f32.mxu1 %v17690_v60  ;;  %22911 = vst [vmem:[#allocation26_spill] sm:$0xff] %v17816_v29  ;;  %v17836_v33 = vmax.f32 %v1399_v34, 0.0  ;;  %v17840_v30 = vmax.f32 %v1404_v28, 0.0  ;;  %v1414_v32 = vadd.f32 %v17525_v51, %v22918_v24  ;;  %v17846_v35 = vmax.f32 %v1409_v22, 0.0  ;;  %v22922_v34 = vld [vmem:[#allocation10_spill] sm:$0xff]  ;;  %v22924_v24 = vld [vmem:[#allocation9_spill] sm:$0xff] }
 0x1a4   :  { %22912 = vst [vmem:[#allocation27_spill] sm:$0xff] %v17820_v18  ;;  %22913 = vst [vmem:[#allocation28_spill] sm:$0xff] %v17826_v31  ;;  %v39_v36 = vlaneseq  ;;  %v17856_v28 = vmax.f32 %v1419_v26, 0.0  ;;  %v22929_v26 = vld [vmem:[#allocation11_spill] sm:$0xff] }
 0x1a5   :  { %22914 = vst [vmem:[#allocation29_spill] sm:$0xff] %v17830_v20  ;;  %22915 = vst [vmem:[#allocation30_spill] sm:$0xff] %v17836_v33 }
 0x1a6   :  { %13340 = vmatmul.mubr.f32.gmra.mrb[22].mxu1 %v17696_v5  ;;  %22917 = vst [vmem:[#allocation6_spill] sm:$0xff] %v17840_v30  ;;  %22919 = vst [vmem:[#allocation8_spill] sm:$0xff] %v17846_v35 }
 0x1a7   :  { %13342 = vmatprep.mubr.f32.mxu1 %v17700_v42  ;;  %22923 = vst [vmem:[#allocation10_spill] sm:$0xff] %v17856_v28 }
 0x1aa   :  { %13343 = vmatmul.mubr.f32.gmra.mrb[24].mxu1 %v17706_v7 }
 0x1ab   :  { %13345 = vmatprep.mubr.f32.mxu1 %v17710_v44 }
 0x1ae   :  { %13346 = vmatmul.mubr.f32.gmra.mrb[26].mxu1 %v17716_v9 }
 0x1af   :  { %13348 = vmatprep.mubr.f32.mxu1 %v17720_v3 }
 0x1b2   :  { %13349 = vmatmul.mubr.f32.gmra.mrb[28].mxu1 %v17726_v11 }
 0x1b3   :  { %13351 = vmatprep.mubr.f32.mxu1 %v17730_v54 }
 0x1b6   :  { %13352 = vmatmul.mubr.f32.gmra.mrb[30].mxu1 %v17736_v13 }
 0x1b7   :  { %13354 = vmatprep.mubr.f32.mxu1 %v17740_v62 }
 0x1ba   :  { %13355 = vmatmul.mubr.f32.gmra.mrb[32].mxu1 %v17746_v15 }
 0x1bb   :  { %13357 = vmatprep.mubr.f32.mxu1 %v17750_v0 }
 0x1be   :  { %13358 = vmatmul.mubr.f32.gmra.mrb[34].mxu1 %v17756_v17 }
 0x1bf   :  { %13360 = vmatprep.mubr.f32.mxu1 %v17760_v6 }
 0x1c2   :  { %13361 = vmatmul.mubr.f32.gmra.mrb[36].mxu1 %v17766_v19 }
 0x1c3   :  { %13363 = vmatprep.mubr.f32.mxu1 %v17770_v8 }
 0x1c6   :  { %13364 = vmatmul.mubr.f32.gmra.mrb[38].mxu1 %v17776_v21 }
 0x1c7   :  { %13366 = vmatprep.mubr.f32.mxu1 %v17780_v10 }
 0x1ca   :  { %13367 = vmatmul.mubr.f32.gmra.mrb[40].mxu1 %v17786_v23 }
 0x1cb   :  { %13369 = vmatprep.mubr.f32.mxu1 %v17790_v12 }
 0x1ce   :  { %13370 = vmatmul.mubr.f32.gmra.mrb[42].mxu1 %v17796_v25 }
 0x1cf   :  { %13372 = vmatprep.mubr.f32.mxu1 %v17800_v14 }
 0x1d2   :  { %13373 = vmatmul.mubr.f32.gmra.mrb[44].mxu1 %v17806_v27 }
 0x1d3   :  { %13375 = vmatprep.mubr.f32.mxu1 %v17810_v16 }
 0x1d6   :  { %13376 = vmatmul.mubr.f32.gmra.mrb[46].mxu1 %v17816_v29 }
 0x1d7   :  { %13378 = vmatprep.mubr.f32.mxu1 %v17820_v18  ;;  %v22932_v18 = vld [vmem:[#allocation14_spill] sm:$0xff] }
 0x1da   :  { %13379 = vmatmul.mubr.f32.gmra.mrb[48].mxu1 %v17826_v31  ;;  %v17850_v31 = vmax.f32 %v1414_v32, 0.0  ;;  %v17864_v32 = vshrl.u32 %v39_v36, 7 }
 0x1db   :  { %13381 = vmatprep.mubr.f32.mxu1 %v17830_v20  ;;  %v1424_v20 = vadd.f32 %v17525_v51, %v22922_v34 }
 0x1dc   :  { %22921 = vst [vmem:[#allocation7_spill] sm:$0xff] %v17850_v31  ;;  %v102_v34 = vadd.s32 496, %v17864_v32  ;;  %vm1600_vm1 = vcmp.lt.s32.totalorder %v17864_v32, 1 }
 0x1dd   :  { %v17860_v22 = vmax.f32 %v1424_v20, 0.0 }
 0x1de   :  { %13382 = vmatmul.mubr.f32.gmra.mrb[50].mxu1 %v17836_v33  ;;  %v1429_v33 = vadd.f32 %v22924_v24, %v17525_v51  ;;  %v22930_v24 = vld [vmem:[#allocation15_spill] sm:$0xff]  ;;  %v166_v36 = vand.u32 15, %v102_v34  ;;  %v42_v34 = vadd.s32 16, %v17864_v32 }
 0x1df   :  { %13384 = vmatprep.mubr.f32.mxu1 %v17840_v30  ;;  %22925 = vst [vmem:[#allocation9_spill] sm:$0xff] %v17860_v22  ;;  %v22926_v30 = vld [vmem:[#allocation12_spill] sm:$0xff]  ;;  %v1459_v20 = vadd.f32 %v22930_v24, %v17525_v51 }
 0x1e0   :  { %v1434_v38 = vadd.f32 %v17525_v51, %v22926_v30  ;;  %22927 = vst [vmem:[#allocation12_spill] sm:$0xff] %v17864_v32  ;;  %v1444_v30 = vadd.f32 %v17525_v51, %v22932_v18  ;;  %v22937_v24 = vld [vmem:[#allocation16_spill] sm:$0xff]  ;;  %v1598_v18 = vrot.slane %v17537_v47, 7  ;;  %vm294_vm0 = vcmp.gt.s32.totalorder %v166_v36, 0 }
 0x1e1   :  { %v17885_v27 = vmax.f32 %v1459_v20, 0.0  ;;  %v1536_v47 = vrot.slane %v17543_v37, 7  ;;  %v1538_v37 = vrot.slane %v17561_v43, 7  ;;  %v11299_v43 = vld [vmem:[%s22204_s3 + $0x120] sm:$0xff] }
 0x1e2   :  { %13385 = vmatmul.mubr.f32.gmra.mrb[52].mxu1 %v17846_v35  ;;  %v17869_v35 = vmax.f32 %v1429_v33, 0.0  ;;  %v17875_v29 = vmax.f32 %v1434_v38, 0.0  ;;  %v22934_v33 = vld [vmem:[#allocation13_spill] sm:$0xff]  ;;  %v1454_v38 = vadd.f32 %v17525_v51, %v22937_v24  ;;  %v106_v24 = vand.u32 15, %v42_v34 }
 0x1e3   :  { %13387 = vmatprep.mubr.f32.mxu1 %v17850_v31  ;;  %v1439_v31 = vadd.f32 %v22929_v26, %v17525_v51  ;;  %22935 = vst [vmem:[#allocation14_spill] sm:$0xff] %v17885_v27  ;;  %v17887_v26 = vmax.f32 %v1444_v30, 0.0  ;;  %v22243_v20 = vrot.slane %v17885_v27, 7 }
 0x1e4   :  { %22928 = vst [vmem:[#allocation31_spill] sm:$0xff] %v17869_v35  ;;  %22931 = vst [vmem:[#allocation11_spill] sm:$0xff] %v17875_v29  ;;  %v17899_v30 = vmax.f32 %v1454_v38, 0.0  ;;  %v44_v38 = vadd.s32 32, %v17864_v32  ;;  %vm234_vm3 = vcmp.gt.s32.totalorder %v106_v24, 0  ;;  %v11300_v24 = vld [vmem:[%s22204_s3 + $0x128] sm:$0xff] }
 0x1e5   :  { %22936 = vst [vmem:[#allocation13_spill] sm:$0xff] %v17887_v26  ;;  %v1602_v36 = vsel %vm1600_vm1, %v22243_v20, %v1598_v18  ;;  %v11298_v20 = vld [vmem:[%s22204_s3 + $0x118] sm:$0xff] }
 0x1e6   :  { %13388 = vmatmul.mubr.f32.gmra.mrb[54].mxu1 %v17856_v28  ;;  %v17881_v28 = vmax.f32 %v1439_v31, 0.0  ;;  %v104_v31 = vand.u32 15, %v17864_v32  ;;  %22939 = vst [vmem:[#allocation32_spill] sm:$0xff] %v17899_v30 }
 0x1e7   :  { %13390 = vmatprep.mubr.f32.mxu1 %v17860_v22  ;;  %v1449_v22 = vadd.f32 %v22934_v33, %v17525_v51  ;;  %v22241_v51 = vmov 0.0  }
 0x1e8   :  { %22933 = vst [vmem:[#allocation15_spill] sm:$0xff] %v17881_v28  ;;  %v17904_v33 = vsel %vm294_vm0, 1.0, %v22241_v51  ;;  %vm232_vm2 = vcmp.gt.s32.totalorder %v104_v31, 0  ;;  %v11297_v51 = vld [vmem:[%s22204_s3 + $0x110] sm:$0xff] }
 0x1e9   :  { %22940 = vst [vmem:[#allocation33_spill] sm:$0xff] %v17904_v33 }
 0x1ea   :  { %13391 = vmatmul.mubr.f32.gmra.mrb[56].mxu1 %v17869_v35  ;;  %v17896_v35 = vmax.f32 %v1449_v22, 0.0  ;;  %v1599_v22 = vrot.slane %v17541_v41, 7  ;;  %v22942_v41 = vmov 0.0  }
 0x1eb   :  { %13393 = vmatprep.mubr.f32.mxu1 %v17875_v29  ;;  %v17925_v31 = vsel %vm232_vm2, 1.0, %v22942_v41 }
 0x1ec   :  { %22938 = vst [vmem:[#allocation16_spill] sm:$0xff] %v17896_v35  ;;  %22943 = vst [vmem:[#allocation35_spill] sm:$0xff] %v17925_v31  ;;  %v1664_v34 = vsel %vm1600_vm1, %v1599_v22, %v1536_v47 }
 0x1ee   :  { %13394 = vmatmul.mubr.f32.gmra.mrb[58].mxu1 %v17881_v28  ;;  %v15713_v28 = vpack.c.bf16 %v11298_v20, %v11297_v51  ;;  %v1540_v20 = vrot.slane %v17577_v49, 7 }
 0x1ef   :  { %13396 = vmatprep.mubr.f32.mxu1 %v17887_v26  ;;  %v17938_v26 = vmul.f32 %v17925_v31, %v1664_v34  ;;  %v1539_v34 = vrot.slane %v17573_v53, 7  ;;  %v15717_v31 = vpack.c.bf16 %v11300_v24, %v11299_v43  ;;  %v1542_v43 = vrot.slane %v17593_v46, 7 }
 0x1f0   :  { %v50_v24 = vadd.s32 80, %v17864_v32 }
 0x1f1   :  { %22945 = vst [vmem:[#allocation37_spill] sm:$0xff] %v17938_v26 }
 0x1f2   :  { %13397 = vmatmul.mubr.f32.gmra.mrb[60].mxu1 %v17896_v35  ;;  %v17915_v35 = vmul.f32 %v17904_v33, %v1602_v36  ;;  %v108_v36 = vand.u32 15, %v44_v38  ;;  %v46_v33 = vadd.s32 48, %v17864_v32  ;;  %v17948_v38 = vsel %vm234_vm3, 1.0, %v22942_v41 }
 0x1f3   :  { %13399 = vmatprep.mubr.f32.mxu1 %v17899_v30  ;;  %v1537_v30 = vrot.slane %v17557_v48, 7  ;;  %22946 = vst [vmem:[#allocation38_spill] sm:$0xff] %v17948_v38 }
 0x1f4   :  { %22941 = vst [vmem:[#allocation34_spill] sm:$0xff] %v17915_v35  ;;  %vm236_vm4 = vcmp.gt.s32.totalorder %v108_v36, 0  ;;  %v110_v51 = vand.u32 15, %v46_v33  ;;  %v11302_v33 = vld [vmem:[%s22204_s3 + $0x138] sm:$0xff] }
 0x1f5   :  { %v17972_v36 = vsel %vm236_vm4, 1.0, %v22942_v41 }
 0x1f6   :  { %13400 = vmatmul.mubr.f32.gmra.mrb[62].mxu1 %v17885_v27  ;;  %v17935_v27 = vsel %vm1600_vm1, %v1598_v18, %v1599_v22  ;;  %v1662_v18 = vsel %vm1600_vm1, %v1537_v30, %v1538_v37  ;;  %v48_v22 = vadd.s32 64, %v17864_v32  ;;  %22949 = vst [vmem:[#allocation41_spill] sm:$0xff] %v17972_v36  ;;  %vm238_vm5 = vcmp.gt.s32.totalorder %v110_v51, 0 }
 0x1f7   :  { %13434 = vmatprep.mubr.f32.mxu1 %v17915_v35  ;;  %22944 = vst [vmem:[#allocation36_spill] sm:$0xff] %v17935_v27  ;;  %v17962_v35 = vmul.f32 %v17948_v38, %v1662_v18  ;;  %v1541_v18 = vrot.slane %v17589_v55, 7  ;;  %v17995_v51 = vsel %vm238_vm5, 1.0, %v22942_v41 }
 0x1f8   :  { %22952 = vst [vmem:[#allocation44_spill] sm:$0xff] %v17995_v51 }
 0x1f9   :  { %22948 = vst [vmem:[#allocation40_spill] sm:$0xff] %v17962_v35 }
 0x1fa   :  { %13435 = vmatmul.mubr.f32.vlgmr.msra.gmra.mrb[0].mxu1 %v17935_v27  ;;  %v17959_v27 = vsel %vm1600_vm1, %v1536_v47, %v1537_v30  ;;  %v1660_v47 = vsel %vm1600_vm1, %v1539_v34, %v1540_v20  ;;  %v112_v30 = vand.u32 15, %v48_v22  ;;  %v1544_v22 = vrot.slane %v17609_v39, 7 }
 0x1fb   :  { %15712 = vmatpush3.bf16.msra.mxu1 %v17657_v2  ;;  %13437 = vmatprep.mubr.f32.mxu1 %v17938_v26  ;;  %22947 = vst [vmem:[#allocation39_spill] sm:$0xff] %v17959_v27  ;;  %v11301_v2 = vld [vmem:[%s22204_s3 + $0x130] sm:$0xff]  ;;  %v17985_v26 = vmul.f32 %v17972_v36, %v1660_v47  ;;  %v18005_v36 = vsel %vm1600_vm1, %v1540_v20, %v1541_v18  ;;  %v1546_v20 = vrot.slane %v17625_v50, 7 }
 0x1fc   :  { %15714 = vmatprep.subr.bf16.mxu1 %v15713_v28  ;;  %v15721_v38 = vpack.c.bf16 %v11302_v33, %v11301_v2  ;;  %vm240_vm6 = vcmp.gt.s32.totalorder %v112_v30, 0  ;;  %v52_v2 = vadd.s32 96, %v17864_v32  ;;  %v1543_v33 = vrot.slane %v17605_v57, 7  ;;  %22953 = vst [vmem:[#allocation45_spill] sm:$0xff] %v18005_v36  ;;  %v11306_v30 = vld [vmem:[%s22204_s3 + $0x158] sm:$0xff] }
 0x1fd   :  { %22951 = vst [vmem:[#allocation43_spill] sm:$0xff] %v17985_v26 }
 0x1fe   :  { %13438 = vmatmul.mubr.f32.gmra.mrb[2].mxu1 %v17959_v27  ;;  %v17982_v27 = vsel %vm1600_vm1, %v1538_v37, %v1539_v34  ;;  %v1658_v37 = vsel %vm1600_vm1, %v1541_v18, %v1542_v43  ;;  %v114_v34 = vand.u32 15, %v50_v24  ;;  %v116_v24 = vand.u32 15, %v52_v2 }
 0x1ff   :  { %13440 = vmatprep.mubr.f32.mxu1 %v17962_v35  ;;  %15716 = vmatpush3.bf16.msra.mxu1 %v15713_v28  ;;  %22950 = vst [vmem:[#allocation42_spill] sm:$0xff] %v17982_v27  ;;  %v11303_v35 = vld [vmem:[%s22204_s3 + $0x140] sm:$0xff]  ;;  %v11304_v28 = vld [vmem:[%s22204_s3 + $0x148] sm:$0xff]  ;;  %v54_v18 = vadd.s32 112, %v17864_v32 }
 0x200   :  { %15718 = vmatprep.subr.bf16.mxu1 %v15717_v31  ;;  %v15725_v47 = vpack.c.bf16 %v11304_v28, %v11303_v35  ;;  %v1656_v35 = vsel %vm1600_vm1, %v1543_v33, %v1544_v22  ;;  %vm242_vm7 = vcmp.gt.s32.totalorder %v114_v34, 0  ;;  %v1545_v28 = vrot.slane %v17621_v59, 7  ;;  %v11308_v34 = vld [vmem:[%s22204_s3 + $0x168] sm:$0xff] }
 0x201   :  { %vm244_vm8 = vcmp.gt.s32.totalorder %v116_v24, 0  ;;  %v118_v2 = vand.u32 15, %v54_v18  ;;  %v11310_v24 = vld [vmem:[%s22204_s3 + $0x178] sm:$0xff] }
 0x202   :  { %13441 = vmatmul.mubr.f32.gmra.mrb[4].mxu1 %v17982_v27  ;;  %v18008_v27 = vmul.f32 %v17995_v51, %v1658_v37  ;;  %v18028_v51 = vsel %vm1600_vm1, %v1542_v43, %v1543_v33  ;;  %v1548_v43 = vrot.slane %v17641_v45, 7  ;;  %v56_v33 = vadd.s32 128, %v17864_v32 }
 0x203   :  { %13443 = vmatprep.mubr.f32.mxu1 %v17985_v26  ;;  %15720 = vmatpush3.bf16.msra.mxu1 %v15717_v31  ;;  %v11305_v26 = vld [vmem:[%s22204_s3 + $0x150] sm:$0xff]  ;;  %v18018_v31 = vsel %vm240_vm6, 1.0, %v22942_v41  ;;  %22956 = vst [vmem:[#allocation48_spill] sm:$0xff] %v18028_v51  ;;  %vm246_vm9 = vcmp.gt.s32.totalorder %v118_v2, 0  ;;  %v11328_v2 = vld [vmem:[%s22204_s3 + $0x208] sm:$0xff] }
 0x204   :  { %15722 = vmatprep.subr.bf16.mxu1 %v15721_v38  ;;  %22954 = vst [vmem:[#allocation46_spill] sm:$0xff] %v18008_v27  ;;  %22955 = vst [vmem:[#allocation47_spill] sm:$0xff] %v18018_v31  ;;  %v15729_v37 = vpack.c.bf16 %v11306_v30, %v11305_v26  ;;  %v1654_v26 = vsel %vm1600_vm1, %v1545_v28, %v1546_v20  ;;  %v1547_v30 = vrot.slane %v17637_v61, 7  ;;  %v120_v18 = vand.u32 15, %v56_v33 }
 0x206   :  { %13444 = vmatmul.mubr.f32.gmra.mrb[6].mxu1 %v18005_v36  ;;  %v18031_v36 = vmul.f32 %v18018_v31, %v1656_v35  ;;  %v18051_v31 = vsel %vm1600_vm1, %v1544_v22, %v1545_v28  ;;  %v1550_v22 = vrot.slane %v17659_v52, 7  ;;  %v58_v28 = vadd.s32 144, %v17864_v32 }
 0x207   :  { %13446 = vmatprep.mubr.f32.mxu1 %v18008_v27  ;;  %15724 = vmatpush3.bf16.msra.mxu1 %v15721_v38  ;;  %v11307_v27 = vld [vmem:[%s22204_s3 + $0x160] sm:$0xff]  ;;  %v18041_v38 = vsel %vm242_vm7, 1.0, %v22942_v41  ;;  %22959 = vst [vmem:[#allocation51_spill] sm:$0xff] %v18051_v31  ;;  %vm248_vm10 = vcmp.gt.s32.totalorder %v120_v18, 0 }
 0x208   :  { %15726 = vmatprep.subr.bf16.mxu1 %v15725_v47  ;;  %22957 = vst [vmem:[#allocation49_spill] sm:$0xff] %v18031_v36  ;;  %22958 = vst [vmem:[#allocation50_spill] sm:$0xff] %v18041_v38  ;;  %v15733_v35 = vpack.c.bf16 %v11308_v34, %v11307_v27  ;;  %v1652_v27 = vsel %vm1600_vm1, %v1547_v30, %v1548_v43  ;;  %v1549_v34 = vrot.slane %v17653_v63, 7  ;;  %v122_v33 = vand.u32 15, %v58_v28 }
 0x209   :  { %v18106_v18 = vsel %vm248_vm10, 1.0, %v22942_v41  ;;  %v1554_v28 = vrot.slane %v17680_v40, 7 }
 0x20a   :  { %13447 = vmatmul.mubr.f32.gmra.mrb[8].mxu1 %v18028_v51  ;;  %v18054_v51 = vmul.f32 %v18041_v38, %v1654_v26  ;;  %v18074_v38 = vsel %vm1600_vm1, %v1546_v20, %v1547_v30  ;;  %v1552_v20 = vrot.slane %v17670_v1, 7  ;;  %v60_v30 = vadd.s32 160, %v17864_v32  ;;  %22967 = vst [vmem:[#allocation59_spill] sm:$0xff] %v18106_v18 }
 0x20b   :  { %13449 = vmatprep.mubr.f32.mxu1 %v18031_v36  ;;  %15728 = vmatpush3.bf16.msra.mxu1 %v15725_v47  ;;  %v11309_v36 = vld [vmem:[%s22204_s3 + $0x170] sm:$0xff]  ;;  %v18064_v47 = vsel %vm244_vm8, 1.0, %v22942_v41  ;;  %22962 = vst [vmem:[#allocation54_spill] sm:$0xff] %v18074_v38  ;;  %vm250_vm11 = vcmp.gt.s32.totalorder %v122_v33, 0 }
 0x20c   :  { %15730 = vmatprep.subr.bf16.mxu1 %v15729_v37  ;;  %22960 = vst [vmem:[#allocation52_spill] sm:$0xff] %v18054_v51  ;;  %22961 = vst [vmem:[#allocation53_spill] sm:$0xff] %v18064_v47  ;;  %v15737_v26 = vpack.c.bf16 %v11310_v24, %v11309_v36  ;;  %v1650_v36 = vsel %vm1600_vm1, %v1549_v34, %v1550_v22  ;;  %v1551_v24 = vrot.slane %v17665_v58, 7 }
 0x20e   :  { %13450 = vmatmul.mubr.f32.gmra.mrb[10].mxu1 %v18051_v31  ;;  %v18077_v31 = vmul.f32 %v18064_v47, %v1652_v27  ;;  %v18099_v47 = vsel %vm1600_vm1, %v1548_v43, %v1549_v34  ;;  %v62_v43 = vadd.s32 176, %v17864_v32  ;;  %v1553_v34 = vrot.slane %v17676_v4, 7 }
 0x20f   :  { %13452 = vmatprep.mubr.f32.mxu1 %v18054_v51  ;;  %15732 = vmatpush3.bf16.msra.mxu1 %v15729_v37  ;;  %v11327_v51 = vld [vmem:[%s22204_s3 + $0x200] sm:$0xff]  ;;  %v18087_v37 = vsel %vm246_vm9, 1.0, %v22942_v41  ;;  %22965 = vst [vmem:[#allocation57_spill] sm:$0xff] %v18099_v47 }
 0x210   :  { %15734 = vmatprep.subr.bf16.mxu1 %v15733_v35  ;;  %22963 = vst [vmem:[#allocation55_spill] sm:$0xff] %v18077_v31  ;;  %22964 = vst [vmem:[#allocation56_spill] sm:$0xff] %v18087_v37  ;;  %v18095_v27 = vpack.c.bf16 %v11328_v2, %v11327_v51  ;;  %v124_v51 = vand.u32 15, %v60_v30  ;;  %v18117_v2 = vsel %vm1600_vm1, %v1550_v22, %v1551_v24  ;;  %v126_v30 = vand.u32 15, %v62_v43 }
 0x211   :  { %22968 = vst [vmem:[#allocation60_spill] sm:$0xff] %v18117_v2  ;;  %v1646_v33 = vsel %vm1600_vm1, %v1553_v34, %v1554_v28  ;;  %v64_v22 = vadd.s32 192, %v17864_v32  ;;  %v1558_v43 = vrot.slane %v17700_v42, 7 }
 0x212   :  { %13453 = vmatmul.mubr.f32.gmra.mrb[12].mxu1 %v18074_v38  ;;  %v18102_v38 = vmul.f32 %v18087_v37, %v1650_v36  ;;  %v18124_v37 = vsel %vm250_vm11, 1.0, %v22942_v41  ;;  %vm252_vm12 = vcmp.gt.s32.totalorder %v124_v51, 0  ;;  %vm254_vm13 = vcmp.gt.s32.totalorder %v126_v30, 0 }
 0x213   :  { %13455 = vmatprep.mubr.f32.mxu1 %v18077_v31  ;;  %15736 = vmatpush3.bf16.msra.mxu1 %v15733_v35  ;;  %v1648_v35 = vsel %vm1600_vm1, %v1551_v24, %v1552_v20  ;;  %22970 = vst [vmem:[#allocation62_spill] sm:$0xff] %v18124_v37  ;;  %v1555_v24 = vrot.slane %v17686_v56, 7 }
 0x214   :  { %15738 = vmatprep.subr.bf16.mxu1 %v15737_v26  ;;  %22966 = vst [vmem:[#allocation58_spill] sm:$0xff] %v18102_v38  ;;  %v18120_v36 = vmul.f32 %v18106_v18, %v1648_v35  ;;  %v18134_v35 = vsel %vm1600_vm1, %v1552_v20, %v1553_v34  ;;  %v18137_v18 = vmul.f32 %v18124_v37, %v1646_v33  ;;  %v66_v20 = vadd.s32 208, %v17864_v32 }
 0x215   :  { %22971 = vst [vmem:[#allocation63_spill] sm:$0xff] %v18134_v35  ;;  %v1557_v34 = vrot.slane %v17696_v5, 7  ;;  %v18151_v33 = vsel %vm1600_vm1, %v1554_v28, %v1555_v24  ;;  %v68_v28 = vadd.s32 224, %v17864_v32 }
 0x216   :  { %13456 = vmatmul.mubr.f32.gmra.mrb[14].mxu1 %v18099_v47  ;;  %22969 = vst [vmem:[#allocation61_spill] sm:$0xff] %v18120_v36  ;;  %22972 = vst [vmem:[#allocation64_spill] sm:$0xff] %v18137_v18 }
 0x217   :  { %13458 = vmatprep.mubr.f32.mxu1 %v18102_v38  ;;  %15740 = vmatpush3.bf16.msra.mxu1 %v15737_v26  ;;  %v1556_v26 = vrot.slane %v17690_v60, 7  ;;  %22974 = vst [vmem:[#allocation66_spill] sm:$0xff] %v18151_v33  ;;  %v1642_v30 = vsel %vm1600_vm1, %v1557_v34, %v1558_v43 }
 0x218   :  { %15742 = vmatprep.subr.bf16.mxu1 %v18095_v27 }
 0x219   :  { %v1644_v51 = vsel %vm1600_vm1, %v1555_v24, %v1556_v26  ;;  %v1559_v24 = vrot.slane %v17706_v7, 7 }
 0x21a   :  { %13459 = vmatmul.mubr.f32.gmra.mrb[16].mxu1 %v18117_v2  ;;  %v18141_v2 = vsel %vm252_vm12, 1.0, %v22942_v41 }
 0x21b   :  { %13461 = vmatprep.mubr.f32.mxu1 %v18120_v36  ;;  %22973 = vst [vmem:[#allocation65_spill] sm:$0xff] %v18141_v2  ;;  %v128_v36 = vand.u32 15, %v64_v22  ;;  %v18154_v37 = vmul.f32 %v18141_v2, %v1644_v51  ;;  %v1560_v22 = vrot.slane %v17710_v44, 7  ;;  %v18168_v51 = vsel %vm1600_vm1, %v1556_v26, %v1557_v34 }
 0x21c   :  { %22977 = vst [vmem:[#allocation69_spill] sm:$0xff] %v18168_v51  ;;  %v70_v26 = vadd.s32 240, %v17864_v32  ;;  %v1561_v34 = vrot.slane %v17716_v9, 7 }
 0x21d   :  { %22975 = vst [vmem:[#allocation67_spill] sm:$0xff] %v18154_v37  ;;  %vm256_vm14 = vcmp.gt.s32.totalorder %v128_v36, 0  ;;  %v1640_v36 = vsel %vm1600_vm1, %v1559_v24, %v1560_v22 }
 0x21e   :  { %13462 = vmatmul.mubr.f32.gmra.mrb[18].mxu1 %v18134_v35  ;;  %v18158_v35 = vsel %vm254_vm13, 1.0, %v22942_v41 }
 0x21f   :  { %13464 = vmatprep.mubr.f32.mxu1 %v18137_v18  ;;  %22976 = vst [vmem:[#allocation68_spill] sm:$0xff] %v18158_v35  ;;  %v130_v18 = vand.u32 15, %v66_v20  ;;  %v18171_v2 = vmul.f32 %v18158_v35, %v1642_v30  ;;  %v1562_v20 = vrot.slane %v17720_v3, 7  ;;  %v18185_v30 = vsel %vm1600_vm1, %v1558_v43, %v1559_v24 }
 0x220   :  { %22980 = vst [vmem:[#allocation72_spill] sm:$0xff] %v18185_v30  ;;  %v72_v43 = vadd.s32 256, %v17864_v32  ;;  %v1563_v24 = vrot.slane %v17726_v11, 7 }
 0x221   :  { %22978 = vst [vmem:[#allocation70_spill] sm:$0xff] %v18171_v2  ;;  %vm258_vm15 = vcmp.gt.s32.totalorder %v130_v18, 0  ;;  %v1638_v18 = vsel %vm1600_vm1, %v1561_v34, %v1562_v20 }
 0x222   :  { %13465 = vmatmul.mubr.f32.gmra.mrb[20].mxu1 %v18151_v33  ;;  %v18175_v33 = vsel %vm256_vm14, 1.0, %v22942_v41 }
 0x223   :  { %13467 = vmatprep.mubr.f32.mxu1 %v18154_v37  ;;  %22979 = vst [vmem:[#allocation71_spill] sm:$0xff] %v18175_v33  ;;  %v132_v37 = vand.u32 15, %v68_v28  ;;  %v18188_v35 = vmul.f32 %v18175_v33, %v1640_v36  ;;  %v1564_v28 = vrot.slane %v17730_v54, 7  ;;  %v18202_v36 = vsel %vm1600_vm1, %v1560_v22, %v1561_v34 }
 0x224   :  { %22983 = vst [vmem:[#allocation75_spill] sm:$0xff] %v18202_v36  ;;  %v74_v22 = vadd.s32 272, %v17864_v32  ;;  %v1565_v34 = vrot.slane %v17736_v13, 7 }
 0x225   :  { %22981 = vst [vmem:[#allocation73_spill] sm:$0xff] %v18188_v35  ;;  %vm260_vm0 = vcmp.gt.s32.totalorder %v132_v37, 0  ;;  %v1636_v37 = vsel %vm1600_vm1, %v1563_v24, %v1564_v28 }
 0x226   :  { %13468 = vmatmul.mubr.f32.gmra.mrb[22].mxu1 %v18168_v51  ;;  %v18192_v51 = vsel %vm258_vm15, 1.0, %v22942_v41 }
 0x227   :  { %13470 = vmatprep.mubr.f32.mxu1 %v18171_v2  ;;  %22982 = vst [vmem:[#allocation74_spill] sm:$0xff] %v18192_v51  ;;  %v134_v2 = vand.u32 15, %v70_v26  ;;  %v18205_v33 = vmul.f32 %v18192_v51, %v1638_v18  ;;  %v1566_v26 = vrot.slane %v17740_v62, 7  ;;  %v18219_v18 = vsel %vm1600_vm1, %v1562_v20, %v1563_v24 }
 0x228   :  { %22986 = vst [vmem:[#allocation78_spill] sm:$0xff] %v18219_v18  ;;  %v76_v20 = vadd.s32 288, %v17864_v32  ;;  %v1567_v24 = vrot.slane %v17746_v15, 7 }
 0x229   :  { %22984 = vst [vmem:[#allocation76_spill] sm:$0xff] %v18205_v33  ;;  %vm262_vm2 = vcmp.gt.s32.totalorder %v134_v2, 0  ;;  %v1634_v2 = vsel %vm1600_vm1, %v1565_v34, %v1566_v26 }
 0x22a   :  { %13471 = vmatmul.mubr.f32.gmra.mrb[24].mxu1 %v18185_v30  ;;  %v18209_v30 = vsel %vm260_vm0, 1.0, %v22942_v41 }
 0x22b   :  { %13473 = vmatprep.mubr.f32.mxu1 %v18188_v35  ;;  %22985 = vst [vmem:[#allocation77_spill] sm:$0xff] %v18209_v30  ;;  %v136_v35 = vand.u32 15, %v72_v43  ;;  %v18222_v51 = vmul.f32 %v18209_v30, %v1636_v37  ;;  %v1568_v43 = vrot.slane %v17750_v0, 7  ;;  %v18236_v37 = vsel %vm1600_vm1, %v1564_v28, %v1565_v34 }
 0x22c   :  { %22989 = vst [vmem:[#allocation81_spill] sm:$0xff] %v18236_v37  ;;  %v78_v28 = vadd.s32 304, %v17864_v32  ;;  %v1569_v34 = vrot.slane %v17756_v17, 7 }
 0x22d   :  { %22987 = vst [vmem:[#allocation79_spill] sm:$0xff] %v18222_v51  ;;  %vm264_vm3 = vcmp.gt.s32.totalorder %v136_v35, 0  ;;  %v1632_v35 = vsel %vm1600_vm1, %v1567_v24, %v1568_v43 }
 0x22e   :  { %13474 = vmatmul.mubr.f32.gmra.mrb[26].mxu1 %v18202_v36  ;;  %v18226_v36 = vsel %vm262_vm2, 1.0, %v22942_v41 }
 0x22f   :  { %13476 = vmatprep.mubr.f32.mxu1 %v18205_v33  ;;  %22988 = vst [vmem:[#allocation80_spill] sm:$0xff] %v18226_v36  ;;  %v138_v33 = vand.u32 15, %v74_v22  ;;  %v18239_v30 = vmul.f32 %v18226_v36, %v1634_v2  ;;  %v1570_v22 = vrot.slane %v17760_v6, 7  ;;  %v18253_v2 = vsel %vm1600_vm1, %v1566_v26, %v1567_v24 }
 0x230   :  { %22992 = vst [vmem:[#allocation84_spill] sm:$0xff] %v18253_v2  ;;  %v80_v26 = vadd.s32 320, %v17864_v32  ;;  %v1571_v24 = vrot.slane %v17766_v19, 7 }
 0x231   :  { %22990 = vst [vmem:[#allocation82_spill] sm:$0xff] %v18239_v30  ;;  %vm266_vm4 = vcmp.gt.s32.totalorder %v138_v33, 0  ;;  %v1630_v33 = vsel %vm1600_vm1, %v1569_v34, %v1570_v22 }
 0x232   :  { %13477 = vmatmul.mubr.f32.gmra.mrb[28].mxu1 %v18219_v18  ;;  %v18243_v18 = vsel %vm264_vm3, 1.0, %v22942_v41 }
 0x233   :  { %13479 = vmatprep.mubr.f32.mxu1 %v18222_v51  ;;  %22991 = vst [vmem:[#allocation83_spill] sm:$0xff] %v18243_v18  ;;  %v140_v51 = vand.u32 15, %v76_v20  ;;  %v18256_v36 = vmul.f32 %v18243_v18, %v1632_v35  ;;  %v1572_v20 = vrot.slane %v17770_v8, 7  ;;  %v18270_v35 = vsel %vm1600_vm1, %v1568_v43, %v1569_v34 }
 0x234   :  { %22995 = vst [vmem:[#allocation87_spill] sm:$0xff] %v18270_v35  ;;  %v82_v43 = vadd.s32 336, %v17864_v32  ;;  %v1573_v34 = vrot.slane %v17776_v21, 7 }
 0x235   :  { %22993 = vst [vmem:[#allocation85_spill] sm:$0xff] %v18256_v36  ;;  %vm268_vm5 = vcmp.gt.s32.totalorder %v140_v51, 0  ;;  %v1628_v51 = vsel %vm1600_vm1, %v1571_v24, %v1572_v20 }
 0x236   :  { %13480 = vmatmul.mubr.f32.gmra.mrb[30].mxu1 %v18236_v37  ;;  %v18260_v37 = vsel %vm266_vm4, 1.0, %v22942_v41  ;;  %vm1793_vm4 = vcmp.lt.s32.totalorder %v17864_v32, 7 }
 0x237   :  { %13482 = vmatprep.mubr.f32.mxu1 %v18239_v30  ;;  %22994 = vst [vmem:[#allocation86_spill] sm:$0xff] %v18260_v37  ;;  %v142_v30 = vand.u32 15, %v78_v28  ;;  %v18273_v18 = vmul.f32 %v18260_v37, %v1630_v33  ;;  %v1574_v28 = vrot.slane %v17780_v10, 7  ;;  %v18287_v33 = vsel %vm1600_vm1, %v1570_v22, %v1571_v24 }
 0x238   :  { %22998 = vst [vmem:[#allocation90_spill] sm:$0xff] %v18287_v33  ;;  %v84_v22 = vadd.s32 352, %v17864_v32  ;;  %v1575_v24 = vrot.slane %v17786_v23, 7 }
 0x239   :  { %22996 = vst [vmem:[#allocation88_spill] sm:$0xff] %v18273_v18  ;;  %vm270_vm6 = vcmp.gt.s32.totalorder %v142_v30, 0  ;;  %v1626_v30 = vsel %vm1600_vm1, %v1573_v34, %v1574_v28 }
 0x23a   :  { %13483 = vmatmul.mubr.f32.gmra.mrb[32].mxu1 %v18253_v2  ;;  %v18277_v2 = vsel %vm268_vm5, 1.0, %v22942_v41 }
 0x23b   :  { %13485 = vmatprep.mubr.f32.mxu1 %v18256_v36  ;;  %22997 = vst [vmem:[#allocation89_spill] sm:$0xff] %v18277_v2  ;;  %v144_v36 = vand.u32 15, %v80_v26  ;;  %v18290_v37 = vmul.f32 %v18277_v2, %v1628_v51  ;;  %v1576_v26 = vrot.slane %v17790_v12, 7  ;;  %v18304_v51 = vsel %vm1600_vm1, %v1572_v20, %v1573_v34 }
 0x23c   :  { %23001 = vst [vmem:[#allocation93_spill] sm:$0xff] %v18304_v51  ;;  %v86_v20 = vadd.s32 368, %v17864_v32  ;;  %v1577_v34 = vrot.slane %v17796_v25, 7 }
 0x23d   :  { %22999 = vst [vmem:[#allocation91_spill] sm:$0xff] %v18290_v37  ;;  %vm272_vm7 = vcmp.gt.s32.totalorder %v144_v36, 0  ;;  %v1624_v36 = vsel %vm1600_vm1, %v1575_v24, %v1576_v26 }
 0x23e   :  { %13486 = vmatmul.mubr.f32.gmra.mrb[34].mxu1 %v18270_v35  ;;  %v18294_v35 = vsel %vm270_vm6, 1.0, %v22942_v41 }
 0x23f   :  { %13488 = vmatprep.mubr.f32.mxu1 %v18273_v18  ;;  %23000 = vst [vmem:[#allocation92_spill] sm:$0xff] %v18294_v35  ;;  %v146_v18 = vand.u32 15, %v82_v43  ;;  %v18307_v2 = vmul.f32 %v18294_v35, %v1626_v30  ;;  %v1578_v43 = vrot.slane %v17800_v14, 7  ;;  %v18321_v30 = vsel %vm1600_vm1, %v1574_v28, %v1575_v24  ;;  %v23007_v24 = vld [vmem:[#allocation25_spill] sm:$0xff] }
 0x240   :  { %23004 = vst [vmem:[#allocation96_spill] sm:$0xff] %v18321_v30  ;;  %v88_v28 = vadd.s32 384, %v17864_v32  ;;  %v1579_v38 = vrot.slane %v23007_v24, 7 }
 0x241   :  { %23002 = vst [vmem:[#allocation94_spill] sm:$0xff] %v18307_v2  ;;  %vm274_vm8 = vcmp.gt.s32.totalorder %v146_v18, 0  ;;  %v1622_v18 = vsel %vm1600_vm1, %v1577_v34, %v1578_v43 }
 0x242   :  { %13489 = vmatmul.mubr.f32.gmra.mrb[36].mxu1 %v18287_v33  ;;  %v18311_v33 = vsel %vm272_vm7, 1.0, %v22942_v41  ;;  %v152_v47 = vand.u32 15, %v88_v28  ;;  %v23016_v28 = vld [vmem:[#allocation29_spill] sm:$0xff] }
 0x243   :  { %13491 = vmatprep.mubr.f32.mxu1 %v18290_v37  ;;  %23003 = vst [vmem:[#allocation95_spill] sm:$0xff] %v18311_v33  ;;  %v148_v37 = vand.u32 15, %v84_v22  ;;  %v18324_v35 = vmul.f32 %v18311_v33, %v1624_v36  ;;  %v1580_v22 = vrot.slane %v17810_v16, 7  ;;  %v18338_v36 = vsel %vm1600_vm1, %v1576_v26, %v1577_v34  ;;  %v23012_v34 = vld [vmem:[#allocation26_spill] sm:$0xff] }
 0x244   :  { %23008 = vst [vmem:[#allocation25_spill] sm:$0xff] %v18338_v36  ;;  %v90_v26 = vadd.s32 400, %v17864_v32  ;;  %v1581_v31 = vrot.slane %v23012_v34, 7  ;;  %vm280_vm11 = vcmp.gt.s32.totalorder %v152_v47, 0 }
 0x245   :  { %23005 = vst [vmem:[#allocation97_spill] sm:$0xff] %v18324_v35  ;;  %vm276_vm9 = vcmp.gt.s32.totalorder %v148_v37, 0  ;;  %v1620_v37 = vsel %vm1600_vm1, %v1579_v38, %v1580_v22 }
 0x246   :  { %13492 = vmatmul.mubr.f32.gmra.mrb[38].mxu1 %v18304_v51  ;;  %v18328_v51 = vsel %vm274_vm8, 1.0, %v22942_v41  ;;  %v154_v34 = vand.u32 15, %v90_v26  ;;  %v23021_v26 = vld [vmem:[#allocation6_spill] sm:$0xff] }
 0x247   :  { %13494 = vmatprep.mubr.f32.mxu1 %v18307_v2  ;;  %23006 = vst [vmem:[#allocation98_spill] sm:$0xff] %v18328_v51  ;;  %v150_v2 = vand.u32 15, %v86_v20  ;;  %v18341_v33 = vmul.f32 %v18328_v51, %v1622_v18  ;;  %v23011_v20 = vld [vmem:[#allocation27_spill] sm:$0xff]  ;;  %v18355_v18 = vsel %vm1600_vm1, %v1578_v43, %v1579_v38  ;;  %v92_v38 = vadd.s32 416, %v17864_v32  ;;  %v23017_v43 = vld [vmem:[#allocation28_spill] sm:$0xff] }
 0x248   :  { %23013 = vst [vmem:[#allocation101_spill] sm:$0xff] %v18355_v18  ;;  %vm282_vm12 = vcmp.gt.s32.totalorder %v154_v34, 0 }
 0x249   :  { %23009 = vst [vmem:[#allocation99_spill] sm:$0xff] %v18341_v33  ;;  %vm278_vm10 = vcmp.gt.s32.totalorder %v150_v2, 0 }
 0x24a   :  { %13495 = vmatmul.mubr.f32.gmra.mrb[40].mxu1 %v18321_v30  ;;  %v18345_v30 = vsel %vm276_vm9, 1.0, %v22942_v41 }
 0x24b   :  { %13497 = vmatprep.mubr.f32.mxu1 %v18324_v35  ;;  %23010 = vst [vmem:[#allocation100_spill] sm:$0xff] %v18345_v30  ;;  %v1582_v35 = vrot.slane %v23011_v20, 7  ;;  %v18358_v51 = vmul.f32 %v18345_v30, %v1620_v37  ;;  %v1583_v20 = vrot.slane %v23017_v43, 7  ;;  %v18372_v37 = vsel %vm1600_vm1, %v1580_v22, %v1581_v31  ;;  %v23022_v22 = vld [vmem:[#allocation30_spill] sm:$0xff] }
 0x24c   :  { %23018 = vst [vmem:[#allocation104_spill] sm:$0xff] %v18372_v37  ;;  %v156_v43 = vand.u32 15, %v92_v38  ;;  %v23026_v38 = vld [vmem:[#allocation7_spill] sm:$0xff] }
 0x24d   :  { %23014 = vst [vmem:[#allocation102_spill] sm:$0xff] %v18358_v51  ;;  %v1618_v2 = vsel %vm1600_vm1, %v1581_v31, %v1582_v35  ;;  %v94_v31 = vadd.s32 432, %v17864_v32 }
 0x24e   :  { %13498 = vmatmul.mubr.f32.gmra.mrb[42].mxu1 %v18338_v36  ;;  %v18362_v36 = vsel %vm278_vm10, 1.0, %v22942_v41  ;;  %vm284_vm13 = vcmp.gt.s32.totalorder %v156_v43, 0 }
 0x24f   :  { %13500 = vmatprep.mubr.f32.mxu1 %v18341_v33  ;;  %23015 = vst [vmem:[#allocation103_spill] sm:$0xff] %v18362_v36  ;;  %v1584_v33 = vrot.slane %v23016_v28, 7  ;;  %v18375_v30 = vmul.f32 %v18362_v36, %v1618_v2  ;;  %v1585_v28 = vrot.slane %v23022_v22, 7  ;;  %v18389_v2 = vsel %vm1600_vm1, %v1582_v35, %v1583_v20 }
 0x250   :  { %23023 = vst [vmem:[#allocation107_spill] sm:$0xff] %v18389_v2  ;;  %v158_v22 = vand.u32 15, %v94_v31  ;;  %v96_v35 = vadd.s32 448, %v17864_v32  ;;  %v23031_v31 = vld [vmem:[#allocation9_spill] sm:$0xff] }
 0x251   :  { %23019 = vst [vmem:[#allocation105_spill] sm:$0xff] %v18375_v30  ;;  %v1616_v47 = vsel %vm1600_vm1, %v1583_v20, %v1584_v33  ;;  %v23027_v20 = vld [vmem:[#allocation8_spill] sm:$0xff] }
 0x252   :  { %13501 = vmatmul.mubr.f32.gmra.mrb[44].mxu1 %v18355_v18  ;;  %v18379_v18 = vsel %vm280_vm11, 1.0, %v22942_v41  ;;  %vm286_vm14 = vcmp.gt.s32.totalorder %v158_v22, 0 }
 0x253   :  { %13503 = vmatprep.mubr.f32.mxu1 %v18358_v51  ;;  %23020 = vst [vmem:[#allocation106_spill] sm:$0xff] %v18379_v18  ;;  %v1586_v51 = vrot.slane %v23021_v26, 7  ;;  %v18392_v36 = vmul.f32 %v18379_v18, %v1616_v47  ;;  %v1587_v26 = vrot.slane %v23027_v20, 7  ;;  %v18406_v47 = vsel %vm1600_vm1, %v1584_v33, %v1585_v28 }
 0x254   :  { %23028 = vst [vmem:[#allocation110_spill] sm:$0xff] %v18406_v47  ;;  %v160_v20 = vand.u32 15, %v96_v35  ;;  %v98_v33 = vadd.s32 464, %v17864_v32  ;;  %v1592_v35 = vrot.slane %v17875_v29, 7  ;;  %v23041_v29 = vld [vmem:[#allocation15_spill] sm:$0xff] }
 0x255   :  { %23024 = vst [vmem:[#allocation108_spill] sm:$0xff] %v18392_v36  ;;  %v1614_v34 = vsel %vm1600_vm1, %v1585_v28, %v1586_v51  ;;  %v23032_v28 = vld [vmem:[#allocation10_spill] sm:$0xff] }
 0x256   :  { %13504 = vmatmul.mubr.f32.gmra.mrb[46].mxu1 %v18372_v37  ;;  %v18396_v37 = vsel %vm282_vm12, 1.0, %v22942_v41  ;;  %vm288_vm15 = vcmp.gt.s32.totalorder %v160_v20, 0 }
 0x257   :  { %13506 = vmatprep.mubr.f32.mxu1 %v18375_v30  ;;  %23025 = vst [vmem:[#allocation109_spill] sm:$0xff] %v18396_v37  ;;  %v1588_v30 = vrot.slane %v23026_v38, 7  ;;  %v18409_v18 = vmul.f32 %v18396_v37, %v1614_v34  ;;  %v1589_v38 = vrot.slane %v23032_v28, 7  ;;  %v18423_v34 = vsel %vm1600_vm1, %v1586_v51, %v1587_v26 }
 0x258   :  { %23033 = vst [vmem:[#allocation113_spill] sm:$0xff] %v18423_v34  ;;  %v100_v51 = vadd.s32 480, %v17864_v32 }
 0x259   :  { %23029 = vst [vmem:[#allocation111_spill] sm:$0xff] %v18409_v18  ;;  %v1612_v43 = vsel %vm1600_vm1, %v1587_v26, %v1588_v30  ;;  %v23036_v26 = vld [vmem:[#allocation31_spill] sm:$0xff] }
 0x25a   :  { %13507 = vmatmul.mubr.f32.gmra.mrb[48].mxu1 %v18389_v2  ;;  %v18413_v2 = vsel %vm284_vm13, 1.0, %v22942_v41  ;;  %v1591_v28 = vrot.slane %v23036_v26, 7  ;;  %v164_v26 = vand.u32 15, %v100_v51  ;;  %v103_v51 = vadd.s32 504, %v17864_v32 }
 0x25b   :  { %13509 = vmatprep.mubr.f32.mxu1 %v18392_v36  ;;  %23030 = vst [vmem:[#allocation112_spill] sm:$0xff] %v18413_v2  ;;  %v1590_v36 = vrot.slane %v23031_v31, 7  ;;  %v18426_v37 = vmul.f32 %v18413_v2, %v1612_v43  ;;  %v18440_v43 = vsel %vm1600_vm1, %v1588_v30, %v1589_v38  ;;  %v1593_v30 = vrot.slane %v23041_v29, 7 }
 0x25c   :  { %23037 = vst [vmem:[#allocation116_spill] sm:$0xff] %v18440_v43  ;;  %v1608_v20 = vsel %vm1600_vm1, %v1591_v28, %v1592_v35  ;;  %vm292_vm2 = vcmp.gt.s32.totalorder %v164_v26, 0  ;;  %v167_v29 = vand.u32 15, %v103_v51  ;;  %v41_v26 = vadd.s32 8, %v17864_v32 }
 0x25d   :  { %23034 = vst [vmem:[#allocation114_spill] sm:$0xff] %v18426_v37  ;;  %v1610_v22 = vsel %vm1600_vm1, %v1589_v38, %v1590_v36  ;;  %v18456_v38 = vsel %vm1600_vm1, %v1590_v36, %v1591_v28  ;;  %v23046_v36 = vld [vmem:[#allocation16_spill] sm:$0xff] }
 0x25e   :  { %13510 = vmatmul.mubr.f32.gmra.mrb[50].mxu1 %v18406_v47  ;;  %v18430_v47 = vsel %vm286_vm14, 1.0, %v22942_v41  ;;  %23042 = vst [vmem:[#allocation119_spill] sm:$0xff] %v18456_v38  ;;  %v1595_v28 = vrot.slane %v23046_v36, 7  ;;  %vm487_vm3 = vcmp.lt.s32.totalorder %v167_v29, 15  ;;  %v105_v36 = vand.u32 15, %v41_v26  ;;  %v23059_v26 = vld [vmem:[#allocation21_spill] sm:$0xff] }
 0x25f   :  { %13512 = vmatprep.mubr.f32.mxu1 %v18409_v18  ;;  %23035 = vst [vmem:[#allocation115_spill] sm:$0xff] %v18430_v47  ;;  %v162_v18 = vand.u32 15, %v98_v33  ;;  %v18443_v2 = vmul.f32 %v18430_v47, %v1610_v22  ;;  %v23040_v33 = vld [vmem:[#allocation13_spill] sm:$0xff]  ;;  %v1731_v51 = vrot.slane %v23059_v26, 1 }
 0x260   :  { %vm425_vm5 = vcmp.lt.s32.totalorder %v105_v36, 15  ;;  %v11331_v36 = vld [vmem:[%s22204_s3 + $0x220] sm:$0xff] }
 0x261   :  { %23038 = vst [vmem:[#allocation117_spill] sm:$0xff] %v18443_v2  ;;  %vm290_vm0 = vcmp.gt.s32.totalorder %v162_v18, 0 }
 0x262   :  { %13513 = vmatmul.mubr.f32.gmra.mrb[52].mxu1 %v18423_v34  ;;  %v18447_v34 = vsel %vm288_vm15, 1.0, %v22942_v41  ;;  %v18463_v47 = vsel %vm290_vm0, 1.0, %v22942_v41 }
 0x263   :  { %13515 = vmatprep.mubr.f32.mxu1 %v18426_v37  ;;  %23039 = vst [vmem:[#allocation118_spill] sm:$0xff] %v18447_v34  ;;  %v1594_v37 = vrot.slane %v23040_v33, 7  ;;  %v18459_v22 = vmul.f32 %v18447_v34, %v1608_v20  ;;  %23044 = vst [vmem:[#allocation121_spill] sm:$0xff] %v18463_v47  ;;  %v18473_v20 = vsel %vm1600_vm1, %v1592_v35, %v1593_v30 }
 0x264   :  { %23047 = vst [vmem:[#allocation122_spill] sm:$0xff] %v18473_v20 }
 0x265   :  { %23043 = vst [vmem:[#allocation120_spill] sm:$0xff] %v18459_v22  ;;  %v18489_v35 = vsel %vm1600_vm1, %v1594_v37, %v1595_v28 }
 0x266   :  { %13516 = vmatmul.mubr.f32.gmra.mrb[54].mxu1 %v18440_v43  ;;  %v1606_v43 = vsel %vm1600_vm1, %v1593_v30, %v1594_v37  ;;  %23050 = vst [vmem:[#allocation125_spill] sm:$0xff] %v18489_v35  ;;  %v23052_v30 = vld [vmem:[#allocation18_spill] sm:$0xff] }
 0x267   :  { %13518 = vmatprep.mubr.f32.mxu1 %v18443_v2  ;;  %v23045_v2 = vld [vmem:[#allocation32_spill] sm:$0xff]  ;;  %v18476_v34 = vmul.f32 %v18463_v47, %v1606_v43  ;;  %v1792_v47 = vrot.slane %v23052_v30, 1  ;;  %v23055_v37 = vld [vmem:[#allocation14_spill] sm:$0xff]  ;;  %v45_v30 = vadd.s32 40, %v17864_v32 }
 0x268   :  { %v1596_v18 = vrot.slane %v23045_v2, 7 }
 0x269   :  { %23048 = vst [vmem:[#allocation123_spill] sm:$0xff] %v18476_v34 }
 0x26a   :  { %13519 = vmatmul.mubr.f32.gmra.mrb[56].mxu1 %v18456_v38  ;;  %v18480_v38 = vsel %vm292_vm2, 1.0, %v22942_v41  ;;  %v1604_v2 = vsel %vm1600_vm1, %v1595_v28, %v1596_v18  ;;  %v23056_v28 = vrot.slane %v23055_v37, 7  ;;  %v18532_v37 = vsel %vm425_vm5, 1.0, %v22942_v41 }
 0x26b   :  { %13521 = vmatprep.mubr.f32.mxu1 %v18459_v22  ;;  %23049 = vst [vmem:[#allocation124_spill] sm:$0xff] %v18480_v38  ;;  %v43_v22 = vadd.s32 24, %v17864_v32  ;;  %v18492_v43 = vmul.f32 %v18480_v38, %v1604_v2  ;;  %v18507_v38 = vsel %vm487_vm3, 1.0, %v22942_v41  ;;  %23063 = vst [vmem:[#allocation131_spill] sm:$0xff] %v18532_v37 }
 0x26c   :  { %v18504_v2 = vsel %vm1600_vm1, %v1596_v18, %v23056_v28  ;;  %23058 = vst [vmem:[#allocation128_spill] sm:$0xff] %v18507_v38 }
 0x26d   :  { %23051 = vst [vmem:[#allocation126_spill] sm:$0xff] %v18492_v43  ;;  %v107_v31 = vand.u32 15, %v43_v22  ;;  %23057 = vst [vmem:[#allocation127_spill] sm:$0xff] %v18504_v2  ;;  %v11330_v22 = vld [vmem:[%s22204_s3 + $0x218] sm:$0xff] }
 0x26e   :  { %13522 = vmatmul.mubr.f32.gmra.mrb[58].mxu1 %v18473_v20  ;;  %v23053_v20 = vld [vmem:[#allocation17_spill] sm:$0xff] }
 0x26f   :  { %13524 = vmatprep.mubr.f32.mxu1 %v18476_v34  ;;  %v23054_v34 = vld [vmem:[#allocation19_spill] sm:$0xff]  ;;  %v23060_v18 = vrot.slane %v23053_v20, 1  ;;  %vm427_vm6 = vcmp.lt.s32.totalorder %v107_v31, 15  ;;  %v47_v31 = vadd.s32 56, %v17864_v32 }
 0x270   :  { %v1729_v33 = vrot.slane %v23054_v34, 1 }
 0x271   :  { %v18523_v28 = vsel %vm1793_vm4, %v23060_v18, %v1792_v47  ;;  %v11332_v18 = vld [vmem:[%s22204_s3 + $0x228] sm:$0xff] }
 0x272   :  { %13525 = vmatmul.mubr.f32.gmra.mrb[60].mxu1 %v18489_v35  ;;  %v1857_v29 = vsel %vm1793_vm4, %v1792_v47, %v1729_v33  ;;  %23061 = vst [vmem:[#allocation129_spill] sm:$0xff] %v18523_v28  ;;  %v1730_v35 = vrot.slane %v17557_v48, 1  ;;  %v1733_v47 = vrot.slane %v17577_v49, 1 }
 0x273   :  { %13527 = vmatprep.mubr.f32.mxu1 %v18492_v43  ;;  %v11329_v43 = vld [vmem:[%s22204_s3 + $0x210] sm:$0xff]  ;;  %v18529_v26 = vmul.f32 %v18507_v38, %v1857_v29  ;;  %v1732_v29 = vrot.slane %v17573_v53, 1 }
 0x274   :  { %v15745_v34 = vpack.c.bf16 %v11330_v22, %v11329_v43  ;;  %v18546_v43 = vsel %vm1793_vm4, %v1729_v33, %v1730_v35  ;;  %v109_v22 = vand.u32 15, %v45_v30  ;;  %v49_v30 = vadd.s32 72, %v17864_v32 }
 0x275   :  { %23062 = vst [vmem:[#allocation130_spill] sm:$0xff] %v18529_v26  ;;  %23064 = vst [vmem:[#allocation132_spill] sm:$0xff] %v18546_v43  ;;  %v1853_v33 = vsel %vm1793_vm4, %v1732_v29, %v1733_v47 }
 0x276   :  { %13528 = vmatmul.mubr.f32.gmra.mrb[62].mxu1 %v18504_v2  ;;  %v1855_v2 = vsel %vm1793_vm4, %v1730_v35, %v1731_v51  ;;  %v1735_v35 = vrot.slane %v17593_v46, 1  ;;  %vm429_vm7 = vcmp.lt.s32.totalorder %v109_v22, 15  ;;  %v11335_v22 = vld [vmem:[%s22204_s3 + $0x240] sm:$0xff] }
 0x277   :  { %13562 = vmatprep.mubr.f32.mxu1 %v18523_v28  ;;  %v18553_v38 = vmul.f32 %v18532_v37, %v1855_v2  ;;  %v15749_v28 = vpack.c.bf16 %v11332_v18, %v11331_v36  ;;  %v11334_v2 = vld [vmem:[%s22204_s3 + $0x238] sm:$0xff]  ;;  %v18571_v36 = vsel %vm1793_vm4, %v1731_v51, %v1732_v29  ;;  %v1734_v18 = vrot.slane %v17589_v55, 1 }
 0x278   :  { %23067 = vst [vmem:[#allocation135_spill] sm:$0xff] %v18571_v36  ;;  %v111_v37 = vand.u32 15, %v47_v31  ;;  %v18579_v49 = vsel %vm429_vm7, 1.0, %v22942_v41  ;;  %v1737_v51 = vrot.slane %v17609_v39, 1  ;;  %v113_v29 = vand.u32 15, %v49_v30 }
 0x279   :  { %23065 = vst [vmem:[#allocation133_spill] sm:$0xff] %v18553_v38  ;;  %23069 = vst [vmem:[#allocation137_spill] sm:$0xff] %v18579_v49  ;;  %v18593_v31 = vsel %vm1793_vm4, %v1733_v47, %v1734_v18 }
 0x27a   :  { %13563 = vmatmul.mubr.f32.vlgmr.msra.gmra.mrb[0].mxu1 %v18529_v26  ;;  %v18556_v26 = vsel %vm427_vm6, 1.0, %v22942_v41  ;;  %23070 = vst [vmem:[#allocation138_spill] sm:$0xff] %v18593_v31  ;;  %vm431_vm8 = vcmp.lt.s32.totalorder %v111_v37, 15  ;;  %vm433_vm9 = vcmp.lt.s32.totalorder %v113_v29, 15  ;;  %v11337_v37 = vld [vmem:[%s22204_s3 + $0x250] sm:$0xff]  ;;  %v53_v29 = vadd.s32 104, %v17864_v32 }
 0x27b   :  { %15744 = vmatpush3.bf16.msra.mxu1 %v18095_v27  ;;  %13565 = vmatprep.mubr.f32.mxu1 %v18546_v43  ;;  %23066 = vst [vmem:[#allocation134_spill] sm:$0xff] %v18556_v26  ;;  %v11333_v27 = vld [vmem:[%s22204_s3 + $0x230] sm:$0xff]  ;;  %v18576_v43 = vmul.f32 %v18556_v26, %v1853_v33  ;;  %v1736_v33 = vrot.slane %v17605_v57, 1  ;;  %v18602_v26 = vsel %vm431_vm8, 1.0, %v22942_v41 }
 0x27c   :  { %15746 = vmatprep.subr.bf16.mxu1 %v15745_v34  ;;  %v15753_v46 = vpack.c.bf16 %v11334_v2, %v11333_v27  ;;  %v51_v27 = vadd.s32 88, %v17864_v32  ;;  %23072 = vst [vmem:[#allocation140_spill] sm:$0xff] %v18602_v26 }
 0x27d   :  { %23068 = vst [vmem:[#allocation136_spill] sm:$0xff] %v18576_v43  ;;  %v1849_v47 = vsel %vm1793_vm4, %v1736_v33, %v1737_v51 }
 0x27e   :  { %13566 = vmatmul.mubr.f32.gmra.mrb[2].mxu1 %v18553_v38  ;;  %v1851_v38 = vsel %vm1793_vm4, %v1734_v18, %v1735_v35  ;;  %v1739_v18 = vrot.slane %v17625_v50, 1 }
 0x27f   :  { %13568 = vmatprep.mubr.f32.mxu1 %v18571_v36  ;;  %15748 = vmatpush3.bf16.msra.mxu1 %v15745_v34  ;;  %v11336_v34 = vld [vmem:[%s22204_s3 + $0x248] sm:$0xff]  ;;  %v18599_v30 = vmul.f32 %v18579_v49, %v1851_v38  ;;  %v11338_v38 = vld [vmem:[%s22204_s3 + $0x258] sm:$0xff]  ;;  %v18622_v49 = vmul.f32 %v18602_v26, %v1849_v47 }
 0x280   :  { %15750 = vmatprep.subr.bf16.mxu1 %v15749_v28  ;;  %v15757_v2 = vpack.c.bf16 %v11336_v34, %v11335_v22  ;;  %v1738_v22 = vrot.slane %v17621_v59, 1  ;;  %v115_v34 = vand.u32 15, %v51_v27  ;;  %v55_v27 = vadd.s32 120, %v17864_v32 }
 0x281   :  { %23071 = vst [vmem:[#allocation139_spill] sm:$0xff] %v18599_v30  ;;  %23074 = vst [vmem:[#allocation142_spill] sm:$0xff] %v18622_v49 }
 0x282   :  { %13569 = vmatmul.mubr.f32.gmra.mrb[4].mxu1 %v18576_v43  ;;  %v18625_v43 = vsel %vm433_vm9, 1.0, %v22942_v41  ;;  %v18640_v47 = vsel %vm1793_vm4, %v1737_v51, %v1738_v22  ;;  %vm435_vm10 = vcmp.lt.s32.totalorder %v115_v34, 15  ;;  %v1743_v51 = vrot.slane %v17659_v52, 1  ;;  %v11341_v34 = vld [vmem:[%s22204_s3 + $0x270] sm:$0xff] }
 0x283   :  { %13571 = vmatprep.mubr.f32.mxu1 %v18593_v31  ;;  %15752 = vmatpush3.bf16.msra.mxu1 %v15749_v28  ;;  %v18616_v28 = vsel %vm1793_vm4, %v1735_v35, %v1736_v33  ;;  %v15761_v31 = vpack.c.bf16 %v11338_v38, %v11337_v37  ;;  %23075 = vst [vmem:[#allocation143_spill] sm:$0xff] %v18625_v43  ;;  %v1741_v33 = vrot.slane %v17641_v45, 1  ;;  %23076 = vst [vmem:[#allocation144_spill] sm:$0xff] %v18640_v47 }
 0x284   :  { %15754 = vmatprep.subr.bf16.mxu1 %v15753_v46  ;;  %23073 = vst [vmem:[#allocation141_spill] sm:$0xff] %v18616_v28  ;;  %v1847_v35 = vsel %vm1793_vm4, %v1738_v22, %v1739_v18  ;;  %v1740_v37 = vrot.slane %v17637_v61, 1  ;;  %v117_v38 = vand.u32 15, %v53_v29  ;;  %v18648_v36 = vsel %vm435_vm10, 1.0, %v22942_v41 }
 0x285   :  { %v18645_v26 = vmul.f32 %v18625_v43, %v1847_v35  ;;  %23078 = vst [vmem:[#allocation146_spill] sm:$0xff] %v18648_v36  ;;  %v119_v22 = vand.u32 15, %v55_v27  ;;  %v1742_v29 = vrot.slane %v17653_v63, 1  ;;  %v57_v35 = vadd.s32 136, %v17864_v32 }
 0x286   :  { %13572 = vmatmul.mubr.f32.gmra.mrb[6].mxu1 %v18599_v30  ;;  %vm437_vm11 = vcmp.lt.s32.totalorder %v117_v38, 15  ;;  %v11311_v38 = vld [vmem:[%s22204_s3 + $0x180] sm:$0xff] }
 0x287   :  { %13574 = vmatprep.mubr.f32.mxu1 %v18616_v28  ;;  %15756 = vmatpush3.bf16.msra.mxu1 %v15753_v46  ;;  %v11339_v28 = vld [vmem:[%s22204_s3 + $0x260] sm:$0xff]  ;;  %v11340_v46 = vld [vmem:[%s22204_s3 + $0x268] sm:$0xff]  ;;  %23077 = vst [vmem:[#allocation145_spill] sm:$0xff] %v18645_v26  ;;  %v18671_v43 = vsel %vm437_vm11, 1.0, %v22942_v41  ;;  %vm439_vm12 = vcmp.lt.s32.totalorder %v119_v22, 15  ;;  %v59_v22 = vadd.s32 152, %v17864_v32 }
 0x288   :  { %15758 = vmatprep.subr.bf16.mxu1 %v15757_v2  ;;  %v15765_v30 = vpack.c.bf16 %v11340_v46, %v11339_v28  ;;  %v18662_v28 = vsel %vm1793_vm4, %v1739_v18, %v1740_v37  ;;  %23081 = vst [vmem:[#allocation149_spill] sm:$0xff] %v18671_v43  ;;  %v1843_v18 = vsel %vm1793_vm4, %v1742_v29, %v1743_v51 }
 0x289   :  { %23079 = vst [vmem:[#allocation147_spill] sm:$0xff] %v18662_v28 }
 0x28a   :  { %13575 = vmatmul.mubr.f32.gmra.mrb[8].mxu1 %v18622_v49  ;;  %v1845_v49 = vsel %vm1793_vm4, %v1740_v37, %v1741_v33  ;;  %v1745_v37 = vrot.slane %v17670_v1, 1 }
 0x28b   :  { %13577 = vmatprep.mubr.f32.mxu1 %v18640_v47  ;;  %15760 = vmatpush3.bf16.msra.mxu1 %v15757_v2  ;;  %v11342_v2 = vld [vmem:[%s22204_s3 + $0x278] sm:$0xff]  ;;  %v18668_v27 = vmul.f32 %v18648_v36, %v1845_v49  ;;  %v11312_v49 = vld [vmem:[%s22204_s3 + $0x188] sm:$0xff]  ;;  %v18691_v36 = vmul.f32 %v18671_v43, %v1843_v18  ;;  %v1746_v18 = vrot.slane %v17676_v4, 1 }
 0x28c   :  { %15762 = vmatprep.subr.bf16.mxu1 %v15761_v31  ;;  %v15769_v46 = vpack.c.bf16 %v11342_v2, %v11341_v34  ;;  %v1744_v34 = vrot.slane %v17665_v58, 1  ;;  %v121_v2 = vand.u32 15, %v57_v35  ;;  %v61_v35 = vadd.s32 168, %v17864_v32 }
 0x28d   :  { %23080 = vst [vmem:[#allocation148_spill] sm:$0xff] %v18668_v27  ;;  %23083 = vst [vmem:[#allocation151_spill] sm:$0xff] %v18691_v36 }
 0x28e   :  { %13578 = vmatmul.mubr.f32.gmra.mrb[10].mxu1 %v18645_v26  ;;  %vm441_vm13 = vcmp.lt.s32.totalorder %v121_v2, 15  ;;  %v18722_v2 = vsel %vm1793_vm4, %v1745_v37, %v1746_v18 }
 0x28f   :  { %13580 = vmatprep.mubr.f32.mxu1 %v18662_v28  ;;  %15764 = vmatpush3.bf16.msra.mxu1 %v15761_v31  ;;  %v18685_v31 = vsel %vm1793_vm4, %v1741_v33, %v1742_v29  ;;  %v18693_v28 = vpack.c.bf16 %v11312_v49, %v11311_v38  ;;  %v1841_v33 = vsel %vm1793_vm4, %v1744_v34, %v1745_v37  ;;  %v1747_v29 = vrot.slane %v17680_v40, 1 }
 0x290   :  { %15766 = vmatprep.subr.bf16.mxu1 %v15765_v30  ;;  %23082 = vst [vmem:[#allocation150_spill] sm:$0xff] %v18685_v31  ;;  %v123_v38 = vand.u32 15, %v59_v22  ;;  %v18714_v43 = vsel %vm441_vm13, 1.0, %v22942_v41  ;;  %23088 = vst [vmem:[#allocation156_spill] sm:$0xff] %v18722_v2  ;;  %v63_v22 = vadd.s32 184, %v17864_v32  ;;  %v1751_v37 = vrot.slane %v17700_v42, 1 }
 0x291   :  { %23087 = vst [vmem:[#allocation155_spill] sm:$0xff] %v18714_v43 }
 0x292   :  { %13581 = vmatmul.mubr.f32.gmra.mrb[12].mxu1 %v18668_v27  ;;  %v18696_v27 = vsel %vm439_vm12, 1.0, %v22942_v41  ;;  %vm443_vm14 = vcmp.lt.s32.totalorder %v123_v38, 15  ;;  %v1750_v38 = vrot.slane %v17696_v5, 1 }
 0x293   :  { %13583 = vmatprep.mubr.f32.mxu1 %v18685_v31  ;;  %15768 = vmatpush3.bf16.msra.mxu1 %v15765_v30  ;;  %23084 = vst [vmem:[#allocation152_spill] sm:$0xff] %v18696_v27  ;;  %v18705_v30 = vsel %vm1793_vm4, %v1743_v51, %v1744_v34  ;;  %v18710_v49 = vmul.f32 %v18696_v27, %v1841_v33  ;;  %v1749_v51 = vrot.slane %v17690_v60, 1  ;;  %v125_v34 = vand.u32 15, %v61_v35 }
 0x294   :  { %15770 = vmatprep.subr.bf16.mxu1 %v15769_v46  ;;  %23085 = vst [vmem:[#allocation153_spill] sm:$0xff] %v18705_v30  ;;  %v18731_v27 = vsel %vm443_vm14, 1.0, %v22942_v41 }
 0x295   :  { %23086 = vst [vmem:[#allocation154_spill] sm:$0xff] %v18710_v49  ;;  %23090 = vst [vmem:[#allocation158_spill] sm:$0xff] %v18731_v27  ;;  %vm445_vm15 = vcmp.lt.s32.totalorder %v125_v34, 15 }
 0x296   :  { %13584 = vmatmul.mubr.f32.gmra.mrb[14].mxu1 %v18691_v36  ;;  %v1839_v36 = vsel %vm1793_vm4, %v1746_v18, %v1747_v29  ;;  %v18748_v34 = vsel %vm445_vm15, 1.0, %v22942_v41 }
 0x297   :  { %13586 = vmatprep.mubr.f32.mxu1 %v18705_v30  ;;  %15772 = vmatpush3.bf16.msra.mxu1 %v15769_v46  ;;  %v1748_v46 = vrot.slane %v17686_v56, 1  ;;  %v18728_v33 = vmul.f32 %v18714_v43, %v1839_v36  ;;  %v65_v36 = vadd.s32 200, %v17864_v32  ;;  %23093 = vst [vmem:[#allocation161_spill] sm:$0xff] %v18748_v34 }
 0x298   :  { %15774 = vmatprep.subr.bf16.mxu1 %v18693_v28 }
 0x299   :  { %23089 = vst [vmem:[#allocation157_spill] sm:$0xff] %v18728_v33  ;;  %v1837_v35 = vsel %vm1793_vm4, %v1748_v46, %v1749_v51  ;;  %v18739_v18 = vsel %vm1793_vm4, %v1747_v29, %v1748_v46  ;;  %v67_v29 = vadd.s32 216, %v17864_v32  ;;  %v18757_v46 = vsel %vm1793_vm4, %v1749_v51, %v1750_v38 }
 0x29a   :  { %13587 = vmatmul.mubr.f32.gmra.mrb[16].mxu1 %v18710_v49  ;;  %23091 = vst [vmem:[#allocation159_spill] sm:$0xff] %v18739_v18  ;;  %v18745_v43 = vmul.f32 %v18731_v27, %v1837_v35  ;;  %v1753_v49 = vrot.slane %v17710_v44, 1  ;;  %23094 = vst [vmem:[#allocation162_spill] sm:$0xff] %v18757_v46  ;;  %v129_v35 = vand.u32 15, %v65_v36 }
 0x29b   :  { %13589 = vmatprep.mubr.f32.mxu1 %v18722_v2  ;;  %v127_v2 = vand.u32 15, %v63_v22  ;;  %v1752_v22 = vrot.slane %v17706_v7, 1  ;;  %v131_v31 = vand.u32 15, %v67_v29 }
 0x29c   :  { %23092 = vst [vmem:[#allocation160_spill] sm:$0xff] %v18745_v43  ;;  %vm449_vm2 = vcmp.lt.s32.totalorder %v129_v35, 15  ;;  %v1756_v35 = vrot.slane %v17726_v11, 1 }
 0x29d   :  { %vm447_vm0 = vcmp.lt.s32.totalorder %v127_v2, 15  ;;  %v1833_v30 = vsel %vm1793_vm4, %v1752_v22, %v1753_v49  ;;  %v18773_v51 = vsel %vm1793_vm4, %v1751_v37, %v1752_v22  ;;  %v1754_v2 = vrot.slane %v17716_v9, 1 }
 0x29e   :  { %13590 = vmatmul.mubr.f32.gmra.mrb[18].mxu1 %v18728_v33  ;;  %v1835_v33 = vsel %vm1793_vm4, %v1750_v38, %v1751_v37  ;;  %23097 = vst [vmem:[#allocation165_spill] sm:$0xff] %v18773_v51  ;;  %v18782_v36 = vsel %vm449_vm2, 1.0, %v22942_v41  ;;  %vm451_vm3 = vcmp.lt.s32.totalorder %v131_v31, 15  ;;  %v1757_v37 = vrot.slane %v17730_v54, 1 }
 0x29f   :  { %13592 = vmatprep.mubr.f32.mxu1 %v18739_v18  ;;  %v18762_v27 = vmul.f32 %v18748_v34, %v1835_v33  ;;  %v18765_v18 = vsel %vm447_vm0, 1.0, %v22942_v41  ;;  %v69_v33 = vadd.s32 232, %v17864_v32  ;;  %23099 = vst [vmem:[#allocation167_spill] sm:$0xff] %v18782_v36  ;;  %v18790_v22 = vsel %vm1793_vm4, %v1753_v49, %v1754_v2 }
 0x2a0   :  { %23096 = vst [vmem:[#allocation164_spill] sm:$0xff] %v18765_v18  ;;  %v18779_v38 = vmul.f32 %v18765_v18, %v1833_v30  ;;  %23100 = vst [vmem:[#allocation168_spill] sm:$0xff] %v18790_v22  ;;  %v71_v30 = vadd.s32 248, %v17864_v32  ;;  %v18799_v31 = vsel %vm451_vm3, 1.0, %v22942_v41  ;;  %v73_v49 = vadd.s32 264, %v17864_v32 }
 0x2a1   :  { %23095 = vst [vmem:[#allocation163_spill] sm:$0xff] %v18762_v27  ;;  %v133_v34 = vand.u32 15, %v69_v33  ;;  %23102 = vst [vmem:[#allocation170_spill] sm:$0xff] %v18799_v31  ;;  %v1758_v33 = vrot.slane %v17736_v13, 1 }
 0x2a2   :  { %13593 = vmatmul.mubr.f32.gmra.mrb[20].mxu1 %v18745_v43  ;;  %v1755_v43 = vrot.slane %v17720_v3, 1  ;;  %23098 = vst [vmem:[#allocation166_spill] sm:$0xff] %v18779_v38 }
 0x2a3   :  { %13595 = vmatprep.mubr.f32.mxu1 %v18757_v46  ;;  %vm453_vm5 = vcmp.lt.s32.totalorder %v133_v34, 15  ;;  %v137_v46 = vand.u32 15, %v73_v49  ;;  %v1760_v34 = vrot.slane %v17746_v15, 1 }
 0x2a4   :  { %v1831_v29 = vsel %vm1793_vm4, %v1754_v2, %v1755_v43  ;;  %v18808_v2 = vsel %vm1793_vm4, %v1755_v43, %v1756_v35  ;;  %v18824_v43 = vsel %vm1793_vm4, %v1757_v37, %v1758_v33 }
 0x2a5   :  { %v18796_v18 = vmul.f32 %v18782_v36, %v1831_v29  ;;  %23103 = vst [vmem:[#allocation171_spill] sm:$0xff] %v18808_v2  ;;  %v135_v29 = vand.u32 15, %v71_v30  ;;  %23106 = vst [vmem:[#allocation174_spill] sm:$0xff] %v18824_v43  ;;  %vm457_vm7 = vcmp.lt.s32.totalorder %v137_v46, 15 }
 0x2a6   :  { %13596 = vmatmul.mubr.f32.gmra.mrb[22].mxu1 %v18762_v27  ;;  %v18850_v46 = vsel %vm457_vm7, 1.0, %v22942_v41 }
 0x2a7   :  { %13598 = vmatprep.mubr.f32.mxu1 %v18773_v51  ;;  %23101 = vst [vmem:[#allocation169_spill] sm:$0xff] %v18796_v18  ;;  %v1759_v51 = vrot.slane %v17740_v62, 1  ;;  %vm455_vm6 = vcmp.lt.s32.totalorder %v135_v29, 15  ;;  %v1762_v29 = vrot.slane %v17756_v17, 1  ;;  %23111 = vst [vmem:[#allocation179_spill] sm:$0xff] %v18850_v46 }
 0x2a8   :  { %v18833_v30 = vsel %vm455_vm6, 1.0, %v22942_v41 }
 0x2a9   :  { %v1827_v27 = vsel %vm1793_vm4, %v1758_v33, %v1759_v51  ;;  %23108 = vst [vmem:[#allocation176_spill] sm:$0xff] %v18833_v30  ;;  %v18841_v33 = vsel %vm1793_vm4, %v1759_v51, %v1760_v34  ;;  %v79_v51 = vadd.s32 312, %v17864_v32 }
 0x2aa   :  { %13599 = vmatmul.mubr.f32.gmra.mrb[24].mxu1 %v18779_v38  ;;  %v1829_v38 = vsel %vm1793_vm4, %v1756_v35, %v1757_v37  ;;  %v1763_v37 = vrot.slane %v17760_v6, 1  ;;  %23109 = vst [vmem:[#allocation177_spill] sm:$0xff] %v18841_v33 }
 0x2ab   :  { %13601 = vmatprep.mubr.f32.mxu1 %v18790_v22  ;;  %v18813_v36 = vmul.f32 %v18799_v31, %v1829_v38  ;;  %v18816_v22 = vsel %vm453_vm5, 1.0, %v22942_v41  ;;  %v75_v38 = vadd.s32 280, %v17864_v32 }
 0x2ac   :  { %23105 = vst [vmem:[#allocation173_spill] sm:$0xff] %v18816_v22  ;;  %v18830_v35 = vmul.f32 %v18816_v22, %v1827_v27  ;;  %v77_v27 = vadd.s32 296, %v17864_v32 }
 0x2ad   :  { %23104 = vst [vmem:[#allocation172_spill] sm:$0xff] %v18813_v36  ;;  %v139_v31 = vand.u32 15, %v75_v38  ;;  %v1764_v38 = vrot.slane %v17766_v19, 1 }
 0x2ae   :  { %13602 = vmatmul.mubr.f32.gmra.mrb[26].mxu1 %v18796_v18  ;;  %v1761_v18 = vrot.slane %v17750_v0, 1  ;;  %23107 = vst [vmem:[#allocation175_spill] sm:$0xff] %v18830_v35 }
 0x2af   :  { %13604 = vmatprep.mubr.f32.mxu1 %v18808_v2  ;;  %vm459_vm8 = vcmp.lt.s32.totalorder %v139_v31, 15  ;;  %v143_v2 = vand.u32 15, %v79_v51  ;;  %v1766_v31 = vrot.slane %v17776_v21, 1 }
 0x2b0   :  { %v1825_v49 = vsel %vm1793_vm4, %v1760_v34, %v1761_v18  ;;  %v18859_v34 = vsel %vm1793_vm4, %v1761_v18, %v1762_v29  ;;  %v18875_v18 = vsel %vm1793_vm4, %v1763_v37, %v1764_v38 }
 0x2b1   :  { %v18847_v22 = vmul.f32 %v18833_v30, %v1825_v49  ;;  %23112 = vst [vmem:[#allocation180_spill] sm:$0xff] %v18859_v34  ;;  %v141_v49 = vand.u32 15, %v77_v27  ;;  %23115 = vst [vmem:[#allocation183_spill] sm:$0xff] %v18875_v18  ;;  %vm463_vm10 = vcmp.lt.s32.totalorder %v143_v2, 15 }
 0x2b2   :  { %13605 = vmatmul.mubr.f32.gmra.mrb[28].mxu1 %v18813_v36  ;;  %v18901_v2 = vsel %vm463_vm10, 1.0, %v22942_v41 }
 0x2b3   :  { %13607 = vmatprep.mubr.f32.mxu1 %v18824_v43  ;;  %23110 = vst [vmem:[#allocation178_spill] sm:$0xff] %v18847_v22  ;;  %v1765_v43 = vrot.slane %v17770_v8, 1  ;;  %vm461_vm9 = vcmp.lt.s32.totalorder %v141_v49, 15  ;;  %v1768_v49 = vrot.slane %v17786_v23, 1  ;;  %23120 = vst [vmem:[#allocation188_spill] sm:$0xff] %v18901_v2 }
 0x2b4   :  { %v18884_v27 = vsel %vm461_vm9, 1.0, %v22942_v41 }
 0x2b5   :  { %v1821_v36 = vsel %vm1793_vm4, %v1764_v38, %v1765_v43  ;;  %23117 = vst [vmem:[#allocation185_spill] sm:$0xff] %v18884_v27  ;;  %v18892_v38 = vsel %vm1793_vm4, %v1765_v43, %v1766_v31  ;;  %v85_v43 = vadd.s32 360, %v17864_v32 }
 0x2b6   :  { %13608 = vmatmul.mubr.f32.gmra.mrb[30].mxu1 %v18830_v35  ;;  %v1823_v35 = vsel %vm1793_vm4, %v1762_v29, %v1763_v37  ;;  %v1769_v37 = vrot.slane %v17790_v12, 1  ;;  %23118 = vst [vmem:[#allocation186_spill] sm:$0xff] %v18892_v38 }
 0x2b7   :  { %13610 = vmatprep.mubr.f32.mxu1 %v18841_v33  ;;  %v18864_v30 = vmul.f32 %v18850_v46, %v1823_v35  ;;  %v18867_v33 = vsel %vm459_vm8, 1.0, %v22942_v41  ;;  %v81_v35 = vadd.s32 328, %v17864_v32 }
 0x2b8   :  { %23114 = vst [vmem:[#allocation182_spill] sm:$0xff] %v18867_v33  ;;  %v18881_v29 = vmul.f32 %v18867_v33, %v1821_v36  ;;  %v83_v36 = vadd.s32 344, %v17864_v32 }
 0x2b9   :  { %23113 = vst [vmem:[#allocation181_spill] sm:$0xff] %v18864_v30  ;;  %v145_v46 = vand.u32 15, %v81_v35  ;;  %v1770_v35 = vrot.slane %v17796_v25, 1 }
 0x2ba   :  { %13611 = vmatmul.mubr.f32.gmra.mrb[32].mxu1 %v18847_v22  ;;  %v1767_v22 = vrot.slane %v17780_v10, 1  ;;  %23116 = vst [vmem:[#allocation184_spill] sm:$0xff] %v18881_v29 }
 0x2bb   :  { %13613 = vmatprep.mubr.f32.mxu1 %v18859_v34  ;;  %vm465_vm11 = vcmp.lt.s32.totalorder %v145_v46, 15  ;;  %v149_v34 = vand.u32 15, %v85_v43  ;;  %v1772_v46 = vrot.slane %v23007_v24, 1 }
 0x2bc   :  { %v1819_v51 = vsel %vm1793_vm4, %v1766_v31, %v1767_v22  ;;  %v18910_v31 = vsel %vm1793_vm4, %v1767_v22, %v1768_v49  ;;  %v18926_v22 = vsel %vm1793_vm4, %v1769_v37, %v1770_v35 }
 0x2bd   :  { %v18898_v33 = vmul.f32 %v18884_v27, %v1819_v51  ;;  %23121 = vst [vmem:[#allocation189_spill] sm:$0xff] %v18910_v31  ;;  %v147_v51 = vand.u32 15, %v83_v36  ;;  %23124 = vst [vmem:[#allocation192_spill] sm:$0xff] %v18926_v22  ;;  %vm469_vm13 = vcmp.lt.s32.totalorder %v149_v34, 15 }
 0x2be   :  { %13614 = vmatmul.mubr.f32.gmra.mrb[34].mxu1 %v18864_v30  ;;  %v18952_v34 = vsel %vm469_vm13, 1.0, %v22942_v41 }
 0x2bf   :  { %13616 = vmatprep.mubr.f32.mxu1 %v18875_v18  ;;  %23119 = vst [vmem:[#allocation187_spill] sm:$0xff] %v18898_v33  ;;  %v1771_v18 = vrot.slane %v17800_v14, 1  ;;  %vm467_vm12 = vcmp.lt.s32.totalorder %v147_v51, 15  ;;  %v23129_v51 = vld [vmem:[#allocation26_spill] sm:$0xff]  ;;  %23131 = vst [vmem:[#allocation197_spill] sm:$0xff] %v18952_v34 }
 0x2c0   :  { %v18935_v36 = vsel %vm467_vm12, 1.0, %v22942_v41 }
 0x2c1   :  { %v1815_v30 = vsel %vm1793_vm4, %v1770_v35, %v1771_v18  ;;  %23126 = vst [vmem:[#allocation194_spill] sm:$0xff] %v18935_v36  ;;  %v18943_v35 = vsel %vm1793_vm4, %v1771_v18, %v1772_v46  ;;  %v91_v18 = vadd.s32 408, %v17864_v32 }
 0x2c2   :  { %13617 = vmatmul.mubr.f32.gmra.mrb[36].mxu1 %v18881_v29  ;;  %v1817_v29 = vsel %vm1793_vm4, %v1768_v49, %v1769_v37  ;;  %23128 = vst [vmem:[#allocation195_spill] sm:$0xff] %v18943_v35 }
 0x2c3   :  { %13619 = vmatprep.mubr.f32.mxu1 %v18892_v38  ;;  %v18915_v27 = vmul.f32 %v18901_v2, %v1817_v29  ;;  %v18918_v38 = vsel %vm465_vm11, 1.0, %v22942_v41  ;;  %v87_v29 = vadd.s32 376, %v17864_v32  ;;  %v23127_v2 = vld [vmem:[#allocation27_spill] sm:$0xff] }
 0x2c4   :  { %23123 = vst [vmem:[#allocation191_spill] sm:$0xff] %v18918_v38  ;;  %v18932_v49 = vmul.f32 %v18918_v38, %v1815_v30  ;;  %v1775_v37 = vrot.slane %v23127_v2, 1  ;;  %v89_v30 = vadd.s32 392, %v17864_v32 }
 0x2c5   :  { %23122 = vst [vmem:[#allocation190_spill] sm:$0xff] %v18915_v27 }
 0x2c6   :  { %13620 = vmatmul.mubr.f32.gmra.mrb[38].mxu1 %v18898_v33  ;;  %v1773_v33 = vrot.slane %v17810_v16, 1  ;;  %23125 = vst [vmem:[#allocation193_spill] sm:$0xff] %v18932_v49 }
 0x2c7   :  { %13622 = vmatprep.mubr.f32.mxu1 %v18910_v31  ;;  %v23132_v31 = vld [vmem:[#allocation29_spill] sm:$0xff] }
 0x2c8   :  { %v1813_v43 = vsel %vm1793_vm4, %v1772_v46, %v1773_v33  ;;  %v1777_v26 = vrot.slane %v23132_v31, 1 }
 0x2c9   :  { %v18949_v38 = vmul.f32 %v18935_v36, %v1813_v43  ;;  %v153_v43 = vand.u32 15, %v89_v30 }
 0x2ca   :  { %13623 = vmatmul.mubr.f32.gmra.mrb[40].mxu1 %v18915_v27  ;;  %v151_v27 = vand.u32 15, %v87_v29  ;;  %v23134_v29 = vld [vmem:[#allocation28_spill] sm:$0xff] }
 0x2cb   :  { %13625 = vmatprep.mubr.f32.mxu1 %v18926_v22  ;;  %v1774_v22 = vrot.slane %v23129_v51, 1  ;;  %23130 = vst [vmem:[#allocation196_spill] sm:$0xff] %v18949_v38  ;;  %v155_v51 = vand.u32 15, %v91_v18  ;;  %vm473_vm15 = vcmp.lt.s32.totalorder %v153_v43, 15  ;;  %v23144_v43 = vld [vmem:[#allocation8_spill] sm:$0xff] }
 0x2cc   :  { %vm471_vm14 = vcmp.lt.s32.totalorder %v151_v27, 15  ;;  %v23139_v27 = vld [vmem:[#allocation30_spill] sm:$0xff] }
 0x2cd   :  { %v18961_v46 = vsel %vm1793_vm4, %v1773_v33, %v1774_v22  ;;  %v18969_v47 = vsel %vm471_vm14, 1.0, %v22942_v41  ;;  %vm475_vm0 = vcmp.lt.s32.totalorder %v155_v51, 15 }
 0x2ce   :  { %13626 = vmatmul.mubr.f32.gmra.mrb[42].mxu1 %v18932_v49  ;;  %v1811_v49 = vsel %vm1793_vm4, %v1774_v22, %v1775_v37  ;;  %23133 = vst [vmem:[#allocation198_spill] sm:$0xff] %v18961_v46  ;;  %23136 = vst [vmem:[#allocation200_spill] sm:$0xff] %v18969_v47  ;;  %v1778_v22 = vrot.slane %v23139_v27, 1  ;;  %v19003_v51 = vsel %vm475_vm0, 1.0, %v22942_v41 }
 0x2cf   :  { %13628 = vmatprep.mubr.f32.mxu1 %v18943_v35  ;;  %v1776_v35 = vrot.slane %v23134_v29, 1  ;;  %v18966_v36 = vmul.f32 %v18952_v34, %v1811_v49  ;;  %v93_v49 = vadd.s32 424, %v17864_v32  ;;  %v18986_v34 = vsel %vm473_vm15, 1.0, %v22942_v41  ;;  %23146 = vst [vmem:[#allocation206_spill] sm:$0xff] %v19003_v51 }
 0x2d0   :  { %23141 = vst [vmem:[#allocation203_spill] sm:$0xff] %v18986_v34 }
 0x2d1   :  { %23135 = vst [vmem:[#allocation199_spill] sm:$0xff] %v18966_v36  ;;  %v1809_v31 = vsel %vm1793_vm4, %v1776_v35, %v1777_v26  ;;  %v18977_v33 = vsel %vm1793_vm4, %v1775_v37, %v1776_v35  ;;  %v18994_v35 = vsel %vm1793_vm4, %v1777_v26, %v1778_v22  ;;  %v97_v26 = vadd.s32 456, %v17864_v32 }
 0x2d2   :  { %13629 = vmatmul.mubr.f32.gmra.mrb[44].mxu1 %v18949_v38  ;;  %v23137_v38 = vld [vmem:[#allocation6_spill] sm:$0xff]  ;;  %23138 = vst [vmem:[#allocation201_spill] sm:$0xff] %v18977_v33  ;;  %v18983_v30 = vmul.f32 %v18969_v47, %v1809_v31  ;;  %23143 = vst [vmem:[#allocation204_spill] sm:$0xff] %v18994_v35  ;;  %v95_v31 = vadd.s32 440, %v17864_v32 }
 0x2d3   :  { %13631 = vmatprep.mubr.f32.mxu1 %v18961_v46  ;;  %v1779_v2 = vrot.slane %v23137_v38, 1  ;;  %v157_v46 = vand.u32 15, %v93_v49  ;;  %v23149_v49 = vld [vmem:[#allocation10_spill] sm:$0xff]  ;;  %v161_v29 = vand.u32 15, %v97_v26 }
 0x2d4   :  { %23140 = vst [vmem:[#allocation202_spill] sm:$0xff] %v18983_v30 }
 0x2d5   :  { %v1807_v18 = vsel %vm1793_vm4, %v1778_v22, %v1779_v2  ;;  %vm477_vm2 = vcmp.lt.s32.totalorder %v157_v46, 15  ;;  %v23154_v46 = vld [vmem:[#allocation31_spill] sm:$0xff]  ;;  %vm481_vm5 = vcmp.lt.s32.totalorder %v161_v29, 15 }
 0x2d6   :  { %13632 = vmatmul.mubr.f32.gmra.mrb[46].mxu1 %v18966_v36  ;;  %v23142_v36 = vld [vmem:[#allocation7_spill] sm:$0xff]  ;;  %v19000_v47 = vmul.f32 %v18986_v34, %v1807_v18  ;;  %v159_v18 = vand.u32 15, %v95_v31  ;;  %v19054_v29 = vsel %vm481_vm5, 1.0, %v22942_v41 }
 0x2d7   :  { %13634 = vmatprep.mubr.f32.mxu1 %v18977_v33  ;;  %v1781_v37 = vrot.slane %v23142_v36, 1  ;;  %v1780_v33 = vrot.slane %v23144_v43, 1  ;;  %v23147_v36 = vld [vmem:[#allocation9_spill] sm:$0xff]  ;;  %v19020_v43 = vsel %vm477_vm2, 1.0, %v22942_v41  ;;  %23161 = vst [vmem:[#allocation215_spill] sm:$0xff] %v19054_v29 }
 0x2d8   :  { %23145 = vst [vmem:[#allocation205_spill] sm:$0xff] %v19000_v47  ;;  %v1783_v38 = vrot.slane %v23147_v36, 1  ;;  %23151 = vst [vmem:[#allocation209_spill] sm:$0xff] %v19020_v43  ;;  %vm479_vm3 = vcmp.lt.s32.totalorder %v159_v18, 15  ;;  %v23159_v18 = vld [vmem:[#allocation15_spill] sm:$0xff] }
 0x2d9   :  { %v19012_v22 = vsel %vm1793_vm4, %v1779_v2, %v1780_v33 }
 0x2da   :  { %13635 = vmatmul.mubr.f32.gmra.mrb[48].mxu1 %v18983_v30  ;;  %v1805_v30 = vsel %vm1793_vm4, %v1780_v33, %v1781_v37  ;;  %23148 = vst [vmem:[#allocation207_spill] sm:$0xff] %v19012_v22  ;;  %v1784_v33 = vrot.slane %v23154_v46, 1 }
 0x2db   :  { %13637 = vmatprep.mubr.f32.mxu1 %v18994_v35  ;;  %v1782_v35 = vrot.slane %v23149_v49, 1  ;;  %v19017_v34 = vmul.f32 %v19003_v51, %v1805_v30  ;;  %v99_v30 = vadd.s32 472, %v17864_v32  ;;  %v19037_v51 = vsel %vm479_vm3, 1.0, %v22942_v41 }
 0x2dc   :  { %23156 = vst [vmem:[#allocation212_spill] sm:$0xff] %v19037_v51 }
 0x2dd   :  { %23150 = vst [vmem:[#allocation208_spill] sm:$0xff] %v19017_v34  ;;  %v1803_v36 = vsel %vm1793_vm4, %v1782_v35, %v1783_v38  ;;  %v19028_v2 = vsel %vm1793_vm4, %v1781_v37, %v1782_v35  ;;  %v19045_v35 = vsel %vm1793_vm4, %v1783_v38, %v1784_v33 }
 0x2de   :  { %13638 = vmatmul.mubr.f32.gmra.mrb[50].mxu1 %v19000_v47  ;;  %v23152_v47 = vld [vmem:[#allocation11_spill] sm:$0xff]  ;;  %23153 = vst [vmem:[#allocation210_spill] sm:$0xff] %v19028_v2  ;;  %v19034_v31 = vmul.f32 %v19020_v43, %v1803_v36  ;;  %23158 = vst [vmem:[#allocation213_spill] sm:$0xff] %v19045_v35  ;;  %v101_v36 = vadd.s32 488, %v17864_v32 }
 0x2df   :  { %13640 = vmatprep.mubr.f32.mxu1 %v19012_v22  ;;  %v1785_v27 = vrot.slane %v23152_v47, 1  ;;  %v163_v22 = vand.u32 15, %v99_v30 }
 0x2e0   :  { %23155 = vst [vmem:[#allocation211_spill] sm:$0xff] %v19034_v31 }
 0x2e1   :  { %v1801_v26 = vsel %vm1793_vm4, %v1784_v33, %v1785_v27  ;;  %v23164_v33 = vld [vmem:[#allocation16_spill] sm:$0xff]  ;;  %vm483_vm6 = vcmp.lt.s32.totalorder %v163_v22, 15 }
 0x2e2   :  { %13641 = vmatmul.mubr.f32.gmra.mrb[52].mxu1 %v19017_v34  ;;  %v23157_v34 = vld [vmem:[#allocation13_spill] sm:$0xff]  ;;  %v19051_v43 = vmul.f32 %v19037_v51, %v1801_v26  ;;  %v1788_v30 = vrot.slane %v23164_v33, 1  ;;  %v19070_v51 = vsel %vm483_vm6, 1.0, %v22942_v41 }
 0x2e3   :  { %13643 = vmatprep.mubr.f32.mxu1 %v19028_v2  ;;  %v1787_v37 = vrot.slane %v23157_v34, 1  ;;  %v1786_v2 = vrot.slane %v23159_v18, 1  ;;  %v23162_v34 = vld [vmem:[#allocation32_spill] sm:$0xff]  ;;  %23166 = vst [vmem:[#allocation218_spill] sm:$0xff] %v19070_v51 }
 0x2e4   :  { %23160 = vst [vmem:[#allocation214_spill] sm:$0xff] %v19051_v43  ;;  %v1789_v47 = vrot.slane %v23162_v34, 1 }
 0x2e5   :  { %v19062_v38 = vsel %vm1793_vm4, %v1785_v27, %v1786_v2  ;;  %v19077_v27 = vsel %vm1793_vm4, %v1787_v37, %v1788_v30 }
 0x2e6   :  { %13644 = vmatmul.mubr.f32.gmra.mrb[54].mxu1 %v19034_v31  ;;  %v1799_v31 = vsel %vm1793_vm4, %v1786_v2, %v1787_v37  ;;  %23163 = vst [vmem:[#allocation216_spill] sm:$0xff] %v19062_v38  ;;  %v1797_v34 = vsel %vm1793_vm4, %v1788_v30, %v1789_v47  ;;  %23167 = vst [vmem:[#allocation219_spill] sm:$0xff] %v19077_v27  ;;  %v23168_v2 = vld [vmem:[#allocation14_spill] sm:$0xff]  ;;  %v11314_v30 = vld [vmem:[%s22204_s3 + $0x198] sm:$0xff] }
 0x2e7   :  { %13646 = vmatprep.mubr.f32.mxu1 %v19045_v35  ;;  %v165_v35 = vand.u32 15, %v101_v36  ;;  %v19067_v26 = vmul.f32 %v19054_v29, %v1799_v31  ;;  %v1790_v22 = vrot.slane %v23168_v2, 1  ;;  %v19082_v31 = vmul.f32 %v19070_v51, %v1797_v34  ;;  %v11313_v34 = vld [vmem:[%s22204_s3 + $0x190] sm:$0xff]  ;;  %v23175_v51 = vld [vmem:[#allocation22_spill] sm:$0xff] }
 0x2e8   :  { %v23170_v29 = vrot.slane %v23053_v20, 1 }
 0x2e9   :  { %23165 = vst [vmem:[#allocation217_spill] sm:$0xff] %v19067_v26  ;;  %vm485_vm7 = vcmp.lt.s32.totalorder %v165_v35, 15  ;;  %v19094_v37 = vsel %vm1793_vm4, %v1789_v47, %v1790_v22  ;;  %v11315_v47 = vld [vmem:[%s22204_s3 + $0x1a0] sm:$0xff] }
 0x2ea   :  { %13647 = vmatmul.mubr.f32.gmra.mrb[56].mxu1 %v19051_v43  ;;  %v19085_v36 = vsel %vm485_vm7, 1.0, %v22942_v41  ;;  %23171 = vst [vmem:[#allocation221_spill] sm:$0xff] %v19094_v37  ;;  %v15777_v41 = vpack.c.bf16 %v11314_v30, %v11313_v34  ;;  %v11317_v34 = vld [vmem:[%s22204_s3 + $0x1b0] sm:$0xff]  ;;  %v11318_v30 = vld [vmem:[%s22204_s3 + $0x1b8] sm:$0xff] }
 0x2eb   :  { %13649 = vmatprep.mubr.f32.mxu1 %v19062_v38  ;;  %23169 = vst [vmem:[#allocation220_spill] sm:$0xff] %v19085_v36  ;;  %v15785_v32 = vpack.c.bf16 %v11318_v30, %v11317_v34  ;;  %v11322_v34 = vld [vmem:[%s22204_s3 + $0x1d8] sm:$0xff] }
 0x2ee   :  { %13650 = vmatmul.mubr.f32.gmra.mrb[58].mxu1 %v19067_v26  ;;  %v1795_v26 = vsel %vm1793_vm4, %v1790_v22, %v23170_v29  ;;  %v23173_v29 = vld [vmem:[#allocation19_spill] sm:$0xff]  ;;  %v23174_v22 = vld [vmem:[#allocation21_spill] sm:$0xff] }
 0x2ef   :  { %13652 = vmatprep.mubr.f32.mxu1 %v19077_v27  ;;  %v19098_v35 = vmul.f32 %v19085_v36, %v1795_v26  ;;  %v11316_v26 = vld [vmem:[%s22204_s3 + $0x1a8] sm:$0xff] }
 0x2f0   :  { %v15781_v36 = vpack.c.bf16 %v11316_v26, %v11315_v47  ;;  %v11320_v47 = vld [vmem:[%s22204_s3 + $0x1c8] sm:$0xff] }
 0x2f1   :  { %23172 = vst [vmem:[#allocation222_spill] sm:$0xff] %v19098_v35  ;;  %v23176_v26 = vld [vmem:[#allocation23_spill] sm:$0xff] }
 0x2f2   :  { %13653 = vmatmul.mubr.f32.gmra.mrb[60].mxu1 %v19082_v31 }
 0x2f3   :  { %13655 = vmatprep.mubr.f32.mxu1 %v19094_v37 }
 0x2f6   :  { %13656 = vmatmul.mubr.f32.gmra.mrb[62].mxu1 %v19098_v35 }
 0x2f7   :  { %13690 = vmatprep.mubr.f32.mxu1 %v23173_v29  ;;  %v23184_v29 = vld [vmem:[#allocation6_spill] sm:$0xff] }
 0x2fa   :  { %13691 = vmatmul.mubr.f32.vlgmr.msra.gmra.mrb[64].mxu1 %v17557_v48 }
 0x2fb   :  { %15776 = vmatpush3.bf16.msra.mxu1 %v18693_v28  ;;  %13693 = vmatprep.mubr.f32.mxu1 %v23174_v22  ;;  %v11319_v28 = vld [vmem:[%s22204_s3 + $0x1c0] sm:$0xff] }
 0x2fc   :  { %15778 = vmatprep.subr.bf16.mxu1 %v15777_v41  ;;  %v15789_v48 = vpack.c.bf16 %v11320_v47, %v11319_v28  ;;  %v11324_v28 = vld [vmem:[%s22204_s3 + $0x1e8] sm:$0xff] }
 0x2fe   :  { %13694 = vmatmul.mubr.f32.gmra.mrb[2].mxu1 %v17573_v53 }
 0x2ff   :  { %13696 = vmatprep.mubr.f32.mxu1 %v23175_v51  ;;  %15780 = vmatpush3.bf16.msra.mxu1 %v15777_v41  ;;  %v11321_v41 = vld [vmem:[%s22204_s3 + $0x1d0] sm:$0xff] }
 0x300   :  { %15782 = vmatprep.subr.bf16.mxu1 %v15781_v36  ;;  %v15793_v30 = vpack.c.bf16 %v11322_v34, %v11321_v41  ;;  %v11326_v41 = vld [vmem:[%s22204_s3 + $0x1f8] sm:$0xff] }
 0x302   :  { %13697 = vmatmul.mubr.f32.gmra.mrb[4].mxu1 %v17589_v55 }
 0x303   :  { %13699 = vmatprep.mubr.f32.mxu1 %v23176_v26  ;;  %15784 = vmatpush3.bf16.msra.mxu1 %v15781_v36  ;;  %v11323_v36 = vld [vmem:[%s22204_s3 + $0x1e0] sm:$0xff] }
 0x304   :  { %15786 = vmatprep.subr.bf16.mxu1 %v15785_v32  ;;  %v15797_v47 = vpack.c.bf16 %v11324_v28, %v11323_v36  ;;  %v11344_v36 = vld [vmem:[%s22204_s3 + $0x288] sm:$0xff] }
 0x306   :  { %13700 = vmatmul.mubr.f32.gmra.mrb[6].mxu1 %v17605_v57 }
 0x307   :  { %13702 = vmatprep.mubr.f32.mxu1 %v17609_v39  ;;  %15788 = vmatpush3.bf16.msra.mxu1 %v15785_v32  ;;  %v11325_v32 = vld [vmem:[%s22204_s3 + $0x1f0] sm:$0xff] }
 0x308   :  { %15790 = vmatprep.subr.bf16.mxu1 %v15789_v48  ;;  %v15801_v34 = vpack.c.bf16 %v11326_v41, %v11325_v32  ;;  %v23179_v32 = vld [vmem:[#allocation26_spill] sm:$0xff]  ;;  %v23180_v41 = vld [vmem:[#allocation27_spill] sm:$0xff] }
 0x30a   :  { %13703 = vmatmul.mubr.f32.gmra.mrb[8].mxu1 %v17621_v59 }
 0x30b   :  { %13705 = vmatprep.mubr.f32.mxu1 %v17625_v50  ;;  %15792 = vmatpush3.bf16.msra.mxu1 %v15789_v48  ;;  %v11343_v48 = vld [vmem:[%s22204_s3 + $0x280] sm:$0xff] }
 0x30c   :  { %15794 = vmatprep.subr.bf16.mxu1 %v15793_v30  ;;  %v15805_v28 = vpack.c.bf16 %v11344_v36, %v11343_v48  ;;  %v23182_v48 = vld [vmem:[#allocation29_spill] sm:$0xff]  ;;  %v23183_v36 = vld [vmem:[#allocation30_spill] sm:$0xff] }
 0x30e   :  { %13706 = vmatmul.mubr.f32.gmra.mrb[10].mxu1 %v17637_v61 }
 0x30f   :  { %13708 = vmatprep.mubr.f32.mxu1 %v17641_v45  ;;  %15796 = vmatpush3.bf16.msra.mxu1 %v15793_v30 }
 0x310   :  { %15798 = vmatprep.subr.bf16.mxu1 %v15797_v47 }
 0x312   :  { %13709 = vmatmul.mubr.f32.gmra.mrb[12].mxu1 %v17653_v63 }
 0x313   :  { %13711 = vmatprep.mubr.f32.mxu1 %v17659_v52  ;;  %15800 = vmatpush3.bf16.msra.mxu1 %v15797_v47 }
 0x314   :  { %15802 = vmatprep.subr.bf16.mxu1 %v15801_v34 }
 0x316   :  { %13712 = vmatmul.mubr.f32.gmra.mrb[14].mxu1 %v17665_v58 }
 0x317   :  { %13714 = vmatprep.mubr.f32.mxu1 %v17670_v1  ;;  %15804 = vmatpush3.bf16.msra.mxu1 %v15801_v34  ;;  %v23181_v34 = vld [vmem:[#allocation28_spill] sm:$0xff] }
 0x318   :  { %15806 = vmatprep.subr.bf16.mxu1 %v15805_v28 }
 0x31a   :  { %13715 = vmatmul.mubr.f32.gmra.mrb[16].mxu1 %v17676_v4 }
 0x31b   :  { %13717 = vmatprep.mubr.f32.mxu1 %v17680_v40 }
 0x31e   :  { %13718 = vmatmul.mubr.f32.gmra.mrb[18].mxu1 %v17686_v56 }
 0x31f   :  { %13720 = vmatprep.mubr.f32.mxu1 %v17690_v60 }
 0x322   :  { %13721 = vmatmul.mubr.f32.gmra.mrb[20].mxu1 %v17696_v5 }
 0x323   :  { %13723 = vmatprep.mubr.f32.mxu1 %v17700_v42 }
 0x326   :  { %13724 = vmatmul.mubr.f32.gmra.mrb[22].mxu1 %v17706_v7 }
 0x327   :  { %13726 = vmatprep.mubr.f32.mxu1 %v17710_v44 }
 0x32a   :  { %13727 = vmatmul.mubr.f32.gmra.mrb[24].mxu1 %v17716_v9 }
 0x32b   :  { %13729 = vmatprep.mubr.f32.mxu1 %v17720_v3 }
 0x32e   :  { %13730 = vmatmul.mubr.f32.gmra.mrb[26].mxu1 %v17726_v11 }
 0x32f   :  { %13732 = vmatprep.mubr.f32.mxu1 %v17730_v54 }
 0x332   :  { %13733 = vmatmul.mubr.f32.gmra.mrb[28].mxu1 %v17736_v13 }
 0x333   :  { %13735 = vmatprep.mubr.f32.mxu1 %v17740_v62 }
 0x336   :  { %13736 = vmatmul.mubr.f32.gmra.mrb[30].mxu1 %v17746_v15 }
 0x337   :  { %13738 = vmatprep.mubr.f32.mxu1 %v17750_v0 }
 0x33a   :  { %13739 = vmatmul.mubr.f32.gmra.mrb[66].mxu1 %v17756_v17 }
 0x33b   :  { %13741 = vmatprep.mubr.f32.mxu1 %v17760_v6 }
 0x33e   :  { %13742 = vmatmul.mubr.f32.gmra.mrb[34].mxu1 %v17766_v19 }
 0x33f   :  { %13744 = vmatprep.mubr.f32.mxu1 %v17770_v8 }
 0x342   :  { %13745 = vmatmul.mubr.f32.gmra.mrb[36].mxu1 %v17776_v21 }
 0x343   :  { %13747 = vmatprep.mubr.f32.mxu1 %v17780_v10 }
 0x346   :  { %13748 = vmatmul.mubr.f32.gmra.mrb[38].mxu1 %v17786_v23 }
 0x347   :  { %13750 = vmatprep.mubr.f32.mxu1 %v17790_v12 }
 0x34a   :  { %13751 = vmatmul.mubr.f32.gmra.mrb[40].mxu1 %v17796_v25 }
 0x34b   :  { %13753 = vmatprep.mubr.f32.mxu1 %v17800_v14  ;;  %v23185_v14 = vld [vmem:[#allocation8_spill] sm:$0xff] }
 0x34d   :  { %v19193_v30 = vpop.f32.mrb[0].mxu1 }
 0x34e   :  { %23177 = vst [vmem:[#allocation21_spill] sm:$0xff] %v19193_v30  ;;  %v19195_v47 = vpop.f32.mrb[1].mxu1  ;;  %13754 = vmatmul.mubr.f32.gmra.mrb[42].mxu1 %v23007_v24  ;;  %v23186_v30 = vld [vmem:[#allocation7_spill] sm:$0xff] }
 0x34f   :  { %23178 = vst [vmem:[#allocation22_spill] sm:$0xff] %v19195_v47  ;;  %13756 = vmatprep.mubr.f32.mxu1 %v17810_v16  ;;  %v23187_v47 = vld [vmem:[#allocation9_spill] sm:$0xff] }
 0x352   :  { %13757 = vmatmul.mubr.f32.gmra.mrb[44].mxu1 %v23179_v32  ;;  %v23188_v32 = vld [vmem:[#allocation11_spill] sm:$0xff] }
 0x353   :  { %13759 = vmatprep.mubr.f32.mxu1 %v23180_v41 }
 0x356   :  { %13760 = vmatmul.mubr.f32.gmra.mrb[46].mxu1 %v23181_v34  ;;  %v23189_v34 = vld [vmem:[#allocation13_spill] sm:$0xff] }
 0x357   :  { %13762 = vmatprep.mubr.f32.mxu1 %v23182_v48 }
 0x35a   :  { %13763 = vmatmul.mubr.f32.gmra.mrb[48].mxu1 %v23183_v36  ;;  %v23190_v36 = vld [vmem:[#allocation32_spill] sm:$0xff] }
 0x35b   :  { %13765 = vmatprep.mubr.f32.mxu1 %v23184_v29 }
 0x35e   :  { %13766 = vmatmul.mubr.f32.gmra.mrb[50].mxu1 %v23185_v14  ;;  %v23214_v14 = vld [vmem:[#allocation67_spill] sm:$0xff] }
 0x35f   :  { %13768 = vmatprep.mubr.f32.mxu1 %v23186_v30 }
 0x362   :  { %13769 = vmatmul.mubr.f32.gmra.mrb[52].mxu1 %v23149_v49 }
 0x363   :  { %13771 = vmatprep.mubr.f32.mxu1 %v23187_v47  ;;  %v11345_v47 = vld [vmem:[%s22204_s3 + $0x290] sm:$0xff] }
 0x366   :  { %13772 = vmatmul.mubr.f32.gmra.mrb[54].mxu1 %v23154_v46  ;;  %v23191_v46 = vld [vmem:[#allocation18_spill] sm:$0xff] }
 0x367   :  { %13774 = vmatprep.mubr.f32.mxu1 %v23188_v32  ;;  %v11346_v32 = vld [vmem:[%s22204_s3 + $0x298] sm:$0xff] }
 0x36a   :  { %13775 = vmatmul.mubr.f32.gmra.mrb[56].mxu1 %v23159_v18  ;;  %v23192_v18 = vld [vmem:[#allocation37_spill] sm:$0xff] }
 0x36b   :  { %13777 = vmatprep.mubr.f32.mxu1 %v23189_v34  ;;  %v15809_v34 = vpack.c.bf16 %v11346_v32, %v11345_v47  ;;  %v11350_v47 = vld [vmem:[%s22204_s3 + $0x2b8] sm:$0xff]  ;;  %v23195_v32 = vld [vmem:[#allocation42_spill] sm:$0xff] }
 0x36e   :  { %13778 = vmatmul.mubr.f32.gmra.mrb[58].mxu1 %v23164_v33  ;;  %v23194_v33 = vld [vmem:[#allocation40_spill] sm:$0xff] }
 0x36f   :  { %13780 = vmatprep.mubr.f32.mxu1 %v23190_v36  ;;  %v11347_v36 = vld [vmem:[%s22204_s3 + $0x2a0] sm:$0xff] }
 0x372   :  { %13781 = vmatmul.mubr.f32.gmra.mrb[60].mxu1 %v23168_v2  ;;  %v23193_v2 = vld [vmem:[#allocation39_spill] sm:$0xff] }
 0x373   :  { %13783 = vmatprep.mubr.f32.mxu1 %v23053_v20  ;;  %v11348_v20 = vld [vmem:[%s22204_s3 + $0x2a8] sm:$0xff] }
 0x374   :  { %v15813_v49 = vpack.c.bf16 %v11348_v20, %v11347_v36  ;;  %v11352_v20 = vld [vmem:[%s22204_s3 + $0x2c8] sm:$0xff]  ;;  %v23197_v36 = vld [vmem:[#allocation45_spill] sm:$0xff] }
 0x376   :  { %13784 = vmatmul.mubr.f32.gmra.mrb[62].mxu1 %v23191_v46  ;;  %v23196_v46 = vld [vmem:[#allocation43_spill] sm:$0xff] }
 0x377   :  { %13818 = vmatprep.mubr.f32.mxu1 %v23192_v18  ;;  %v11349_v18 = vld [vmem:[%s22204_s3 + $0x2b0] sm:$0xff] }
 0x37a   :  { %13819 = vmatmul.mubr.f32.vlgmr.msra.gmra.mrb[64].mxu1 %v23193_v2  ;;  %v15817_v2 = vpack.c.bf16 %v11350_v47, %v11349_v18  ;;  %v11354_v18 = vld [vmem:[%s22204_s3 + $0x2d8] sm:$0xff] }
 0x37b   :  { %15808 = vmatpush3.bf16.msra.mxu1 %v15805_v28  ;;  %13821 = vmatprep.mubr.f32.mxu1 %v23194_v33  ;;  %v11351_v28 = vld [vmem:[%s22204_s3 + $0x2c0] sm:$0xff]  ;;  %v23199_v47 = vld [vmem:[#allocation48_spill] sm:$0xff] }
 0x37c   :  { %15810 = vmatprep.subr.bf16.mxu1 %v15809_v34  ;;  %v23198_v33 = vld [vmem:[#allocation46_spill] sm:$0xff] }
 0x37e   :  { %13822 = vmatmul.mubr.f32.gmra.mrb[2].mxu1 %v23195_v32  ;;  %v15821_v32 = vpack.c.bf16 %v11352_v20, %v11351_v28  ;;  %v11356_v28 = vld [vmem:[%s22204_s3 + $0x2e8] sm:$0xff] }
 0x37f   :  { %13824 = vmatprep.mubr.f32.mxu1 %v23196_v46  ;;  %15812 = vmatpush3.bf16.msra.mxu1 %v15809_v34  ;;  %v11353_v34 = vld [vmem:[%s22204_s3 + $0x2d0] sm:$0xff]  ;;  %v23200_v46 = vld [vmem:[#allocation49_spill] sm:$0xff] }
 0x380   :  { %15814 = vmatprep.subr.bf16.mxu1 %v15813_v49  ;;  %v23201_v20 = vld [vmem:[#allocation51_spill] sm:$0xff] }
 0x382   :  { %13825 = vmatmul.mubr.f32.gmra.mrb[4].mxu1 %v23197_v36  ;;  %v15825_v36 = vpack.c.bf16 %v11354_v18, %v11353_v34  ;;  %v11358_v34 = vld [vmem:[%s22204_s3 + $0x2f8] sm:$0xff] }
 0x383   :  { %13827 = vmatprep.mubr.f32.mxu1 %v23198_v33  ;;  %15816 = vmatpush3.bf16.msra.mxu1 %v15813_v49  ;;  %v11355_v49 = vld [vmem:[%s22204_s3 + $0x2e0] sm:$0xff]  ;;  %v23202_v33 = vld [vmem:[#allocation52_spill] sm:$0xff] }
 0x384   :  { %15818 = vmatprep.subr.bf16.mxu1 %v15817_v2 }
 0x386   :  { %13828 = vmatmul.mubr.f32.gmra.mrb[6].mxu1 %v23199_v47  ;;  %v15829_v47 = vpack.c.bf16 %v11356_v28, %v11355_v49  ;;  %v11375_v49 = vld [vmem:[%s22204_s3 + $0x380] sm:$0xff]  ;;  %v11376_v28 = vld [vmem:[%s22204_s3 + $0x388] sm:$0xff] }
 0x387   :  { %13830 = vmatprep.mubr.f32.mxu1 %v23200_v46  ;;  %15820 = vmatpush3.bf16.msra.mxu1 %v15817_v2  ;;  %v11357_v2 = vld [vmem:[%s22204_s3 + $0x2f0] sm:$0xff]  ;;  %v23205_v46 = vld [vmem:[#allocation54_spill] sm:$0xff] }
 0x388   :  { %15822 = vmatprep.subr.bf16.mxu1 %v15821_v32 }
 0x38a   :  { %13831 = vmatmul.mubr.f32.gmra.mrb[8].mxu1 %v23201_v20  ;;  %v23206_v20 = vld [vmem:[#allocation55_spill] sm:$0xff] }
 0x38b   :  { %13833 = vmatprep.mubr.f32.mxu1 %v23202_v33  ;;  %15824 = vmatpush3.bf16.msra.mxu1 %v15821_v32  ;;  %v15833_v32 = vpack.c.bf16 %v11358_v34, %v11357_v2  ;;  %v23208_v33 = vld [vmem:[#allocation58_spill] sm:$0xff]  ;;  %v23211_v2 = vld [vmem:[#allocation63_spill] sm:$0xff]  ;;  %v23212_v34 = vld [vmem:[#allocation64_spill] sm:$0xff] }
 0x38c   :  { %15826 = vmatprep.subr.bf16.mxu1 %v15825_v36 }
 0x38d   :  { %v19265_v30 = vpop.f32.mrb[32].mxu1 }
 0x38e   :  { %23203 = vst [vmem:[#allocation23_spill] sm:$0xff] %v19265_v30  ;;  %v19273_v18 = vpop.f32.mrb[33].mxu1  ;;  %13834 = vmatmul.mubr.f32.gmra.mrb[10].mxu1 %v23205_v46  ;;  %v23207_v30 = vld [vmem:[#allocation57_spill] sm:$0xff]  ;;  %v23209_v46 = vld [vmem:[#allocation60_spill] sm:$0xff] }
 0x38f   :  { %23204 = vst [vmem:[#allocation27_spill] sm:$0xff] %v19273_v18  ;;  %13836 = vmatprep.mubr.f32.mxu1 %v23206_v20  ;;  %15828 = vmatpush3.bf16.msra.mxu1 %v15825_v36  ;;  %v15837_v18 = vpack.c.bf16 %v11376_v28, %v11375_v49  ;;  %v23210_v36 = vld [vmem:[#allocation61_spill] sm:$0xff]  ;;  %v23213_v20 = vld [vmem:[#allocation66_spill] sm:$0xff]  ;;  %v23219_v28 = vld [vmem:[#allocation75_spill] sm:$0xff] }
 0x390   :  { %15830 = vmatprep.subr.bf16.mxu1 %v15829_v47  ;;  %v23218_v49 = vld [vmem:[#allocation73_spill] sm:$0xff] }
 0x392   :  { %13837 = vmatmul.mubr.f32.gmra.mrb[12].mxu1 %v23207_v30  ;;  %v23215_v30 = vld [vmem:[#allocation69_spill] sm:$0xff] }
 0x393   :  { %13839 = vmatprep.mubr.f32.mxu1 %v23208_v33  ;;  %15832 = vmatpush3.bf16.msra.mxu1 %v15829_v47  ;;  %v23216_v33 = vld [vmem:[#allocation70_spill] sm:$0xff]  ;;  %v23217_v47 = vld [vmem:[#allocation72_spill] sm:$0xff] }
 0x394   :  { %15834 = vmatprep.subr.bf16.mxu1 %v15833_v32 }
 0x396   :  { %13840 = vmatmul.mubr.f32.gmra.mrb[14].mxu1 %v23209_v46  ;;  %v23278_v46 = vld [vmem:[#allocation162_spill] sm:$0xff] }
 0x397   :  { %13842 = vmatprep.mubr.f32.mxu1 %v23210_v36  ;;  %15836 = vmatpush3.bf16.msra.mxu1 %v15833_v32  ;;  %v23220_v32 = vld [vmem:[#allocation76_spill] sm:$0xff]  ;;  %v23221_v36 = vld [vmem:[#allocation78_spill] sm:$0xff] }
 0x398   :  { %15838 = vmatprep.subr.bf16.mxu1 %v15837_v18 }
 0x39a   :  { %13843 = vmatmul.mubr.f32.gmra.mrb[16].mxu1 %v23211_v2  ;;  %v23222_v2 = vld [vmem:[#allocation79_spill] sm:$0xff] }
 0x39b   :  { %13845 = vmatprep.mubr.f32.mxu1 %v23212_v34  ;;  %v23223_v34 = vld [vmem:[#allocation81_spill] sm:$0xff] }
 0x39e   :  { %13846 = vmatmul.mubr.f32.gmra.mrb[18].mxu1 %v23213_v20  ;;  %v23224_v20 = vld [vmem:[#allocation82_spill] sm:$0xff] }
 0x39f   :  { %13848 = vmatprep.mubr.f32.mxu1 %v23214_v14  ;;  %v23225_v14 = vld [vmem:[#allocation84_spill] sm:$0xff] }
 0x3a2   :  { %13849 = vmatmul.mubr.f32.gmra.mrb[20].mxu1 %v23215_v30  ;;  %v23226_v30 = vld [vmem:[#allocation85_spill] sm:$0xff] }
 0x3a3   :  { %13851 = vmatprep.mubr.f32.mxu1 %v23216_v33  ;;  %v23227_v33 = vld [vmem:[#allocation87_spill] sm:$0xff] }
 0x3a6   :  { %13852 = vmatmul.mubr.f32.gmra.mrb[22].mxu1 %v23217_v47  ;;  %v23228_v47 = vld [vmem:[#allocation88_spill] sm:$0xff] }
 0x3a7   :  { %13854 = vmatprep.mubr.f32.mxu1 %v23218_v49  ;;  %v23229_v49 = vld [vmem:[#allocation90_spill] sm:$0xff] }
 0x3aa   :  { %13855 = vmatmul.mubr.f32.gmra.mrb[24].mxu1 %v23219_v28  ;;  %v23230_v28 = vld [vmem:[#allocation91_spill] sm:$0xff] }
 0x3ab   :  { %13857 = vmatprep.mubr.f32.mxu1 %v23220_v32  ;;  %v23231_v32 = vld [vmem:[#allocation93_spill] sm:$0xff] }
 0x3ae   :  { %13858 = vmatmul.mubr.f32.gmra.mrb[26].mxu1 %v23221_v36  ;;  %v23232_v36 = vld [vmem:[#allocation94_spill] sm:$0xff] }
 0x3af   :  { %13860 = vmatprep.mubr.f32.mxu1 %v23222_v2  ;;  %v23233_v2 = vld [vmem:[#allocation96_spill] sm:$0xff] }
 0x3b2   :  { %13861 = vmatmul.mubr.f32.gmra.mrb[28].mxu1 %v23223_v34  ;;  %v23234_v34 = vld [vmem:[#allocation97_spill] sm:$0xff] }
 0x3b3   :  { %13863 = vmatprep.mubr.f32.mxu1 %v23224_v20  ;;  %v23235_v20 = vld [vmem:[#allocation25_spill] sm:$0xff] }
 0x3b6   :  { %13864 = vmatmul.mubr.f32.gmra.mrb[30].mxu1 %v23225_v14  ;;  %v23236_v14 = vld [vmem:[#allocation99_spill] sm:$0xff] }
 0x3b7   :  { %13866 = vmatprep.mubr.f32.mxu1 %v23226_v30  ;;  %v23237_v30 = vld [vmem:[#allocation101_spill] sm:$0xff] }
 0x3ba   :  { %13867 = vmatmul.mubr.f32.gmra.mrb[66].mxu1 %v23227_v33  ;;  %v23238_v33 = vld [vmem:[#allocation102_spill] sm:$0xff] }
 0x3bb   :  { %13869 = vmatprep.mubr.f32.mxu1 %v23228_v47  ;;  %v23239_v47 = vld [vmem:[#allocation104_spill] sm:$0xff] }
 0x3be   :  { %13870 = vmatmul.mubr.f32.gmra.mrb[34].mxu1 %v23229_v49  ;;  %v23240_v49 = vld [vmem:[#allocation105_spill] sm:$0xff] }
 0x3bf   :  { %13872 = vmatprep.mubr.f32.mxu1 %v23230_v28  ;;  %v23241_v28 = vld [vmem:[#allocation107_spill] sm:$0xff] }
 0x3c2   :  { %13873 = vmatmul.mubr.f32.gmra.mrb[36].mxu1 %v23231_v32  ;;  %v23242_v32 = vld [vmem:[#allocation108_spill] sm:$0xff] }
 0x3c3   :  { %13875 = vmatprep.mubr.f32.mxu1 %v23232_v36  ;;  %v23243_v36 = vld [vmem:[#allocation110_spill] sm:$0xff] }
 0x3c6   :  { %13876 = vmatmul.mubr.f32.gmra.mrb[38].mxu1 %v23233_v2  ;;  %v23244_v2 = vld [vmem:[#allocation111_spill] sm:$0xff] }
 0x3c7   :  { %13878 = vmatprep.mubr.f32.mxu1 %v23234_v34  ;;  %v23245_v34 = vld [vmem:[#allocation113_spill] sm:$0xff] }
 0x3ca   :  { %13879 = vmatmul.mubr.f32.gmra.mrb[40].mxu1 %v23235_v20  ;;  %v23246_v20 = vld [vmem:[#allocation114_spill] sm:$0xff] }
 0x3cb   :  { %13881 = vmatprep.mubr.f32.mxu1 %v23236_v14  ;;  %v23247_v14 = vld [vmem:[#allocation116_spill] sm:$0xff] }
 0x3ce   :  { %13882 = vmatmul.mubr.f32.gmra.mrb[42].mxu1 %v23237_v30  ;;  %v23248_v30 = vld [vmem:[#allocation117_spill] sm:$0xff] }
 0x3cf   :  { %13884 = vmatprep.mubr.f32.mxu1 %v23238_v33  ;;  %v23249_v33 = vld [vmem:[#allocation119_spill] sm:$0xff] }
 0x3d2   :  { %13885 = vmatmul.mubr.f32.gmra.mrb[44].mxu1 %v23239_v47  ;;  %v23250_v47 = vld [vmem:[#allocation120_spill] sm:$0xff] }
 0x3d3   :  { %13887 = vmatprep.mubr.f32.mxu1 %v23240_v49  ;;  %v23251_v49 = vld [vmem:[#allocation122_spill] sm:$0xff] }
 0x3d6   :  { %13888 = vmatmul.mubr.f32.gmra.mrb[46].mxu1 %v23241_v28  ;;  %v23252_v28 = vld [vmem:[#allocation123_spill] sm:$0xff] }
 0x3d7   :  { %13890 = vmatprep.mubr.f32.mxu1 %v23242_v32  ;;  %v23253_v32 = vld [vmem:[#allocation125_spill] sm:$0xff] }
 0x3da   :  { %13891 = vmatmul.mubr.f32.gmra.mrb[48].mxu1 %v23243_v36  ;;  %v23254_v36 = vld [vmem:[#allocation126_spill] sm:$0xff] }
 0x3db   :  { %13893 = vmatprep.mubr.f32.mxu1 %v23244_v2  ;;  %v23255_v2 = vld [vmem:[#allocation127_spill] sm:$0xff] }
 0x3de   :  { %13894 = vmatmul.mubr.f32.gmra.mrb[50].mxu1 %v23245_v34  ;;  %v23256_v34 = vld [vmem:[#allocation34_spill] sm:$0xff] }
 0x3df   :  { %13896 = vmatprep.mubr.f32.mxu1 %v23246_v20  ;;  %v23273_v20 = vld [vmem:[#allocation154_spill] sm:$0xff] }
 0x3e2   :  { %13897 = vmatmul.mubr.f32.gmra.mrb[52].mxu1 %v23247_v14 }
 0x3e3   :  { %13899 = vmatprep.mubr.f32.mxu1 %v23248_v30  ;;  %v11377_v30 = vld [vmem:[%s22204_s3 + $0x390] sm:$0xff] }
 0x3e6   :  { %13900 = vmatmul.mubr.f32.gmra.mrb[54].mxu1 %v23249_v33  ;;  %v23257_v33 = vld [vmem:[#allocation36_spill] sm:$0xff] }
 0x3e7   :  { %13902 = vmatprep.mubr.f32.mxu1 %v23250_v47  ;;  %v11378_v47 = vld [vmem:[%s22204_s3 + $0x398] sm:$0xff] }
 0x3ea   :  { %13903 = vmatmul.mubr.f32.gmra.mrb[56].mxu1 %v23251_v49  ;;  %v23258_v49 = vld [vmem:[#allocation132_spill] sm:$0xff] }
 0x3eb   :  { %13905 = vmatprep.mubr.f32.mxu1 %v23252_v28  ;;  %v15841_v28 = vpack.c.bf16 %v11378_v47, %v11377_v30  ;;  %v11382_v30 = vld [vmem:[%s22204_s3 + $0x3b8] sm:$0xff] }
 0x3ec   :  { %v23261_v47 = vld [vmem:[#allocation136_spill] sm:$0xff] }
 0x3ee   :  { %13906 = vmatmul.mubr.f32.gmra.mrb[58].mxu1 %v23253_v32  ;;  %v23260_v32 = vld [vmem:[#allocation135_spill] sm:$0xff] }
 0x3ef   :  { %13908 = vmatprep.mubr.f32.mxu1 %v23254_v36  ;;  %v11379_v36 = vld [vmem:[%s22204_s3 + $0x3a0] sm:$0xff] }
 0x3f2   :  { %13909 = vmatmul.mubr.f32.gmra.mrb[60].mxu1 %v23255_v2  ;;  %v23259_v2 = vld [vmem:[#allocation133_spill] sm:$0xff] }
 0x3f3   :  { %13911 = vmatprep.mubr.f32.mxu1 %v23256_v34  ;;  %v11380_v34 = vld [vmem:[%s22204_s3 + $0x3a8] sm:$0xff] }
 0x3f4   :  { %v15845_v14 = vpack.c.bf16 %v11380_v34, %v11379_v36  ;;  %v11384_v36 = vld [vmem:[%s22204_s3 + $0x3c8] sm:$0xff] }
 0x3f5   :  { %v23263_v34 = vld [vmem:[#allocation139_spill] sm:$0xff] }
 0x3f6   :  { %13912 = vmatmul.mubr.f32.gmra.mrb[62].mxu1 %v23257_v33  ;;  %v23262_v33 = vld [vmem:[#allocation138_spill] sm:$0xff] }
 0x3f7   :  { %13946 = vmatprep.mubr.f32.mxu1 %v23258_v49  ;;  %v11381_v49 = vld [vmem:[%s22204_s3 + $0x3b0] sm:$0xff] }
 0x3fa   :  { %13947 = vmatmul.mubr.f32.vlgmr.msra.gmra.mrb[64].mxu1 %v23259_v2  ;;  %v15849_v2 = vpack.c.bf16 %v11382_v30, %v11381_v49  ;;  %v11386_v49 = vld [vmem:[%s22204_s3 + $0x3d8] sm:$0xff]  ;;  %v23265_v30 = vld [vmem:[#allocation142_spill] sm:$0xff] }
 0x3fb   :  { %15840 = vmatpush3.bf16.msra.mxu1 %v15837_v18  ;;  %13949 = vmatprep.mubr.f32.mxu1 %v23260_v32  ;;  %v11383_v18 = vld [vmem:[%s22204_s3 + $0x3c0] sm:$0xff] }
 0x3fc   :  { %15842 = vmatprep.subr.bf16.mxu1 %v15841_v28  ;;  %v23264_v32 = vld [vmem:[#allocation141_spill] sm:$0xff] }
 0x3fe   :  { %13950 = vmatmul.mubr.f32.gmra.mrb[2].mxu1 %v23261_v47  ;;  %v15853_v47 = vpack.c.bf16 %v11384_v36, %v11383_v18  ;;  %v11388_v18 = vld [vmem:[%s22204_s3 + $0x3e8] sm:$0xff]  ;;  %v23267_v36 = vld [vmem:[#allocation145_spill] sm:$0xff] }
 0x3ff   :  { %13952 = vmatprep.mubr.f32.mxu1 %v23262_v33  ;;  %15844 = vmatpush3.bf16.msra.mxu1 %v15841_v28  ;;  %v11385_v28 = vld [vmem:[%s22204_s3 + $0x3d0] sm:$0xff] }
 0x400   :  { %15846 = vmatprep.subr.bf16.mxu1 %v15845_v14  ;;  %v23266_v33 = vld [vmem:[#allocation144_spill] sm:$0xff] }
 0x402   :  { %13953 = vmatmul.mubr.f32.gmra.mrb[4].mxu1 %v23263_v34  ;;  %v15857_v34 = vpack.c.bf16 %v11386_v49, %v11385_v28  ;;  %v11390_v28 = vld [vmem:[%s22204_s3 + $0x3f8] sm:$0xff] }
 0x403   :  { %13955 = vmatprep.mubr.f32.mxu1 %v23264_v32  ;;  %15848 = vmatpush3.bf16.msra.mxu1 %v15845_v14  ;;  %v11387_v14 = vld [vmem:[%s22204_s3 + $0x3e0] sm:$0xff]  ;;  %v23268_v32 = vld [vmem:[#allocation147_spill] sm:$0xff]  ;;  %v23269_v49 = vld [vmem:[#allocation148_spill] sm:$0xff] }
 0x404   :  { %15850 = vmatprep.subr.bf16.mxu1 %v15849_v2 }
 0x406   :  { %13956 = vmatmul.mubr.f32.gmra.mrb[6].mxu1 %v23265_v30  ;;  %v15861_v30 = vpack.c.bf16 %v11388_v18, %v11387_v14  ;;  %v11360_v14 = vld [vmem:[%s22204_s3 + $0x308] sm:$0xff] }
 0x407   :  { %13958 = vmatprep.mubr.f32.mxu1 %v23266_v33  ;;  %15852 = vmatpush3.bf16.msra.mxu1 %v15849_v2  ;;  %v11389_v2 = vld [vmem:[%s22204_s3 + $0x3f0] sm:$0xff]  ;;  %v23270_v33 = vld [vmem:[#allocation150_spill] sm:$0xff] }
 0x408   :  { %15854 = vmatprep.subr.bf16.mxu1 %v15853_v47  ;;  %v23271_v18 = vld [vmem:[#allocation151_spill] sm:$0xff] }
 0x40a   :  { %13959 = vmatmul.mubr.f32.gmra.mrb[8].mxu1 %v23267_v36  ;;  %v15865_v36 = vpack.c.bf16 %v11390_v28, %v11389_v2  ;;  %v23275_v2 = vld [vmem:[#allocation157_spill] sm:$0xff]  ;;  %v23276_v28 = vld [vmem:[#allocation159_spill] sm:$0xff] }
 0x40b   :  { %13961 = vmatprep.mubr.f32.mxu1 %v23268_v32  ;;  %15856 = vmatpush3.bf16.msra.mxu1 %v15853_v47  ;;  %v11359_v47 = vld [vmem:[%s22204_s3 + $0x300] sm:$0xff] }
 0x40c   :  { %15858 = vmatprep.subr.bf16.mxu1 %v15857_v34  ;;  %v23272_v32 = vld [vmem:[#allocation153_spill] sm:$0xff] }
 0x40e   :  { %13962 = vmatmul.mubr.f32.gmra.mrb[10].mxu1 %v23269_v49  ;;  %v15869_v49 = vpack.c.bf16 %v11360_v14, %v11359_v47  ;;  %v23282_v47 = vld [vmem:[#allocation168_spill] sm:$0xff]  ;;  %v23283_v14 = vld [vmem:[#allocation169_spill] sm:$0xff] }
 0x40f   :  { %13964 = vmatprep.mubr.f32.mxu1 %v23270_v33  ;;  %15860 = vmatpush3.bf16.msra.mxu1 %v15857_v34  ;;  %v23274_v34 = vld [vmem:[#allocation156_spill] sm:$0xff] }
 0x410   :  { %15862 = vmatprep.subr.bf16.mxu1 %v15861_v30  ;;  %v23277_v33 = vld [vmem:[#allocation160_spill] sm:$0xff] }
 0x412   :  { %13965 = vmatmul.mubr.f32.gmra.mrb[12].mxu1 %v23271_v18  ;;  %v23279_v18 = vld [vmem:[#allocation163_spill] sm:$0xff] }
 0x413   :  { %13967 = vmatprep.mubr.f32.mxu1 %v23272_v32  ;;  %15864 = vmatpush3.bf16.msra.mxu1 %v15861_v30  ;;  %v23280_v32 = vld [vmem:[#allocation165_spill] sm:$0xff]  ;;  %v23281_v30 = vld [vmem:[#allocation166_spill] sm:$0xff] }
 0x414   :  { %15866 = vmatprep.subr.bf16.mxu1 %v15865_v36 }
 0x416   :  { %13968 = vmatmul.mubr.f32.gmra.mrb[14].mxu1 %v23273_v20 }
 0x417   :  { %13970 = vmatprep.mubr.f32.mxu1 %v23274_v34  ;;  %15868 = vmatpush3.bf16.msra.mxu1 %v15865_v36  ;;  %v23284_v36 = vld [vmem:[#allocation171_spill] sm:$0xff]  ;;  %v23285_v34 = vld [vmem:[#allocation172_spill] sm:$0xff] }
 0x418   :  { %15870 = vmatprep.subr.bf16.mxu1 %v15869_v49 }
 0x41a   :  { %13971 = vmatmul.mubr.f32.gmra.mrb[16].mxu1 %v23275_v2  ;;  %v23286_v2 = vld [vmem:[#allocation174_spill] sm:$0xff] }
 0x41b   :  { %13973 = vmatprep.mubr.f32.mxu1 %v23276_v28  ;;  %v23287_v28 = vld [vmem:[#allocation175_spill] sm:$0xff] }
 0x41e   :  { %13974 = vmatmul.mubr.f32.gmra.mrb[18].mxu1 %v23277_v33  ;;  %v23288_v33 = vld [vmem:[#allocation177_spill] sm:$0xff] }
 0x41f   :  { %13976 = vmatprep.mubr.f32.mxu1 %v23278_v46  ;;  %v23289_v46 = vld [vmem:[#allocation178_spill] sm:$0xff] }
 0x422   :  { %13977 = vmatmul.mubr.f32.gmra.mrb[20].mxu1 %v23279_v18  ;;  %v23290_v18 = vld [vmem:[#allocation180_spill] sm:$0xff] }
 0x423   :  { %13979 = vmatprep.mubr.f32.mxu1 %v23280_v32  ;;  %v23291_v32 = vld [vmem:[#allocation181_spill] sm:$0xff] }
 0x426   :  { %13980 = vmatmul.mubr.f32.gmra.mrb[22].mxu1 %v23281_v30  ;;  %v23292_v30 = vld [vmem:[#allocation183_spill] sm:$0xff] }
 0x427   :  { %13982 = vmatprep.mubr.f32.mxu1 %v23282_v47  ;;  %v23293_v47 = vld [vmem:[#allocation184_spill] sm:$0xff] }
 0x42a   :  { %13983 = vmatmul.mubr.f32.gmra.mrb[24].mxu1 %v23283_v14  ;;  %v23294_v14 = vld [vmem:[#allocation186_spill] sm:$0xff] }
 0x42b   :  { %13985 = vmatprep.mubr.f32.mxu1 %v23284_v36  ;;  %v23295_v36 = vld [vmem:[#allocation187_spill] sm:$0xff] }
 0x42e   :  { %13986 = vmatmul.mubr.f32.gmra.mrb[26].mxu1 %v23285_v34  ;;  %v23296_v34 = vld [vmem:[#allocation189_spill] sm:$0xff] }
 0x42f   :  { %13988 = vmatprep.mubr.f32.mxu1 %v23286_v2  ;;  %v23297_v2 = vld [vmem:[#allocation190_spill] sm:$0xff] }
 0x432   :  { %13989 = vmatmul.mubr.f32.gmra.mrb[28].mxu1 %v23287_v28  ;;  %v23298_v28 = vld [vmem:[#allocation192_spill] sm:$0xff] }
 0x433   :  { %13991 = vmatprep.mubr.f32.mxu1 %v23288_v33  ;;  %v23299_v33 = vld [vmem:[#allocation193_spill] sm:$0xff] }
 0x436   :  { %13992 = vmatmul.mubr.f32.gmra.mrb[30].mxu1 %v23289_v46  ;;  %v23300_v46 = vld [vmem:[#allocation195_spill] sm:$0xff] }
 0x437   :  { %13994 = vmatprep.mubr.f32.mxu1 %v23290_v18  ;;  %v23301_v18 = vld [vmem:[#allocation196_spill] sm:$0xff] }
 0x43a   :  { %13995 = vmatmul.mubr.f32.gmra.mrb[66].mxu1 %v23291_v32  ;;  %v23302_v32 = vld [vmem:[#allocation198_spill] sm:$0xff] }
 0x43b   :  { %13997 = vmatprep.mubr.f32.mxu1 %v23292_v30  ;;  %v23303_v30 = vld [vmem:[#allocation199_spill] sm:$0xff] }
 0x43e   :  { %13998 = vmatmul.mubr.f32.gmra.mrb[34].mxu1 %v23293_v47  ;;  %v23304_v47 = vld [vmem:[#allocation201_spill] sm:$0xff] }
 0x43f   :  { %14000 = vmatprep.mubr.f32.mxu1 %v23294_v14  ;;  %v23305_v14 = vld [vmem:[#allocation202_spill] sm:$0xff] }
 0x442   :  { %14001 = vmatmul.mubr.f32.gmra.mrb[36].mxu1 %v23295_v36  ;;  %v23306_v36 = vld [vmem:[#allocation204_spill] sm:$0xff] }
 0x443   :  { %14003 = vmatprep.mubr.f32.mxu1 %v23296_v34  ;;  %v23307_v34 = vld [vmem:[#allocation205_spill] sm:$0xff] }
 0x446   :  { %14004 = vmatmul.mubr.f32.gmra.mrb[38].mxu1 %v23297_v2  ;;  %v23308_v2 = vld [vmem:[#allocation207_spill] sm:$0xff] }
 0x447   :  { %14006 = vmatprep.mubr.f32.mxu1 %v23298_v28  ;;  %v23309_v28 = vld [vmem:[#allocation208_spill] sm:$0xff] }
 0x44a   :  { %14007 = vmatmul.mubr.f32.gmra.mrb[40].mxu1 %v23299_v33  ;;  %v23310_v33 = vld [vmem:[#allocation210_spill] sm:$0xff] }
 0x44b   :  { %14009 = vmatprep.mubr.f32.mxu1 %v23300_v46  ;;  %v23311_v46 = vld [vmem:[#allocation211_spill] sm:$0xff] }
 0x44e   :  { %14010 = vmatmul.mubr.f32.gmra.mrb[42].mxu1 %v23301_v18  ;;  %v23312_v18 = vld [vmem:[#allocation213_spill] sm:$0xff] }
 0x44f   :  { %14012 = vmatprep.mubr.f32.mxu1 %v23302_v32 }
 0x452   :  { %14013 = vmatmul.mubr.f32.gmra.mrb[44].mxu1 %v23303_v30 }
 0x453   :  { %14015 = vmatprep.mubr.f32.mxu1 %v23304_v47  ;;  %v23313_v47 = vld [vmem:[#allocation217_spill] sm:$0xff] }
 0x456   :  { %14016 = vmatmul.mubr.f32.gmra.mrb[46].mxu1 %v23305_v14 }
 0x457   :  { %14018 = vmatprep.mubr.f32.mxu1 %v23306_v36 }
 0x45a   :  { %14019 = vmatmul.mubr.f32.gmra.mrb[48].mxu1 %v23307_v34 }
 0x45b   :  { %14021 = vmatprep.mubr.f32.mxu1 %v23308_v2 }
 0x45e   :  { %14022 = vmatmul.mubr.f32.gmra.mrb[50].mxu1 %v23309_v28  ;;  %v23314_v28 = vld [vmem:[#allocation129_spill] sm:$0xff] }
 0x45f   :  { %14024 = vmatprep.mubr.f32.mxu1 %v23310_v33 }
 0x462   :  { %14025 = vmatmul.mubr.f32.gmra.mrb[52].mxu1 %v23311_v46 }
 0x463   :  { %14027 = vmatprep.mubr.f32.mxu1 %v23312_v18  ;;  %v11361_v18 = vld [vmem:[%s22204_s3 + $0x310] sm:$0xff] }
 0x466   :  { %14028 = vmatmul.mubr.f32.gmra.mrb[54].mxu1 %v19051_v43  ;;  %v23315_v43 = vld [vmem:[#allocation130_spill] sm:$0xff] }
 0x467   :  { %14030 = vmatprep.mubr.f32.mxu1 %v19062_v38  ;;  %v11362_v38 = vld [vmem:[%s22204_s3 + $0x318] sm:$0xff] }
 0x46a   :  { %14031 = vmatmul.mubr.f32.gmra.mrb[56].mxu1 %v23313_v47 }
 0x46b   :  { %14033 = vmatprep.mubr.f32.mxu1 %v19077_v27  ;;  %v15873_v27 = vpack.c.bf16 %v11362_v38, %v11361_v18  ;;  %v11366_v38 = vld [vmem:[%s22204_s3 + $0x338] sm:$0xff]  ;;  %v11392_v18 = vld [vmem:[%s22204_s3 + $0x408] sm:$0xff] }
 0x46e   :  { %14034 = vmatmul.mubr.f32.gmra.mrb[58].mxu1 %v19082_v31 }
 0x46f   :  { %14036 = vmatprep.mubr.f32.mxu1 %v19094_v37  ;;  %v11363_v37 = vld [vmem:[%s22204_s3 + $0x320] sm:$0xff] }
 0x472   :  { %14037 = vmatmul.mubr.f32.gmra.mrb[60].mxu1 %v19098_v35 }
 0x473   :  { %14039 = vmatprep.mubr.f32.mxu1 %v23314_v28  ;;  %v11364_v28 = vld [vmem:[%s22204_s3 + $0x328] sm:$0xff] }
 0x474   :  { %v15877_v35 = vpack.c.bf16 %v11364_v28, %v11363_v37  ;;  %v11368_v37 = vld [vmem:[%s22204_s3 + $0x348] sm:$0xff]  ;;  %v11399_v28 = vld [vmem:[%s22204_s3 + $0x440] sm:$0xff] }
 0x476   :  { %14040 = vmatmul.mubr.f32.gmra.mrb[62].mxu1 %v23315_v43 }
 0x477   :  { %14074 = vmatprep.mubr.f32.mxu1 %v23174_v22  ;;  %v11365_v22 = vld [vmem:[%s22204_s3 + $0x330] sm:$0xff] }
 0x47a   :  { %14075 = vmatmul.mubr.f32.vlgmr.msra.gmra.mrb[64].mxu1 %v17573_v53  ;;  %v15881_v53 = vpack.c.bf16 %v11366_v38, %v11365_v22  ;;  %v11400_v22 = vld [vmem:[%s22204_s3 + $0x448] sm:$0xff]  ;;  %v23340_v38 = vld [vmem:[#allocation48_spill] sm:$0xff] }
 0x47b   :  { %15872 = vmatpush3.bf16.msra.mxu1 %v15869_v49  ;;  %14077 = vmatprep.mubr.f32.mxu1 %v23175_v51  ;;  %v11367_v51 = vld [vmem:[%s22204_s3 + $0x340] sm:$0xff]  ;;  %v11374_v49 = vld [vmem:[%s22204_s3 + $0x378] sm:$0xff] }
 0x47c   :  { %15874 = vmatprep.subr.bf16.mxu1 %v15873_v27 }
 0x47e   :  { %14078 = vmatmul.mubr.f32.gmra.mrb[2].mxu1 %v17589_v55  ;;  %v15885_v55 = vpack.c.bf16 %v11368_v37, %v11367_v51  ;;  %v15917_v51 = vpack.c.bf16 %v11400_v22, %v11399_v28  ;;  %v11401_v37 = vld [vmem:[%s22204_s3 + $0x450] sm:$0xff]  ;;  %v23376_v28 = vld [vmem:[#allocation101_spill] sm:$0xff]  ;;  %v23377_v22 = vld [vmem:[#allocation102_spill] sm:$0xff] }
 0x47f   :  { %14080 = vmatprep.mubr.f32.mxu1 %v23176_v26  ;;  %15876 = vmatpush3.bf16.msra.mxu1 %v15873_v27  ;;  %v11369_v27 = vld [vmem:[%s22204_s3 + $0x350] sm:$0xff]  ;;  %v11370_v26 = vld [vmem:[%s22204_s3 + $0x358] sm:$0xff] }
 0x480   :  { %15878 = vmatprep.subr.bf16.mxu1 %v15877_v35 }
 0x482   :  { %14081 = vmatmul.mubr.f32.gmra.mrb[4].mxu1 %v17605_v57  ;;  %v15889_v57 = vpack.c.bf16 %v11370_v26, %v11369_v27  ;;  %v23342_v27 = vld [vmem:[#allocation51_spill] sm:$0xff]  ;;  %v23343_v26 = vld [vmem:[#allocation52_spill] sm:$0xff] }
 0x483   :  { %14083 = vmatprep.mubr.f32.mxu1 %v17609_v39  ;;  %15880 = vmatpush3.bf16.msra.mxu1 %v15877_v35  ;;  %v11371_v39 = vld [vmem:[%s22204_s3 + $0x360] sm:$0xff]  ;;  %v11372_v35 = vld [vmem:[%s22204_s3 + $0x368] sm:$0xff] }
 0x484   :  { %15882 = vmatprep.subr.bf16.mxu1 %v15881_v53 }
 0x486   :  { %14084 = vmatmul.mubr.f32.gmra.mrb[6].mxu1 %v17621_v59  ;;  %v15893_v59 = vpack.c.bf16 %v11372_v35, %v11371_v39  ;;  %v11403_v35 = vld [vmem:[%s22204_s3 + $0x460] sm:$0xff] }
 0x487   :  { %14086 = vmatprep.mubr.f32.mxu1 %v17625_v50  ;;  %15884 = vmatpush3.bf16.msra.mxu1 %v15881_v53  ;;  %v11373_v50 = vld [vmem:[%s22204_s3 + $0x370] sm:$0xff]  ;;  %v23341_v53 = vld [vmem:[#allocation49_spill] sm:$0xff] }
 0x488   :  { %15886 = vmatprep.subr.bf16.mxu1 %v15885_v55 }
 0x48a   :  { %14087 = vmatmul.mubr.f32.gmra.mrb[8].mxu1 %v17637_v61  ;;  %v15897_v61 = vpack.c.bf16 %v11374_v49, %v11373_v50  ;;  %v23344_v49 = vld [vmem:[#allocation54_spill] sm:$0xff] }
 0x48b   :  { %14089 = vmatprep.mubr.f32.mxu1 %v17641_v45  ;;  %15888 = vmatpush3.bf16.msra.mxu1 %v15885_v55  ;;  %v11391_v45 = vld [vmem:[%s22204_s3 + $0x400] sm:$0xff]  ;;  %v11402_v55 = vld [vmem:[%s22204_s3 + $0x458] sm:$0xff] }
 0x48c   :  { %15890 = vmatprep.subr.bf16.mxu1 %v15889_v57 }
 0x48e   :  { %14090 = vmatmul.mubr.f32.gmra.mrb[10].mxu1 %v17653_v63  ;;  %v15901_v63 = vpack.c.bf16 %v11392_v18, %v11391_v45  ;;  %v11405_v18 = vld [vmem:[%s22204_s3 + $0x470] sm:$0xff] }
 0x48f   :  { %14092 = vmatprep.mubr.f32.mxu1 %v17659_v52  ;;  %15892 = vmatpush3.bf16.msra.mxu1 %v15889_v57  ;;  %v23316_v52 = vld [vmem:[#allocation24_spill] sm:$0xff]  ;;  %v15921_v57 = vpack.c.bf16 %v11402_v55, %v11401_v37  ;;  %v23382_v55 = vld [vmem:[#allocation110_spill] sm:$0xff] }
 0x490   :  { %15894 = vmatprep.subr.bf16.mxu1 %v15893_v59  ;;  %v23381_v37 = vld [vmem:[#allocation108_spill] sm:$0xff] }
 0x492   :  { %14093 = vmatmul.mubr.f32.gmra.mrb[12].mxu1 %v17665_v58  ;;  %v23317_v58 = vld [vmem:[#allocation26_spill] sm:$0xff] }
 0x493   :  { %14095 = vmatprep.mubr.f32.mxu1 %v17670_v1  ;;  %15896 = vmatpush3.bf16.msra.mxu1 %v15893_v59  ;;  %v23318_v1 = vld [vmem:[#allocation28_spill] sm:$0xff]  ;;  %v11404_v59 = vld [vmem:[%s22204_s3 + $0x468] sm:$0xff] }
 0x494   :  { %15898 = vmatprep.subr.bf16.mxu1 %v15897_v61  ;;  %v15925_v45 = vpack.c.bf16 %v11404_v59, %v11403_v35  ;;  %v23386_v35 = vld [vmem:[#allocation116_spill] sm:$0xff]  ;;  %v23387_v59 = vld [vmem:[#allocation117_spill] sm:$0xff] }
 0x496   :  { %14096 = vmatmul.mubr.f32.gmra.mrb[14].mxu1 %v17676_v4  ;;  %v23319_v4 = vld [vmem:[#allocation30_spill] sm:$0xff] }
 0x497   :  { %14098 = vmatprep.mubr.f32.mxu1 %v17680_v40  ;;  %15900 = vmatpush3.bf16.msra.mxu1 %v15897_v61  ;;  %v23320_v40 = vld [vmem:[#allocation8_spill] sm:$0xff]  ;;  %v23345_v61 = vld [vmem:[#allocation55_spill] sm:$0xff] }
 0x498   :  { %15902 = vmatprep.subr.bf16.mxu1 %v15901_v63 }
 0x49a   :  { %14099 = vmatmul.mubr.f32.gmra.mrb[16].mxu1 %v17686_v56  ;;  %v23321_v56 = vld [vmem:[#allocation7_spill] sm:$0xff] }
 0x49b   :  { %14101 = vmatprep.mubr.f32.mxu1 %v17690_v60  ;;  %v23322_v60 = vld [vmem:[#allocation10_spill] sm:$0xff] }
 0x49e   :  { %14102 = vmatmul.mubr.f32.gmra.mrb[18].mxu1 %v17696_v5  ;;  %v23323_v5 = vld [vmem:[#allocation9_spill] sm:$0xff] }
 0x49f   :  { %14104 = vmatprep.mubr.f32.mxu1 %v17700_v42  ;;  %v23324_v42 = vld [vmem:[#allocation31_spill] sm:$0xff] }
 0x4a2   :  { %14105 = vmatmul.mubr.f32.gmra.mrb[20].mxu1 %v17706_v7  ;;  %v23325_v7 = vld [vmem:[#allocation11_spill] sm:$0xff] }
 0x4a3   :  { %14107 = vmatprep.mubr.f32.mxu1 %v17710_v44  ;;  %v23326_v44 = vld [vmem:[#allocation15_spill] sm:$0xff] }
 0x4a6   :  { %14108 = vmatmul.mubr.f32.gmra.mrb[22].mxu1 %v17716_v9  ;;  %v23327_v9 = vld [vmem:[#allocation13_spill] sm:$0xff] }
 0x4a7   :  { %14110 = vmatprep.mubr.f32.mxu1 %v17720_v3  ;;  %v23328_v3 = vld [vmem:[#allocation16_spill] sm:$0xff] }
 0x4aa   :  { %14111 = vmatmul.mubr.f32.gmra.mrb[24].mxu1 %v17726_v11  ;;  %v23329_v11 = vld [vmem:[#allocation32_spill] sm:$0xff] }
 0x4ab   :  { %14113 = vmatprep.mubr.f32.mxu1 %v17730_v54  ;;  %v23330_v54 = vld [vmem:[#allocation14_spill] sm:$0xff] }
 0x4ae   :  { %14114 = vmatmul.mubr.f32.gmra.mrb[26].mxu1 %v17736_v13  ;;  %v23331_v13 = vld [vmem:[#allocation17_spill] sm:$0xff] }
 0x4af   :  { %14116 = vmatprep.mubr.f32.mxu1 %v17740_v62  ;;  %v23332_v62 = vld [vmem:[#allocation18_spill] sm:$0xff] }
 0x4b2   :  { %14117 = vmatmul.mubr.f32.gmra.mrb[28].mxu1 %v17746_v15  ;;  %v23333_v15 = vld [vmem:[#allocation19_spill] sm:$0xff] }
 0x4b3   :  { %14119 = vmatprep.mubr.f32.mxu1 %v17750_v0  ;;  %v11393_v0 = vld [vmem:[%s22204_s3 + $0x410] sm:$0xff] }
 0x4b6   :  { %14120 = vmatmul.mubr.f32.gmra.mrb[68].mxu1 %v17756_v17  ;;  %v11394_v17 = vld [vmem:[%s22204_s3 + $0x418] sm:$0xff] }
 0x4b7   :  { %14122 = vmatprep.mubr.f32.mxu1 %v17760_v6  ;;  %v23334_v6 = vld [vmem:[#allocation20_spill] sm:$0xff] }
 0x4ba   :  { %14123 = vmatmul.mubr.f32.gmra.mrb[66].mxu1 %v17766_v19  ;;  %v23335_v19 = vld [vmem:[#allocation40_spill] sm:$0xff] }
 0x4bb   :  { %14125 = vmatprep.mubr.f32.mxu1 %v17770_v8  ;;  %v15905_v8 = vpack.c.bf16 %v11394_v17, %v11393_v0  ;;  %v23363_v0 = vld [vmem:[#allocation82_spill] sm:$0xff]  ;;  %v23364_v17 = vld [vmem:[#allocation84_spill] sm:$0xff] }
 0x4be   :  { %14126 = vmatmul.mubr.f32.gmra.mrb[34].mxu1 %v17776_v21  ;;  %v11395_v21 = vld [vmem:[%s22204_s3 + $0x420] sm:$0xff] }
 0x4bf   :  { %14128 = vmatprep.mubr.f32.mxu1 %v17780_v10  ;;  %v11396_v10 = vld [vmem:[%s22204_s3 + $0x428] sm:$0xff] }
 0x4c2   :  { %14129 = vmatmul.mubr.f32.gmra.mrb[36].mxu1 %v17786_v23  ;;  %v23336_v23 = vld [vmem:[#allocation42_spill] sm:$0xff] }
 0x4c3   :  { %14131 = vmatprep.mubr.f32.mxu1 %v17790_v12  ;;  %v23337_v12 = vld [vmem:[#allocation43_spill] sm:$0xff] }
 0x4c6   :  { %14132 = vmatmul.mubr.f32.gmra.mrb[38].mxu1 %v17796_v25  ;;  %v15909_v25 = vpack.c.bf16 %v11396_v10, %v11395_v21  ;;  %v23368_v21 = vld [vmem:[#allocation90_spill] sm:$0xff]  ;;  %v23369_v10 = vld [vmem:[#allocation91_spill] sm:$0xff] }
 0x4c7   :  { %14134 = vmatprep.mubr.f32.mxu1 %v23316_v52  ;;  %v23346_v52 = vld [vmem:[#allocation57_spill] sm:$0xff] }
 0x4ca   :  { %14135 = vmatmul.mubr.f32.gmra.mrb[40].mxu1 %v23007_v24  ;;  %v11398_v24 = vld [vmem:[%s22204_s3 + $0x438] sm:$0xff] }
 0x4cb   :  { %14137 = vmatprep.mubr.f32.mxu1 %v17810_v16  ;;  %v11397_v16 = vld [vmem:[%s22204_s3 + $0x430] sm:$0xff] }
 0x4ce   :  { %14138 = vmatmul.mubr.f32.gmra.mrb[42].mxu1 %v23317_v58  ;;  %v23347_v58 = vld [vmem:[#allocation58_spill] sm:$0xff] }
 0x4cf   :  { %14140 = vmatprep.mubr.f32.mxu1 %v23180_v41  ;;  %v23339_v41 = vld [vmem:[#allocation46_spill] sm:$0xff] }
 0x4d2   :  { %14141 = vmatmul.mubr.f32.gmra.mrb[44].mxu1 %v23318_v1 }
 0x4d3   :  { %14143 = vmatprep.mubr.f32.mxu1 %v23182_v48  ;;  %v15913_v48 = vpack.c.bf16 %v11398_v24, %v11397_v16  ;;  %v23373_v16 = vld [vmem:[#allocation97_spill] sm:$0xff] }
 0x4d4   :  { %v23374_v24 = vld [vmem:[#allocation25_spill] sm:$0xff] }
 0x4d6   :  { %14144 = vmatmul.mubr.f32.gmra.mrb[46].mxu1 %v23319_v4  ;;  %v23348_v4 = vld [vmem:[#allocation60_spill] sm:$0xff] }
 0x4d7   :  { %14146 = vmatprep.mubr.f32.mxu1 %v23184_v29  ;;  %v23338_v29 = vld [vmem:[#allocation45_spill] sm:$0xff] }
 0x4da   :  { %14147 = vmatmul.mubr.f32.gmra.mrb[48].mxu1 %v23320_v40  ;;  %v23349_v40 = vld [vmem:[#allocation61_spill] sm:$0xff] }
 0x4db   :  { %14149 = vmatprep.mubr.f32.mxu1 %v23321_v56  ;;  %v23350_v56 = vld [vmem:[#allocation63_spill] sm:$0xff] }
 0x4de   :  { %14150 = vmatmul.mubr.f32.gmra.mrb[50].mxu1 %v23322_v60  ;;  %v23351_v60 = vld [vmem:[#allocation64_spill] sm:$0xff] }
 0x4df   :  { %14152 = vmatprep.mubr.f32.mxu1 %v23323_v5  ;;  %v23352_v5 = vld [vmem:[#allocation66_spill] sm:$0xff] }
 0x4e2   :  { %14153 = vmatmul.mubr.f32.gmra.mrb[52].mxu1 %v23324_v42  ;;  %v23353_v42 = vld [vmem:[#allocation67_spill] sm:$0xff] }
 0x4e3   :  { %14155 = vmatprep.mubr.f32.mxu1 %v23325_v7  ;;  %v23354_v7 = vld [vmem:[#allocation69_spill] sm:$0xff] }
 0x4e6   :  { %14156 = vmatmul.mubr.f32.gmra.mrb[54].mxu1 %v23326_v44  ;;  %v23355_v44 = vld [vmem:[#allocation70_spill] sm:$0xff] }
 0x4e7   :  { %14158 = vmatprep.mubr.f32.mxu1 %v23327_v9  ;;  %v23356_v9 = vld [vmem:[#allocation72_spill] sm:$0xff] }
 0x4ea   :  { %14159 = vmatmul.mubr.f32.gmra.mrb[56].mxu1 %v23328_v3  ;;  %v23357_v3 = vld [vmem:[#allocation73_spill] sm:$0xff] }
 0x4eb   :  { %14161 = vmatprep.mubr.f32.mxu1 %v23329_v11  ;;  %v23358_v11 = vld [vmem:[#allocation75_spill] sm:$0xff] }
 0x4ee   :  { %14162 = vmatmul.mubr.f32.gmra.mrb[58].mxu1 %v23330_v54  ;;  %v23359_v54 = vld [vmem:[#allocation76_spill] sm:$0xff] }
 0x4ef   :  { %14164 = vmatprep.mubr.f32.mxu1 %v23331_v13  ;;  %v23360_v13 = vld [vmem:[#allocation78_spill] sm:$0xff] }
 0x4f2   :  { %14165 = vmatmul.mubr.f32.gmra.mrb[60].mxu1 %v23332_v62  ;;  %v23361_v62 = vld [vmem:[#allocation79_spill] sm:$0xff] }
 0x4f3   :  { %14167 = vmatprep.mubr.f32.mxu1 %v23333_v15  ;;  %v23362_v15 = vld [vmem:[#allocation81_spill] sm:$0xff] }
 0x4f6   :  { %14168 = vmatmul.mubr.f32.gmra.mrb[70].mxu1 %v23334_v6  ;;  %v23365_v6 = vld [vmem:[#allocation85_spill] sm:$0xff] }
 0x4f7   :  { %14202 = vmatprep.mubr.f32.mxu1 %v23335_v19  ;;  %v23366_v19 = vld [vmem:[#allocation87_spill] sm:$0xff] }
 0x4fa   :  { %14203 = vmatmul.mubr.f32.vlgmr.msra.gmra.mrb[64].mxu1 %v23336_v23  ;;  %v23370_v23 = vld [vmem:[#allocation93_spill] sm:$0xff] }
 0x4fb   :  { %15904 = vmatpush3.bf16.msra.mxu1 %v15901_v63  ;;  %14205 = vmatprep.mubr.f32.mxu1 %v23337_v12  ;;  %v11406_v63 = vld [vmem:[%s22204_s3 + $0x478] sm:$0xff]  ;;  %v23371_v12 = vld [vmem:[#allocation94_spill] sm:$0xff] }
 0x4fc   :  { %15906 = vmatprep.subr.bf16.mxu1 %v15905_v8  ;;  %v15929_v1 = vpack.c.bf16 %v11406_v63, %v11405_v18  ;;  %v23391_v18 = vld [vmem:[#allocation123_spill] sm:$0xff]  ;;  %v23392_v63 = vld [vmem:[#allocation125_spill] sm:$0xff] }
 0x4fe   :  { %14206 = vmatmul.mubr.f32.gmra.mrb[2].mxu1 %v23338_v29  ;;  %v23375_v29 = vld [vmem:[#allocation99_spill] sm:$0xff] }
 0x4ff   :  { %14208 = vmatprep.mubr.f32.mxu1 %v23339_v41  ;;  %15908 = vmatpush3.bf16.msra.mxu1 %v15905_v8  ;;  %v23367_v8 = vld [vmem:[#allocation88_spill] sm:$0xff] }
 0x500   :  { %15910 = vmatprep.subr.bf16.mxu1 %v15909_v25 }
 0x502   :  { %14209 = vmatmul.mubr.f32.gmra.mrb[4].mxu1 %v23340_v38  ;;  %v23378_v38 = vld [vmem:[#allocation104_spill] sm:$0xff] }
 0x503   :  { %14211 = vmatprep.mubr.f32.mxu1 %v23341_v53  ;;  %15912 = vmatpush3.bf16.msra.mxu1 %v15909_v25  ;;  %v23372_v25 = vld [vmem:[#allocation96_spill] sm:$0xff]  ;;  %v23379_v53 = vld [vmem:[#allocation105_spill] sm:$0xff] }
 0x504   :  { %15914 = vmatprep.subr.bf16.mxu1 %v15913_v48 }
 0x506   :  { %14212 = vmatmul.mubr.f32.gmra.mrb[6].mxu1 %v23342_v27  ;;  %v23383_v27 = vld [vmem:[#allocation111_spill] sm:$0xff] }
 0x507   :  { %14214 = vmatprep.mubr.f32.mxu1 %v23343_v26  ;;  %15916 = vmatpush3.bf16.msra.mxu1 %v15913_v48  ;;  %v23384_v26 = vld [vmem:[#allocation113_spill] sm:$0xff] }
 0x508   :  { %15918 = vmatprep.subr.bf16.mxu1 %v15917_v51 }
 0x509   :  { %v19597_v39 = vpop.f32.mrb[30].mxu1 }
 0x50a   :  { %v19605_v50 = vpop.f32.mrb[31].mxu1  ;;  %14215 = vmatmul.mubr.f32.gmra.mrb[8].mxu1 %v23344_v49  ;;  %v23388_v49 = vld [vmem:[#allocation119_spill] sm:$0xff] }
 0x50b   :  { %14217 = vmatprep.mubr.f32.mxu1 %v23345_v61  ;;  %15920 = vmatpush3.bf16.msra.mxu1 %v15917_v51  ;;  %v23380_v51 = vld [vmem:[#allocation107_spill] sm:$0xff]  ;;  %v23389_v61 = vld [vmem:[#allocation120_spill] sm:$0xff] }
 0x50c   :  { %15922 = vmatprep.subr.bf16.mxu1 %v15921_v57 }
 0x50e   :  { %14218 = vmatmul.mubr.f32.gmra.mrb[10].mxu1 %v23346_v52  ;;  %v23393_v52 = vld [vmem:[#allocation126_spill] sm:$0xff] }
 0x50f   :  { %14220 = vmatprep.mubr.f32.mxu1 %v23347_v58  ;;  %15924 = vmatpush3.bf16.msra.mxu1 %v15921_v57  ;;  %v23385_v57 = vld [vmem:[#allocation114_spill] sm:$0xff]  ;;  %v23394_v58 = vld [vmem:[#allocation127_spill] sm:$0xff] }
 0x510   :  { %15926 = vmatprep.subr.bf16.mxu1 %v15925_v45 }
 0x512   :  { %14221 = vmatmul.mubr.f32.gmra.mrb[12].mxu1 %v23348_v4  ;;  %v23396_v4 = vld [vmem:[#allocation36_spill] sm:$0xff] }
 0x513   :  { %14223 = vmatprep.mubr.f32.mxu1 %v23349_v40  ;;  %15928 = vmatpush3.bf16.msra.mxu1 %v15925_v45  ;;  %v23390_v45 = vld [vmem:[#allocation122_spill] sm:$0xff]  ;;  %v23397_v40 = vld [vmem:[#allocation37_spill] sm:$0xff] }
 0x514   :  { %15930 = vmatprep.subr.bf16.mxu1 %v15929_v1 }
 0x516   :  { %14224 = vmatmul.mubr.f32.gmra.mrb[14].mxu1 %v23350_v56  ;;  %v23398_v56 = vld [vmem:[#allocation39_spill] sm:$0xff] }
 0x517   :  { %14226 = vmatprep.mubr.f32.mxu1 %v23351_v60  ;;  %15932 = vmatpush3.bf16.msra.mxu1 %v15929_v1  ;;  %v23395_v1 = vld [vmem:[#allocation34_spill] sm:$0xff]  ;;  %v23399_v60 = vld [vmem:[#allocation135_spill] sm:$0xff] }
 0x51a   :  { %14227 = vmatmul.mubr.f32.gmra.mrb[16].mxu1 %v23352_v5  ;;  %v23400_v5 = vld [vmem:[#allocation136_spill] sm:$0xff] }
 0x51b   :  { %14229 = vmatprep.mubr.f32.mxu1 %v23353_v42  ;;  %v23401_v42 = vld [vmem:[#allocation138_spill] sm:$0xff] }
 0x51e   :  { %14230 = vmatmul.mubr.f32.gmra.mrb[18].mxu1 %v23354_v7  ;;  %v23402_v7 = vld [vmem:[#allocation139_spill] sm:$0xff] }
 0x51f   :  { %14232 = vmatprep.mubr.f32.mxu1 %v23355_v44  ;;  %v23403_v44 = vld [vmem:[#allocation141_spill] sm:$0xff] }
 0x522   :  { %14233 = vmatmul.mubr.f32.gmra.mrb[20].mxu1 %v23356_v9  ;;  %v23404_v9 = vld [vmem:[#allocation142_spill] sm:$0xff] }
 0x523   :  { %14235 = vmatprep.mubr.f32.mxu1 %v23357_v3  ;;  %v23405_v3 = vld [vmem:[#allocation144_spill] sm:$0xff] }
 0x526   :  { %14236 = vmatmul.mubr.f32.gmra.mrb[22].mxu1 %v23358_v11  ;;  %v23406_v11 = vld [vmem:[#allocation145_spill] sm:$0xff] }
 0x527   :  { %14238 = vmatprep.mubr.f32.mxu1 %v23359_v54  ;;  %v23407_v54 = vld [vmem:[#allocation147_spill] sm:$0xff] }
 0x52a   :  { %14239 = vmatmul.mubr.f32.gmra.mrb[24].mxu1 %v23360_v13  ;;  %v23408_v13 = vld [vmem:[#allocation148_spill] sm:$0xff] }
 0x52b   :  { %14241 = vmatprep.mubr.f32.mxu1 %v23361_v62  ;;  %v23409_v62 = vld [vmem:[#allocation150_spill] sm:$0xff] }
 0x52e   :  { %14242 = vmatmul.mubr.f32.gmra.mrb[26].mxu1 %v23362_v15  ;;  %v23410_v15 = vld [vmem:[#allocation151_spill] sm:$0xff] }
 0x52f   :  { %14244 = vmatprep.mubr.f32.mxu1 %v23363_v0  ;;  %v23411_v0 = vld [vmem:[#allocation153_spill] sm:$0xff] }
 0x532   :  { %14245 = vmatmul.mubr.f32.gmra.mrb[28].mxu1 %v23364_v17  ;;  %v23412_v17 = vld [vmem:[#allocation156_spill] sm:$0xff] }
 0x533   :  { %14247 = vmatprep.mubr.f32.mxu1 %v23365_v6  ;;  %v23413_v6 = vld [vmem:[#allocation157_spill] sm:$0xff] }
 0x536   :  { %14248 = vmatmul.mubr.f32.gmra.mrb[68].mxu1 %v23366_v19  ;;  %v23414_v19 = vld [vmem:[#allocation159_spill] sm:$0xff] }
 0x537   :  { %14250 = vmatprep.mubr.f32.mxu1 %v23367_v8  ;;  %v23415_v8 = vld [vmem:[#allocation160_spill] sm:$0xff] }
 0x53a   :  { %14251 = vmatmul.mubr.f32.gmra.mrb[66].mxu1 %v23368_v21  ;;  %v23416_v21 = vld [vmem:[#allocation162_spill] sm:$0xff] }
 0x53b   :  { %14253 = vmatprep.mubr.f32.mxu1 %v23369_v10  ;;  %v23417_v10 = vld [vmem:[#allocation163_spill] sm:$0xff] }
 0x53e   :  { %14254 = vmatmul.mubr.f32.gmra.mrb[34].mxu1 %v23370_v23  ;;  %v23418_v23 = vld [vmem:[#allocation165_spill] sm:$0xff] }
 0x53f   :  { %14256 = vmatprep.mubr.f32.mxu1 %v23371_v12  ;;  %v23419_v12 = vld [vmem:[#allocation166_spill] sm:$0xff] }
 0x542   :  { %14257 = vmatmul.mubr.f32.gmra.mrb[36].mxu1 %v23372_v25  ;;  %v23420_v25 = vld [vmem:[#allocation168_spill] sm:$0xff] }
 0x543   :  { %14259 = vmatprep.mubr.f32.mxu1 %v23373_v16  ;;  %v23421_v16 = vld [vmem:[#allocation169_spill] sm:$0xff] }
 0x546   :  { %14260 = vmatmul.mubr.f32.gmra.mrb[38].mxu1 %v23374_v24  ;;  %v23423_v24 = vld [vmem:[#allocation172_spill] sm:$0xff] }
 0x547   :  { %14262 = vmatprep.mubr.f32.mxu1 %v23375_v29  ;;  %v23424_v29 = vld [vmem:[#allocation174_spill] sm:$0xff] }
 0x549   :  { %v19645_v41 = vpop.f32.mrb[62].mxu1 }
 0x54a   :  { %v19647_v48 = vpop.f32.mrb[63].mxu1  ;;  %14263 = vmatmul.mubr.f32.gmra.mrb[40].mxu1 %v23376_v28  ;;  %v23425_v28 = vld [vmem:[#allocation175_spill] sm:$0xff] }
 0x54b   :  { %14265 = vmatprep.mubr.f32.mxu1 %v23377_v22  ;;  %v23426_v22 = vld [vmem:[#allocation177_spill] sm:$0xff] }
 0x54e   :  { %14266 = vmatmul.mubr.f32.gmra.mrb[42].mxu1 %v23378_v38  ;;  %v23427_v38 = vld [vmem:[#allocation178_spill] sm:$0xff] }
 0x54f   :  { %14268 = vmatprep.mubr.f32.mxu1 %v23379_v53  ;;  %v23428_v53 = vld [vmem:[#allocation180_spill] sm:$0xff] }
 0x552   :  { %14269 = vmatmul.mubr.f32.gmra.mrb[44].mxu1 %v23380_v51  ;;  %v23429_v51 = vld [vmem:[#allocation181_spill] sm:$0xff] }
 0x553   :  { %14271 = vmatprep.mubr.f32.mxu1 %v23381_v37  ;;  %v23430_v37 = vld [vmem:[#allocation183_spill] sm:$0xff] }
 0x556   :  { %14272 = vmatmul.mubr.f32.gmra.mrb[46].mxu1 %v23382_v55  ;;  %v23431_v55 = vld [vmem:[#allocation184_spill] sm:$0xff] }
 0x557   :  { %14274 = vmatprep.mubr.f32.mxu1 %v23383_v27  ;;  %v23432_v27 = vld [vmem:[#allocation186_spill] sm:$0xff] }
 0x55a   :  { %14275 = vmatmul.mubr.f32.gmra.mrb[48].mxu1 %v23384_v26  ;;  %v23433_v26 = vld [vmem:[#allocation187_spill] sm:$0xff] }
 0x55b   :  { %14277 = vmatprep.mubr.f32.mxu1 %v23385_v57  ;;  %v23434_v57 = vld [vmem:[#allocation189_spill] sm:$0xff] }
 0x55e   :  { %14278 = vmatmul.mubr.f32.gmra.mrb[50].mxu1 %v23386_v35  ;;  %v23435_v35 = vld [vmem:[#allocation190_spill] sm:$0xff] }
 0x55f   :  { %14280 = vmatprep.mubr.f32.mxu1 %v23387_v59  ;;  %v23436_v59 = vld [vmem:[#allocation192_spill] sm:$0xff] }
 0x562   :  { %14281 = vmatmul.mubr.f32.gmra.mrb[52].mxu1 %v23388_v49  ;;  %v23437_v49 = vld [vmem:[#allocation193_spill] sm:$0xff] }
 0x563   :  { %14283 = vmatprep.mubr.f32.mxu1 %v23389_v61  ;;  %v23438_v61 = vld [vmem:[#allocation195_spill] sm:$0xff] }
 0x566   :  { %14284 = vmatmul.mubr.f32.gmra.mrb[54].mxu1 %v23390_v45  ;;  %v23439_v45 = vld [vmem:[#allocation196_spill] sm:$0xff] }
 0x567   :  { %14286 = vmatprep.mubr.f32.mxu1 %v23391_v18  ;;  %v23440_v18 = vld [vmem:[#allocation201_spill] sm:$0xff] }
 0x56a   :  { %14287 = vmatmul.mubr.f32.gmra.mrb[56].mxu1 %v23392_v63  ;;  %v11408_v63 = vld [vmem:[%s22206_s5 + $0x80] sm:$0xff] }
 0x56b   :  { %14289 = vmatprep.mubr.f32.mxu1 %v23393_v52  ;;  %v11409_v52 = vld [vmem:[%s22206_s5 + $0x88] sm:$0xff] }
 0x56e   :  { %14290 = vmatmul.mubr.f32.gmra.mrb[58].mxu1 %v23394_v58  ;;  %v15933_v58 = vpack.c.bf16 %v11409_v52, %v11408_v63 }
 0x56f   :  { %14292 = vmatprep.mubr.f32.mxu1 %v23395_v1 }
 0x570   :  { %15934 = vmatprep.subr.bf16.mxu0 %v15933_v58 }
 0x571   :  { %15936 = vmatpush3.bf16.msra.mxu0 %v15933_v58 }
 0x572   :  { %14293 = vmatmul.mubr.f32.gmra.mrb[60].mxu1 %v23396_v4  ;;  %v23447_v4 = vld [vmem:[#allocation222_spill] sm:$0xff] }
 0x573   :  { %14295 = vmatprep.mubr.f32.mxu1 %v23397_v40  ;;  %v23448_v40 = vld [vmem:[#allocation129_spill] sm:$0xff] }
 0x576   :  { %14296 = vmatmul.mubr.f32.gmra.mrb[70].mxu1 %v23398_v56  ;;  %v23449_v56 = vld [vmem:[#allocation132_spill] sm:$0xff] }
 0x577   :  { %14330 = vmatprep.mubr.f32.mxu1 %v23399_v60  ;;  %v11413_v60 = vld [vmem:[%s22206_s5 + $0xa8] sm:$0xff] }
 0x57a   :  { %14331 = vmatmul.mubr.f32.vlgmr.msra.gmra.mrb[64].mxu1 %v23400_v5  ;;  %v23450_v5 = vld [vmem:[#allocation133_spill] sm:$0xff] }
 0x57b   :  { %14333 = vmatprep.mubr.f32.mxu1 %v23401_v42  ;;  %v11414_v42 = vld [vmem:[%s22206_s5 + $0xb0] sm:$0xff] }
 0x57e   :  { %14334 = vmatmul.mubr.f32.gmra.mrb[2].mxu1 %v23402_v7 }
 0x57f   :  { %14336 = vmatprep.mubr.f32.mxu1 %v23403_v44  ;;  %v11416_v44 = vld [vmem:[%s22206_s5 + $0xc0] sm:$0xff] }
 0x582   :  { %14337 = vmatmul.mubr.f32.gmra.mrb[4].mxu1 %v23404_v9  ;;  %v11417_v9 = vld [vmem:[%s22206_s5 + $0xc8] sm:$0xff] }
 0x583   :  { %14339 = vmatprep.mubr.f32.mxu1 %v23405_v3  ;;  %v15949_v3 = vpack.c.bf16 %v11417_v9, %v11416_v44 }
 0x586   :  { %14340 = vmatmul.mubr.f32.gmra.mrb[6].mxu1 %v23406_v11  ;;  %v11418_v11 = vld [vmem:[%s22206_s5 + $0xd0] sm:$0xff] }
 0x587   :  { %14342 = vmatprep.mubr.f32.mxu1 %v23407_v54  ;;  %v11419_v54 = vld [vmem:[%s22206_s5 + $0xd8] sm:$0xff] }
 0x58a   :  { %14343 = vmatmul.mubr.f32.gmra.mrb[8].mxu1 %v23408_v13  ;;  %v15953_v13 = vpack.c.bf16 %v11419_v54, %v11418_v11 }
 0x58b   :  { %14345 = vmatprep.mubr.f32.mxu1 %v23409_v62  ;;  %v11420_v62 = vld [vmem:[%s22206_s5 + $0xe0] sm:$0xff] }
 0x58e   :  { %14346 = vmatmul.mubr.f32.gmra.mrb[10].mxu1 %v23410_v15  ;;  %v11421_v15 = vld [vmem:[%s22206_s5 + $0xe8] sm:$0xff] }
 0x58f   :  { %14348 = vmatprep.mubr.f32.mxu1 %v23411_v0  ;;  %v15957_v0 = vpack.c.bf16 %v11421_v15, %v11420_v62 }
 0x592   :  { %14349 = vmatmul.mubr.f32.gmra.mrb[12].mxu1 %v23273_v20  ;;  %v23422_v20 = vld [vmem:[#allocation171_spill] sm:$0xff] }
 0x593   :  { %14351 = vmatprep.mubr.f32.mxu1 %v23412_v17  ;;  %v11422_v17 = vld [vmem:[%s22206_s5 + $0xf0] sm:$0xff] }
 0x596   :  { %14352 = vmatmul.mubr.f32.gmra.mrb[14].mxu1 %v23413_v6  ;;  %v11423_v6 = vld [vmem:[%s22206_s5 + $0xf8] sm:$0xff] }
 0x597   :  { %14354 = vmatprep.mubr.f32.mxu1 %v23414_v19  ;;  %v15961_v19 = vpack.c.bf16 %v11423_v6, %v11422_v17 }
 0x59a   :  { %14355 = vmatmul.mubr.f32.gmra.mrb[16].mxu1 %v23415_v8  ;;  %v23451_v8 = vld [vmem:[#allocation21_spill] sm:$0xff] }
 0x59b   :  { %14357 = vmatprep.mubr.f32.mxu1 %v23416_v21  ;;  %v3192_v21 = vmul.f32 0.0, %v23451_v8 }
 0x59e   :  { %14358 = vmatmul.mubr.f32.gmra.mrb[18].mxu1 %v23417_v10  ;;  %v23452_v10 = vld [vmem:[#allocation22_spill] sm:$0xff] }
 0x59f   :  { %14360 = vmatprep.mubr.f32.mxu1 %v23418_v23  ;;  %v3191_v23 = vmul.f32 0.0, %v23452_v10 }
 0x5a2   :  { %14361 = vmatmul.mubr.f32.gmra.mrb[20].mxu1 %v23419_v12 }
 0x5a3   :  { %14363 = vmatprep.mubr.f32.mxu1 %v23420_v25 }
 0x5a6   :  { %14364 = vmatmul.mubr.f32.gmra.mrb[22].mxu1 %v23421_v16 }
 0x5a7   :  { %14366 = vmatprep.mubr.f32.mxu1 %v23422_v20 }
 0x5aa   :  { %14367 = vmatmul.mubr.f32.gmra.mrb[24].mxu1 %v23423_v24 }
 0x5ab   :  { %14369 = vmatprep.mubr.f32.mxu1 %v23424_v29 }
 0x5ae   :  { %14370 = vmatmul.mubr.f32.gmra.mrb[26].mxu1 %v23425_v28  ;;  %v6506_v28 = vld [vmem:[%s22206_s5] sm:$0xff] }
 0x5af   :  { %14372 = vmatprep.mubr.f32.mxu1 %v23426_v22  ;;  %v6507_v22 = vld [vmem:[%s22206_s5 + $0x8] sm:$0xff] }
 0x5b2   :  { %14373 = vmatmul.mubr.f32.gmra.mrb[28].mxu1 %v23427_v38  ;;  %v19800_v38 = vpack.c.bf16 %v6507_v22, %v6506_v28 }
 0x5b3   :  { %14375 = vmatprep.mubr.f32.mxu1 %v23428_v53 }
 0x5b6   :  { %14376 = vmatmul.mubr.f32.gmra.mrb[68].mxu1 %v23429_v51 }
 0x5b7   :  { %14378 = vmatprep.mubr.f32.mxu1 %v23430_v37 }
 0x5ba   :  { %14379 = vmatmul.mubr.f32.gmra.mrb[66].mxu1 %v23431_v55 }
 0x5bb   :  { %14381 = vmatprep.mubr.f32.mxu1 %v23432_v27 }
 0x5be   :  { %14382 = vmatmul.mubr.f32.gmra.mrb[34].mxu1 %v23433_v26 }
 0x5bf   :  { %14384 = vmatprep.mubr.f32.mxu1 %v23434_v57 }
 0x5c2   :  { %14385 = vmatmul.mubr.f32.gmra.mrb[36].mxu1 %v23435_v35 }
 0x5c3   :  { %14387 = vmatprep.mubr.f32.mxu1 %v23436_v59 }
 0x5c6   :  { %14388 = vmatmul.mubr.f32.gmra.mrb[38].mxu1 %v23437_v49 }
 0x5c7   :  { %14390 = vmatprep.mubr.f32.mxu1 %v23438_v61 }
 0x5ca   :  { %14391 = vmatmul.mubr.f32.gmra.mrb[40].mxu1 %v23439_v45 }
 0x5cb   :  { %14393 = vmatprep.mubr.f32.mxu1 %v23302_v32  ;;  %v23441_v32 = vld [vmem:[#allocation208_spill] sm:$0xff] }
 0x5ce   :  { %14394 = vmatmul.mubr.f32.gmra.mrb[42].mxu1 %v23303_v30  ;;  %v23442_v30 = vld [vmem:[#allocation213_spill] sm:$0xff] }
 0x5cf   :  { %14396 = vmatprep.mubr.f32.mxu1 %v23440_v18 }
 0x5d2   :  { %14397 = vmatmul.mubr.f32.gmra.mrb[44].mxu1 %v23305_v14  ;;  %v23443_v14 = vld [vmem:[#allocation214_spill] sm:$0xff] }
 0x5d3   :  { %14399 = vmatprep.mubr.f32.mxu1 %v23306_v36  ;;  %v23444_v36 = vld [vmem:[#allocation216_spill] sm:$0xff] }
 0x5d6   :  { %14400 = vmatmul.mubr.f32.gmra.mrb[46].mxu1 %v23307_v34  ;;  %v11410_v34 = vld [vmem:[%s22206_s5 + $0x90] sm:$0xff] }
 0x5d7   :  { %14402 = vmatprep.mubr.f32.mxu1 %v23308_v2  ;;  %v11411_v2 = vld [vmem:[%s22206_s5 + $0x98] sm:$0xff] }
 0x5d8   :  { %v15937_v1 = vpack.c.bf16 %v11411_v2, %v11410_v34 }
 0x5da   :  { %14403 = vmatmul.mubr.f32.gmra.mrb[48].mxu1 %v23441_v32  ;;  %15938 = vmatprep.subr.bf16.mxu0 %v15937_v1 }
 0x5db   :  { %14405 = vmatprep.mubr.f32.mxu1 %v23310_v33  ;;  %v23445_v33 = vld [vmem:[#allocation219_spill] sm:$0xff]  ;;  %15940 = vmatpush3.bf16.msra.mxu0 %v15937_v1 }
 0x5de   :  { %14406 = vmatmul.mubr.f32.gmra.mrb[50].mxu1 %v23311_v46  ;;  %v23446_v46 = vld [vmem:[#allocation221_spill] sm:$0xff] }
 0x5df   :  { %14408 = vmatprep.mubr.f32.mxu1 %v23442_v30 }
 0x5e2   :  { %14409 = vmatmul.mubr.f32.gmra.mrb[52].mxu1 %v23443_v14 }
 0x5e3   :  { %14411 = vmatprep.mubr.f32.mxu1 %v23444_v36 }
 0x5e6   :  { %14412 = vmatmul.mubr.f32.gmra.mrb[54].mxu1 %v23313_v47  ;;  %v11412_v47 = vld [vmem:[%s22206_s5 + $0xa0] sm:$0xff] }
 0x5e7   :  { %14414 = vmatprep.mubr.f32.mxu1 %v23445_v33 }
 0x5ea   :  { %14415 = vmatmul.mubr.f32.gmra.mrb[56].mxu1 %v19082_v31  ;;  %v15941_v31 = vpack.c.bf16 %v11413_v60, %v11412_v47 }
 0x5eb   :  { %14417 = vmatprep.mubr.f32.mxu1 %v23446_v46 }
 0x5ec   :  { %15942 = vmatprep.subr.bf16.mxu0 %v15941_v31 }
 0x5ed   :  { %15944 = vmatpush3.bf16.msra.mxu0 %v15941_v31 }
 0x5ee   :  { %14418 = vmatmul.mubr.f32.gmra.mrb[58].mxu1 %v23447_v4 }
 0x5ef   :  { %14420 = vmatprep.mubr.f32.mxu1 %v23448_v40 }
 0x5f2   :  { %14421 = vmatmul.mubr.f32.gmra.mrb[60].mxu1 %v23315_v43  ;;  %v11415_v43 = vld [vmem:[%s22206_s5 + $0xb8] sm:$0xff] }
 0x5f3   :  { %14423 = vmatprep.mubr.f32.mxu1 %v23449_v56  ;;  %v15945_v7 = vpack.c.bf16 %v11415_v43, %v11414_v42  ;;  %v23454_v43 = vld [vmem:[#allocation27_spill] sm:$0xff] }
 0x5f5   :  { %15946 = vmatprep.subr.bf16.mxu0 %v15945_v7 }
 0x5f6   :  { %14424 = vmatmul.mubr.f32.gmra.mrb[70].mxu1 %v23450_v5  ;;  %15948 = vmatpush3.bf16.msra.mxu0 %v15945_v7  ;;  %v23453_v5 = vld [vmem:[#allocation23_spill] sm:$0xff]  ;;  %v3223_v7 = vmul.f32 0.0, %v23454_v43 }
 0x5f7   :  { %15950 = vmatprep.subr.bf16.mxu0 %v15949_v3  ;;  %v3224_v31 = vmul.f32 0.0, %v23453_v5 }
 0x5fa   :  { %15952 = vmatpush3.bf16.msra.mxu0 %v15949_v3 }
 0x5fb   :  { %15954 = vmatprep.subr.bf16.mxu0 %v15953_v13 }
 0x5fe   :  { %15956 = vmatpush3.bf16.msra.mxu0 %v15953_v13 }
 0x5ff   :  { %15958 = vmatprep.subr.bf16.mxu0 %v15957_v0 }
 0x602   :  { %15960 = vmatpush3.bf16.msra.mxu0 %v15957_v0 }
 0x603   :  { %15962 = vmatprep.subr.bf16.mxu0 %v15961_v19 }
 0x606   :  { %15964 = vmatpush3.bf16.msra.mxu0 %v15961_v19 }
 0x607   :  { %15966 = vmatprep.subr.bf16.mxu0 %v19800_v38 }
 0x64d   :  { %v14332_v12 = vpop.f32.mrb[64].mxu1 }
 0x64e   :  { %v19786_v25 = vadd.f32 %v14332_v12, %v3192_v21  ;;  %v5412_v16 = vpop.f32.mrb[65].mxu1 }
 0x64f   :  { %v19788_v20 = vadd.f32 %v5412_v16, %v3191_v23 }
 0x651   :  { %v19790_v24 = vpop.f32.mrb[2].mxu1 }
 0x652   :  { %v19792_v29 = vpop.f32.mrb[3].mxu1 }
 0x655   :  { %v19802_v53 = vpop.f32.mrb[4].mxu1 }
 0x656   :  { %v19804_v51 = vpop.f32.mrb[5].mxu1 }
 0x659   :  { %v19807_v37 = vpop.f32.mrb[6].mxu1 }
 0x65a   :  { %v19809_v55 = vpop.f32.mrb[7].mxu1 }
 0x65d   :  { %v19811_v27 = vpop.f32.mrb[8].mxu1 }
 0x65e   :  { %v19813_v26 = vpop.f32.mrb[9].mxu1 }
 0x661   :  { %v19815_v57 = vpop.f32.mrb[10].mxu1 }
 0x662   :  { %v19817_v35 = vpop.f32.mrb[11].mxu1 }
 0x665   :  { %v19819_v59 = vpop.f32.mrb[12].mxu1 }
 0x666   :  { %v19821_v49 = vpop.f32.mrb[13].mxu1 }
 0x669   :  { %v19823_v61 = vpop.f32.mrb[14].mxu1 }
 0x66a   :  { %v19825_v45 = vpop.f32.mrb[15].mxu1 }
 0x66d   :  { %v19827_v18 = vpop.f32.mrb[16].mxu1 }
 0x66e   :  { %v19829_v63 = vpop.f32.mrb[17].mxu1 }
 0x671   :  { %v19831_v52 = vpop.f32.mrb[18].mxu1 }
 0x672   :  { %v19833_v58 = vpop.f32.mrb[19].mxu1 }
 0x675   :  { %v19835_v32 = vpop.f32.mrb[20].mxu1 }
 0x676   :  { %v19837_v30 = vpop.f32.mrb[21].mxu1 }
 0x679   :  { %v19839_v14 = vpop.f32.mrb[22].mxu1 }
 0x67a   :  { %v19841_v36 = vpop.f32.mrb[23].mxu1 }
 0x67d   :  { %v19843_v34 = vpop.f32.mrb[24].mxu1 }
 0x67e   :  { %v19845_v2 = vpop.f32.mrb[25].mxu1 }
 0x681   :  { %v19847_v1 = vpop.f32.mrb[26].mxu1 }
 0x682   :  { %v19849_v33 = vpop.f32.mrb[27].mxu1 }
 0x685   :  { %v19851_v46 = vpop.f32.mrb[28].mxu1 }
 0x686   :  { %v19853_v4 = vpop.f32.mrb[29].mxu1 }
 0x689   :  { %v14377_v40 = vpop.f32.mrb[68].mxu1 }
 0x68a   :  { %v5826_v56 = vmul.f32 0.0, %v14377_v40  ;;  %v5562_v47 = vpop.f32.mrb[69].mxu1 }
 0x68b   :  { %v5825_v60 = vmul.f32 0.0, %v5562_v47 }
 0x68c   :  { %v19857_v42 = vadd.f32 %v19597_v39, %v5826_v56 }
 0x68d   :  { %v19861_v44 = vadd.f32 %v5825_v60, %v19605_v50  ;;  %v14380_v9 = vpop.f32.mrb[66].mxu1 }
 0x68e   :  { %v19863_v3 = vadd.f32 %v14380_v9, %v3224_v31  ;;  %v5572_v11 = vpop.f32.mrb[67].mxu1 }
 0x68f   :  { %v19865_v54 = vadd.f32 %v5572_v11, %v3223_v7 }
 0x691   :  { %v19867_v13 = vpop.f32.mrb[34].mxu1 }
 0x692   :  { %v19869_v62 = vpop.f32.mrb[35].mxu1 }
 0x695   :  { %v19871_v15 = vpop.f32.mrb[36].mxu1 }
 0x696   :  { %v19873_v0 = vpop.f32.mrb[37].mxu1 }
 0x699   :  { %v19875_v39 = vpop.f32.mrb[38].mxu1 }
 0x69a   :  { %v19877_v17 = vpop.f32.mrb[39].mxu1 }
 0x69d   :  { %v19879_v50 = vpop.f32.mrb[40].mxu1 }
 0x69e   :  { %v19881_v6 = vpop.f32.mrb[41].mxu1 }
 0x6a1   :  { %v19883_v19 = vpop.f32.mrb[42].mxu1 }
 0x6a2   :  { %v19885_v8 = vpop.f32.mrb[43].mxu1 }
 0x6a5   :  { %v19887_v21 = vpop.f32.mrb[44].mxu1 }
 0x6a6   :  { %v19889_v10 = vpop.f32.mrb[45].mxu1 }
 0x6a9   :  { %v19891_v23 = vpop.f32.mrb[46].mxu1 }
 0x6aa   :  { %v19893_v12 = vpop.f32.mrb[47].mxu1 }
 0x6ad   :  { %v19895_v16 = vpop.f32.mrb[48].mxu1 }
 0x6ae   :  { %23455 = vst [vmem:[#allocation29_spill] sm:$0xff] %v19895_v16  ;;  %v19897_v28 = vpop.f32.mrb[49].mxu1 }
 0x6b1   :  { %v19899_v22 = vpop.f32.mrb[50].mxu1 }
 0x6b2   :  { %23456 = vst [vmem:[#allocation6_spill] sm:$0xff] %v19899_v22  ;;  %v19901_v40 = vpop.f32.mrb[51].mxu1 }
 0x6b3   :  { %23457 = vst [vmem:[#allocation154_spill] sm:$0xff] %v19901_v40 }
 0x6b5   :  { %v19903_v56 = vpop.f32.mrb[52].mxu1 }
 0x6b6   :  { %23458 = vst [vmem:[#allocation198_spill] sm:$0xff] %v19903_v56  ;;  %v19905_v47 = vpop.f32.mrb[53].mxu1 }
 0x6b7   :  { %23459 = vst [vmem:[#allocation199_spill] sm:$0xff] %v19905_v47 }
 0x6b9   :  { %v19907_v60 = vpop.f32.mrb[54].mxu1 }
 0x6ba   :  { %23460 = vst [vmem:[#allocation202_spill] sm:$0xff] %v19907_v60  ;;  %v19909_v5 = vpop.f32.mrb[55].mxu1  ;;  %v19926_v60 = vld [vmem:[%s22205_s4] ss:$0 sm:$0xff] }
 0x6bd   :  { %v19911_v31 = vpop.f32.mrb[56].mxu1 }
 0x6be   :  { %23461 = vst [vmem:[#allocation204_spill] sm:$0xff] %v19911_v31  ;;  %v19913_v43 = vpop.f32.mrb[57].mxu1 }
 0x6bf   :  { %23462 = vst [vmem:[#allocation205_spill] sm:$0xff] %v19913_v43 }
 0x6c1   :  { %v19915_v7 = vpop.f32.mrb[58].mxu1 }
 0x6c2   :  { %23463 = vst [vmem:[#allocation207_spill] sm:$0xff] %v19915_v7  ;;  %v19917_v9 = vpop.f32.mrb[59].mxu1 }
 0x6c3   :  { %23464 = vst [vmem:[#allocation210_spill] sm:$0xff] %v19917_v9  ;;  %v5994_v9 = vadd.f32 %v19788_v20, %v19926_v60  ;;  %v5996_v20 = vadd.f32 %v19926_v60, %v19792_v29  ;;  %v5997_v29 = vadd.f32 %v19790_v24, %v19926_v60 }
 0x6c5   :  { %v19919_v11 = vpop.f32.mrb[60].mxu1  ;;  %v19976_v24 = vmax.f32 %v5997_v29, 0.0 }
 0x6c6   :  { %23465 = vst [vmem:[#allocation211_spill] sm:$0xff] %v19919_v11  ;;  %v19921_v22 = vpop.f32.mrb[61].mxu1 }
 0x6c7   :  { %23466 = vst [vmem:[#allocation217_spill] sm:$0xff] %v19921_v22 }
 0x6c9   :  { %v14425_v40 = vpop.f32.mrb[70].mxu1 }
 0x6ca   :  { %v5858_v56 = vmul.f32 0.0, %v14425_v40  ;;  %v5722_v16 = vpop.f32.mrb[71].mxu1  ;;  %v6509_v40 = vld [vmem:[%s22206_s5 + $0x18] sm:$0xff] }
 0x6cb   :  { %v5857_v47 = vmul.f32 0.0, %v5722_v16  ;;  %v6508_v16 = vld [vmem:[%s22206_s5 + $0x10] sm:$0xff] }
 0x6cc   :  { %v5986_v31 = vadd.f32 %v19645_v41, %v5858_v56  ;;  %v5995_v41 = vadd.f32 %v19786_v25, %v19926_v60  ;;  %v15969_v56 = vpack.c.bf16 %v6509_v40, %v6508_v16  ;;  %v6512_v16 = vld [vmem:[%s22206_s5 + $0x30] sm:$0xff]  ;;  %v5999_v40 = vadd.f32 %v19802_v53, %v19926_v60 }
 0x6cd   :  { %v5985_v43 = vadd.f32 %v5857_v47, %v19647_v48  ;;  %v19946_v47 = vmax.f32 %v5994_v9, 0.0  ;;  %v5998_v9 = vadd.f32 %v19926_v60, %v19804_v51 }
 0x6ce   :  { %v6057_v7 = vadd.f32 %v19926_v60, %v5986_v31  ;;  %v6510_v31 = vld [vmem:[%s22206_s5 + $0x20] sm:$0xff]  ;;  %v19960_v25 = vmax.f32 %v5995_v41, 0.0  ;;  %v19992_v53 = vmax.f32 %v5999_v40, 0.0 }
 0x6cf   :  { %v6056_v22 = vadd.f32 %v19926_v60, %v5985_v43  ;;  %23469 = vst [vmem:[#allocation26_spill] sm:$0xff] %v19946_v47  ;;  %v19980_v41 = vmax.f32 %v5998_v9, 0.0  ;;  %v6002_v9 = vadd.f32 %v19926_v60, %v19813_v26 }
 0x6d0   :  { %v19944_v48 = vmax.f32 %v6057_v7, 0.0  ;;  %23470 = vst [vmem:[#allocation28_spill] sm:$0xff] %v19960_v25  ;;  %v19964_v7 = vmax.f32 %v5996_v20, 0.0  ;;  %v6000_v20 = vadd.f32 %v19926_v60, %v19809_v55 }
 0x6d1   :  { %v19940_v11 = vmax.f32 %v6056_v22, 0.0  ;;  %v6511_v22 = vld [vmem:[%s22206_s5 + $0x28] sm:$0xff]  ;;  %v20012_v40 = vmax.f32 %v6002_v9, 0.0  ;;  %v6006_v9 = vadd.f32 %v19926_v60, %v19821_v49 }
 0x6d2   :  { %23468 = vst [vmem:[#allocation24_spill] sm:$0xff] %v19944_v48  ;;  %v15973_v43 = vpack.c.bf16 %v6511_v22, %v6510_v31  ;;  %23471 = vst [vmem:[#allocation30_spill] sm:$0xff] %v19964_v7  ;;  %v6514_v31 = vld [vmem:[%s22206_s5 + $0x40] sm:$0xff]  ;;  %v6001_v22 = vadd.f32 %v19807_v37, %v19926_v60  ;;  %v19996_v29 = vmax.f32 %v6000_v20, 0.0  ;;  %v6004_v20 = vadd.f32 %v19926_v60, %v19817_v35 }
 0x6d3   :  { %23467 = vst [vmem:[#allocation130_spill] sm:$0xff] %v19940_v11  ;;  %14458 = vmatprep.mubr.f32.mxu0 %v19940_v11 }
 0x6d4   :  { %14459 = vmatmul.mubr.f32.vlgmr.msra.gmra.mrb[64].mxu0 %v19944_v48  ;;  %v20008_v37 = vmax.f32 %v6001_v22, 0.0  ;;  %v20028_v22 = vmax.f32 %v6004_v20, 0.0  ;;  %v6008_v20 = vadd.f32 %v19926_v60, %v19825_v45 }
 0x6d5   :  { %15968 = vmatpush3.bf16.msra.mxu0 %v19800_v38  ;;  %14461 = vmatprep.mubr.f32.mxu0 %v19946_v47  ;;  %v6513_v38 = vld [vmem:[%s22206_s5 + $0x38] sm:$0xff] }
 0x6d6   :  { %15970 = vmatprep.subr.bf16.mxu0 %v15969_v56  ;;  %v15977_v51 = vpack.c.bf16 %v6513_v38, %v6512_v16  ;;  %v6516_v16 = vld [vmem:[%s22206_s5 + $0x50] sm:$0xff]  ;;  %v6003_v38 = vadd.f32 %v19811_v27, %v19926_v60 }
 0x6d8   :  { %14462 = vmatmul.mubr.f32.gmra.mrb[66].mxu0 %v19960_v25  ;;  %v20024_v27 = vmax.f32 %v6003_v38, 0.0  ;;  %v20044_v38 = vmax.f32 %v6006_v9, 0.0  ;;  %v6010_v9 = vadd.f32 %v19926_v60, %v19829_v63 }
 0x6d9   :  { %14464 = vmatprep.mubr.f32.mxu0 %v19964_v7  ;;  %15972 = vmatpush3.bf16.msra.mxu0 %v15969_v56  ;;  %v6515_v56 = vld [vmem:[%s22206_s5 + $0x48] sm:$0xff] }
 0x6da   :  { %15974 = vmatprep.subr.bf16.mxu0 %v15973_v43  ;;  %v15981_v55 = vpack.c.bf16 %v6515_v56, %v6514_v31  ;;  %v6518_v31 = vld [vmem:[%s22206_s5 + $0x60] sm:$0xff]  ;;  %v6005_v56 = vadd.f32 %v19815_v57, %v19926_v60 }
 0x6dc   :  { %14465 = vmatmul.mubr.f32.gmra.mrb[68].mxu0 %v19976_v24  ;;  %v20040_v57 = vmax.f32 %v6005_v56, 0.0  ;;  %v20062_v56 = vmax.f32 %v6008_v20, 0.0 }
 0x6dd   :  { %14467 = vmatprep.mubr.f32.mxu0 %v19980_v41  ;;  %15976 = vmatpush3.bf16.msra.mxu0 %v15973_v43  ;;  %v6517_v43 = vld [vmem:[%s22206_s5 + $0x58] sm:$0xff] }
 0x6de   :  { %15978 = vmatprep.subr.bf16.mxu0 %v15977_v51  ;;  %v15985_v26 = vpack.c.bf16 %v6517_v43, %v6516_v16  ;;  %v6520_v16 = vld [vmem:[%s22206_s5 + $0x70] sm:$0xff]  ;;  %v6007_v43 = vadd.f32 %v19819_v59, %v19926_v60 }
 0x6e0   :  { %14468 = vmatmul.mubr.f32.gmra.mrb[70].mxu0 %v19992_v53  ;;  %v20056_v59 = vmax.f32 %v6007_v43, 0.0  ;;  %v6013_v43 = vadd.f32 %v19831_v52, %v19926_v60 }
 0x6e1   :  { %14470 = vmatprep.mubr.f32.mxu0 %v19996_v29  ;;  %15980 = vmatpush3.bf16.msra.mxu0 %v15977_v51  ;;  %v6519_v51 = vld [vmem:[%s22206_s5 + $0x68] sm:$0xff] }
 0x6e2   :  { %15982 = vmatprep.subr.bf16.mxu0 %v15981_v55  ;;  %v15989_v35 = vpack.c.bf16 %v6519_v51, %v6518_v31  ;;  %v11424_v31 = vld [vmem:[%s22206_s5 + $0x100] sm:$0xff]  ;;  %v6009_v51 = vadd.f32 %v19823_v61, %v19926_v60  ;;  %v20073_v61 = vmax.f32 %v6010_v9, 0.0  ;;  %v20089_v20 = vmax.f32 %v6013_v43, 0.0 }
 0x6e3   :  { %v6018_v9 = vadd.f32 %v19926_v60, %v19845_v2  ;;  %v6021_v2 = vadd.f32 %v19847_v1, %v19926_v60 }
 0x6e4   :  { %14471 = vmatmul.mubr.f32.gmra.mrb[72].mxu0 %v20008_v37 }
 0x6e5   :  { %14473 = vmatprep.mubr.f32.mxu0 %v20012_v40  ;;  %15984 = vmatpush3.bf16.msra.mxu0 %v15981_v55  ;;  %v6521_v55 = vld [vmem:[%s22206_s5 + $0x78] sm:$0xff] }
 0x6e6   :  { %15986 = vmatprep.subr.bf16.mxu0 %v15985_v26  ;;  %v15993_v49 = vpack.c.bf16 %v6521_v55, %v6520_v16  ;;  %v20068_v16 = vmax.f32 %v6009_v51, 0.0  ;;  %v6012_v55 = vadd.f32 %v19926_v60, %v19833_v58  ;;  %v6015_v58 = vadd.f32 %v19835_v32, %v19926_v60 }
 0x6e8   :  { %14474 = vmatmul.mubr.f32.gmra.mrb[74].mxu0 %v20024_v27  ;;  %v20099_v52 = vmax.f32 %v6015_v58, 0.0 }
 0x6e9   :  { %14476 = vmatprep.mubr.f32.mxu0 %v20028_v22  ;;  %15988 = vmatpush3.bf16.msra.mxu0 %v15985_v26  ;;  %v11425_v26 = vld [vmem:[%s22206_s5 + $0x108] sm:$0xff] }
 0x6ea   :  { %15990 = vmatprep.subr.bf16.mxu0 %v15989_v35  ;;  %v20060_v45 = vpack.c.bf16 %v11425_v26, %v11424_v31  ;;  %v6016_v26 = vadd.f32 %v19926_v60, %v19841_v36  ;;  %v6019_v36 = vadd.f32 %v19843_v34, %v19926_v60  ;;  %v20129_v34 = vmax.f32 %v6021_v2, 0.0 }
 0x6ec   :  { %14477 = vmatmul.mubr.f32.gmra.mrb[76].mxu0 %v20040_v57  ;;  %v20103_v51 = vmax.f32 %v6016_v26, 0.0  ;;  %v6024_v26 = vadd.f32 %v19926_v60, %v19861_v44  ;;  %v6027_v44 = vadd.f32 %v19863_v3, %v19926_v60 }
 0x6ed   :  { %14479 = vmatprep.mubr.f32.mxu0 %v20044_v38  ;;  %15992 = vmatpush3.bf16.msra.mxu0 %v15989_v35  ;;  %v6011_v35 = vadd.f32 %v19827_v18, %v19926_v60  ;;  %v6014_v18 = vadd.f32 %v19926_v60, %v19837_v30  ;;  %v6017_v30 = vadd.f32 %v19839_v14, %v19926_v60  ;;  %v20119_v14 = vmax.f32 %v6019_v36, 0.0 }
 0x6ee   :  { %15994 = vmatprep.subr.bf16.mxu0 %v15993_v49 }
 0x6ef   :  { %v20079_v63 = vmax.f32 %v6011_v35, 0.0  ;;  %v20093_v31 = vmax.f32 %v6014_v18, 0.0  ;;  %v20109_v32 = vmax.f32 %v6017_v30, 0.0  ;;  %v20113_v35 = vmax.f32 %v6018_v9, 0.0 }
 0x6f0   :  { %14480 = vmatmul.mubr.f32.gmra.mrb[78].mxu0 %v20056_v59  ;;  %v6022_v18 = vadd.f32 %v19926_v60, %v19853_v4  ;;  %v6025_v4 = vadd.f32 %v19926_v60, %v19857_v42  ;;  %v20143_v30 = vmax.f32 %v6024_v26, 0.0  ;;  %v6026_v9 = vadd.f32 %v19865_v54, %v19926_v60 }
 0x6f1   :  { %14482 = vmatprep.mubr.f32.mxu0 %v20062_v56  ;;  %15996 = vmatpush3.bf16.msra.mxu0 %v15993_v49  ;;  %v20083_v49 = vmax.f32 %v6012_v55, 0.0  ;;  %v6020_v55 = vadd.f32 %v19926_v60, %v19849_v33  ;;  %v6023_v33 = vadd.f32 %v19851_v46, %v19926_v60  ;;  %v20159_v42 = vmax.f32 %v6027_v44, 0.0 }
 0x6f2   :  { %15998 = vmatprep.subr.bf16.mxu0 %v20060_v45  ;;  %v20133_v58 = vmax.f32 %v6022_v18, 0.0  ;;  %v20149_v46 = vmax.f32 %v6025_v4, 0.0  ;;  %v20153_v36 = vmax.f32 %v6026_v9, 0.0  ;;  %v6029_v54 = vadd.f32 %v19867_v13, %v19926_v60 }
 0x6f3   :  { %v20123_v43 = vmax.f32 %v6020_v55, 0.0  ;;  %v20139_v1 = vmax.f32 %v6023_v33, 0.0  ;;  %v6028_v55 = vadd.f32 %v19926_v60, %v19869_v62  ;;  %v6030_v18 = vadd.f32 %v19926_v60, %v19873_v0 }
 0x6f4   :  { %14483 = vmatmul.mubr.f32.gmra.mrb[80].mxu0 %v20068_v16  ;;  %v20169_v3 = vmax.f32 %v6029_v54, 0.0  ;;  %v6031_v62 = vadd.f32 %v19871_v15, %v19926_v60  ;;  %v6032_v26 = vadd.f32 %v19926_v60, %v19877_v17  ;;  %v6033_v0 = vadd.f32 %v19875_v39, %v19926_v60 }
 0x6f5   :  { %14485 = vmatprep.mubr.f32.mxu0 %v20073_v61  ;;  %v20163_v2 = vmax.f32 %v6028_v55, 0.0  ;;  %v20173_v33 = vmax.f32 %v6030_v18, 0.0  ;;  %v6034_v9 = vadd.f32 %v19926_v60, %v19881_v6  ;;  %v6035_v17 = vadd.f32 %v19879_v50, %v19926_v60 }
 0x6f6   :  { %v20179_v13 = vmax.f32 %v6031_v62, 0.0  ;;  %v20183_v4 = vmax.f32 %v6032_v26, 0.0  ;;  %v20189_v15 = vmax.f32 %v6033_v0, 0.0  ;;  %v6036_v55 = vadd.f32 %v19926_v60, %v19885_v8 }
 0x6f7   :  { %v20193_v44 = vmax.f32 %v6034_v9, 0.0  ;;  %v20199_v39 = vmax.f32 %v6035_v17, 0.0  ;;  %v6037_v6 = vadd.f32 %v19883_v19, %v19926_v60  ;;  %v6038_v18 = vadd.f32 %v19926_v60, %v19889_v10 }
 0x6f8   :  { %14486 = vmatmul.mubr.f32.gmra.mrb[82].mxu0 %v20079_v63  ;;  %v20203_v54 = vmax.f32 %v6036_v55, 0.0  ;;  %v6039_v8 = vadd.f32 %v19887_v21, %v19926_v60  ;;  %v6040_v26 = vadd.f32 %v19926_v60, %v19893_v12  ;;  %v6041_v10 = vadd.f32 %v19891_v23, %v19926_v60  ;;  %v23475_v12 = vld [vmem:[#allocation29_spill] sm:$0xff] }
 0x6f9   :  { %14488 = vmatprep.mubr.f32.mxu0 %v20083_v49  ;;  %v20209_v50 = vmax.f32 %v6037_v6, 0.0  ;;  %v20213_v62 = vmax.f32 %v6038_v18, 0.0  ;;  %v6042_v9 = vadd.f32 %v19926_v60, %v19897_v28  ;;  %v6043_v17 = vadd.f32 %v23475_v12, %v19926_v60  ;;  %v23477_v6 = vld [vmem:[#allocation154_spill] sm:$0xff] }
 0x6fa   :  { %v20219_v19 = vmax.f32 %v6039_v8, 0.0  ;;  %v20223_v0 = vmax.f32 %v6040_v26, 0.0  ;;  %v20229_v21 = vmax.f32 %v6041_v10, 0.0  ;;  %v6044_v18 = vadd.f32 %v19926_v60, %v23477_v6  ;;  %v23479_v28 = vld [vmem:[#allocation6_spill] sm:$0xff]  ;;  %v23481_v10 = vld [vmem:[#allocation199_spill] sm:$0xff] }
 0x6fb   :  { %v20233_v55 = vmax.f32 %v6042_v9, 0.0  ;;  %v20239_v23 = vmax.f32 %v6043_v17, 0.0  ;;  %v6045_v8 = vadd.f32 %v23479_v28, %v19926_v60  ;;  %v23483_v12 = vld [vmem:[#allocation198_spill] sm:$0xff]  ;;  %v6048_v17 = vadd.f32 %v19926_v60, %v19909_v5  ;;  %v23490_v5 = vld [vmem:[#allocation204_spill] sm:$0xff] }
 0x6fc   :  { %14489 = vmatmul.mubr.f32.gmra.mrb[84].mxu0 %v20089_v20  ;;  %23472 = vst [vmem:[#allocation8_spill] sm:$0xff] %v20219_v19  ;;  %23473 = vst [vmem:[#allocation7_spill] sm:$0xff] %v20223_v0  ;;  %v20243_v26 = vmax.f32 %v6044_v18, 0.0  ;;  %v6047_v6 = vadd.f32 %v23483_v12, %v19926_v60  ;;  %v23486_v28 = vld [vmem:[#allocation202_spill] sm:$0xff]  ;;  %v6051_v12 = vadd.f32 %v23490_v5, %v19926_v60 }
 0x6fd   :  { %14491 = vmatprep.mubr.f32.mxu0 %v20093_v31  ;;  %23474 = vst [vmem:[#allocation10_spill] sm:$0xff] %v20229_v21  ;;  %23476 = vst [vmem:[#allocation9_spill] sm:$0xff] %v20233_v55  ;;  %v20249_v9 = vmax.f32 %v6045_v8, 0.0  ;;  %v23488_v8 = vld [vmem:[#allocation205_spill] sm:$0xff] }
 0x6fe   :  { %23478 = vst [vmem:[#allocation31_spill] sm:$0xff] %v20239_v23  ;;  %23480 = vst [vmem:[#allocation11_spill] sm:$0xff] %v20243_v26  ;;  %v20259_v18 = vmax.f32 %v6047_v6, 0.0  ;;  %v23491_v6 = vld [vmem:[#allocation211_spill] sm:$0xff] }
 0x6ff   :  { %23482 = vst [vmem:[#allocation15_spill] sm:$0xff] %v20249_v9 }
 0x700   :  { %14492 = vmatmul.mubr.f32.gmra.mrb[86].mxu0 %v20099_v52  ;;  %23485 = vst [vmem:[#allocation16_spill] sm:$0xff] %v20259_v18 }
 0x701   :  { %14494 = vmatprep.mubr.f32.mxu0 %v20103_v51 }
 0x704   :  { %14495 = vmatmul.mubr.f32.gmra.mrb[88].mxu0 %v20109_v32 }
 0x705   :  { %14497 = vmatprep.mubr.f32.mxu0 %v20113_v35 }
 0x708   :  { %14498 = vmatmul.mubr.f32.gmra.mrb[90].mxu0 %v20119_v14 }
 0x709   :  { %14500 = vmatprep.mubr.f32.mxu0 %v20123_v43 }
 0x70c   :  { %14501 = vmatmul.mubr.f32.gmra.mrb[92].mxu0 %v20129_v34 }
 0x70d   :  { %14503 = vmatprep.mubr.f32.mxu0 %v20133_v58 }
 0x710   :  { %14504 = vmatmul.mubr.f32.gmra.mrb[94].mxu0 %v20139_v1 }
 0x711   :  { %14506 = vmatprep.mubr.f32.mxu0 %v20143_v30 }
 0x714   :  { %14507 = vmatmul.mubr.f32.gmra.mrb[96].mxu0 %v20149_v46 }
 0x715   :  { %14509 = vmatprep.mubr.f32.mxu0 %v20153_v36 }
 0x718   :  { %14510 = vmatmul.mubr.f32.gmra.mrb[98].mxu0 %v20159_v42 }
 0x719   :  { %14512 = vmatprep.mubr.f32.mxu0 %v20163_v2 }
 0x71c   :  { %14513 = vmatmul.mubr.f32.gmra.mrb[100].mxu0 %v20169_v3 }
 0x71d   :  { %14515 = vmatprep.mubr.f32.mxu0 %v20173_v33 }
 0x720   :  { %14516 = vmatmul.mubr.f32.gmra.mrb[102].mxu0 %v20179_v13 }
 0x721   :  { %14518 = vmatprep.mubr.f32.mxu0 %v20183_v4 }
 0x724   :  { %14519 = vmatmul.mubr.f32.gmra.mrb[104].mxu0 %v20189_v15 }
 0x725   :  { %14521 = vmatprep.mubr.f32.mxu0 %v20193_v44 }
 0x728   :  { %14522 = vmatmul.mubr.f32.gmra.mrb[106].mxu0 %v20199_v39 }
 0x729   :  { %14524 = vmatprep.mubr.f32.mxu0 %v20203_v54 }
 0x72c   :  { %14525 = vmatmul.mubr.f32.gmra.mrb[108].mxu0 %v20209_v50 }
 0x72d   :  { %14527 = vmatprep.mubr.f32.mxu0 %v20213_v62 }
 0x730   :  { %14528 = vmatmul.mubr.f32.gmra.mrb[110].mxu0 %v20219_v19  ;;  %v6046_v19 = vadd.f32 %v19926_v60, %v23481_v10  ;;  %v6049_v10 = vadd.f32 %v23486_v28, %v19926_v60  ;;  %v23493_v28 = vld [vmem:[#allocation210_spill] sm:$0xff] }
 0x731   :  { %14530 = vmatprep.mubr.f32.mxu0 %v20223_v0 }
 0x734   :  { %14531 = vmatmul.mubr.f32.gmra.mrb[112].mxu0 %v20229_v21  ;;  %v20253_v21 = vmax.f32 %v6046_v19, 0.0  ;;  %v20269_v19 = vmax.f32 %v6049_v10, 0.0  ;;  %v23495_v10 = vld [vmem:[#allocation207_spill] sm:$0xff] }
 0x735   :  { %14533 = vmatprep.mubr.f32.mxu0 %v20233_v55  ;;  %v23498_v55 = vld [vmem:[#allocation217_spill] sm:$0xff] }
 0x736   :  { %23484 = vst [vmem:[#allocation13_spill] sm:$0xff] %v20253_v21  ;;  %23489 = vst [vmem:[#allocation14_spill] sm:$0xff] %v20269_v19 }
 0x738   :  { %14534 = vmatmul.mubr.f32.gmra.mrb[114].mxu0 %v20239_v23  ;;  %v20263_v23 = vmax.f32 %v6048_v17, 0.0  ;;  %v6052_v17 = vadd.f32 %v19926_v60, %v23493_v28 }
 0x739   :  { %14536 = vmatprep.mubr.f32.mxu0 %v20243_v26  ;;  %v6050_v26 = vadd.f32 %v19926_v60, %v23488_v8  ;;  %v20281_v8 = vmax.f32 %v6051_v12, 0.0 }
 0x73a   :  { %23487 = vst [vmem:[#allocation32_spill] sm:$0xff] %v20263_v23  ;;  %v20287_v5 = vmax.f32 %v6052_v17, 0.0 }
 0x73b   :  { %23494 = vst [vmem:[#allocation18_spill] sm:$0xff] %v20281_v8 }
 0x73c   :  { %14537 = vmatmul.mubr.f32.gmra.mrb[116].mxu0 %v20249_v9  ;;  %v6055_v9 = vadd.f32 %v23491_v6, %v19926_v60  ;;  %23497 = vst [vmem:[#allocation20_spill] sm:$0xff] %v20287_v5  ;;  %v6184_v6 = vrot.slane %v19940_v11, 7  ;;  %v11427_v11 = vld [vmem:[%s22206_s5 + $0x118] sm:$0xff] }
 0x73d   :  { %14539 = vmatprep.mubr.f32.mxu0 %v20253_v21  ;;  %v20275_v21 = vmax.f32 %v6050_v26, 0.0  ;;  %v6054_v26 = vadd.f32 %v19926_v60, %v23498_v55  ;;  %v6122_v55 = vrot.slane %v19946_v47, 7 }
 0x73f   :  { %23492 = vst [vmem:[#allocation17_spill] sm:$0xff] %v20275_v21 }
 0x740   :  { %14540 = vmatmul.mubr.f32.gmra.mrb[118].mxu0 %v20259_v18  ;;  %v6053_v18 = vadd.f32 %v23495_v10, %v19926_v60  ;;  %v6185_v60 = vrot.slane %v19944_v48, 7  ;;  %v23502_v10 = vld [vmem:[#allocation33_spill] sm:$0xff]  ;;  %v6124_v48 = vrot.slane %v19964_v7, 7  ;;  %v11429_v7 = vld [vmem:[%s22206_s5 + $0x128] sm:$0xff] }
 0x741   :  { %14542 = vmatprep.mubr.f32.mxu0 %v20263_v23  ;;  %v20285_v23 = vmax.f32 %v6055_v9, 0.0 }
 0x742   :  { %v20294_v28 = vmax.f32 %v6053_v18, 0.0  ;;  %v20324_v47 = vsel %vm1600_vm1, %v6184_v6, %v6185_v60 }
 0x743   :  { %23496 = vst [vmem:[#allocation19_spill] sm:$0xff] %v20285_v23  ;;  %v22610_v12 = vrot.slane %v20285_v23, 7  ;;  %23504 = vst [vmem:[#allocation45_spill] sm:$0xff] %v20324_v47 }
 0x744   :  { %14543 = vmatmul.mubr.f32.gmra.mrb[120].mxu0 %v20269_v19  ;;  %23499 = vst [vmem:[#allocation40_spill] sm:$0xff] %v20294_v28  ;;  %v20297_v19 = vmax.f32 %v6054_v26, 0.0  ;;  %v11426_v26 = vld [vmem:[%s22206_s5 + $0x110] sm:$0xff] }
 0x745   :  { %14545 = vmatprep.mubr.f32.mxu0 %v20275_v21  ;;  %v6187_v17 = vsel %vm1600_vm1, %v22610_v12, %v6184_v6  ;;  %v6249_v12 = vsel %vm1600_vm1, %v6185_v60, %v6122_v55  ;;  %v6125_v6 = vrot.slane %v19976_v24, 7  ;;  %v23508_v60 = vld [vmem:[#allocation38_spill] sm:$0xff] }
 0x746   :  { %23500 = vst [vmem:[#allocation42_spill] sm:$0xff] %v20297_v19  ;;  %v20308_v18 = vmul.f32 %v23502_v10, %v6187_v17  ;;  %v6123_v17 = vrot.slane %v19960_v25, 7  ;;  %v16001_v10 = vpack.c.bf16 %v11427_v11, %v11426_v26  ;;  %v6126_v26 = vrot.slane %v19980_v41, 7 }
 0x748   :  { %14546 = vmatmul.mubr.f32.gmra.mrb[122].mxu0 %v20281_v8  ;;  %23503 = vst [vmem:[#allocation43_spill] sm:$0xff] %v20308_v18  ;;  %v6247_v11 = vsel %vm1600_vm1, %v6123_v17, %v6124_v48 }
 0x749   :  { %14548 = vmatprep.mubr.f32.mxu0 %v20287_v5 }
 0x74c   :  { %14549 = vmatmul.mubr.f32.gmra.mrb[124].mxu0 %v20294_v28  ;;  %v23505_v28 = vld [vmem:[#allocation35_spill] sm:$0xff] }
 0x74d   :  { %14551 = vmatprep.mubr.f32.mxu0 %v20297_v19  ;;  %v20327_v19 = vmul.f32 %v23505_v28, %v6249_v12  ;;  %v20344_v12 = vsel %vm1600_vm1, %v6122_v55, %v6123_v17  ;;  %v6127_v55 = vrot.slane %v19992_v53, 7 }
 0x74e   :  { %23507 = vst [vmem:[#allocation48_spill] sm:$0xff] %v20344_v12 }
 0x74f   :  { %23506 = vst [vmem:[#allocation46_spill] sm:$0xff] %v20327_v19 }
 0x750   :  { %14552 = vmatmul.mubr.f32.gmra.mrb[126].mxu0 %v20285_v23  ;;  %v11428_v23 = vld [vmem:[%s22206_s5 + $0x120] sm:$0xff] }
 0x751   :  { %14586 = vmatprep.mubr.f32.mxu0 %v20308_v18  ;;  %v16005_v28 = vpack.c.bf16 %v11429_v7, %v11428_v23  ;;  %v20347_v18 = vmul.f32 %v23508_v60, %v6247_v11  ;;  %v6245_v7 = vsel %vm1600_vm1, %v6125_v6, %v6126_v26  ;;  %v6128_v23 = vrot.slane %v19996_v29, 7  ;;  %v23511_v60 = vld [vmem:[#allocation41_spill] sm:$0xff] }
 0x752   :  { %v20363_v11 = vsel %vm1600_vm1, %v6124_v48, %v6125_v6  ;;  %v6129_v48 = vrot.slane %v20008_v37, 7 }
 0x753   :  { %23509 = vst [vmem:[#allocation49_spill] sm:$0xff] %v20347_v18  ;;  %23510 = vst [vmem:[#allocation51_spill] sm:$0xff] %v20363_v11 }
 0x754   :  { %14587 = vmatmul.mubr.f32.vlgmr.msra.gmra.mrb[64].mxu0 %v20324_v47  ;;  %v11430_v47 = vld [vmem:[%s22206_s5 + $0x130] sm:$0xff] }
 0x755   :  { %16000 = vmatpush3.bf16.msra.mxu0 %v20060_v45  ;;  %14589 = vmatprep.mubr.f32.mxu0 %v20327_v19  ;;  %v11431_v45 = vld [vmem:[%s22206_s5 + $0x138] sm:$0xff]  ;;  %v20366_v19 = vmul.f32 %v23511_v60, %v6245_v7 }
 0x756   :  { %16002 = vmatprep.subr.bf16.mxu0 %v16001_v10  ;;  %v16009_v17 = vpack.c.bf16 %v11431_v45, %v11430_v47  ;;  %v6243_v47 = vsel %vm1600_vm1, %v6127_v55, %v6128_v23  ;;  %v20382_v45 = vsel %vm1600_vm1, %v6126_v26, %v6127_v55  ;;  %v23514_v7 = vld [vmem:[#allocation44_spill] sm:$0xff]  ;;  %v6131_v26 = vrot.slane %v20024_v27, 7 }
 0x757   :  { %23512 = vst [vmem:[#allocation52_spill] sm:$0xff] %v20366_v19  ;;  %23513 = vst [vmem:[#allocation54_spill] sm:$0xff] %v20382_v45  ;;  %v20385_v60 = vmul.f32 %v23514_v7, %v6243_v47  ;;  %v20401_v55 = vsel %vm1600_vm1, %v6128_v23, %v6129_v48  ;;  %v23517_v47 = vld [vmem:[#allocation47_spill] sm:$0xff]  ;;  %v6133_v23 = vrot.slane %v20040_v57, 7 }
 0x758   :  { %14590 = vmatmul.mubr.f32.gmra.mrb[128].mxu0 %v20344_v12  ;;  %v11432_v12 = vld [vmem:[%s22206_s5 + $0x140] sm:$0xff]  ;;  %23516 = vst [vmem:[#allocation57_spill] sm:$0xff] %v20401_v55 }
 0x759   :  { %14592 = vmatprep.mubr.f32.mxu0 %v20347_v18  ;;  %16004 = vmatpush3.bf16.msra.mxu0 %v16001_v10  ;;  %v11433_v18 = vld [vmem:[%s22206_s5 + $0x148] sm:$0xff]  ;;  %v6130_v10 = vrot.slane %v20012_v40, 7  ;;  %23515 = vst [vmem:[#allocation55_spill] sm:$0xff] %v20385_v60 }
 0x75a   :  { %16006 = vmatprep.subr.bf16.mxu0 %v16005_v28  ;;  %v16013_v6 = vpack.c.bf16 %v11433_v18, %v11432_v12 }
 0x75b   :  { %v6241_v18 = vsel %vm1600_vm1, %v6129_v48, %v6130_v10  ;;  %v20420_v48 = vsel %vm1600_vm1, %v6130_v10, %v6131_v26  ;;  %v6135_v10 = vrot.slane %v20056_v59, 7 }
 0x75c   :  { %14593 = vmatmul.mubr.f32.gmra.mrb[68].mxu0 %v20363_v11  ;;  %v11434_v11 = vld [vmem:[%s22206_s5 + $0x150] sm:$0xff]  ;;  %v20404_v7 = vmul.f32 %v23517_v47, %v6241_v18  ;;  %23519 = vst [vmem:[#allocation60_spill] sm:$0xff] %v20420_v48  ;;  %v23520_v18 = vld [vmem:[#allocation50_spill] sm:$0xff] }
 0x75d   :  { %14595 = vmatprep.mubr.f32.mxu0 %v20366_v19  ;;  %16008 = vmatpush3.bf16.msra.mxu0 %v16005_v28  ;;  %v11435_v19 = vld [vmem:[%s22206_s5 + $0x158] sm:$0xff]  ;;  %v6132_v28 = vrot.slane %v20028_v22, 7 }
 0x75e   :  { %16010 = vmatprep.subr.bf16.mxu0 %v16009_v17  ;;  %v16017_v12 = vpack.c.bf16 %v11435_v19, %v11434_v11  ;;  %23518 = vst [vmem:[#allocation58_spill] sm:$0xff] %v20404_v7 }
 0x75f   :  { %v6239_v19 = vsel %vm1600_vm1, %v6131_v26, %v6132_v28  ;;  %v20439_v26 = vsel %vm1600_vm1, %v6132_v28, %v6133_v23  ;;  %v6137_v28 = vrot.slane %v20068_v16, 7 }
 0x760   :  { %14596 = vmatmul.mubr.f32.gmra.mrb[130].mxu0 %v20382_v45  ;;  %v11436_v45 = vld [vmem:[%s22206_s5 + $0x160] sm:$0xff]  ;;  %v20423_v47 = vmul.f32 %v23520_v18, %v6239_v19  ;;  %23522 = vst [vmem:[#allocation63_spill] sm:$0xff] %v20439_v26 }
 0x761   :  { %14598 = vmatprep.mubr.f32.mxu0 %v20385_v60  ;;  %16012 = vmatpush3.bf16.msra.mxu0 %v16009_v17  ;;  %v11437_v60 = vld [vmem:[%s22206_s5 + $0x168] sm:$0xff]  ;;  %v6134_v17 = vrot.slane %v20044_v38, 7  ;;  %v23523_v19 = vld [vmem:[#allocation53_spill] sm:$0xff] }
 0x762   :  { %16014 = vmatprep.subr.bf16.mxu0 %v16013_v6  ;;  %v16021_v11 = vpack.c.bf16 %v11437_v60, %v11436_v45  ;;  %23521 = vst [vmem:[#allocation61_spill] sm:$0xff] %v20423_v47  ;;  %v6136_v45 = vrot.slane %v20062_v56, 7 }
 0x764   :  { %14599 = vmatmul.mubr.f32.gmra.mrb[72].mxu0 %v20401_v55  ;;  %v11438_v55 = vld [vmem:[%s22206_s5 + $0x170] sm:$0xff] }
 0x765   :  { %14601 = vmatprep.mubr.f32.mxu0 %v20404_v7  ;;  %16016 = vmatpush3.bf16.msra.mxu0 %v16013_v6  ;;  %v11439_v7 = vld [vmem:[%s22206_s5 + $0x178] sm:$0xff]  ;;  %v6237_v6 = vsel %vm1600_vm1, %v6133_v23, %v6134_v17  ;;  %v20460_v23 = vsel %vm1600_vm1, %v6134_v17, %v6135_v10  ;;  %v20474_v17 = vsel %vm1600_vm1, %v6136_v45, %v6137_v28 }
 0x766   :  { %16018 = vmatprep.subr.bf16.mxu0 %v16017_v12  ;;  %v16025_v60 = vpack.c.bf16 %v11439_v7, %v11438_v55  ;;  %v20442_v18 = vmul.f32 %v23523_v19, %v6237_v6  ;;  %v6138_v55 = vrot.slane %v20073_v61, 7  ;;  %23525 = vst [vmem:[#allocation66_spill] sm:$0xff] %v20460_v23  ;;  %v23526_v6 = vld [vmem:[#allocation56_spill] sm:$0xff]  ;;  %23528 = vst [vmem:[#allocation69_spill] sm:$0xff] %v20474_v17 }
 0x768   :  { %14602 = vmatmul.mubr.f32.gmra.mrb[132].mxu0 %v20420_v48  ;;  %23524 = vst [vmem:[#allocation64_spill] sm:$0xff] %v20442_v18  ;;  %v11456_v48 = vld [vmem:[%s22206_s5 + $0x200] sm:$0xff] }
 0x769   :  { %14604 = vmatprep.mubr.f32.mxu0 %v20423_v47  ;;  %16020 = vmatpush3.bf16.msra.mxu0 %v16017_v12  ;;  %v11457_v47 = vld [vmem:[%s22206_s5 + $0x208] sm:$0xff]  ;;  %v6235_v12 = vsel %vm1600_vm1, %v6135_v10, %v6136_v45 }
 0x76a   :  { %16022 = vmatprep.subr.bf16.mxu0 %v16021_v11  ;;  %v20456_v7 = vpack.c.bf16 %v11457_v47, %v11456_v48  ;;  %v20463_v19 = vmul.f32 %v23526_v6, %v6235_v12  ;;  %v23529_v48 = vld [vmem:[#allocation59_spill] sm:$0xff]  ;;  %v6142_v12 = vrot.slane %v20093_v31, 7  ;;  %v23532_v45 = vld [vmem:[#allocation62_spill] sm:$0xff] }
 0x76c   :  { %14605 = vmatmul.mubr.f32.gmra.mrb[76].mxu0 %v20439_v26  ;;  %23527 = vst [vmem:[#allocation67_spill] sm:$0xff] %v20463_v19  ;;  %v6233_v26 = vsel %vm1600_vm1, %v6137_v28, %v6138_v55 }
 0x76d   :  { %14607 = vmatprep.mubr.f32.mxu0 %v20442_v18  ;;  %16024 = vmatpush3.bf16.msra.mxu0 %v16021_v11  ;;  %v6140_v18 = vrot.slane %v20083_v49, 7  ;;  %v6139_v11 = vrot.slane %v20079_v63, 7  ;;  %v20477_v47 = vmul.f32 %v23529_v48, %v6233_v26  ;;  %v6144_v48 = vrot.slane %v20103_v51, 7 }
 0x76e   :  { %16026 = vmatprep.subr.bf16.mxu0 %v16025_v60 }
 0x76f   :  { %23530 = vst [vmem:[#allocation70_spill] sm:$0xff] %v20477_v47  ;;  %v6231_v10 = vsel %vm1600_vm1, %v6139_v11, %v6140_v18  ;;  %v20487_v6 = vsel %vm1600_vm1, %v6138_v55, %v6139_v11  ;;  %v23535_v55 = vld [vmem:[#allocation65_spill] sm:$0xff] }
 0x770   :  { %14608 = vmatmul.mubr.f32.gmra.mrb[134].mxu0 %v20460_v23  ;;  %23531 = vst [vmem:[#allocation72_spill] sm:$0xff] %v20487_v6  ;;  %v20490_v28 = vmul.f32 %v23532_v45, %v6231_v10  ;;  %v6146_v45 = vrot.slane %v20113_v35, 7 }
 0x771   :  { %14610 = vmatprep.mubr.f32.mxu0 %v20463_v19  ;;  %16028 = vmatpush3.bf16.msra.mxu0 %v16025_v60  ;;  %v6141_v60 = vrot.slane %v20089_v20, 7 }
 0x772   :  { %16030 = vmatprep.subr.bf16.mxu0 %v20456_v7  ;;  %23533 = vst [vmem:[#allocation73_spill] sm:$0xff] %v20490_v28 }
 0x773   :  { %v6229_v26 = vsel %vm1600_vm1, %v6141_v60, %v6142_v12 }
 0x774   :  { %14611 = vmatmul.mubr.f32.gmra.mrb[80].mxu0 %v20474_v17  ;;  %v20500_v17 = vsel %vm1600_vm1, %v6140_v18, %v6141_v60  ;;  %v20503_v11 = vmul.f32 %v23535_v55, %v6229_v26  ;;  %v23538_v18 = vld [vmem:[#allocation68_spill] sm:$0xff]  ;;  %v6148_v55 = vrot.slane %v20123_v43, 7 }
 0x775   :  { %14613 = vmatprep.mubr.f32.mxu0 %v20477_v47  ;;  %v6143_v47 = vrot.slane %v20099_v52, 7  ;;  %23534 = vst [vmem:[#allocation75_spill] sm:$0xff] %v20500_v17 }
 0x776   :  { %23536 = vst [vmem:[#allocation76_spill] sm:$0xff] %v20503_v11 }
 0x777   :  { %v6227_v10 = vsel %vm1600_vm1, %v6143_v47, %v6144_v48 }
 0x778   :  { %14614 = vmatmul.mubr.f32.gmra.mrb[136].mxu0 %v20487_v6  ;;  %v20513_v6 = vsel %vm1600_vm1, %v6142_v12, %v6143_v47  ;;  %v20516_v60 = vmul.f32 %v23538_v18, %v6227_v10  ;;  %v23541_v47 = vld [vmem:[#allocation71_spill] sm:$0xff]  ;;  %v6150_v18 = vrot.slane %v20133_v58, 7 }
 0x779   :  { %14616 = vmatprep.mubr.f32.mxu0 %v20490_v28  ;;  %v6145_v28 = vrot.slane %v20109_v32, 7  ;;  %23537 = vst [vmem:[#allocation78_spill] sm:$0xff] %v20513_v6 }
 0x77a   :  { %23539 = vst [vmem:[#allocation79_spill] sm:$0xff] %v20516_v60 }
 0x77b   :  { %v6225_v26 = vsel %vm1600_vm1, %v6145_v28, %v6146_v45 }
 0x77c   :  { %14617 = vmatmul.mubr.f32.gmra.mrb[84].mxu0 %v20500_v17  ;;  %v20526_v17 = vsel %vm1600_vm1, %v6144_v48, %v6145_v28  ;;  %v20529_v12 = vmul.f32 %v23541_v47, %v6225_v26  ;;  %v23544_v28 = vld [vmem:[#allocation74_spill] sm:$0xff]  ;;  %v6152_v47 = vrot.slane %v20143_v30, 7 }
 0x77d   :  { %14619 = vmatprep.mubr.f32.mxu0 %v20503_v11  ;;  %v6147_v11 = vrot.slane %v20119_v14, 7  ;;  %23540 = vst [vmem:[#allocation81_spill] sm:$0xff] %v20526_v17 }
 0x77e   :  { %23542 = vst [vmem:[#allocation82_spill] sm:$0xff] %v20529_v12 }
 0x77f   :  { %v6223_v10 = vsel %vm1600_vm1, %v6147_v11, %v6148_v55 }
 0x780   :  { %14620 = vmatmul.mubr.f32.gmra.mrb[138].mxu0 %v20513_v6  ;;  %v20539_v6 = vsel %vm1600_vm1, %v6146_v45, %v6147_v11  ;;  %v20542_v48 = vmul.f32 %v23544_v28, %v6223_v10  ;;  %v23547_v11 = vld [vmem:[#allocation77_spill] sm:$0xff]  ;;  %v6154_v28 = vrot.slane %v20153_v36, 7 }
 0x781   :  { %14622 = vmatprep.mubr.f32.mxu0 %v20516_v60  ;;  %v6149_v60 = vrot.slane %v20129_v34, 7  ;;  %23543 = vst [vmem:[#allocation84_spill] sm:$0xff] %v20539_v6 }
 0x782   :  { %23545 = vst [vmem:[#allocation85_spill] sm:$0xff] %v20542_v48 }
 0x783   :  { %v6221_v26 = vsel %vm1600_vm1, %v6149_v60, %v6150_v18 }
 0x784   :  { %14623 = vmatmul.mubr.f32.gmra.mrb[140].mxu0 %v20526_v17  ;;  %v20552_v17 = vsel %vm1600_vm1, %v6148_v55, %v6149_v60  ;;  %v20555_v45 = vmul.f32 %v23547_v11, %v6221_v26  ;;  %v23550_v60 = vld [vmem:[#allocation80_spill] sm:$0xff]  ;;  %v6156_v11 = vrot.slane %v20163_v2, 7 }
 0x785   :  { %14625 = vmatprep.mubr.f32.mxu0 %v20529_v12  ;;  %v6151_v12 = vrot.slane %v20139_v1, 7  ;;  %23546 = vst [vmem:[#allocation87_spill] sm:$0xff] %v20552_v17 }
 0x786   :  { %23548 = vst [vmem:[#allocation88_spill] sm:$0xff] %v20555_v45 }
 0x787   :  { %v6219_v10 = vsel %vm1600_vm1, %v6151_v12, %v6152_v47 }
 0x788   :  { %14626 = vmatmul.mubr.f32.gmra.mrb[142].mxu0 %v20539_v6  ;;  %v20565_v6 = vsel %vm1600_vm1, %v6150_v18, %v6151_v12  ;;  %v20568_v55 = vmul.f32 %v23550_v60, %v6219_v10  ;;  %v23553_v12 = vld [vmem:[#allocation83_spill] sm:$0xff]  ;;  %v6158_v60 = vrot.slane %v20173_v33, 7 }
 0x789   :  { %14628 = vmatprep.mubr.f32.mxu0 %v20542_v48  ;;  %v6153_v48 = vrot.slane %v20149_v46, 7  ;;  %23549 = vst [vmem:[#allocation90_spill] sm:$0xff] %v20565_v6 }
 0x78a   :  { %23551 = vst [vmem:[#allocation91_spill] sm:$0xff] %v20568_v55 }
 0x78b   :  { %v6217_v26 = vsel %vm1600_vm1, %v6153_v48, %v6154_v28 }
 0x78c   :  { %14629 = vmatmul.mubr.f32.gmra.mrb[144].mxu0 %v20552_v17  ;;  %v20578_v17 = vsel %vm1600_vm1, %v6152_v47, %v6153_v48  ;;  %v20581_v18 = vmul.f32 %v23553_v12, %v6217_v26  ;;  %v23556_v48 = vld [vmem:[#allocation86_spill] sm:$0xff]  ;;  %v6160_v12 = vrot.slane %v20183_v4, 7 }
 0x78d   :  { %14631 = vmatprep.mubr.f32.mxu0 %v20555_v45  ;;  %v6155_v45 = vrot.slane %v20159_v42, 7  ;;  %23552 = vst [vmem:[#allocation93_spill] sm:$0xff] %v20578_v17 }
 0x78e   :  { %23554 = vst [vmem:[#allocation94_spill] sm:$0xff] %v20581_v18 }
 0x78f   :  { %v6215_v10 = vsel %vm1600_vm1, %v6155_v45, %v6156_v11 }
 0x790   :  { %14632 = vmatmul.mubr.f32.gmra.mrb[146].mxu0 %v20565_v6  ;;  %v20591_v6 = vsel %vm1600_vm1, %v6154_v28, %v6155_v45  ;;  %v20594_v47 = vmul.f32 %v23556_v48, %v6215_v10  ;;  %v23559_v45 = vld [vmem:[#allocation89_spill] sm:$0xff]  ;;  %v6162_v48 = vrot.slane %v20193_v44, 7 }
 0x791   :  { %14634 = vmatprep.mubr.f32.mxu0 %v20568_v55  ;;  %v6157_v55 = vrot.slane %v20169_v3, 7  ;;  %23555 = vst [vmem:[#allocation96_spill] sm:$0xff] %v20591_v6 }
 0x792   :  { %23557 = vst [vmem:[#allocation97_spill] sm:$0xff] %v20594_v47 }
 0x793   :  { %v6213_v26 = vsel %vm1600_vm1, %v6157_v55, %v6158_v60 }
 0x794   :  { %14635 = vmatmul.mubr.f32.gmra.mrb[96].mxu0 %v20578_v17  ;;  %v20604_v17 = vsel %vm1600_vm1, %v6156_v11, %v6157_v55  ;;  %v20607_v28 = vmul.f32 %v23559_v45, %v6213_v26  ;;  %v23562_v55 = vld [vmem:[#allocation92_spill] sm:$0xff]  ;;  %v6164_v45 = vrot.slane %v20203_v54, 7 }
 0x795   :  { %14637 = vmatprep.mubr.f32.mxu0 %v20581_v18  ;;  %v6159_v18 = vrot.slane %v20179_v13, 7  ;;  %23558 = vst [vmem:[#allocation25_spill] sm:$0xff] %v20604_v17 }
 0x796   :  { %23560 = vst [vmem:[#allocation99_spill] sm:$0xff] %v20607_v28 }
 0x797   :  { %v6211_v10 = vsel %vm1600_vm1, %v6159_v18, %v6160_v12 }
 0x798   :  { %14638 = vmatmul.mubr.f32.gmra.mrb[148].mxu0 %v20591_v6  ;;  %v20617_v6 = vsel %vm1600_vm1, %v6158_v60, %v6159_v18  ;;  %v20620_v11 = vmul.f32 %v23562_v55, %v6211_v10  ;;  %v23565_v18 = vld [vmem:[#allocation95_spill] sm:$0xff]  ;;  %v6166_v55 = vrot.slane %v20213_v62, 7 }
 0x799   :  { %14640 = vmatprep.mubr.f32.mxu0 %v20594_v47  ;;  %v6161_v47 = vrot.slane %v20189_v15, 7  ;;  %23561 = vst [vmem:[#allocation101_spill] sm:$0xff] %v20617_v6 }
 0x79a   :  { %23563 = vst [vmem:[#allocation102_spill] sm:$0xff] %v20620_v11 }
 0x79b   :  { %v6209_v26 = vsel %vm1600_vm1, %v6161_v47, %v6162_v48 }
 0x79c   :  { %14641 = vmatmul.mubr.f32.gmra.mrb[100].mxu0 %v20604_v17  ;;  %v20630_v17 = vsel %vm1600_vm1, %v6160_v12, %v6161_v47  ;;  %v20633_v60 = vmul.f32 %v23565_v18, %v6209_v26  ;;  %v23568_v47 = vld [vmem:[#allocation98_spill] sm:$0xff]  ;;  %v6168_v18 = vrot.slane %v20223_v0, 7 }
 0x79d   :  { %14643 = vmatprep.mubr.f32.mxu0 %v20607_v28  ;;  %v6163_v28 = vrot.slane %v20199_v39, 7  ;;  %23564 = vst [vmem:[#allocation104_spill] sm:$0xff] %v20630_v17 }
 0x79e   :  { %23566 = vst [vmem:[#allocation105_spill] sm:$0xff] %v20633_v60 }
 0x79f   :  { %v6207_v10 = vsel %vm1600_vm1, %v6163_v28, %v6164_v45 }
 0x7a0   :  { %14644 = vmatmul.mubr.f32.gmra.mrb[150].mxu0 %v20617_v6  ;;  %v20643_v6 = vsel %vm1600_vm1, %v6162_v48, %v6163_v28  ;;  %v20646_v12 = vmul.f32 %v23568_v47, %v6207_v10  ;;  %v23572_v28 = vld [vmem:[#allocation100_spill] sm:$0xff] }
 0x7a1   :  { %14646 = vmatprep.mubr.f32.mxu0 %v20620_v11  ;;  %v6165_v11 = vrot.slane %v20209_v50, 7  ;;  %23567 = vst [vmem:[#allocation107_spill] sm:$0xff] %v20643_v6 }
 0x7a2   :  { %23569 = vst [vmem:[#allocation108_spill] sm:$0xff] %v20646_v12 }
 0x7a3   :  { %v6205_v26 = vsel %vm1600_vm1, %v6165_v11, %v6166_v55  ;;  %v20656_v23 = vsel %vm1600_vm1, %v6164_v45, %v6165_v11  ;;  %v23577_v11 = vld [vmem:[#allocation103_spill] sm:$0xff] }
 0x7a4   :  { %14647 = vmatmul.mubr.f32.gmra.mrb[104].mxu0 %v20630_v17  ;;  %v23570_v17 = vld [vmem:[#allocation8_spill] sm:$0xff]  ;;  %23571 = vst [vmem:[#allocation110_spill] sm:$0xff] %v20656_v23  ;;  %v20659_v48 = vmul.f32 %v23572_v28, %v6205_v26  ;;  %v23579_v28 = vld [vmem:[#allocation11_spill] sm:$0xff] }
 0x7a5   :  { %14649 = vmatprep.mubr.f32.mxu0 %v20633_v60  ;;  %v6167_v60 = vrot.slane %v23570_v17, 7 }
 0x7a6   :  { %23573 = vst [vmem:[#allocation111_spill] sm:$0xff] %v20659_v48 }
 0x7a7   :  { %v6203_v47 = vsel %vm1600_vm1, %v6167_v60, %v6168_v18 }
 0x7a8   :  { %14650 = vmatmul.mubr.f32.gmra.mrb[152].mxu0 %v20643_v6  ;;  %v23574_v6 = vld [vmem:[#allocation9_spill] sm:$0xff]  ;;  %v20672_v45 = vmul.f32 %v23577_v11, %v6203_v47 }
 0x7a9   :  { %14652 = vmatprep.mubr.f32.mxu0 %v20646_v12  ;;  %v6170_v0 = vrot.slane %v23574_v6, 7  ;;  %v23575_v12 = vld [vmem:[#allocation10_spill] sm:$0xff] }
 0x7aa   :  { %v6169_v17 = vrot.slane %v23575_v12, 7  ;;  %23578 = vst [vmem:[#allocation114_spill] sm:$0xff] %v20672_v45 }
 0x7ab   :  { %v14463_v19 = vpop.f32.mrb[66].mxu0 }
 0x7ac   :  { %v6615_v10 = vpop.f32.mrb[67].mxu0  ;;  %14653 = vmatmul.mubr.f32.gmra.mrb[108].mxu0 %v20656_v23  ;;  %v20669_v19 = vsel %vm1600_vm1, %v6166_v55, %v6167_v60  ;;  %v6201_v26 = vsel %vm1600_vm1, %v6169_v17, %v6170_v0  ;;  %v23580_v23 = vld [vmem:[#allocation31_spill] sm:$0xff]  ;;  %v20682_v12 = vsel %vm1600_vm1, %v6168_v18, %v6169_v17  ;;  %v23582_v60 = vld [vmem:[#allocation106_spill] sm:$0xff]  ;;  %v23587_v17 = vld [vmem:[#allocation109_spill] sm:$0xff] }
 0x7ad   :  { %14655 = vmatprep.mubr.f32.mxu0 %v20659_v48  ;;  %23576 = vst [vmem:[#allocation113_spill] sm:$0xff] %v20669_v19  ;;  %v6172_v10 = vrot.slane %v23579_v28, 7  ;;  %v6171_v48 = vrot.slane %v23580_v23, 7  ;;  %23581 = vst [vmem:[#allocation116_spill] sm:$0xff] %v20682_v12  ;;  %v20685_v55 = vmul.f32 %v23582_v60, %v6201_v26  ;;  %v23589_v60 = vld [vmem:[#allocation32_spill] sm:$0xff] }
 0x7af   :  { %23583 = vst [vmem:[#allocation117_spill] sm:$0xff] %v20685_v55  ;;  %v6199_v11 = vsel %vm1600_vm1, %v6171_v48, %v6172_v10 }
 0x7b0   :  { %14656 = vmatmul.mubr.f32.gmra.mrb[154].mxu0 %v20669_v19  ;;  %v23584_v19 = vld [vmem:[#allocation13_spill] sm:$0xff]  ;;  %v20698_v18 = vmul.f32 %v23587_v17, %v6199_v11 }
 0x7b1   :  { %14658 = vmatprep.mubr.f32.mxu0 %v20672_v45  ;;  %v6174_v28 = vrot.slane %v23584_v19, 7  ;;  %v23585_v45 = vld [vmem:[#allocation15_spill] sm:$0xff] }
 0x7b2   :  { %v6173_v23 = vrot.slane %v23585_v45, 7  ;;  %23588 = vst [vmem:[#allocation120_spill] sm:$0xff] %v20698_v18 }
 0x7b3   :  { %v14469_v6 = vpop.f32.mrb[70].mxu0 }
 0x7b4   :  { %v6635_v47 = vpop.f32.mrb[71].mxu0  ;;  %14659 = vmatmul.mubr.f32.gmra.mrb[112].mxu0 %v20682_v12  ;;  %v20695_v6 = vsel %vm1600_vm1, %v6170_v0, %v6171_v48  ;;  %v6197_v26 = vsel %vm1600_vm1, %v6173_v23, %v6174_v28  ;;  %v23590_v12 = vld [vmem:[#allocation16_spill] sm:$0xff]  ;;  %v20708_v45 = vsel %vm1600_vm1, %v6172_v10, %v6173_v23  ;;  %v23596_v23 = vld [vmem:[#allocation115_spill] sm:$0xff] }
 0x7b5   :  { %14661 = vmatprep.mubr.f32.mxu0 %v20685_v55  ;;  %23586 = vst [vmem:[#allocation119_spill] sm:$0xff] %v20695_v6  ;;  %v6176_v47 = vrot.slane %v23589_v60, 7  ;;  %v6175_v55 = vrot.slane %v23590_v12, 7  ;;  %23591 = vst [vmem:[#allocation122_spill] sm:$0xff] %v20708_v45  ;;  %v23592_v0 = vld [vmem:[#allocation112_spill] sm:$0xff] }
 0x7b6   :  { %v20711_v48 = vmul.f32 %v23592_v0, %v6197_v26  ;;  %v6180_v0 = vrot.slane %v20287_v5, 7 }
 0x7b7   :  { %v6195_v17 = vsel %vm1600_vm1, %v6175_v55, %v6176_v47 }
 0x7b8   :  { %14662 = vmatmul.mubr.f32.gmra.mrb[156].mxu0 %v20695_v6  ;;  %23593 = vst [vmem:[#allocation123_spill] sm:$0xff] %v20711_v48  ;;  %v6178_v6 = vrot.slane %v20275_v21, 7  ;;  %v20724_v10 = vmul.f32 %v23596_v23, %v6195_v17 }
 0x7b9   :  { %14664 = vmatprep.mubr.f32.mxu0 %v20698_v18  ;;  %v23594_v18 = vld [vmem:[#allocation14_spill] sm:$0xff] }
 0x7ba   :  { %v6177_v12 = vrot.slane %v23594_v18, 7  ;;  %23597 = vst [vmem:[#allocation126_spill] sm:$0xff] %v20724_v10 }
 0x7bb   :  { %v14475_v19 = vpop.f32.mrb[74].mxu0 }
 0x7bc   :  { %v6655_v11 = vpop.f32.mrb[75].mxu0  ;;  %14665 = vmatmul.mubr.f32.gmra.mrb[116].mxu0 %v20708_v45  ;;  %v20721_v19 = vsel %vm1600_vm1, %v6174_v28, %v6175_v55  ;;  %v6193_v26 = vsel %vm1600_vm1, %v6177_v12, %v6178_v6  ;;  %v20734_v45 = vsel %vm1600_vm1, %v6176_v47, %v6177_v12  ;;  %v23599_v28 = vld [vmem:[#allocation118_spill] sm:$0xff]  ;;  %v23604_v12 = vld [vmem:[#allocation121_spill] sm:$0xff] }
 0x7bd   :  { %14667 = vmatprep.mubr.f32.mxu0 %v20711_v48  ;;  %23595 = vst [vmem:[#allocation125_spill] sm:$0xff] %v20721_v19  ;;  %v6179_v11 = vrot.slane %v20281_v8, 7  ;;  %23598 = vst [vmem:[#allocation127_spill] sm:$0xff] %v20734_v45  ;;  %v20737_v55 = vmul.f32 %v23599_v28, %v6193_v26 }
 0x7bf   :  { %23600 = vst [vmem:[#allocation34_spill] sm:$0xff] %v20737_v55  ;;  %v6191_v23 = vsel %vm1600_vm1, %v6179_v11, %v6180_v0 }
 0x7c0   :  { %14668 = vmatmul.mubr.f32.gmra.mrb[158].mxu0 %v20721_v19  ;;  %v23601_v19 = vld [vmem:[#allocation42_spill] sm:$0xff]  ;;  %v20750_v47 = vmul.f32 %v23604_v12, %v6191_v23  ;;  %v11459_v12 = vld [vmem:[%s22206_s5 + $0x218] sm:$0xff] }
 0x7c1   :  { %14670 = vmatprep.mubr.f32.mxu0 %v20724_v10  ;;  %v6182_v5 = vrot.slane %v23601_v19, 7  ;;  %v23602_v10 = vld [vmem:[#allocation40_spill] sm:$0xff]  ;;  %v23610_v23 = vld [vmem:[#allocation130_spill] sm:$0xff] }
 0x7c2   :  { %v6181_v8 = vrot.slane %v23602_v10, 7  ;;  %23605 = vst [vmem:[#allocation37_spill] sm:$0xff] %v20750_v47 }
 0x7c3   :  { %v14481_v48 = vpop.f32.mrb[78].mxu0 }
 0x7c4   :  { %v6675_v17 = vpop.f32.mrb[79].mxu0  ;;  %14671 = vmatmul.mubr.f32.gmra.mrb[160].mxu0 %v20734_v45  ;;  %v20747_v48 = vsel %vm1600_vm1, %v6178_v6, %v6179_v11  ;;  %v6189_v26 = vsel %vm1600_vm1, %v6181_v8, %v6182_v5  ;;  %v23609_v6 = vld [vmem:[#allocation24_spill] sm:$0xff] }
 0x7c5   :  { %14673 = vmatprep.mubr.f32.mxu0 %v20737_v55  ;;  %23603 = vst [vmem:[#allocation36_spill] sm:$0xff] %v20747_v48  ;;  %v20758_v17 = vsel %vm1600_vm1, %v6180_v0, %v6181_v8  ;;  %v23607_v55 = vld [vmem:[#allocation124_spill] sm:$0xff]  ;;  %v6377_v11 = vrot.slane %v23609_v6, 1 }
 0x7c6   :  { %23606 = vst [vmem:[#allocation39_spill] sm:$0xff] %v20758_v17  ;;  %v20761_v45 = vmul.f32 %v23607_v55, %v6189_v26  ;;  %v23615_v55 = vld [vmem:[#allocation30_spill] sm:$0xff] }
 0x7c7   :  { %v6316_v26 = vrot.slane %v23615_v55, 1 }
 0x7c8   :  { %14674 = vmatmul.mubr.f32.gmra.mrb[162].mxu0 %v20747_v48  ;;  %23608 = vst [vmem:[#allocation135_spill] sm:$0xff] %v20761_v45  ;;  %v23611_v48 = vld [vmem:[#allocation26_spill] sm:$0xff] }
 0x7c9   :  { %14676 = vmatprep.mubr.f32.mxu0 %v20750_v47  ;;  %v6314_v19 = vrot.slane %v23611_v48, 1  ;;  %v23612_v47 = vld [vmem:[#allocation19_spill] sm:$0xff] }
 0x7cb   :  { %v14487_v28 = vpop.f32.mrb[82].mxu0  ;;  %v6441_v0 = vsel %vm1793_vm4, %v6377_v11, %v6314_v19 }
 0x7cc   :  { %v6695_v10 = vpop.f32.mrb[83].mxu0  ;;  %14677 = vmatmul.mubr.f32.gmra.mrb[164].mxu0 %v20758_v17  ;;  %v23613_v28 = vrot.slane %v23612_v47, 7  ;;  %v23618_v17 = vld [vmem:[#allocation128_spill] sm:$0xff] }
 0x7cd   :  { %14679 = vmatprep.mubr.f32.mxu0 %v20761_v45  ;;  %v11458_v10 = vld [vmem:[%s22206_s5 + $0x210] sm:$0xff]  ;;  %v23616_v45 = vrot.slane %v23610_v23, 1  ;;  %v20793_v6 = vmul.f32 %v23618_v17, %v6441_v0  ;;  %v11460_v23 = vld [vmem:[%s22206_s5 + $0x220] sm:$0xff] }
 0x7ce   :  { %v20772_v8 = vsel %vm1600_vm1, %v6182_v5, %v23613_v28  ;;  %v6315_v28 = vrot.slane %v19960_v25, 1  ;;  %v16033_v55 = vpack.c.bf16 %v11459_v12, %v11458_v10  ;;  %v23621_v12 = vld [vmem:[#allocation131_spill] sm:$0xff]  ;;  %vm10874_vm1 = vcmask 1041409  }
 0x7cf   :  { %23614 = vst [vmem:[#allocation136_spill] sm:$0xff] %v20772_v8  ;;  %v20788_v5 = vsel %vm1793_vm4, %v23616_v45, %v6377_v11  ;;  %23619 = vst [vmem:[#allocation139_spill] sm:$0xff] %v20793_v6  ;;  %v11461_v45 = vld [vmem:[%s22206_s5 + $0x228] sm:$0xff] }
 0x7d0   :  { %14680 = vmatmul.mubr.f32.gmra.mrb[166].mxu0 %v20772_v8  ;;  %23617 = vst [vmem:[#allocation138_spill] sm:$0xff] %v20788_v5  ;;  %v6439_v47 = vsel %vm1793_vm4, %v6315_v28, %v6316_v26  ;;  %v6318_v8 = vrot.slane %v19980_v41, 1  ;;  %v20807_v17 = vsel %vm1793_vm4, %v6314_v19, %v6315_v28  ;;  %v16037_v10 = vpack.c.bf16 %v11461_v45, %v11460_v23  ;;  %v11462_v19 = vld [vmem:[%s22206_s5 + $0x230] sm:$0xff] }
 0x7d1   :  { %14714 = vmatprep.mubr.f32.mxu0 %v20788_v5  ;;  %23620 = vst [vmem:[#allocation141_spill] sm:$0xff] %v20807_v17  ;;  %v20813_v0 = vmul.f32 %v23621_v12, %v6439_v47  ;;  %v6319_v23 = vrot.slane %v19992_v53, 1 }
 0x7d3   :  { %v14493_v48 = vpop.f32.mrb[86].mxu0  ;;  %23622 = vst [vmem:[#allocation142_spill] sm:$0xff] %v20813_v0 }
 0x7d4   :  { %v6715_v11 = vpop.f32.mrb[87].mxu0  ;;  %14715 = vmatmul.mubr.f32.vlgmr.msra.gmra.mrb[64].mxu0 %v20793_v6  ;;  %v6317_v48 = vrot.slane %v19976_v24, 1  ;;  %v6320_v6 = vrot.slane %v19996_v29, 1 }
 0x7d5   :  { %16032 = vmatpush3.bf16.msra.mxu0 %v20456_v7  ;;  %14717 = vmatprep.mubr.f32.mxu0 %v20807_v17  ;;  %v11463_v7 = vld [vmem:[%s22206_s5 + $0x238] sm:$0xff] }
 0x7d6   :  { %16034 = vmatprep.subr.bf16.mxu0 %v16033_v55  ;;  %v6437_v11 = vsel %vm1793_vm4, %v6317_v48, %v6318_v8  ;;  %v20827_v47 = vsel %vm1793_vm4, %v6316_v26, %v6317_v48  ;;  %v16041_v12 = vpack.c.bf16 %v11463_v7, %v11462_v19  ;;  %v11464_v26 = vld [vmem:[%s22206_s5 + $0x240] sm:$0xff]  ;;  %v11465_v48 = vld [vmem:[%s22206_s5 + $0x248] sm:$0xff] }
 0x7d7   :  { %v14496_v5 = vpop.f32.mrb[88].mxu0  ;;  %23623 = vst [vmem:[#allocation144_spill] sm:$0xff] %v20827_v47  ;;  %v23627_v19 = vld [vmem:[#allocation137_spill] sm:$0xff] }
 0x7d8   :  { %v6725_v28 = vpop.f32.mrb[89].mxu0  ;;  %14718 = vmatmul.mubr.f32.gmra.mrb[168].mxu0 %v20813_v0  ;;  %v23624_v5 = vld [vmem:[#allocation134_spill] sm:$0xff]  ;;  %v6322_v0 = vrot.slane %v20012_v40, 1 }
 0x7d9   :  { %14720 = vmatprep.mubr.f32.mxu0 %v20827_v47  ;;  %16036 = vmatpush3.bf16.msra.mxu0 %v16033_v55  ;;  %v20832_v45 = vmul.f32 %v23624_v5, %v6437_v11  ;;  %v6435_v28 = vsel %vm1793_vm4, %v6319_v23, %v6320_v6  ;;  %v20846_v11 = vsel %vm1793_vm4, %v6318_v8, %v6319_v23  ;;  %v11466_v8 = vld [vmem:[%s22206_s5 + $0x250] sm:$0xff]  ;;  %v11467_v23 = vld [vmem:[%s22206_s5 + $0x258] sm:$0xff] }
 0x7da   :  { %16038 = vmatprep.subr.bf16.mxu0 %v16037_v10  ;;  %23626 = vst [vmem:[#allocation147_spill] sm:$0xff] %v20846_v11  ;;  %v20851_v7 = vmul.f32 %v23627_v19, %v6435_v28  ;;  %v16045_v5 = vpack.c.bf16 %v11465_v48, %v11464_v26  ;;  %v23630_v26 = vld [vmem:[#allocation140_spill] sm:$0xff]  ;;  %v16049_v19 = vpack.c.bf16 %v11467_v23, %v11466_v8  ;;  %v23633_v8 = vld [vmem:[#allocation143_spill] sm:$0xff] }
 0x7db   :  { %23625 = vst [vmem:[#allocation145_spill] sm:$0xff] %v20832_v45  ;;  %v14499_v17 = vpop.f32.mrb[90].mxu0 }
 0x7dc   :  { %v6735_v55 = vpop.f32.mrb[91].mxu0  ;;  %14721 = vmatmul.mubr.f32.gmra.mrb[68].mxu0 %v20832_v45  ;;  %v6321_v17 = vrot.slane %v20008_v37, 1  ;;  %23628 = vst [vmem:[#allocation148_spill] sm:$0xff] %v20851_v7  ;;  %v6324_v45 = vrot.slane %v20028_v22, 1 }
 0x7dd   :  { %14723 = vmatprep.mubr.f32.mxu0 %v20846_v11  ;;  %16040 = vmatpush3.bf16.msra.mxu0 %v16037_v10 }
 0x7de   :  { %16042 = vmatprep.subr.bf16.mxu0 %v16041_v12  ;;  %v6433_v55 = vsel %vm1793_vm4, %v6321_v17, %v6322_v0  ;;  %v20865_v28 = vsel %vm1793_vm4, %v6320_v6, %v6321_v17  ;;  %v11468_v6 = vld [vmem:[%s22206_s5 + $0x260] sm:$0xff]  ;;  %v11469_v17 = vld [vmem:[%s22206_s5 + $0x268] sm:$0xff] }
 0x7df   :  { %v14502_v47 = vpop.f32.mrb[92].mxu0  ;;  %23629 = vst [vmem:[#allocation150_spill] sm:$0xff] %v20865_v28  ;;  %v20870_v48 = vmul.f32 %v23630_v26, %v6433_v55  ;;  %v16053_v26 = vpack.c.bf16 %v11469_v17, %v11468_v6  ;;  %v23636_v6 = vld [vmem:[#allocation146_spill] sm:$0xff] }
 0x7e0   :  { %v6745_v10 = vpop.f32.mrb[93].mxu0  ;;  %14724 = vmatmul.mubr.f32.gmra.mrb[170].mxu0 %v20851_v7  ;;  %v6323_v47 = vrot.slane %v20024_v27, 1  ;;  %v6326_v7 = vrot.slane %v20044_v38, 1 }
 0x7e1   :  { %14726 = vmatprep.mubr.f32.mxu0 %v20865_v28  ;;  %16044 = vmatpush3.bf16.msra.mxu0 %v16041_v12  ;;  %23631 = vst [vmem:[#allocation151_spill] sm:$0xff] %v20870_v48 }
 0x7e2   :  { %16046 = vmatprep.subr.bf16.mxu0 %v16045_v5  ;;  %v6431_v10 = vsel %vm1793_vm4, %v6323_v47, %v6324_v45  ;;  %v20884_v55 = vsel %vm1793_vm4, %v6322_v0, %v6323_v47  ;;  %v11470_v0 = vld [vmem:[%s22206_s5 + $0x270] sm:$0xff]  ;;  %v11471_v47 = vld [vmem:[%s22206_s5 + $0x278] sm:$0xff] }
 0x7e3   :  { %v14505_v11 = vpop.f32.mrb[94].mxu0  ;;  %23632 = vst [vmem:[#allocation153_spill] sm:$0xff] %v20884_v55  ;;  %v20889_v23 = vmul.f32 %v23633_v8, %v6431_v10  ;;  %v6327_v10 = vrot.slane %v20056_v59, 1  ;;  %v16057_v8 = vpack.c.bf16 %v11471_v47, %v11470_v0  ;;  %v23639_v0 = vld [vmem:[#allocation149_spill] sm:$0xff] }
 0x7e4   :  { %v6755_v12 = vpop.f32.mrb[95].mxu0  ;;  %14727 = vmatmul.mubr.f32.gmra.mrb[72].mxu0 %v20870_v48  ;;  %v6325_v11 = vrot.slane %v20040_v57, 1 }
 0x7e5   :  { %14729 = vmatprep.mubr.f32.mxu0 %v20884_v55  ;;  %16048 = vmatpush3.bf16.msra.mxu0 %v16045_v5  ;;  %23634 = vst [vmem:[#allocation156_spill] sm:$0xff] %v20889_v23  ;;  %v6328_v12 = vrot.slane %v20062_v56, 1 }
 0x7e6   :  { %16050 = vmatprep.subr.bf16.mxu0 %v16049_v19  ;;  %v6429_v28 = vsel %vm1793_vm4, %v6325_v11, %v6326_v7  ;;  %v20903_v5 = vsel %vm1793_vm4, %v6324_v45, %v6325_v11  ;;  %v11440_v45 = vld [vmem:[%s22206_s5 + $0x180] sm:$0xff]  ;;  %v11441_v11 = vld [vmem:[%s22206_s5 + $0x188] sm:$0xff] }
 0x7e7   :  { %23635 = vst [vmem:[#allocation157_spill] sm:$0xff] %v20903_v5  ;;  %v20908_v17 = vmul.f32 %v23636_v6, %v6429_v28  ;;  %v6427_v48 = vsel %vm1793_vm4, %v6327_v10, %v6328_v12  ;;  %v20922_v28 = vsel %vm1793_vm4, %v6326_v7, %v6327_v10  ;;  %v20929_v6 = vpack.c.bf16 %v11441_v11, %v11440_v45 }
 0x7e8   :  { %14730 = vmatmul.mubr.f32.gmra.mrb[172].mxu0 %v20889_v23  ;;  %v6330_v23 = vrot.slane %v20073_v61, 1  ;;  %23638 = vst [vmem:[#allocation160_spill] sm:$0xff] %v20922_v28  ;;  %v20927_v47 = vmul.f32 %v23639_v0, %v6427_v48  ;;  %v6331_v10 = vrot.slane %v20079_v63, 1  ;;  %v23642_v48 = vld [vmem:[#allocation152_spill] sm:$0xff]  ;;  %v6334_v0 = vrot.slane %v20093_v31, 1 }
 0x7e9   :  { %14732 = vmatprep.mubr.f32.mxu0 %v20903_v5  ;;  %16052 = vmatpush3.bf16.msra.mxu0 %v16049_v19  ;;  %23637 = vst [vmem:[#allocation159_spill] sm:$0xff] %v20908_v17 }
 0x7ea   :  { %16054 = vmatprep.subr.bf16.mxu0 %v16053_v26  ;;  %23640 = vst [vmem:[#allocation162_spill] sm:$0xff] %v20927_v47 }
 0x7eb   :  { %v14511_v55 = vpop.f32.mrb[98].mxu0 }
 0x7ec   :  { %v6775_v19 = vpop.f32.mrb[99].mxu0  ;;  %14733 = vmatmul.mubr.f32.gmra.mrb[76].mxu0 %v20908_v17  ;;  %v6329_v55 = vrot.slane %v20068_v16, 1  ;;  %v6332_v17 = vrot.slane %v20083_v49, 1 }
 0x7ed   :  { %14735 = vmatprep.mubr.f32.mxu0 %v20922_v28  ;;  %16056 = vmatpush3.bf16.msra.mxu0 %v16053_v26  ;;  %v23688_v28 = vld [vmem:[#allocation9_spill] sm:$0xff] }
 0x7ee   :  { %16058 = vmatprep.subr.bf16.mxu0 %v16057_v8  ;;  %v6425_v19 = vsel %vm1793_vm4, %v6329_v55, %v6330_v23  ;;  %v20937_v7 = vsel %vm1793_vm4, %v6328_v12, %v6329_v55  ;;  %v6423_v11 = vsel %vm1793_vm4, %v6331_v10, %v6332_v17  ;;  %v20951_v12 = vsel %vm1793_vm4, %v6330_v23, %v6331_v10  ;;  %v23645_v55 = vld [vmem:[#allocation155_spill] sm:$0xff]  ;;  %v23648_v10 = vld [vmem:[#allocation158_spill] sm:$0xff] }
 0x7ef   :  { %23641 = vst [vmem:[#allocation163_spill] sm:$0xff] %v20937_v7  ;;  %v20942_v26 = vmul.f32 %v23642_v48, %v6425_v19  ;;  %23644 = vst [vmem:[#allocation166_spill] sm:$0xff] %v20951_v12  ;;  %v20956_v19 = vmul.f32 %v23645_v55, %v6423_v11  ;;  %v6335_v23 = vrot.slane %v20099_v52, 1  ;;  %v6362_v5 = vrot.slane %v23688_v28, 1  ;;  %v23698_v28 = vld [vmem:[#allocation13_spill] sm:$0xff] }
 0x7f0   :  { %14736 = vmatmul.mubr.f32.gmra.mrb[174].mxu0 %v20927_v47 }
 0x7f1   :  { %14738 = vmatprep.mubr.f32.mxu0 %v20937_v7  ;;  %16060 = vmatpush3.bf16.msra.mxu0 %v16057_v8  ;;  %23643 = vst [vmem:[#allocation165_spill] sm:$0xff] %v20942_v26  ;;  %v6333_v8 = vrot.slane %v20089_v20, 1  ;;  %23646 = vst [vmem:[#allocation168_spill] sm:$0xff] %v20956_v19 }
 0x7f2   :  { %16062 = vmatprep.subr.bf16.mxu0 %v20929_v6 }
 0x7f3   :  { %v14517_v45 = vpop.f32.mrb[102].mxu0  ;;  %v6421_v48 = vsel %vm1793_vm4, %v6333_v8, %v6334_v0 }
 0x7f4   :  { %v6795_v47 = vpop.f32.mrb[103].mxu0  ;;  %14739 = vmatmul.mubr.f32.gmra.mrb[80].mxu0 %v20942_v26  ;;  %v6336_v45 = vrot.slane %v20103_v51, 1  ;;  %v6338_v26 = vrot.slane %v20113_v35, 1 }
 0x7f5   :  { %14741 = vmatprep.mubr.f32.mxu0 %v20951_v12  ;;  %v20964_v47 = vsel %vm1793_vm4, %v6332_v17, %v6333_v8  ;;  %v20969_v12 = vmul.f32 %v23648_v10, %v6421_v48  ;;  %v20977_v17 = vsel %vm1793_vm4, %v6334_v0, %v6335_v23  ;;  %v6337_v8 = vrot.slane %v20109_v32, 1 }
 0x7f6   :  { %23647 = vst [vmem:[#allocation169_spill] sm:$0xff] %v20964_v47  ;;  %v6419_v55 = vsel %vm1793_vm4, %v6335_v23, %v6336_v45  ;;  %23650 = vst [vmem:[#allocation172_spill] sm:$0xff] %v20977_v17  ;;  %v6339_v0 = vrot.slane %v20119_v14, 1  ;;  %v23654_v23 = vld [vmem:[#allocation164_spill] sm:$0xff] }
 0x7f7   :  { %23649 = vst [vmem:[#allocation171_spill] sm:$0xff] %v20969_v12  ;;  %v6417_v10 = vsel %vm1793_vm4, %v6337_v8, %v6338_v26 }
 0x7f8   :  { %14742 = vmatmul.mubr.f32.gmra.mrb[176].mxu0 %v20956_v19 }
 0x7f9   :  { %14744 = vmatprep.mubr.f32.mxu0 %v20964_v47  ;;  %v23651_v47 = vld [vmem:[#allocation161_spill] sm:$0xff] }
 0x7fa   :  { %v20982_v48 = vmul.f32 %v23651_v47, %v6419_v55 }
 0x7fb   :  { %v14523_v11 = vpop.f32.mrb[106].mxu0 }
 0x7fc   :  { %v6815_v7 = vpop.f32.mrb[107].mxu0  ;;  %14745 = vmatmul.mubr.f32.gmra.mrb[84].mxu0 %v20969_v12  ;;  %23652 = vst [vmem:[#allocation174_spill] sm:$0xff] %v20982_v48  ;;  %v6340_v11 = vrot.slane %v20123_v43, 1  ;;  %v6342_v12 = vrot.slane %v20133_v58, 1 }
 0x7fd   :  { %14747 = vmatprep.mubr.f32.mxu0 %v20977_v17  ;;  %v20990_v7 = vsel %vm1793_vm4, %v6336_v45, %v6337_v8  ;;  %v20995_v17 = vmul.f32 %v23654_v23, %v6417_v10  ;;  %v21003_v45 = vsel %vm1793_vm4, %v6338_v26, %v6339_v0  ;;  %v6341_v8 = vrot.slane %v20129_v34, 1 }
 0x7fe   :  { %23653 = vst [vmem:[#allocation175_spill] sm:$0xff] %v20990_v7  ;;  %v6415_v55 = vsel %vm1793_vm4, %v6339_v0, %v6340_v11  ;;  %23656 = vst [vmem:[#allocation178_spill] sm:$0xff] %v21003_v45  ;;  %v6343_v26 = vrot.slane %v20139_v1, 1  ;;  %v23660_v0 = vld [vmem:[#allocation170_spill] sm:$0xff] }
 0x7ff   :  { %23655 = vst [vmem:[#allocation177_spill] sm:$0xff] %v20995_v17  ;;  %v6413_v23 = vsel %vm1793_vm4, %v6341_v8, %v6342_v12 }
 0x800   :  { %14748 = vmatmul.mubr.f32.gmra.mrb[178].mxu0 %v20982_v48 }
 0x801   :  { %14750 = vmatprep.mubr.f32.mxu0 %v20990_v7  ;;  %v23657_v7 = vld [vmem:[#allocation167_spill] sm:$0xff] }
 0x802   :  { %v21008_v10 = vmul.f32 %v23657_v7, %v6415_v55 }
 0x803   :  { %v14529_v47 = vpop.f32.mrb[110].mxu0 }
 0x804   :  { %v6835_v19 = vpop.f32.mrb[111].mxu0  ;;  %14751 = vmatmul.mubr.f32.gmra.mrb[180].mxu0 %v20995_v17  ;;  %23658 = vst [vmem:[#allocation180_spill] sm:$0xff] %v21008_v10  ;;  %v6344_v47 = vrot.slane %v20143_v30, 1  ;;  %v6346_v17 = vrot.slane %v20153_v36, 1 }
 0x805   :  { %14753 = vmatprep.mubr.f32.mxu0 %v21003_v45  ;;  %v21016_v19 = vsel %vm1793_vm4, %v6340_v11, %v6341_v8  ;;  %v21021_v45 = vmul.f32 %v23660_v0, %v6413_v23  ;;  %v21029_v11 = vsel %vm1793_vm4, %v6342_v12, %v6343_v26  ;;  %v6345_v8 = vrot.slane %v20149_v46, 1 }
 0x806   :  { %23659 = vst [vmem:[#allocation181_spill] sm:$0xff] %v21016_v19  ;;  %v6411_v55 = vsel %vm1793_vm4, %v6343_v26, %v6344_v47  ;;  %23662 = vst [vmem:[#allocation184_spill] sm:$0xff] %v21029_v11  ;;  %v6347_v12 = vrot.slane %v20159_v42, 1  ;;  %v23666_v26 = vld [vmem:[#allocation176_spill] sm:$0xff] }
 0x807   :  { %23661 = vst [vmem:[#allocation183_spill] sm:$0xff] %v21021_v45  ;;  %v6409_v0 = vsel %vm1793_vm4, %v6345_v8, %v6346_v17 }
 0x808   :  { %14754 = vmatmul.mubr.f32.gmra.mrb[182].mxu0 %v21008_v10 }
 0x809   :  { %14756 = vmatprep.mubr.f32.mxu0 %v21016_v19  ;;  %v23663_v19 = vld [vmem:[#allocation173_spill] sm:$0xff] }
 0x80a   :  { %v21034_v23 = vmul.f32 %v23663_v19, %v6411_v55 }
 0x80b   :  { %v14535_v7 = vpop.f32.mrb[114].mxu0 }
 0x80c   :  { %v6855_v48 = vpop.f32.mrb[115].mxu0  ;;  %14757 = vmatmul.mubr.f32.gmra.mrb[184].mxu0 %v21021_v45  ;;  %23664 = vst [vmem:[#allocation186_spill] sm:$0xff] %v21034_v23  ;;  %v6348_v7 = vrot.slane %v20163_v2, 1  ;;  %v6350_v45 = vrot.slane %v20173_v33, 1 }
 0x80d   :  { %14759 = vmatprep.mubr.f32.mxu0 %v21029_v11  ;;  %v21042_v48 = vsel %vm1793_vm4, %v6344_v47, %v6345_v8  ;;  %v21047_v11 = vmul.f32 %v23666_v26, %v6409_v0  ;;  %v21055_v47 = vsel %vm1793_vm4, %v6346_v17, %v6347_v12  ;;  %v6349_v8 = vrot.slane %v20169_v3, 1 }
 0x80e   :  { %23665 = vst [vmem:[#allocation187_spill] sm:$0xff] %v21042_v48  ;;  %v6407_v55 = vsel %vm1793_vm4, %v6347_v12, %v6348_v7  ;;  %23668 = vst [vmem:[#allocation190_spill] sm:$0xff] %v21055_v47  ;;  %v6351_v12 = vrot.slane %v20179_v13, 1 }
 0x80f   :  { %23667 = vst [vmem:[#allocation189_spill] sm:$0xff] %v21047_v11  ;;  %v21068_v17 = vsel %vm1793_vm4, %v6348_v7, %v6349_v8 }
 0x810   :  { %14760 = vmatmul.mubr.f32.gmra.mrb[186].mxu0 %v21034_v23  ;;  %v6352_v23 = vrot.slane %v20183_v4, 1  ;;  %23671 = vst [vmem:[#allocation193_spill] sm:$0xff] %v21068_v17  ;;  %v21081_v7 = vsel %vm1793_vm4, %v6350_v45, %v6351_v12 }
 0x811   :  { %14762 = vmatprep.mubr.f32.mxu0 %v21042_v48  ;;  %v23669_v48 = vld [vmem:[#allocation179_spill] sm:$0xff]  ;;  %23674 = vst [vmem:[#allocation196_spill] sm:$0xff] %v21081_v7 }
 0x812   :  { %v21060_v0 = vmul.f32 %v23669_v48, %v6407_v55 }
 0x813   :  { %v14541_v19 = vpop.f32.mrb[118].mxu0 }
 0x814   :  { %v6875_v10 = vpop.f32.mrb[119].mxu0  ;;  %14763 = vmatmul.mubr.f32.gmra.mrb[96].mxu0 %v21047_v11  ;;  %23670 = vst [vmem:[#allocation192_spill] sm:$0xff] %v21060_v0  ;;  %v6405_v19 = vsel %vm1793_vm4, %v6349_v8, %v6350_v45  ;;  %v6354_v11 = vrot.slane %v20193_v44, 1  ;;  %v6353_v8 = vrot.slane %v20189_v15, 1 }
 0x815   :  { %14765 = vmatprep.mubr.f32.mxu0 %v21055_v47  ;;  %v23672_v47 = vld [vmem:[#allocation182_spill] sm:$0xff] }
 0x816   :  { %v21073_v48 = vmul.f32 %v23672_v47, %v6405_v19  ;;  %v21094_v45 = vsel %vm1793_vm4, %v6352_v23, %v6353_v8 }
 0x817   :  { %v14544_v26 = vpop.f32.mrb[120].mxu0  ;;  %23677 = vst [vmem:[#allocation208_spill] sm:$0xff] %v21094_v45 }
 0x818   :  { %v6885_v10 = vpop.f32.mrb[121].mxu0  ;;  %14766 = vmatmul.mubr.f32.gmra.mrb[188].mxu0 %v21060_v0  ;;  %23673 = vst [vmem:[#allocation195_spill] sm:$0xff] %v21073_v48  ;;  %v6403_v26 = vsel %vm1793_vm4, %v6351_v12, %v6352_v23  ;;  %v6356_v0 = vrot.slane %v20203_v54, 1  ;;  %v6355_v12 = vrot.slane %v20199_v39, 1 }
 0x819   :  { %14768 = vmatprep.mubr.f32.mxu0 %v21068_v17  ;;  %v23675_v17 = vld [vmem:[#allocation185_spill] sm:$0xff] }
 0x81a   :  { %v21086_v47 = vmul.f32 %v23675_v17, %v6403_v26  ;;  %v21107_v23 = vsel %vm1793_vm4, %v6354_v11, %v6355_v12 }
 0x81b   :  { %v14547_v55 = vpop.f32.mrb[122].mxu0  ;;  %23680 = vst [vmem:[#allocation214_spill] sm:$0xff] %v21107_v23 }
 0x81c   :  { %v6895_v10 = vpop.f32.mrb[123].mxu0  ;;  %14769 = vmatmul.mubr.f32.gmra.mrb[100].mxu0 %v21073_v48  ;;  %23676 = vst [vmem:[#allocation201_spill] sm:$0xff] %v21086_v47  ;;  %v6401_v55 = vsel %vm1793_vm4, %v6353_v8, %v6354_v11  ;;  %v6358_v48 = vrot.slane %v20213_v62, 1  ;;  %v6357_v8 = vrot.slane %v20209_v50, 1  ;;  %v23685_v11 = vld [vmem:[#allocation8_spill] sm:$0xff] }
 0x81d   :  { %14771 = vmatprep.mubr.f32.mxu0 %v21081_v7  ;;  %v23678_v7 = vld [vmem:[#allocation188_spill] sm:$0xff] }
 0x81e   :  { %v21099_v17 = vmul.f32 %v23678_v7, %v6401_v55  ;;  %v6397_v55 = vsel %vm1793_vm4, %v6357_v8, %v6358_v48 }
 0x81f   :  { %v14550_v19 = vpop.f32.mrb[124].mxu0 }
 0x820   :  { %v6905_v10 = vpop.f32.mrb[125].mxu0  ;;  %14772 = vmatmul.mubr.f32.gmra.mrb[190].mxu0 %v21086_v47  ;;  %23679 = vst [vmem:[#allocation213_spill] sm:$0xff] %v21099_v17  ;;  %v6399_v19 = vsel %vm1793_vm4, %v6355_v12, %v6356_v0  ;;  %v6359_v12 = vrot.slane %v23685_v11, 1 }
 0x821   :  { %14774 = vmatprep.mubr.f32.mxu0 %v21094_v45  ;;  %v23681_v45 = vld [vmem:[#allocation191_spill] sm:$0xff] }
 0x822   :  { %v21112_v7 = vmul.f32 %v23681_v45, %v6399_v19 }
 0x823   :  { %v14553_v26 = vpop.f32.mrb[126].mxu0 }
 0x824   :  { %v6915_v10 = vpop.f32.mrb[127].mxu0  ;;  %14775 = vmatmul.mubr.f32.gmra.mrb[104].mxu0 %v21099_v17  ;;  %23682 = vst [vmem:[#allocation216_spill] sm:$0xff] %v21112_v7  ;;  %v23683_v26 = vld [vmem:[#allocation7_spill] sm:$0xff]  ;;  %v23686_v17 = vld [vmem:[#allocation194_spill] sm:$0xff] }
 0x825   :  { %14777 = vmatprep.mubr.f32.mxu0 %v21107_v23  ;;  %v6360_v47 = vrot.slane %v23683_v26, 1  ;;  %v21120_v10 = vsel %vm1793_vm4, %v6356_v0, %v6357_v8  ;;  %v21125_v23 = vmul.f32 %v23686_v17, %v6397_v55  ;;  %v21133_v0 = vsel %vm1793_vm4, %v6358_v48, %v6359_v12  ;;  %v23690_v8 = vld [vmem:[#allocation10_spill] sm:$0xff]  ;;  %v23695_v48 = vld [vmem:[#allocation31_spill] sm:$0xff] }
 0x826   :  { %23684 = vst [vmem:[#allocation219_spill] sm:$0xff] %v21120_v10  ;;  %23689 = vst [vmem:[#allocation222_spill] sm:$0xff] %v21133_v0 }
 0x827   :  { %23687 = vst [vmem:[#allocation221_spill] sm:$0xff] %v21125_v23  ;;  %v6395_v19 = vsel %vm1793_vm4, %v6359_v12, %v6360_v47  ;;  %v6363_v12 = vrot.slane %v23695_v48, 1 }
 0x828   :  { %14778 = vmatmul.mubr.f32.gmra.mrb[192].mxu0 %v21112_v7  ;;  %v6361_v7 = vrot.slane %v23690_v8, 1  ;;  %v6366_v8 = vrot.slane %v23698_v28, 1  ;;  %v6370_v28 = vrot.slane %v20275_v21, 1  ;;  %v23715_v21 = vld [vmem:[#allocation42_spill] sm:$0xff] }
 0x829   :  { %14780 = vmatprep.mubr.f32.mxu0 %v21120_v10  ;;  %v23691_v10 = vld [vmem:[#allocation197_spill] sm:$0xff] }
 0x82a   :  { %v21138_v17 = vmul.f32 %v23691_v10, %v6395_v19  ;;  %v6393_v55 = vsel %vm1793_vm4, %v6361_v7, %v6362_v5 }
 0x82b   :  { %v14591_v45 = vpop.f32.mrb[128].mxu0 }
 0x82c   :  { %v7000_v26 = vpop.f32.mrb[129].mxu0  ;;  %14781 = vmatmul.mubr.f32.gmra.mrb[108].mxu0 %v21125_v23  ;;  %23692 = vst [vmem:[#allocation129_spill] sm:$0xff] %v21138_v17  ;;  %v23693_v45 = vld [vmem:[#allocation11_spill] sm:$0xff]  ;;  %v23696_v23 = vld [vmem:[#allocation200_spill] sm:$0xff] }
 0x82d   :  { %14783 = vmatprep.mubr.f32.mxu0 %v21133_v0  ;;  %v6364_v11 = vrot.slane %v23693_v45, 1  ;;  %v21146_v26 = vsel %vm1793_vm4, %v6360_v47, %v6361_v7  ;;  %v21151_v0 = vmul.f32 %v23696_v23, %v6393_v55  ;;  %v21159_v47 = vsel %vm1793_vm4, %v6362_v5, %v6363_v12  ;;  %v23700_v7 = vld [vmem:[#allocation15_spill] sm:$0xff]  ;;  %v23704_v5 = vld [vmem:[#allocation16_spill] sm:$0xff] }
 0x82e   :  { %23694 = vst [vmem:[#allocation132_spill] sm:$0xff] %v21146_v26  ;;  %23699 = vst [vmem:[#allocation21_spill] sm:$0xff] %v21159_v47 }
 0x82f   :  { %23697 = vst [vmem:[#allocation133_spill] sm:$0xff] %v21151_v0  ;;  %v6391_v19 = vsel %vm1793_vm4, %v6363_v12, %v6364_v11  ;;  %v6367_v12 = vrot.slane %v23704_v5, 1 }
 0x830   :  { %14784 = vmatmul.mubr.f32.gmra.mrb[194].mxu0 %v21138_v17  ;;  %v6365_v17 = vrot.slane %v23700_v7, 1 }
 0x831   :  { %14786 = vmatprep.mubr.f32.mxu0 %v21146_v26  ;;  %v23701_v26 = vld [vmem:[#allocation203_spill] sm:$0xff] }
 0x832   :  { %v21164_v23 = vmul.f32 %v23701_v26, %v6391_v19  ;;  %v6389_v55 = vsel %vm1793_vm4, %v6365_v17, %v6366_v8 }
 0x833   :  { %v14597_v10 = vpop.f32.mrb[130].mxu0 }
 0x834   :  { %v7020_v45 = vpop.f32.mrb[131].mxu0  ;;  %14787 = vmatmul.mubr.f32.gmra.mrb[112].mxu0 %v21151_v0  ;;  %23702 = vst [vmem:[#allocation22_spill] sm:$0xff] %v21164_v23  ;;  %v6368_v10 = vrot.slane %v23589_v60, 1  ;;  %v23705_v0 = vld [vmem:[#allocation206_spill] sm:$0xff] }
 0x835   :  { %14789 = vmatprep.mubr.f32.mxu0 %v21159_v47  ;;  %v21172_v45 = vsel %vm1793_vm4, %v6364_v11, %v6365_v17  ;;  %v21177_v47 = vmul.f32 %v23705_v0, %v6389_v55  ;;  %v21185_v11 = vsel %vm1793_vm4, %v6366_v8, %v6367_v12  ;;  %v6369_v17 = vrot.slane %v23594_v18, 1  ;;  %v23712_v8 = vld [vmem:[#allocation18_spill] sm:$0xff] }
 0x836   :  { %23703 = vst [vmem:[#allocation23_spill] sm:$0xff] %v21172_v45  ;;  %v6387_v19 = vsel %vm1793_vm4, %v6367_v12, %v6368_v10  ;;  %23707 = vst [vmem:[#allocation29_spill] sm:$0xff] %v21185_v11  ;;  %v6371_v12 = vrot.slane %v23712_v8, 1  ;;  %v6374_v18 = vrot.slane %v23715_v21, 1  ;;  %v23723_v21 = vld [vmem:[#allocation130_spill] sm:$0xff] }
 0x837   :  { %23706 = vst [vmem:[#allocation27_spill] sm:$0xff] %v21177_v47  ;;  %v6385_v55 = vsel %vm1793_vm4, %v6369_v17, %v6370_v28 }
 0x838   :  { %14790 = vmatmul.mubr.f32.gmra.mrb[196].mxu0 %v21164_v23 }
 0x839   :  { %14792 = vmatprep.mubr.f32.mxu0 %v21172_v45  ;;  %v23708_v45 = vld [vmem:[#allocation209_spill] sm:$0xff] }
 0x83a   :  { %v21190_v0 = vmul.f32 %v23708_v45, %v6387_v19 }
 0x83b   :  { %v14603_v26 = vpop.f32.mrb[132].mxu0 }
 0x83c   :  { %v7040_v60 = vpop.f32.mrb[133].mxu0  ;;  %14793 = vmatmul.mubr.f32.gmra.mrb[116].mxu0 %v21177_v47  ;;  %23709 = vst [vmem:[#allocation154_spill] sm:$0xff] %v21190_v0  ;;  %v23710_v26 = vld [vmem:[#allocation20_spill] sm:$0xff] }
 0x83d   :  { %14795 = vmatprep.mubr.f32.mxu0 %v21185_v11  ;;  %v6372_v23 = vrot.slane %v23710_v26, 1  ;;  %v21198_v60 = vsel %vm1793_vm4, %v6368_v10, %v6369_v17  ;;  %v23713_v47 = vld [vmem:[#allocation212_spill] sm:$0xff]  ;;  %v21211_v10 = vsel %vm1793_vm4, %v6370_v28, %v6371_v12  ;;  %v23721_v28 = vld [vmem:[#allocation218_spill] sm:$0xff] }
 0x83e   :  { %23711 = vst [vmem:[#allocation6_spill] sm:$0xff] %v21198_v60  ;;  %v21203_v11 = vmul.f32 %v23713_v47, %v6385_v55  ;;  %23716 = vst [vmem:[#allocation198_spill] sm:$0xff] %v21211_v10  ;;  %v23717_v17 = vld [vmem:[#allocation40_spill] sm:$0xff] }
 0x83f   :  { %v6383_v19 = vsel %vm1793_vm4, %v6371_v12, %v6372_v23 }
 0x840   :  { %14796 = vmatmul.mubr.f32.gmra.mrb[198].mxu0 %v21190_v0  ;;  %23714 = vst [vmem:[#allocation199_spill] sm:$0xff] %v21203_v11  ;;  %v6373_v0 = vrot.slane %v23717_v17, 1 }
 0x841   :  { %14798 = vmatprep.mubr.f32.mxu0 %v21198_v60  ;;  %v23718_v60 = vld [vmem:[#allocation215_spill] sm:$0xff] }
 0x842   :  { %v21216_v47 = vmul.f32 %v23718_v60, %v6383_v19  ;;  %v6381_v55 = vsel %vm1793_vm4, %v6373_v0, %v6374_v18  ;;  %v23724_v60 = vrot.slane %v23723_v21, 1 }
 0x843   :  { %v14609_v45 = vpop.f32.mrb[134].mxu0  ;;  %v21228_v12 = vmul.f32 %v23721_v28, %v6381_v55  ;;  %v11443_v55 = vld [vmem:[%s22206_s5 + $0x198] sm:$0xff]  ;;  %v11445_v28 = vld [vmem:[%s22206_s5 + $0x1a8] sm:$0xff] }
 0x844   :  { %v7060_v26 = vpop.f32.mrb[135].mxu0  ;;  %14799 = vmatmul.mubr.f32.gmra.mrb[200].mxu0 %v21203_v11  ;;  %v23720_v45 = vld [vmem:[#allocation19_spill] sm:$0xff] }
 0x845   :  { %14801 = vmatprep.mubr.f32.mxu0 %v21211_v10  ;;  %v21223_v26 = vsel %vm1793_vm4, %v6372_v23, %v6373_v0  ;;  %v6375_v11 = vrot.slane %v23720_v45, 1  ;;  %23722 = vst [vmem:[#allocation205_spill] sm:$0xff] %v21228_v12  ;;  %v23726_v0 = vld [vmem:[#allocation220_spill] sm:$0xff] }
 0x846   :  { %23719 = vst [vmem:[#allocation202_spill] sm:$0xff] %v21223_v26 }
 0x847   :  { %v6379_v19 = vsel %vm1793_vm4, %v6375_v11, %v23724_v60  ;;  %v21237_v23 = vsel %vm1793_vm4, %v6374_v18, %v6375_v11  ;;  %v11444_v11 = vld [vmem:[%s22206_s5 + $0x1a0] sm:$0xff]  ;;  %vm17039_vm4 = vmmov 0  }
 0x848   :  { %14802 = vmatmul.mubr.f32.gmra.mrb[202].mxu0 %v21216_v47  ;;  %23725 = vst [vmem:[#allocation204_spill] sm:$0xff] %v21237_v23 }
 0x849   :  { %14804 = vmatprep.mubr.f32.mxu0 %v21223_v26  ;;  %v21241_v26 = vmul.f32 %v23726_v0, %v6379_v19  ;;  %v23728_v19 = vld [vmem:[#allocation30_spill] sm:$0xff]  ;;  %v16069_v0 = vpack.c.bf16 %v11445_v28, %v11444_v11 }
 0x84a   :  { %v11449_v11 = vld [vmem:[%s22206_s5 + $0x1c8] sm:$0xff] }
 0x84b   :  { %v14615_v10 = vpop.f32.mrb[136].mxu0 }
 0x84c   :  { %v7080_v17 = vpop.f32.mrb[137].mxu0  ;;  %14805 = vmatmul.mubr.f32.gmra.mrb[204].mxu0 %v21228_v12  ;;  %v11442_v10 = vld [vmem:[%s22206_s5 + $0x190] sm:$0xff] }
 0x84d   :  { %14807 = vmatprep.mubr.f32.mxu0 %v21237_v23  ;;  %v23727_v17 = vld [vmem:[#allocation26_spill] sm:$0xff]  ;;  %v16065_v9 = vpack.c.bf16 %v11443_v55, %v11442_v10  ;;  %v11446_v10 = vld [vmem:[%s22206_s5 + $0x1b0] sm:$0xff]  ;;  %v11447_v55 = vld [vmem:[%s22206_s5 + $0x1b8] sm:$0xff] }
 0x850   :  { %14808 = vmatmul.mubr.f32.gmra.mrb[206].mxu0 %v21241_v26 }
 0x851   :  { %14842 = vmatprep.mubr.f32.mxu0 %v23727_v17 }
 0x853   :  { %v14621_v18 = vpop.f32.mrb[138].mxu0 }
 0x854   :  { %v7100_v60 = vpop.f32.mrb[139].mxu0  ;;  %14843 = vmatmul.mubr.f32.vlgmr.msra.gmra.mrb[208].mxu0 %v19960_v25 }
 0x855   :  { %16064 = vmatpush3.bf16.msra.mxu0 %v20929_v6  ;;  %14845 = vmatprep.mubr.f32.mxu0 %v23728_v19  ;;  %v16073_v6 = vpack.c.bf16 %v11447_v55, %v11446_v10  ;;  %v11450_v10 = vld [vmem:[%s22206_s5 + $0x1d0] sm:$0xff]  ;;  %v11451_v55 = vld [vmem:[%s22206_s5 + $0x1d8] sm:$0xff] }
 0x856   :  { %16066 = vmatprep.subr.bf16.mxu0 %v16065_v9 }
 0x857   :  { %v14624_v17 = vpop.f32.mrb[140].mxu0 }
 0x858   :  { %v7110_v18 = vpop.f32.mrb[141].mxu0  ;;  %14846 = vmatmul.mubr.f32.gmra.mrb[210].mxu0 %v19976_v24  ;;  %v11448_v17 = vld [vmem:[%s22206_s5 + $0x1c0] sm:$0xff] }
 0x859   :  { %14848 = vmatprep.mubr.f32.mxu0 %v19980_v41  ;;  %16068 = vmatpush3.bf16.msra.mxu0 %v16065_v9  ;;  %v16077_v18 = vpack.c.bf16 %v11449_v11, %v11448_v17  ;;  %v11452_v17 = vld [vmem:[%s22206_s5 + $0x1e0] sm:$0xff]  ;;  %v11453_v11 = vld [vmem:[%s22206_s5 + $0x1e8] sm:$0xff] }
 0x85a   :  { %16070 = vmatprep.subr.bf16.mxu0 %v16069_v0 }
 0x85b   :  { %v14627_v60 = vpop.f32.mrb[142].mxu0 }
 0x85c   :  { %v7120_v28 = vpop.f32.mrb[143].mxu0  ;;  %14849 = vmatmul.mubr.f32.gmra.mrb[68].mxu0 %v19992_v53 }
 0x85d   :  { %14851 = vmatprep.mubr.f32.mxu0 %v19996_v29  ;;  %16072 = vmatpush3.bf16.msra.mxu0 %v16069_v0  ;;  %v16081_v28 = vpack.c.bf16 %v11451_v55, %v11450_v10  ;;  %v11455_v10 = vld [vmem:[%s22206_s5 + $0x1f8] sm:$0xff] }
 0x85e   :  { %16074 = vmatprep.subr.bf16.mxu0 %v16073_v6 }
 0x85f   :  { %v14630_v9 = vpop.f32.mrb[144].mxu0 }
 0x860   :  { %v7130_v60 = vpop.f32.mrb[145].mxu0  ;;  %14852 = vmatmul.mubr.f32.gmra.mrb[212].mxu0 %v20008_v37 }
 0x861   :  { %14854 = vmatprep.mubr.f32.mxu0 %v20012_v40  ;;  %16076 = vmatpush3.bf16.msra.mxu0 %v16073_v6  ;;  %v16085_v60 = vpack.c.bf16 %v11453_v11, %v11452_v17  ;;  %v11454_v6 = vld [vmem:[%s22206_s5 + $0x1f0] sm:$0xff]  ;;  %v11473_v17 = vld [vmem:[%s22206_s5 + $0x288] sm:$0xff] }
 0x862   :  { %16078 = vmatprep.subr.bf16.mxu0 %v16077_v18  ;;  %v16089_v55 = vpack.c.bf16 %v11455_v10, %v11454_v6 }
 0x863   :  { %v14633_v0 = vpop.f32.mrb[146].mxu0 }
 0x864   :  { %v7140_v9 = vpop.f32.mrb[147].mxu0  ;;  %14855 = vmatmul.mubr.f32.gmra.mrb[72].mxu0 %v20024_v27 }
 0x865   :  { %14857 = vmatprep.mubr.f32.mxu0 %v20028_v22  ;;  %16080 = vmatpush3.bf16.msra.mxu0 %v16077_v18  ;;  %v11472_v18 = vld [vmem:[%s22206_s5 + $0x280] sm:$0xff] }
 0x866   :  { %16082 = vmatprep.subr.bf16.mxu0 %v16081_v28  ;;  %v21308_v9 = vpack.c.bf16 %v11473_v17, %v11472_v18 }
 0x868   :  { %14858 = vmatmul.mubr.f32.gmra.mrb[214].mxu0 %v20040_v57 }
 0x869   :  { %14860 = vmatprep.mubr.f32.mxu0 %v20044_v38  ;;  %16084 = vmatpush3.bf16.msra.mxu0 %v16081_v28 }
 0x86a   :  { %16086 = vmatprep.subr.bf16.mxu0 %v16085_v60 }
 0x86b   :  { %v14639_v0 = vpop.f32.mrb[148].mxu0 }
 0x86c   :  { %v7160_v11 = vpop.f32.mrb[149].mxu0  ;;  %14861 = vmatmul.mubr.f32.gmra.mrb[76].mxu0 %v20056_v59 }
 0x86d   :  { %14863 = vmatprep.mubr.f32.mxu0 %v20062_v56  ;;  %16088 = vmatpush3.bf16.msra.mxu0 %v16085_v60 }
 0x86e   :  { %16090 = vmatprep.subr.bf16.mxu0 %v16089_v55 }
 0x870   :  { %14864 = vmatmul.mubr.f32.gmra.mrb[216].mxu0 %v20068_v16 }
 0x871   :  { %14866 = vmatprep.mubr.f32.mxu0 %v20073_v61  ;;  %16092 = vmatpush3.bf16.msra.mxu0 %v16089_v55 }
 0x872   :  { %16094 = vmatprep.subr.bf16.mxu0 %v21308_v9 }
 0x873   :  { %v14645_v28 = vpop.f32.mrb[150].mxu0 }
 0x874   :  { %v7180_v6 = vpop.f32.mrb[151].mxu0  ;;  %14867 = vmatmul.mubr.f32.gmra.mrb[80].mxu0 %v20079_v63 }
 0x875   :  { %14869 = vmatprep.mubr.f32.mxu0 %v20083_v49 }
 0x878   :  { %14870 = vmatmul.mubr.f32.gmra.mrb[218].mxu0 %v20089_v20 }
 0x879   :  { %14872 = vmatprep.mubr.f32.mxu0 %v20093_v31 }
 0x87b   :  { %v14651_v60 = vpop.f32.mrb[152].mxu0 }
 0x87c   :  { %v7200_v10 = vpop.f32.mrb[153].mxu0  ;;  %14873 = vmatmul.mubr.f32.gmra.mrb[84].mxu0 %v20099_v52 }
 0x87d   :  { %14875 = vmatprep.mubr.f32.mxu0 %v20103_v51 }
 0x880   :  { %14876 = vmatmul.mubr.f32.gmra.mrb[220].mxu0 %v20109_v32 }
 0x881   :  { %14878 = vmatprep.mubr.f32.mxu0 %v20113_v35 }
 0x883   :  { %v14657_v55 = vpop.f32.mrb[154].mxu0 }
 0x884   :  { %v7220_v0 = vpop.f32.mrb[155].mxu0  ;;  %14879 = vmatmul.mubr.f32.gmra.mrb[222].mxu0 %v20119_v14 }
 0x885   :  { %14881 = vmatprep.mubr.f32.mxu0 %v20123_v43 }
 0x888   :  { %14882 = vmatmul.mubr.f32.gmra.mrb[224].mxu0 %v20129_v34 }
 0x889   :  { %14884 = vmatprep.mubr.f32.mxu0 %v20133_v58 }
 0x88b   :  { %v14663_v18 = vpop.f32.mrb[156].mxu0 }
 0x88c   :  { %v7240_v17 = vpop.f32.mrb[157].mxu0  ;;  %14885 = vmatmul.mubr.f32.gmra.mrb[226].mxu0 %v20139_v1 }
 0x88d   :  { %14887 = vmatprep.mubr.f32.mxu0 %v20143_v30 }
 0x890   :  { %14888 = vmatmul.mubr.f32.gmra.mrb[228].mxu0 %v20149_v46 }
 0x891   :  { %14890 = vmatprep.mubr.f32.mxu0 %v20153_v36 }
 0x893   :  { %v14669_v11 = vpop.f32.mrb[158].mxu0 }
 0x894   :  { %v7260_v28 = vpop.f32.mrb[159].mxu0  ;;  %14891 = vmatmul.mubr.f32.gmra.mrb[230].mxu0 %v20159_v42 }
 0x895   :  { %14893 = vmatprep.mubr.f32.mxu0 %v20163_v2 }
 0x897   :  { %v14672_v6 = vpop.f32.mrb[160].mxu0 }
 0x898   :  { %v7270_v60 = vpop.f32.mrb[161].mxu0  ;;  %14894 = vmatmul.mubr.f32.gmra.mrb[232].mxu0 %v20169_v3 }
 0x899   :  { %14896 = vmatprep.mubr.f32.mxu0 %v20173_v33 }
 0x89b   :  { %v14675_v10 = vpop.f32.mrb[162].mxu0 }
 0x89c   :  { %v7280_v55 = vpop.f32.mrb[163].mxu0  ;;  %14897 = vmatmul.mubr.f32.gmra.mrb[100].mxu0 %v20179_v13 }
 0x89d   :  { %14899 = vmatprep.mubr.f32.mxu0 %v20183_v4  ;;  %v23731_v55 = vld [vmem:[#allocation8_spill] sm:$0xff] }
 0x89f   :  { %v14678_v0 = vpop.f32.mrb[164].mxu0 }
 0x8a0   :  { %v7290_v18 = vpop.f32.mrb[165].mxu0  ;;  %14900 = vmatmul.mubr.f32.gmra.mrb[234].mxu0 %v20189_v15  ;;  %v23732_v0 = vld [vmem:[#allocation7_spill] sm:$0xff] }
 0x8a1   :  { %14902 = vmatprep.mubr.f32.mxu0 %v20193_v44  ;;  %v23733_v18 = vld [vmem:[#allocation10_spill] sm:$0xff] }
 0x8a3   :  { %v14681_v17 = vpop.f32.mrb[166].mxu0 }
 0x8a4   :  { %v7300_v11 = vpop.f32.mrb[167].mxu0  ;;  %14903 = vmatmul.mubr.f32.gmra.mrb[104].mxu0 %v20199_v39  ;;  %v23734_v17 = vld [vmem:[#allocation9_spill] sm:$0xff] }
 0x8a5   :  { %14905 = vmatprep.mubr.f32.mxu0 %v20203_v54 }
 0x8a7   :  { %v21339_v28 = vpop.f32.mrb[64].mxu0 }
 0x8a8   :  { %23729 = vst [vmem:[#allocation211_spill] sm:$0xff] %v21339_v28  ;;  %v21341_v6 = vpop.f32.mrb[65].mxu0  ;;  %14906 = vmatmul.mubr.f32.gmra.mrb[236].mxu0 %v20209_v50  ;;  %v23735_v28 = vld [vmem:[#allocation11_spill] sm:$0xff] }
 0x8a9   :  { %23730 = vst [vmem:[#allocation210_spill] sm:$0xff] %v21341_v6  ;;  %14908 = vmatprep.mubr.f32.mxu0 %v20213_v62  ;;  %v23736_v6 = vld [vmem:[#allocation13_spill] sm:$0xff] }
 0x8ab   :  { %v14719_v60 = vpop.f32.mrb[168].mxu0 }
 0x8ac   :  { %v7402_v10 = vpop.f32.mrb[169].mxu0  ;;  %14909 = vmatmul.mubr.f32.gmra.mrb[108].mxu0 %v23731_v55  ;;  %v23737_v55 = vld [vmem:[#allocation32_spill] sm:$0xff] }
 0x8ad   :  { %14911 = vmatprep.mubr.f32.mxu0 %v23732_v0  ;;  %v23738_v0 = vld [vmem:[#allocation14_spill] sm:$0xff] }
 0x8b0   :  { %14912 = vmatmul.mubr.f32.gmra.mrb[238].mxu0 %v23733_v18  ;;  %v23739_v18 = vld [vmem:[#allocation17_spill] sm:$0xff] }
 0x8b1   :  { %14914 = vmatprep.mubr.f32.mxu0 %v23734_v17 }
 0x8b3   :  { %v14725_v11 = vpop.f32.mrb[170].mxu0 }
 0x8b4   :  { %v7422_v25 = vpop.f32.mrb[171].mxu0  ;;  %14915 = vmatmul.mubr.f32.gmra.mrb[112].mxu0 %v23695_v48  ;;  %v23740_v48 = vld [vmem:[#allocation20_spill] sm:$0xff] }
 0x8b5   :  { %14917 = vmatprep.mubr.f32.mxu0 %v23735_v28  ;;  %v23741_v28 = vld [vmem:[#allocation40_spill] sm:$0xff] }
 0x8b8   :  { %14918 = vmatmul.mubr.f32.gmra.mrb[240].mxu0 %v23700_v7  ;;  %v23742_v7 = vld [vmem:[#allocation42_spill] sm:$0xff] }
 0x8b9   :  { %14920 = vmatprep.mubr.f32.mxu0 %v23736_v6 }
 0x8bb   :  { %v14731_v60 = vpop.f32.mrb[172].mxu0 }
 0x8bc   :  { %v7442_v10 = vpop.f32.mrb[173].mxu0  ;;  %14921 = vmatmul.mubr.f32.gmra.mrb[116].mxu0 %v23704_v5  ;;  %v23781_v5 = vld [vmem:[#allocation25_spill] sm:$0xff] }
 0x8bd   :  { %14923 = vmatprep.mubr.f32.mxu0 %v23737_v55  ;;  %v23771_v55 = vld [vmem:[#allocation84_spill] sm:$0xff] }
 0x8c0   :  { %14924 = vmatmul.mubr.f32.gmra.mrb[242].mxu0 %v23738_v0  ;;  %v23747_v0 = vld [vmem:[#allocation51_spill] sm:$0xff] }
 0x8c1   :  { %14926 = vmatprep.mubr.f32.mxu0 %v23739_v18  ;;  %v11474_v18 = vld [vmem:[%s22206_s5 + $0x290] sm:$0xff] }
 0x8c3   :  { %v14737_v11 = vpop.f32.mrb[174].mxu0 }
 0x8c4   :  { %v7462_v25 = vpop.f32.mrb[175].mxu0  ;;  %14927 = vmatmul.mubr.f32.gmra.mrb[244].mxu0 %v23712_v8  ;;  %v11475_v11 = vld [vmem:[%s22206_s5 + $0x298] sm:$0xff] }
 0x8c5   :  { %14929 = vmatprep.mubr.f32.mxu0 %v23740_v48  ;;  %v23743_v25 = vld [vmem:[#allocation24_spill] sm:$0xff]  ;;  %v23744_v48 = vld [vmem:[#allocation46_spill] sm:$0xff]  ;;  %v23746_v8 = vld [vmem:[#allocation49_spill] sm:$0xff] }
 0x8c8   :  { %14930 = vmatmul.mubr.f32.gmra.mrb[246].mxu0 %v23741_v28  ;;  %v16097_v28 = vpack.c.bf16 %v11475_v11, %v11474_v18  ;;  %v11479_v18 = vld [vmem:[%s22206_s5 + $0x2b8] sm:$0xff] }
 0x8c9   :  { %14932 = vmatprep.mubr.f32.mxu0 %v23742_v7 }
 0x8cb   :  { %v14743_v60 = vpop.f32.mrb[176].mxu0 }
 0x8cc   :  { %v7482_v10 = vpop.f32.mrb[177].mxu0  ;;  %14933 = vmatmul.mubr.f32.gmra.mrb[248].mxu0 %v23720_v45  ;;  %v11476_v60 = vld [vmem:[%s22206_s5 + $0x2a0] sm:$0xff]  ;;  %v23745_v45 = vld [vmem:[#allocation48_spill] sm:$0xff] }
 0x8cd   :  { %14935 = vmatprep.mubr.f32.mxu0 %v23723_v21  ;;  %v11477_v10 = vld [vmem:[%s22206_s5 + $0x2a8] sm:$0xff] }
 0x8d0   :  { %14936 = vmatmul.mubr.f32.gmra.mrb[250].mxu0 %v23743_v25  ;;  %v16101_v25 = vpack.c.bf16 %v11477_v10, %v11476_v60  ;;  %v11481_v60 = vld [vmem:[%s22206_s5 + $0x2c8] sm:$0xff] }
 0x8d1   :  { %14970 = vmatprep.mubr.f32.mxu0 %v23744_v48 }
 0x8d3   :  { %v14749_v7 = vpop.f32.mrb[178].mxu0 }
 0x8d4   :  { %v7502_v21 = vpop.f32.mrb[179].mxu0  ;;  %14971 = vmatmul.mubr.f32.vlgmr.msra.gmra.mrb[208].mxu0 %v23745_v45  ;;  %v11478_v7 = vld [vmem:[%s22206_s5 + $0x2b0] sm:$0xff] }
 0x8d5   :  { %16096 = vmatpush3.bf16.msra.mxu0 %v21308_v9  ;;  %14973 = vmatprep.mubr.f32.mxu0 %v23746_v8  ;;  %v23748_v21 = vld [vmem:[#allocation52_spill] sm:$0xff]  ;;  %v16105_v9 = vpack.c.bf16 %v11479_v18, %v11478_v7  ;;  %v23749_v8 = vld [vmem:[#allocation54_spill] sm:$0xff] }
 0x8d6   :  { %16098 = vmatprep.subr.bf16.mxu0 %v16097_v28  ;;  %v11483_v7 = vld [vmem:[%s22206_s5 + $0x2d8] sm:$0xff] }
 0x8d7   :  { %v14752_v48 = vpop.f32.mrb[180].mxu0 }
 0x8d8   :  { %v7512_v11 = vpop.f32.mrb[181].mxu0  ;;  %14974 = vmatmul.mubr.f32.gmra.mrb[252].mxu0 %v23747_v0  ;;  %v11480_v48 = vld [vmem:[%s22206_s5 + $0x2c0] sm:$0xff] }
 0x8d9   :  { %14976 = vmatprep.mubr.f32.mxu0 %v23748_v21  ;;  %16100 = vmatpush3.bf16.msra.mxu0 %v16097_v28  ;;  %v23750_v11 = vld [vmem:[#allocation55_spill] sm:$0xff]  ;;  %v16109_v21 = vpack.c.bf16 %v11481_v60, %v11480_v48  ;;  %v23751_v0 = vld [vmem:[#allocation57_spill] sm:$0xff] }
 0x8da   :  { %16102 = vmatprep.subr.bf16.mxu0 %v16101_v25  ;;  %v11484_v48 = vld [vmem:[%s22206_s5 + $0x2e0] sm:$0xff]  ;;  %v11485_v60 = vld [vmem:[%s22206_s5 + $0x2e8] sm:$0xff] }
 0x8db   :  { %v14755_v45 = vpop.f32.mrb[182].mxu0 }
 0x8dc   :  { %v7522_v10 = vpop.f32.mrb[183].mxu0  ;;  %14977 = vmatmul.mubr.f32.gmra.mrb[68].mxu0 %v23749_v8  ;;  %v11482_v45 = vld [vmem:[%s22206_s5 + $0x2d0] sm:$0xff] }
 0x8dd   :  { %14979 = vmatprep.mubr.f32.mxu0 %v23750_v11  ;;  %16104 = vmatpush3.bf16.msra.mxu0 %v16101_v25  ;;  %v23752_v10 = vld [vmem:[#allocation58_spill] sm:$0xff]  ;;  %v16113_v11 = vpack.c.bf16 %v11483_v7, %v11482_v45  ;;  %v23753_v8 = vld [vmem:[#allocation60_spill] sm:$0xff] }
 0x8de   :  { %16106 = vmatprep.subr.bf16.mxu0 %v16105_v9  ;;  %v11486_v45 = vld [vmem:[%s22206_s5 + $0x2f0] sm:$0xff]  ;;  %v11487_v7 = vld [vmem:[%s22206_s5 + $0x2f8] sm:$0xff] }
 0x8df   :  { %v14758_v28 = vpop.f32.mrb[184].mxu0 }
 0x8e0   :  { %v7532_v18 = vpop.f32.mrb[185].mxu0  ;;  %14980 = vmatmul.mubr.f32.gmra.mrb[254].mxu0 %v23751_v0  ;;  %v23759_v0 = vld [vmem:[#allocation66_spill] sm:$0xff] }
 0x8e1   :  { %14982 = vmatprep.mubr.f32.mxu0 %v23752_v10  ;;  %16108 = vmatpush3.bf16.msra.mxu0 %v16105_v9  ;;  %v23754_v18 = vld [vmem:[#allocation61_spill] sm:$0xff]  ;;  %v16117_v10 = vpack.c.bf16 %v11485_v60, %v11484_v48 }
 0x8e2   :  { %16110 = vmatprep.subr.bf16.mxu0 %v16109_v21  ;;  %v11504_v60 = vld [vmem:[%s22206_s5 + $0x380] sm:$0xff] }
 0x8e3   :  { %v14761_v25 = vpop.f32.mrb[186].mxu0 }
 0x8e4   :  { %v7542_v28 = vpop.f32.mrb[187].mxu0  ;;  %14983 = vmatmul.mubr.f32.gmra.mrb[72].mxu0 %v23753_v8  ;;  %v23758_v8 = vld [vmem:[#allocation64_spill] sm:$0xff] }
 0x8e5   :  { %14985 = vmatprep.mubr.f32.mxu0 %v23754_v18  ;;  %16112 = vmatpush3.bf16.msra.mxu0 %v16109_v21  ;;  %v23757_v28 = vld [vmem:[#allocation63_spill] sm:$0xff]  ;;  %v16121_v21 = vpack.c.bf16 %v11487_v7, %v11486_v45  ;;  %v23762_v45 = vld [vmem:[#allocation70_spill] sm:$0xff] }
 0x8e6   :  { %16114 = vmatprep.subr.bf16.mxu0 %v16113_v11 }
 0x8e7   :  { %v21412_v9 = vpop.f32.mrb[96].mxu0 }
 0x8e8   :  { %23755 = vst [vmem:[#allocation207_spill] sm:$0xff] %v21412_v9  ;;  %v21420_v25 = vpop.f32.mrb[97].mxu0  ;;  %14986 = vmatmul.mubr.f32.gmra.mrb[0].mxu0 %v23757_v28  ;;  %v11505_v9 = vld [vmem:[%s22206_s5 + $0x388] sm:$0xff]  ;;  %v23763_v28 = vld [vmem:[#allocation72_spill] sm:$0xff] }
 0x8e9   :  { %23756 = vst [vmem:[#allocation217_spill] sm:$0xff] %v21420_v25  ;;  %14988 = vmatprep.mubr.f32.mxu0 %v23758_v8  ;;  %16116 = vmatpush3.bf16.msra.mxu0 %v16113_v11  ;;  %v23760_v25 = vld [vmem:[#allocation67_spill] sm:$0xff]  ;;  %v21432_v8 = vpack.c.bf16 %v11505_v9, %v11504_v60  ;;  %v23761_v11 = vld [vmem:[#allocation69_spill] sm:$0xff]  ;;  %v23767_v60 = vld [vmem:[#allocation78_spill] sm:$0xff] }
 0x8ea   :  { %16118 = vmatprep.subr.bf16.mxu0 %v16117_v10 }
 0x8eb   :  { %v14767_v48 = vpop.f32.mrb[188].mxu0 }
 0x8ec   :  { %v7562_v18 = vpop.f32.mrb[189].mxu0  ;;  %14989 = vmatmul.mubr.f32.gmra.mrb[76].mxu0 %v23759_v0  ;;  %v23765_v0 = vld [vmem:[#allocation75_spill] sm:$0xff] }
 0x8ed   :  { %14991 = vmatprep.mubr.f32.mxu0 %v23760_v25  ;;  %16120 = vmatpush3.bf16.msra.mxu0 %v16117_v10  ;;  %v23764_v18 = vld [vmem:[#allocation73_spill] sm:$0xff]  ;;  %v23766_v25 = vld [vmem:[#allocation76_spill] sm:$0xff] }
 0x8ee   :  { %16122 = vmatprep.subr.bf16.mxu0 %v16121_v21 }
 0x8f0   :  { %14992 = vmatmul.mubr.f32.gmra.mrb[2].mxu0 %v23761_v11  ;;  %v23768_v11 = vld [vmem:[#allocation79_spill] sm:$0xff] }
 0x8f1   :  { %14994 = vmatprep.mubr.f32.mxu0 %v23762_v45  ;;  %16124 = vmatpush3.bf16.msra.mxu0 %v16121_v21  ;;  %v23769_v45 = vld [vmem:[#allocation81_spill] sm:$0xff]  ;;  %v23770_v21 = vld [vmem:[#allocation82_spill] sm:$0xff] }
 0x8f2   :  { %16126 = vmatprep.subr.bf16.mxu0 %v21432_v8 }
 0x8f3   :  { %v14773_v7 = vpop.f32.mrb[190].mxu0 }
 0x8f4   :  { %v7582_v48 = vpop.f32.mrb[191].mxu0  ;;  %14995 = vmatmul.mubr.f32.gmra.mrb[80].mxu0 %v23763_v28  ;;  %v23772_v28 = vld [vmem:[#allocation85_spill] sm:$0xff] }
 0x8f5   :  { %14997 = vmatprep.mubr.f32.mxu0 %v23764_v18  ;;  %v23773_v18 = vld [vmem:[#allocation87_spill] sm:$0xff] }
 0x8f8   :  { %14998 = vmatmul.mubr.f32.gmra.mrb[4].mxu0 %v23765_v0  ;;  %v23774_v0 = vld [vmem:[#allocation88_spill] sm:$0xff] }
 0x8f9   :  { %15000 = vmatprep.mubr.f32.mxu0 %v23766_v25  ;;  %v23775_v25 = vld [vmem:[#allocation90_spill] sm:$0xff] }
 0x8fb   :  { %v14779_v10 = vpop.f32.mrb[192].mxu0 }
 0x8fc   :  { %v7602_v9 = vpop.f32.mrb[193].mxu0  ;;  %15001 = vmatmul.mubr.f32.gmra.mrb[84].mxu0 %v23767_v60  ;;  %v23776_v60 = vld [vmem:[#allocation91_spill] sm:$0xff] }
 0x8fd   :  { %15003 = vmatprep.mubr.f32.mxu0 %v23768_v11  ;;  %v23777_v11 = vld [vmem:[#allocation93_spill] sm:$0xff] }
 0x900   :  { %15004 = vmatmul.mubr.f32.gmra.mrb[6].mxu0 %v23769_v45  ;;  %v23778_v45 = vld [vmem:[#allocation94_spill] sm:$0xff] }
 0x901   :  { %15006 = vmatprep.mubr.f32.mxu0 %v23770_v21  ;;  %v23779_v21 = vld [vmem:[#allocation96_spill] sm:$0xff] }
 0x903   :  { %v14785_v7 = vpop.f32.mrb[194].mxu0 }
 0x904   :  { %v7622_v48 = vpop.f32.mrb[195].mxu0  ;;  %15007 = vmatmul.mubr.f32.gmra.mrb[8].mxu0 %v23771_v55  ;;  %v23780_v55 = vld [vmem:[#allocation97_spill] sm:$0xff] }
 0x905   :  { %15009 = vmatprep.mubr.f32.mxu0 %v23772_v28 }
 0x908   :  { %15010 = vmatmul.mubr.f32.gmra.mrb[10].mxu0 %v23773_v18 }
 0x909   :  { %15012 = vmatprep.mubr.f32.mxu0 %v23774_v0  ;;  %v23783_v0 = vld [vmem:[#allocation101_spill] sm:$0xff] }
 0x90b   :  { %v14791_v10 = vpop.f32.mrb[196].mxu0 }
 0x90c   :  { %v7642_v9 = vpop.f32.mrb[197].mxu0  ;;  %15013 = vmatmul.mubr.f32.gmra.mrb[12].mxu0 %v23775_v25  ;;  %v23782_v10 = vld [vmem:[#allocation99_spill] sm:$0xff] }
 0x90d   :  { %15015 = vmatprep.mubr.f32.mxu0 %v23776_v60  ;;  %v23784_v60 = vld [vmem:[#allocation102_spill] sm:$0xff] }
 0x910   :  { %15016 = vmatmul.mubr.f32.gmra.mrb[14].mxu0 %v23777_v11 }
 0x911   :  { %15018 = vmatprep.mubr.f32.mxu0 %v23778_v45 }
 0x913   :  { %v14797_v7 = vpop.f32.mrb[198].mxu0 }
 0x914   :  { %v7662_v48 = vpop.f32.mrb[199].mxu0  ;;  %15019 = vmatmul.mubr.f32.gmra.mrb[230].mxu0 %v23779_v21  ;;  %v23785_v7 = vld [vmem:[#allocation104_spill] sm:$0xff] }
 0x915   :  { %15021 = vmatprep.mubr.f32.mxu0 %v23780_v55  ;;  %v23786_v48 = vld [vmem:[#allocation105_spill] sm:$0xff] }
 0x917   :  { %v14800_v28 = vpop.f32.mrb[200].mxu0 }
 0x918   :  { %v7672_v18 = vpop.f32.mrb[201].mxu0  ;;  %15022 = vmatmul.mubr.f32.gmra.mrb[16].mxu0 %v23781_v5  ;;  %v23787_v28 = vld [vmem:[#allocation107_spill] sm:$0xff]  ;;  %v23789_v5 = vld [vmem:[#allocation110_spill] sm:$0xff] }
 0x919   :  { %15024 = vmatprep.mubr.f32.mxu0 %v23782_v10  ;;  %v23788_v18 = vld [vmem:[#allocation108_spill] sm:$0xff]  ;;  %v23791_v10 = vld [vmem:[#allocation113_spill] sm:$0xff] }
 0x91b   :  { %v14803_v9 = vpop.f32.mrb[202].mxu0 }
 0x91c   :  { %v7682_v25 = vpop.f32.mrb[203].mxu0  ;;  %15025 = vmatmul.mubr.f32.gmra.mrb[100].mxu0 %v23783_v0  ;;  %v23790_v9 = vld [vmem:[#allocation111_spill] sm:$0xff] }
 0x91d   :  { %15027 = vmatprep.mubr.f32.mxu0 %v23784_v60  ;;  %v23845_v60 = vld [vmem:[#allocation195_spill] sm:$0xff] }
 0x91f   :  { %v14806_v11 = vpop.f32.mrb[204].mxu0 }
 0x920   :  { %v7692_v45 = vpop.f32.mrb[205].mxu0  ;;  %15028 = vmatmul.mubr.f32.gmra.mrb[18].mxu0 %v23785_v7  ;;  %v23792_v11 = vld [vmem:[#allocation114_spill] sm:$0xff]  ;;  %v23794_v7 = vld [vmem:[#allocation117_spill] sm:$0xff] }
 0x921   :  { %15030 = vmatprep.mubr.f32.mxu0 %v23786_v48  ;;  %v23793_v45 = vld [vmem:[#allocation116_spill] sm:$0xff]  ;;  %v23795_v48 = vld [vmem:[#allocation119_spill] sm:$0xff] }
 0x923   :  { %v14809_v21 = vpop.f32.mrb[206].mxu0 }
 0x924   :  { %v7702_v55 = vpop.f32.mrb[207].mxu0  ;;  %15031 = vmatmul.mubr.f32.gmra.mrb[104].mxu0 %v23787_v28  ;;  %v23796_v28 = vld [vmem:[#allocation120_spill] sm:$0xff] }
 0x925   :  { %15033 = vmatprep.mubr.f32.mxu0 %v23788_v18  ;;  %v23797_v18 = vld [vmem:[#allocation122_spill] sm:$0xff] }
 0x928   :  { %15034 = vmatmul.mubr.f32.gmra.mrb[20].mxu0 %v23789_v5  ;;  %v23798_v5 = vld [vmem:[#allocation123_spill] sm:$0xff] }
 0x929   :  { %15036 = vmatprep.mubr.f32.mxu0 %v23790_v9  ;;  %v23799_v9 = vld [vmem:[#allocation125_spill] sm:$0xff] }
 0x92b   :  { %v14847_v25 = vpop.f32.mrb[210].mxu0 }
 0x92c   :  { %v7949_v0 = vpop.f32.mrb[211].mxu0  ;;  %15037 = vmatmul.mubr.f32.gmra.mrb[108].mxu0 %v23791_v10  ;;  %v23800_v10 = vld [vmem:[#allocation126_spill] sm:$0xff] }
 0x92d   :  { %15039 = vmatprep.mubr.f32.mxu0 %v23792_v11  ;;  %v23801_v11 = vld [vmem:[#allocation127_spill] sm:$0xff] }
 0x930   :  { %15040 = vmatmul.mubr.f32.gmra.mrb[22].mxu0 %v23793_v45  ;;  %v23802_v45 = vld [vmem:[#allocation34_spill] sm:$0xff] }
 0x931   :  { %15042 = vmatprep.mubr.f32.mxu0 %v23794_v7  ;;  %v23803_v7 = vld [vmem:[#allocation36_spill] sm:$0xff] }
 0x933   :  { %v14853_v21 = vpop.f32.mrb[212].mxu0 }
 0x934   :  { %v7969_v55 = vpop.f32.mrb[213].mxu0  ;;  %15043 = vmatmul.mubr.f32.gmra.mrb[112].mxu0 %v23795_v48  ;;  %v23804_v48 = vld [vmem:[#allocation37_spill] sm:$0xff] }
 0x935   :  { %15045 = vmatprep.mubr.f32.mxu0 %v23796_v28  ;;  %v23805_v28 = vld [vmem:[#allocation39_spill] sm:$0xff] }
 0x938   :  { %15046 = vmatmul.mubr.f32.gmra.mrb[24].mxu0 %v23797_v18  ;;  %v23806_v18 = vld [vmem:[#allocation135_spill] sm:$0xff] }
 0x939   :  { %15048 = vmatprep.mubr.f32.mxu0 %v23798_v5  ;;  %v23807_v5 = vld [vmem:[#allocation136_spill] sm:$0xff] }
 0x93b   :  { %v14859_v25 = vpop.f32.mrb[214].mxu0 }
 0x93c   :  { %v7989_v0 = vpop.f32.mrb[215].mxu0  ;;  %15049 = vmatmul.mubr.f32.gmra.mrb[116].mxu0 %v23799_v9  ;;  %v23808_v9 = vld [vmem:[#allocation43_spill] sm:$0xff] }
 0x93d   :  { %15051 = vmatprep.mubr.f32.mxu0 %v23800_v10  ;;  %v23835_v10 = vld [vmem:[#allocation180_spill] sm:$0xff] }
 0x940   :  { %15052 = vmatmul.mubr.f32.gmra.mrb[26].mxu0 %v23801_v11  ;;  %v23813_v11 = vld [vmem:[#allocation145_spill] sm:$0xff] }
 0x941   :  { %15054 = vmatprep.mubr.f32.mxu0 %v23802_v45  ;;  %v11506_v45 = vld [vmem:[%s22206_s5 + $0x390] sm:$0xff] }
 0x943   :  { %v14865_v21 = vpop.f32.mrb[216].mxu0 }
 0x944   :  { %v8009_v55 = vpop.f32.mrb[217].mxu0  ;;  %15055 = vmatmul.mubr.f32.gmra.mrb[28].mxu0 %v23803_v7  ;;  %v11507_v21 = vld [vmem:[%s22206_s5 + $0x398] sm:$0xff] }
 0x945   :  { %15057 = vmatprep.mubr.f32.mxu0 %v23804_v48  ;;  %v23809_v55 = vld [vmem:[#allocation45_spill] sm:$0xff]  ;;  %v23812_v7 = vld [vmem:[#allocation144_spill] sm:$0xff] }
 0x946   :  { %v23810_v48 = vld [vmem:[#allocation141_spill] sm:$0xff] }
 0x948   :  { %15058 = vmatmul.mubr.f32.gmra.mrb[30].mxu0 %v23805_v28  ;;  %v16129_v28 = vpack.c.bf16 %v11507_v21, %v11506_v45  ;;  %v11511_v45 = vld [vmem:[%s22206_s5 + $0x3b8] sm:$0xff] }
 0x949   :  { %15060 = vmatprep.mubr.f32.mxu0 %v23806_v18 }
 0x94b   :  { %v14871_v25 = vpop.f32.mrb[218].mxu0 }
 0x94c   :  { %v8029_v0 = vpop.f32.mrb[219].mxu0  ;;  %15061 = vmatmul.mubr.f32.gmra.mrb[32].mxu0 %v23807_v5  ;;  %v11508_v25 = vld [vmem:[%s22206_s5 + $0x3a0] sm:$0xff] }
 0x94d   :  { %15063 = vmatprep.mubr.f32.mxu0 %v23808_v9  ;;  %v11509_v0 = vld [vmem:[%s22206_s5 + $0x3a8] sm:$0xff] }
 0x94e   :  { %v23811_v5 = vld [vmem:[#allocation142_spill] sm:$0xff] }
 0x950   :  { %15064 = vmatmul.mubr.f32.gmra.mrb[34].mxu0 %v23809_v55  ;;  %v16133_v55 = vpack.c.bf16 %v11509_v0, %v11508_v25  ;;  %v11513_v25 = vld [vmem:[%s22206_s5 + $0x3c8] sm:$0xff] }
 0x951   :  { %15098 = vmatprep.mubr.f32.mxu0 %v23810_v48 }
 0x953   :  { %v14877_v18 = vpop.f32.mrb[220].mxu0 }
 0x954   :  { %v8049_v9 = vpop.f32.mrb[221].mxu0  ;;  %15099 = vmatmul.mubr.f32.vlgmr.msra.gmra.mrb[208].mxu0 %v23811_v5  ;;  %v11510_v18 = vld [vmem:[%s22206_s5 + $0x3b0] sm:$0xff] }
 0x955   :  { %16128 = vmatpush3.bf16.msra.mxu0 %v21432_v8  ;;  %15101 = vmatprep.mubr.f32.mxu0 %v23812_v7  ;;  %v23814_v9 = vld [vmem:[#allocation147_spill] sm:$0xff]  ;;  %v16137_v8 = vpack.c.bf16 %v11511_v45, %v11510_v18  ;;  %v23815_v7 = vld [vmem:[#allocation148_spill] sm:$0xff] }
 0x956   :  { %16130 = vmatprep.subr.bf16.mxu0 %v16129_v28  ;;  %v11515_v18 = vld [vmem:[%s22206_s5 + $0x3d8] sm:$0xff] }
 0x957   :  { %v14880_v48 = vpop.f32.mrb[222].mxu0 }
 0x958   :  { %v8059_v21 = vpop.f32.mrb[223].mxu0  ;;  %15102 = vmatmul.mubr.f32.gmra.mrb[36].mxu0 %v23813_v11  ;;  %v11512_v48 = vld [vmem:[%s22206_s5 + $0x3c0] sm:$0xff]  ;;  %v23817_v11 = vld [vmem:[#allocation151_spill] sm:$0xff] }
 0x959   :  { %15104 = vmatprep.mubr.f32.mxu0 %v23814_v9  ;;  %16132 = vmatpush3.bf16.msra.mxu0 %v16129_v28  ;;  %v23816_v21 = vld [vmem:[#allocation150_spill] sm:$0xff]  ;;  %v16141_v9 = vpack.c.bf16 %v11513_v25, %v11512_v48 }
 0x95a   :  { %16134 = vmatprep.subr.bf16.mxu0 %v16133_v55  ;;  %v11516_v48 = vld [vmem:[%s22206_s5 + $0x3e0] sm:$0xff]  ;;  %v11517_v25 = vld [vmem:[%s22206_s5 + $0x3e8] sm:$0xff] }
 0x95b   :  { %v14883_v5 = vpop.f32.mrb[224].mxu0 }
 0x95c   :  { %v8069_v0 = vpop.f32.mrb[225].mxu0  ;;  %15105 = vmatmul.mubr.f32.gmra.mrb[68].mxu0 %v23815_v7  ;;  %v11514_v5 = vld [vmem:[%s22206_s5 + $0x3d0] sm:$0xff] }
 0x95d   :  { %15107 = vmatprep.mubr.f32.mxu0 %v23816_v21  ;;  %16136 = vmatpush3.bf16.msra.mxu0 %v16133_v55  ;;  %v23818_v0 = vld [vmem:[#allocation153_spill] sm:$0xff]  ;;  %v16145_v21 = vpack.c.bf16 %v11515_v18, %v11514_v5  ;;  %v23819_v7 = vld [vmem:[#allocation156_spill] sm:$0xff]  ;;  %v23821_v18 = vld [vmem:[#allocation159_spill] sm:$0xff] }
 0x95e   :  { %16138 = vmatprep.subr.bf16.mxu0 %v16137_v8  ;;  %v11519_v5 = vld [vmem:[%s22206_s5 + $0x3f8] sm:$0xff] }
 0x95f   :  { %v14886_v28 = vpop.f32.mrb[226].mxu0 }
 0x960   :  { %v8079_v45 = vpop.f32.mrb[227].mxu0  ;;  %15108 = vmatmul.mubr.f32.gmra.mrb[38].mxu0 %v23817_v11  ;;  %v23824_v11 = vld [vmem:[#allocation163_spill] sm:$0xff] }
 0x961   :  { %15110 = vmatprep.mubr.f32.mxu0 %v23818_v0  ;;  %16140 = vmatpush3.bf16.msra.mxu0 %v16137_v8  ;;  %v23820_v45 = vld [vmem:[#allocation157_spill] sm:$0xff]  ;;  %v16149_v0 = vpack.c.bf16 %v11517_v25, %v11516_v48  ;;  %v11518_v8 = vld [vmem:[%s22206_s5 + $0x3f0] sm:$0xff]  ;;  %v11489_v48 = vld [vmem:[%s22206_s5 + $0x308] sm:$0xff] }
 0x962   :  { %16142 = vmatprep.subr.bf16.mxu0 %v16141_v9 }
 0x963   :  { %v14889_v55 = vpop.f32.mrb[228].mxu0 }
 0x964   :  { %v8089_v28 = vpop.f32.mrb[229].mxu0  ;;  %15111 = vmatmul.mubr.f32.gmra.mrb[72].mxu0 %v23819_v7  ;;  %v23822_v55 = vld [vmem:[#allocation160_spill] sm:$0xff] }
 0x965   :  { %15113 = vmatprep.mubr.f32.mxu0 %v23820_v45  ;;  %16144 = vmatpush3.bf16.msra.mxu0 %v16141_v9  ;;  %v16153_v28 = vpack.c.bf16 %v11519_v5, %v11518_v8  ;;  %v11488_v9 = vld [vmem:[%s22206_s5 + $0x300] sm:$0xff] }
 0x966   :  { %16146 = vmatprep.subr.bf16.mxu0 %v16145_v21  ;;  %v23823_v45 = vld [vmem:[#allocation162_spill] sm:$0xff] }
 0x968   :  { %15114 = vmatmul.mubr.f32.gmra.mrb[40].mxu0 %v23821_v18  ;;  %v23827_v18 = vld [vmem:[#allocation168_spill] sm:$0xff] }
 0x969   :  { %15116 = vmatprep.mubr.f32.mxu0 %v23822_v55  ;;  %16148 = vmatpush3.bf16.msra.mxu0 %v16145_v21  ;;  %v21548_v55 = vpack.c.bf16 %v11489_v48, %v11488_v9  ;;  %v23825_v21 = vld [vmem:[#allocation165_spill] sm:$0xff]  ;;  %v23831_v48 = vld [vmem:[#allocation174_spill] sm:$0xff] }
 0x96a   :  { %16150 = vmatprep.subr.bf16.mxu0 %v16149_v0 }
 0x96b   :  { %v14895_v7 = vpop.f32.mrb[232].mxu0 }
 0x96c   :  { %v8109_v25 = vpop.f32.mrb[233].mxu0  ;;  %15117 = vmatmul.mubr.f32.gmra.mrb[76].mxu0 %v23823_v45  ;;  %v23826_v7 = vld [vmem:[#allocation166_spill] sm:$0xff]  ;;  %v23829_v45 = vld [vmem:[#allocation171_spill] sm:$0xff] }
 0x96d   :  { %15119 = vmatprep.mubr.f32.mxu0 %v23824_v11  ;;  %16152 = vmatpush3.bf16.msra.mxu0 %v16149_v0  ;;  %v23828_v25 = vld [vmem:[#allocation169_spill] sm:$0xff]  ;;  %v23830_v11 = vld [vmem:[#allocation172_spill] sm:$0xff] }
 0x96e   :  { %16154 = vmatprep.subr.bf16.mxu0 %v16153_v28 }
 0x970   :  { %15120 = vmatmul.mubr.f32.gmra.mrb[42].mxu0 %v23825_v21  ;;  %v23832_v21 = vld [vmem:[#allocation175_spill] sm:$0xff] }
 0x971   :  { %15122 = vmatprep.mubr.f32.mxu0 %v23826_v7  ;;  %16156 = vmatpush3.bf16.msra.mxu0 %v16153_v28  ;;  %v23833_v7 = vld [vmem:[#allocation177_spill] sm:$0xff]  ;;  %v23834_v28 = vld [vmem:[#allocation178_spill] sm:$0xff] }
 0x972   :  { %16158 = vmatprep.subr.bf16.mxu0 %v21548_v55 }
 0x973   :  { %v14901_v8 = vpop.f32.mrb[234].mxu0 }
 0x974   :  { %v8129_v5 = vpop.f32.mrb[235].mxu0  ;;  %15123 = vmatmul.mubr.f32.gmra.mrb[80].mxu0 %v23827_v18  ;;  %v23836_v18 = vld [vmem:[#allocation181_spill] sm:$0xff] }
 0x975   :  { %15125 = vmatprep.mubr.f32.mxu0 %v23828_v25  ;;  %v23837_v25 = vld [vmem:[#allocation183_spill] sm:$0xff] }
 0x978   :  { %15126 = vmatmul.mubr.f32.gmra.mrb[44].mxu0 %v23829_v45  ;;  %v23838_v45 = vld [vmem:[#allocation184_spill] sm:$0xff] }
 0x979   :  { %15128 = vmatprep.mubr.f32.mxu0 %v23830_v11  ;;  %v23839_v11 = vld [vmem:[#allocation186_spill] sm:$0xff] }
 0x97b   :  { %v14907_v0 = vpop.f32.mrb[236].mxu0 }
 0x97c   :  { %v8149_v9 = vpop.f32.mrb[237].mxu0  ;;  %15129 = vmatmul.mubr.f32.gmra.mrb[84].mxu0 %v23831_v48  ;;  %v23840_v48 = vld [vmem:[#allocation187_spill] sm:$0xff] }
 0x97d   :  { %15131 = vmatprep.mubr.f32.mxu0 %v23832_v21  ;;  %v23841_v21 = vld [vmem:[#allocation189_spill] sm:$0xff] }
 0x980   :  { %15132 = vmatmul.mubr.f32.gmra.mrb[46].mxu0 %v23833_v7  ;;  %v23842_v7 = vld [vmem:[#allocation190_spill] sm:$0xff] }
 0x981   :  { %15134 = vmatprep.mubr.f32.mxu0 %v23834_v28  ;;  %v23843_v28 = vld [vmem:[#allocation192_spill] sm:$0xff] }
 0x983   :  { %v14913_v8 = vpop.f32.mrb[238].mxu0 }
 0x984   :  { %v8169_v5 = vpop.f32.mrb[239].mxu0  ;;  %15135 = vmatmul.mubr.f32.gmra.mrb[48].mxu0 %v23835_v10  ;;  %v23844_v10 = vld [vmem:[#allocation193_spill] sm:$0xff] }
 0x985   :  { %15137 = vmatprep.mubr.f32.mxu0 %v23836_v18 }
 0x988   :  { %15138 = vmatmul.mubr.f32.gmra.mrb[50].mxu0 %v23837_v25 }
 0x989   :  { %15140 = vmatprep.mubr.f32.mxu0 %v23838_v45  ;;  %v23847_v45 = vld [vmem:[#allocation201_spill] sm:$0xff] }
 0x98b   :  { %v14919_v0 = vpop.f32.mrb[240].mxu0 }
 0x98c   :  { %v8189_v9 = vpop.f32.mrb[241].mxu0  ;;  %15141 = vmatmul.mubr.f32.gmra.mrb[52].mxu0 %v23839_v11  ;;  %v23846_v0 = vld [vmem:[#allocation196_spill] sm:$0xff] }
 0x98d   :  { %15143 = vmatprep.mubr.f32.mxu0 %v23840_v48  ;;  %v23848_v48 = vld [vmem:[#allocation208_spill] sm:$0xff] }
 0x990   :  { %15144 = vmatmul.mubr.f32.gmra.mrb[54].mxu0 %v23841_v21 }
 0x991   :  { %15146 = vmatprep.mubr.f32.mxu0 %v23842_v7 }
 0x993   :  { %v14925_v8 = vpop.f32.mrb[242].mxu0 }
 0x994   :  { %v8209_v5 = vpop.f32.mrb[243].mxu0  ;;  %15147 = vmatmul.mubr.f32.gmra.mrb[230].mxu0 %v23843_v28  ;;  %v23849_v8 = vld [vmem:[#allocation213_spill] sm:$0xff] }
 0x995   :  { %15149 = vmatprep.mubr.f32.mxu0 %v23844_v10  ;;  %v23850_v5 = vld [vmem:[#allocation214_spill] sm:$0xff] }
 0x997   :  { %v14928_v18 = vpop.f32.mrb[244].mxu0 }
 0x998   :  { %v8219_v25 = vpop.f32.mrb[245].mxu0  ;;  %15150 = vmatmul.mubr.f32.gmra.mrb[56].mxu0 %v23845_v60  ;;  %v23851_v18 = vld [vmem:[#allocation216_spill] sm:$0xff]  ;;  %v23853_v60 = vld [vmem:[#allocation221_spill] sm:$0xff] }
 0x999   :  { %15152 = vmatprep.mubr.f32.mxu0 %v23846_v0  ;;  %v23852_v25 = vld [vmem:[#allocation219_spill] sm:$0xff]  ;;  %v23855_v0 = vld [vmem:[#allocation129_spill] sm:$0xff] }
 0x99b   :  { %v14931_v9 = vpop.f32.mrb[246].mxu0 }
 0x99c   :  { %v8229_v11 = vpop.f32.mrb[247].mxu0  ;;  %15153 = vmatmul.mubr.f32.gmra.mrb[100].mxu0 %v23847_v45  ;;  %v23854_v9 = vld [vmem:[#allocation222_spill] sm:$0xff] }
 0x99d   :  { %15155 = vmatprep.mubr.f32.mxu0 %v23848_v48 }
 0x99f   :  { %v14934_v21 = vpop.f32.mrb[248].mxu0 }
 0x9a0   :  { %v8239_v7 = vpop.f32.mrb[249].mxu0  ;;  %15156 = vmatmul.mubr.f32.gmra.mrb[58].mxu0 %v23849_v8  ;;  %v23856_v21 = vld [vmem:[#allocation132_spill] sm:$0xff]  ;;  %v23858_v8 = vld [vmem:[#allocation21_spill] sm:$0xff] }
 0x9a1   :  { %15158 = vmatprep.mubr.f32.mxu0 %v23850_v5  ;;  %v23857_v7 = vld [vmem:[#allocation133_spill] sm:$0xff]  ;;  %v23859_v5 = vld [vmem:[#allocation22_spill] sm:$0xff] }
 0x9a3   :  { %v14937_v28 = vpop.f32.mrb[250].mxu0 }
 0x9a4   :  { %v8249_v10 = vpop.f32.mrb[251].mxu0  ;;  %15159 = vmatmul.mubr.f32.gmra.mrb[104].mxu0 %v23851_v18  ;;  %v23860_v18 = vld [vmem:[#allocation23_spill] sm:$0xff] }
 0x9a5   :  { %15161 = vmatprep.mubr.f32.mxu0 %v23852_v25  ;;  %v23861_v25 = vld [vmem:[#allocation27_spill] sm:$0xff] }
 0x9a8   :  { %15162 = vmatmul.mubr.f32.gmra.mrb[60].mxu0 %v23853_v60  ;;  %v23862_v60 = vld [vmem:[#allocation29_spill] sm:$0xff] }
 0x9a9   :  { %15164 = vmatprep.mubr.f32.mxu0 %v23854_v9  ;;  %v23863_v9 = vld [vmem:[#allocation154_spill] sm:$0xff] }
 0x9ab   :  { %v14975_v11 = vpop.f32.mrb[252].mxu0 }
 0x9ac   :  { %v8334_v45 = vpop.f32.mrb[253].mxu0  ;;  %15165 = vmatmul.mubr.f32.gmra.mrb[108].mxu0 %v23855_v0  ;;  %v23864_v0 = vld [vmem:[#allocation6_spill] sm:$0xff] }
 0x9ad   :  { %15167 = vmatprep.mubr.f32.mxu0 %v23856_v21  ;;  %v23865_v21 = vld [vmem:[#allocation199_spill] sm:$0xff] }
 0x9b0   :  { %15168 = vmatmul.mubr.f32.gmra.mrb[62].mxu0 %v23857_v7  ;;  %v23866_v7 = vld [vmem:[#allocation198_spill] sm:$0xff] }
 0x9b1   :  { %15170 = vmatprep.mubr.f32.mxu0 %v23858_v8 }
 0x9b3   :  { %v14981_v28 = vpop.f32.mrb[254].mxu0 }
 0x9b4   :  { %v8354_v10 = vpop.f32.mrb[255].mxu0  ;;  %15171 = vmatmul.mubr.f32.gmra.mrb[112].mxu0 %v23859_v5  ;;  %v23867_v5 = vld [vmem:[#allocation202_spill] sm:$0xff] }
 0x9b5   :  { %15173 = vmatprep.mubr.f32.mxu0 %v23860_v18 }
 0x9b8   :  { %15174 = vmatmul.mubr.f32.gmra.mrb[66].mxu0 %v23861_v25 }
 0x9b9   :  { %15176 = vmatprep.mubr.f32.mxu0 %v23862_v60 }
 0x9bb   :  { %v14987_v11 = vpop.f32.mrb[0].mxu0 }
 0x9bc   :  { %v8374_v45 = vpop.f32.mrb[1].mxu0  ;;  %15177 = vmatmul.mubr.f32.gmra.mrb[116].mxu0 %v23863_v9  ;;  %v23868_v9 = vld [vmem:[#allocation138_spill] sm:$0xff] }
 0x9bd   :  { %15179 = vmatprep.mubr.f32.mxu0 %v23864_v0 }
 0x9c0   :  { %15180 = vmatmul.mubr.f32.gmra.mrb[70].mxu0 %v23865_v21 }
 0x9c1   :  { %15182 = vmatprep.mubr.f32.mxu0 %v23866_v7  ;;  %v11490_v7 = vld [vmem:[%s22206_s5 + $0x310] sm:$0xff] }
 0x9c3   :  { %v14993_v28 = vpop.f32.mrb[2].mxu0 }
 0x9c4   :  { %v8394_v10 = vpop.f32.mrb[3].mxu0  ;;  %15183 = vmatmul.mubr.f32.gmra.mrb[74].mxu0 %v21216_v47  ;;  %v11491_v28 = vld [vmem:[%s22206_s5 + $0x318] sm:$0xff] }
 0x9c5   :  { %15185 = vmatprep.mubr.f32.mxu0 %v23867_v5  ;;  %v23869_v10 = vld [vmem:[#allocation139_spill] sm:$0xff] }
 0x9c8   :  { %15186 = vmatmul.mubr.f32.gmra.mrb[78].mxu0 %v21228_v12  ;;  %v16161_v12 = vpack.c.bf16 %v11491_v28, %v11490_v7  ;;  %v11495_v7 = vld [vmem:[%s22206_s5 + $0x338] sm:$0xff] }
 0x9c9   :  { %15188 = vmatprep.mubr.f32.mxu0 %v21237_v23 }
 0x9cb   :  { %v14999_v11 = vpop.f32.mrb[4].mxu0 }
 0x9cc   :  { %v8414_v45 = vpop.f32.mrb[5].mxu0  ;;  %15189 = vmatmul.mubr.f32.gmra.mrb[82].mxu0 %v21241_v26  ;;  %v11492_v11 = vld [vmem:[%s22206_s5 + $0x320] sm:$0xff] }
 0x9cd   :  { %15191 = vmatprep.mubr.f32.mxu0 %v23868_v9  ;;  %v11493_v45 = vld [vmem:[%s22206_s5 + $0x328] sm:$0xff] }
 0x9d0   :  { %15192 = vmatmul.mubr.f32.gmra.mrb[86].mxu0 %v23869_v10  ;;  %v16165_v10 = vpack.c.bf16 %v11493_v45, %v11492_v11  ;;  %v11499_v45 = vld [vmem:[%s22206_s5 + $0x358] sm:$0xff] }
 0x9d1   :  { %15226 = vmatprep.mubr.f32.mxu0 %v23728_v19 }
 0x9d3   :  { %v15005_v23 = vpop.f32.mrb[6].mxu0 }
 0x9d4   :  { %v8434_v9 = vpop.f32.mrb[7].mxu0  ;;  %15227 = vmatmul.mubr.f32.vlgmr.msra.gmra.mrb[208].mxu0 %v19976_v24  ;;  %v11494_v23 = vld [vmem:[%s22206_s5 + $0x330] sm:$0xff] }
 0x9d5   :  { %16160 = vmatpush3.bf16.msra.mxu0 %v21548_v55  ;;  %15229 = vmatprep.mubr.f32.mxu0 %v19980_v41  ;;  %v16169_v24 = vpack.c.bf16 %v11495_v7, %v11494_v23  ;;  %v11496_v55 = vld [vmem:[%s22206_s5 + $0x340] sm:$0xff]  ;;  %v11497_v9 = vld [vmem:[%s22206_s5 + $0x348] sm:$0xff] }
 0x9d6   :  { %16162 = vmatprep.subr.bf16.mxu0 %v16161_v12  ;;  %v11501_v23 = vld [vmem:[%s22206_s5 + $0x368] sm:$0xff] }
 0x9d7   :  { %v15008_v19 = vpop.f32.mrb[8].mxu0 }
 0x9d8   :  { %v8444_v28 = vpop.f32.mrb[9].mxu0  ;;  %15230 = vmatmul.mubr.f32.gmra.mrb[88].mxu0 %v19992_v53  ;;  %v16173_v53 = vpack.c.bf16 %v11497_v9, %v11496_v55 }
 0x9d9   :  { %15232 = vmatprep.mubr.f32.mxu0 %v19996_v29  ;;  %16164 = vmatpush3.bf16.msra.mxu0 %v16161_v12  ;;  %v11498_v12 = vld [vmem:[%s22206_s5 + $0x350] sm:$0xff]  ;;  %v11503_v28 = vld [vmem:[%s22206_s5 + $0x378] sm:$0xff] }
 0x9da   :  { %16166 = vmatprep.subr.bf16.mxu0 %v16165_v10 }
 0x9db   :  { %v15011_v41 = vpop.f32.mrb[10].mxu0 }
 0x9dc   :  { %v8454_v11 = vpop.f32.mrb[11].mxu0  ;;  %15233 = vmatmul.mubr.f32.gmra.mrb[68].mxu0 %v20008_v37  ;;  %v16177_v37 = vpack.c.bf16 %v11499_v45, %v11498_v12  ;;  %v11521_v41 = vld [vmem:[%s22206_s5 + $0x408] sm:$0xff] }
 0x9dd   :  { %15235 = vmatprep.mubr.f32.mxu0 %v20012_v40  ;;  %16168 = vmatpush3.bf16.msra.mxu0 %v16165_v10  ;;  %v11500_v10 = vld [vmem:[%s22206_s5 + $0x360] sm:$0xff] }
 0x9de   :  { %16170 = vmatprep.subr.bf16.mxu0 %v16169_v24  ;;  %v23878_v11 = vld [vmem:[#allocation14_spill] sm:$0xff] }
 0x9df   :  { %v15014_v29 = vpop.f32.mrb[12].mxu0 }
 0x9e0   :  { %v8464_v19 = vpop.f32.mrb[13].mxu0  ;;  %15236 = vmatmul.mubr.f32.gmra.mrb[90].mxu0 %v20024_v27  ;;  %v16181_v27 = vpack.c.bf16 %v11501_v23, %v11500_v10  ;;  %v23881_v29 = vld [vmem:[#allocation20_spill] sm:$0xff] }
 0x9e1   :  { %15238 = vmatprep.mubr.f32.mxu0 %v20028_v22  ;;  %16172 = vmatpush3.bf16.msra.mxu0 %v16169_v24  ;;  %v11502_v22 = vld [vmem:[%s22206_s5 + $0x370] sm:$0xff] }
 0x9e2   :  { %16174 = vmatprep.subr.bf16.mxu0 %v16173_v53  ;;  %v23882_v19 = vld [vmem:[#allocation40_spill] sm:$0xff] }
 0x9e3   :  { %v15017_v40 = vpop.f32.mrb[14].mxu0 }
 0x9e4   :  { %v8474_v7 = vpop.f32.mrb[15].mxu0  ;;  %15239 = vmatmul.mubr.f32.gmra.mrb[72].mxu0 %v20040_v57  ;;  %v16185_v57 = vpack.c.bf16 %v11503_v28, %v11502_v22  ;;  %v23885_v40 = vld [vmem:[#allocation130_spill] sm:$0xff]  ;;  %v11522_v22 = vld [vmem:[%s22206_s5 + $0x410] sm:$0xff]  ;;  %v11523_v28 = vld [vmem:[%s22206_s5 + $0x418] sm:$0xff] }
 0x9e5   :  { %15241 = vmatprep.mubr.f32.mxu0 %v20044_v38  ;;  %16176 = vmatpush3.bf16.msra.mxu0 %v16173_v53  ;;  %v11520_v38 = vld [vmem:[%s22206_s5 + $0x400] sm:$0xff]  ;;  %v23886_v7 = vld [vmem:[#allocation24_spill] sm:$0xff] }
 0x9e6   :  { %16178 = vmatprep.subr.bf16.mxu0 %v16177_v37  ;;  %v23879_v53 = vld [vmem:[#allocation17_spill] sm:$0xff] }
 0x9e8   :  { %15242 = vmatmul.mubr.f32.gmra.mrb[92].mxu0 %v20056_v59  ;;  %v21664_v59 = vpack.c.bf16 %v11521_v41, %v11520_v38  ;;  %v16193_v38 = vpack.c.bf16 %v11523_v28, %v11522_v22  ;;  %v23907_v22 = vld [vmem:[#allocation76_spill] sm:$0xff]  ;;  %v23908_v28 = vld [vmem:[#allocation78_spill] sm:$0xff] }
 0x9e9   :  { %15244 = vmatprep.mubr.f32.mxu0 %v20062_v56  ;;  %16180 = vmatpush3.bf16.msra.mxu0 %v16177_v37  ;;  %v23883_v37 = vld [vmem:[#allocation42_spill] sm:$0xff] }
 0x9ea   :  { %16182 = vmatprep.subr.bf16.mxu0 %v16181_v27 }
 0x9eb   :  { %v15023_v24 = vpop.f32.mrb[16].mxu0 }
 0x9ec   :  { %v8494_v55 = vpop.f32.mrb[17].mxu0  ;;  %15245 = vmatmul.mubr.f32.gmra.mrb[76].mxu0 %v20068_v16  ;;  %v23889_v24 = vld [vmem:[#allocation49_spill] sm:$0xff] }
 0x9ed   :  { %15247 = vmatprep.mubr.f32.mxu0 %v20073_v61  ;;  %16184 = vmatpush3.bf16.msra.mxu0 %v16181_v27  ;;  %v23887_v27 = vld [vmem:[#allocation26_spill] sm:$0xff] }
 0x9ee   :  { %16186 = vmatprep.subr.bf16.mxu0 %v16185_v57  ;;  %v11524_v55 = vld [vmem:[%s22206_s5 + $0x420] sm:$0xff] }
 0x9f0   :  { %15248 = vmatmul.mubr.f32.gmra.mrb[94].mxu0 %v20079_v63 }
 0x9f1   :  { %15250 = vmatprep.mubr.f32.mxu0 %v20083_v49  ;;  %16188 = vmatpush3.bf16.msra.mxu0 %v16185_v57  ;;  %v23888_v57 = vld [vmem:[#allocation28_spill] sm:$0xff] }
 0x9f2   :  { %16190 = vmatprep.subr.bf16.mxu0 %v21664_v59 }
 0x9f3   :  { %v15029_v56 = vpop.f32.mrb[18].mxu0 }
 0x9f4   :  { %v8514_v9 = vpop.f32.mrb[19].mxu0  ;;  %15251 = vmatmul.mubr.f32.gmra.mrb[80].mxu0 %v20089_v20  ;;  %v11525_v56 = vld [vmem:[%s22206_s5 + $0x428] sm:$0xff] }
 0x9f5   :  { %15253 = vmatprep.mubr.f32.mxu0 %v20093_v31 }
 0x9f8   :  { %15254 = vmatmul.mubr.f32.gmra.mrb[98].mxu0 %v20099_v52 }
 0x9f9   :  { %15256 = vmatprep.mubr.f32.mxu0 %v20103_v51 }
 0x9fb   :  { %v15035_v16 = vpop.f32.mrb[20].mxu0 }
 0x9fc   :  { %v8534_v61 = vpop.f32.mrb[21].mxu0  ;;  %15257 = vmatmul.mubr.f32.gmra.mrb[84].mxu0 %v20109_v32  ;;  %v23890_v16 = vld [vmem:[#allocation51_spill] sm:$0xff] }
 0x9fd   :  { %15259 = vmatprep.mubr.f32.mxu0 %v20113_v35  ;;  %v23891_v61 = vld [vmem:[#allocation52_spill] sm:$0xff] }
 0xa00   :  { %15260 = vmatmul.mubr.f32.gmra.mrb[102].mxu0 %v20119_v14 }
 0xa01   :  { %15262 = vmatprep.mubr.f32.mxu0 %v20123_v43 }
 0xa03   :  { %v15041_v63 = vpop.f32.mrb[22].mxu0 }
 0xa04   :  { %v8554_v49 = vpop.f32.mrb[23].mxu0  ;;  %15263 = vmatmul.mubr.f32.gmra.mrb[106].mxu0 %v20129_v34  ;;  %v16197_v63 = vpack.c.bf16 %v11525_v56, %v11524_v55  ;;  %v23911_v55 = vld [vmem:[#allocation82_spill] sm:$0xff]  ;;  %v23912_v56 = vld [vmem:[#allocation84_spill] sm:$0xff] }
 0xa05   :  { %15265 = vmatprep.mubr.f32.mxu0 %v20133_v58 }
 0xa08   :  { %15266 = vmatmul.mubr.f32.gmra.mrb[110].mxu0 %v20139_v1 }
 0xa09   :  { %15268 = vmatprep.mubr.f32.mxu0 %v20143_v30 }
 0xa0b   :  { %v15047_v20 = vpop.f32.mrb[24].mxu0 }
 0xa0c   :  { %v8574_v31 = vpop.f32.mrb[25].mxu0  ;;  %15269 = vmatmul.mubr.f32.gmra.mrb[114].mxu0 %v20149_v46  ;;  %v23870_v46 = vld [vmem:[#allocation8_spill] sm:$0xff] }
 0xa0d   :  { %15271 = vmatprep.mubr.f32.mxu0 %v20153_v36  ;;  %v23871_v36 = vld [vmem:[#allocation7_spill] sm:$0xff]  ;;  %v11527_v31 = vld [vmem:[%s22206_s5 + $0x438] sm:$0xff] }
 0xa0e   :  { %v11526_v20 = vld [vmem:[%s22206_s5 + $0x430] sm:$0xff] }
 0xa10   :  { %15272 = vmatmul.mubr.f32.gmra.mrb[118].mxu0 %v20159_v42 }
 0xa11   :  { %15274 = vmatprep.mubr.f32.mxu0 %v20163_v2 }
 0xa13   :  { %v15053_v52 = vpop.f32.mrb[26].mxu0 }
 0xa14   :  { %v8594_v51 = vpop.f32.mrb[27].mxu0  ;;  %15275 = vmatmul.mubr.f32.gmra.mrb[230].mxu0 %v20169_v3  ;;  %v23872_v3 = vld [vmem:[#allocation10_spill] sm:$0xff] }
 0xa15   :  { %15277 = vmatprep.mubr.f32.mxu0 %v20173_v33  ;;  %v23873_v33 = vld [vmem:[#allocation31_spill] sm:$0xff]  ;;  %v23892_v51 = vld [vmem:[#allocation54_spill] sm:$0xff] }
 0xa17   :  { %v15056_v32 = vpop.f32.mrb[28].mxu0 }
 0xa18   :  { %v8604_v35 = vpop.f32.mrb[29].mxu0  ;;  %15278 = vmatmul.mubr.f32.gmra.mrb[120].mxu0 %v20179_v13  ;;  %v23874_v13 = vld [vmem:[#allocation11_spill] sm:$0xff] }
 0xa19   :  { %15280 = vmatprep.mubr.f32.mxu0 %v20183_v4  ;;  %v23893_v32 = vld [vmem:[#allocation55_spill] sm:$0xff] }
 0xa1b   :  { %v15059_v14 = vpop.f32.mrb[30].mxu0 }
 0xa1c   :  { %v8614_v43 = vpop.f32.mrb[31].mxu0  ;;  %15281 = vmatmul.mubr.f32.gmra.mrb[100].mxu0 %v20189_v15  ;;  %v11528_v14 = vld [vmem:[%s22206_s5 + $0x440] sm:$0xff] }
 0xa1d   :  { %15283 = vmatprep.mubr.f32.mxu0 %v20193_v44  ;;  %v23875_v44 = vld [vmem:[#allocation15_spill] sm:$0xff] }
 0xa1e   :  { %v11529_v43 = vld [vmem:[%s22206_s5 + $0x448] sm:$0xff] }
 0xa1f   :  { %v15062_v34 = vpop.f32.mrb[32].mxu0 }
 0xa20   :  { %v8624_v58 = vpop.f32.mrb[33].mxu0  ;;  %15284 = vmatmul.mubr.f32.gmra.mrb[122].mxu0 %v20199_v39  ;;  %v23876_v39 = vld [vmem:[#allocation16_spill] sm:$0xff] }
 0xa21   :  { %15286 = vmatprep.mubr.f32.mxu0 %v20203_v54  ;;  %v23877_v54 = vld [vmem:[#allocation32_spill] sm:$0xff]  ;;  %v23894_v58 = vld [vmem:[#allocation57_spill] sm:$0xff] }
 0xa23   :  { %v15065_v1 = vpop.f32.mrb[34].mxu0 }
 0xa24   :  { %v8634_v30 = vpop.f32.mrb[35].mxu0  ;;  %15287 = vmatmul.mubr.f32.gmra.mrb[104].mxu0 %v20209_v50  ;;  %v23895_v1 = vld [vmem:[#allocation58_spill] sm:$0xff] }
 0xa25   :  { %15289 = vmatprep.mubr.f32.mxu0 %v20213_v62  ;;  %v16205_v30 = vpack.c.bf16 %v11529_v43, %v11528_v14  ;;  %v23921_v14 = vld [vmem:[#allocation97_spill] sm:$0xff] }
 0xa28   :  { %15290 = vmatmul.mubr.f32.gmra.mrb[124].mxu0 %v23870_v46 }
 0xa29   :  { %15292 = vmatprep.mubr.f32.mxu0 %v23871_v36  ;;  %v11530_v36 = vld [vmem:[%s22206_s5 + $0x450] sm:$0xff] }
 0xa2b   :  { %v15103_v42 = vpop.f32.mrb[36].mxu0 }
 0xa2c   :  { %v8736_v2 = vpop.f32.mrb[37].mxu0  ;;  %15293 = vmatmul.mubr.f32.gmra.mrb[108].mxu0 %v23872_v3  ;;  %v11531_v42 = vld [vmem:[%s22206_s5 + $0x458] sm:$0xff] }
 0xa2d   :  { %15295 = vmatprep.mubr.f32.mxu0 %v23734_v17  ;;  %v23880_v17 = vld [vmem:[#allocation18_spill] sm:$0xff]  ;;  %v23896_v3 = vld [vmem:[#allocation60_spill] sm:$0xff] }
 0xa30   :  { %15296 = vmatmul.mubr.f32.gmra.mrb[126].mxu0 %v23873_v33  ;;  %v23897_v33 = vld [vmem:[#allocation61_spill] sm:$0xff] }
 0xa31   :  { %15298 = vmatprep.mubr.f32.mxu0 %v23874_v13  ;;  %v16209_v13 = vpack.c.bf16 %v11531_v42, %v11530_v36  ;;  %v23924_v36 = vld [vmem:[#allocation101_spill] sm:$0xff]  ;;  %v23925_v42 = vld [vmem:[#allocation102_spill] sm:$0xff] }
 0xa33   :  { %v15109_v4 = vpop.f32.mrb[38].mxu0 }
 0xa34   :  { %v8756_v15 = vpop.f32.mrb[39].mxu0  ;;  %15299 = vmatmul.mubr.f32.gmra.mrb[112].mxu0 %v23875_v44  ;;  %v11533_v44 = vld [vmem:[%s22206_s5 + $0x468] sm:$0xff] }
 0xa35   :  { %15301 = vmatprep.mubr.f32.mxu0 %v23736_v6  ;;  %v23884_v6 = vld [vmem:[#allocation19_spill] sm:$0xff]  ;;  %v11532_v15 = vld [vmem:[%s22206_s5 + $0x460] sm:$0xff] }
 0xa38   :  { %15302 = vmatmul.mubr.f32.gmra.mrb[128].mxu0 %v23876_v39 }
 0xa39   :  { %15304 = vmatprep.mubr.f32.mxu0 %v23877_v54  ;;  %v23898_v54 = vld [vmem:[#allocation63_spill] sm:$0xff] }
 0xa3b   :  { %v15115_v50 = vpop.f32.mrb[40].mxu0 }
 0xa3c   :  { %v8776_v62 = vpop.f32.mrb[41].mxu0  ;;  %15305 = vmatmul.mubr.f32.gmra.mrb[116].mxu0 %v23878_v11  ;;  %v23899_v50 = vld [vmem:[#allocation64_spill] sm:$0xff] }
 0xa3d   :  { %15307 = vmatprep.mubr.f32.mxu0 %v23879_v53  ;;  %v16213_v62 = vpack.c.bf16 %v11533_v44, %v11532_v15  ;;  %v11534_v11 = vld [vmem:[%s22206_s5 + $0x470] sm:$0xff]  ;;  %v11535_v53 = vld [vmem:[%s22206_s5 + $0x478] sm:$0xff] }
 0xa3e   :  { %v23928_v44 = vld [vmem:[#allocation107_spill] sm:$0xff] }
 0xa40   :  { %15308 = vmatmul.mubr.f32.gmra.mrb[130].mxu0 %v23880_v17  ;;  %v23900_v17 = vld [vmem:[#allocation66_spill] sm:$0xff] }
 0xa41   :  { %15310 = vmatprep.mubr.f32.mxu0 %v23881_v29  ;;  %v23901_v29 = vld [vmem:[#allocation67_spill] sm:$0xff] }
 0xa43   :  { %v15121_v12 = vpop.f32.mrb[42].mxu0 }
 0xa44   :  { %v8796_v45 = vpop.f32.mrb[43].mxu0  ;;  %15311 = vmatmul.mubr.f32.gmra.mrb[132].mxu0 %v23882_v19  ;;  %v16217_v12 = vpack.c.bf16 %v11535_v53, %v11534_v11  ;;  %v23931_v11 = vld [vmem:[#allocation111_spill] sm:$0xff]  ;;  %v23932_v53 = vld [vmem:[#allocation113_spill] sm:$0xff] }
 0xa45   :  { %15313 = vmatprep.mubr.f32.mxu0 %v23883_v37  ;;  %v23902_v37 = vld [vmem:[#allocation69_spill] sm:$0xff] }
 0xa48   :  { %15314 = vmatmul.mubr.f32.gmra.mrb[134].mxu0 %v23884_v6  ;;  %v23903_v6 = vld [vmem:[#allocation70_spill] sm:$0xff] }
 0xa49   :  { %15316 = vmatprep.mubr.f32.mxu0 %v23885_v40  ;;  %v23904_v40 = vld [vmem:[#allocation72_spill] sm:$0xff] }
 0xa4b   :  { %v15127_v10 = vpop.f32.mrb[44].mxu0 }
 0xa4c   :  { %v8816_v23 = vpop.f32.mrb[45].mxu0  ;;  %15317 = vmatmul.mubr.f32.gmra.mrb[136].mxu0 %v23886_v7  ;;  %v23905_v10 = vld [vmem:[#allocation73_spill] sm:$0xff] }
 0xa4d   :  { %15319 = vmatprep.mubr.f32.mxu0 %v23887_v27  ;;  %v23906_v27 = vld [vmem:[#allocation75_spill] sm:$0xff] }
 0xa50   :  { %15320 = vmatmul.mubr.f32.gmra.mrb[138].mxu0 %v23888_v57  ;;  %v23909_v57 = vld [vmem:[#allocation79_spill] sm:$0xff] }
 0xa51   :  { %15354 = vmatprep.mubr.f32.mxu0 %v23889_v24 }
 0xa53   :  { %v15133_v41 = vpop.f32.mrb[46].mxu0 }
 0xa54   :  { %v8836_v9 = vpop.f32.mrb[47].mxu0  ;;  %15355 = vmatmul.mubr.f32.vlgmr.msra.gmra.mrb[208].mxu0 %v23890_v16  ;;  %v23910_v41 = vld [vmem:[#allocation81_spill] sm:$0xff] }
 0xa55   :  { %16192 = vmatpush3.bf16.msra.mxu0 %v21664_v59  ;;  %15357 = vmatprep.mubr.f32.mxu0 %v23891_v61  ;;  %v16201_v59 = vpack.c.bf16 %v11527_v31, %v11526_v20  ;;  %v23913_v9 = vld [vmem:[#allocation85_spill] sm:$0xff]  ;;  %v23916_v20 = vld [vmem:[#allocation90_spill] sm:$0xff]  ;;  %v23917_v31 = vld [vmem:[#allocation91_spill] sm:$0xff] }
 0xa56   :  { %16194 = vmatprep.subr.bf16.mxu0 %v16193_v38 }
 0xa57   :  { %v15136_v49 = vpop.f32.mrb[48].mxu0 }
 0xa58   :  { %v8846_v52 = vpop.f32.mrb[49].mxu0  ;;  %15358 = vmatmul.mubr.f32.gmra.mrb[140].mxu0 %v23892_v51  ;;  %v23915_v49 = vld [vmem:[#allocation88_spill] sm:$0xff] }
 0xa59   :  { %15360 = vmatprep.mubr.f32.mxu0 %v23893_v32  ;;  %16196 = vmatpush3.bf16.msra.mxu0 %v16193_v38  ;;  %v23918_v32 = vld [vmem:[#allocation93_spill] sm:$0xff] }
 0xa5a   :  { %16198 = vmatprep.subr.bf16.mxu0 %v16197_v63 }
 0xa5b   :  { %v15139_v35 = vpop.f32.mrb[50].mxu0 }
 0xa5c   :  { %v8856_v34 = vpop.f32.mrb[51].mxu0  ;;  %15361 = vmatmul.mubr.f32.gmra.mrb[68].mxu0 %v23894_v58  ;;  %v23920_v35 = vld [vmem:[#allocation96_spill] sm:$0xff]  ;;  %v23922_v58 = vld [vmem:[#allocation25_spill] sm:$0xff] }
 0xa5d   :  { %15363 = vmatprep.mubr.f32.mxu0 %v23895_v1  ;;  %16200 = vmatpush3.bf16.msra.mxu0 %v16197_v63  ;;  %v23914_v63 = vld [vmem:[#allocation87_spill] sm:$0xff] }
 0xa5e   :  { %16202 = vmatprep.subr.bf16.mxu0 %v16201_v59  ;;  %v23923_v1 = vld [vmem:[#allocation99_spill] sm:$0xff] }
 0xa5f   :  { %v15142_v46 = vpop.f32.mrb[52].mxu0 }
 0xa60   :  { %v8866_v2 = vpop.f32.mrb[53].mxu0  ;;  %15364 = vmatmul.mubr.f32.gmra.mrb[142].mxu0 %v23896_v3 }
 0xa61   :  { %15366 = vmatprep.mubr.f32.mxu0 %v23897_v33  ;;  %16204 = vmatpush3.bf16.msra.mxu0 %v16201_v59  ;;  %v23919_v59 = vld [vmem:[#allocation94_spill] sm:$0xff]  ;;  %v23926_v33 = vld [vmem:[#allocation104_spill] sm:$0xff] }
 0xa62   :  { %16206 = vmatprep.subr.bf16.mxu0 %v16205_v30 }
 0xa63   :  { %v15145_v4 = vpop.f32.mrb[54].mxu0 }
 0xa64   :  { %v8876_v39 = vpop.f32.mrb[55].mxu0  ;;  %15367 = vmatmul.mubr.f32.gmra.mrb[72].mxu0 %v23898_v54 }
 0xa65   :  { %15369 = vmatprep.mubr.f32.mxu0 %v23899_v50  ;;  %16208 = vmatpush3.bf16.msra.mxu0 %v16205_v30  ;;  %v23929_v39 = vld [vmem:[#allocation108_spill] sm:$0xff] }
 0xa66   :  { %16210 = vmatprep.subr.bf16.mxu0 %v16209_v13 }
 0xa68   :  { %15370 = vmatmul.mubr.f32.gmra.mrb[144].mxu0 %v23900_v17  ;;  %v23933_v17 = vld [vmem:[#allocation114_spill] sm:$0xff] }
 0xa69   :  { %15372 = vmatprep.mubr.f32.mxu0 %v23901_v29  ;;  %16212 = vmatpush3.bf16.msra.mxu0 %v16209_v13  ;;  %v23927_v13 = vld [vmem:[#allocation105_spill] sm:$0xff] }
 0xa6a   :  { %16214 = vmatprep.subr.bf16.mxu0 %v16213_v62 }
 0xa6b   :  { %v15151_v45 = vpop.f32.mrb[56].mxu0 }
 0xa6c   :  { %v8896_v19 = vpop.f32.mrb[57].mxu0  ;;  %15373 = vmatmul.mubr.f32.gmra.mrb[76].mxu0 %v23902_v37  ;;  %v23934_v45 = vld [vmem:[#allocation116_spill] sm:$0xff]  ;;  %v23936_v37 = vld [vmem:[#allocation119_spill] sm:$0xff] }
 0xa6d   :  { %15375 = vmatprep.mubr.f32.mxu0 %v23903_v6  ;;  %16216 = vmatpush3.bf16.msra.mxu0 %v16213_v62  ;;  %v23930_v62 = vld [vmem:[#allocation110_spill] sm:$0xff]  ;;  %v23935_v19 = vld [vmem:[#allocation117_spill] sm:$0xff]  ;;  %v23937_v6 = vld [vmem:[#allocation120_spill] sm:$0xff] }
 0xa6e   :  { %16218 = vmatprep.subr.bf16.mxu0 %v16217_v12 }
 0xa70   :  { %15376 = vmatmul.mubr.f32.gmra.mrb[146].mxu0 %v23904_v40 }
 0xa71   :  { %15378 = vmatprep.mubr.f32.mxu0 %v23905_v10  ;;  %16220 = vmatpush3.bf16.msra.mxu0 %v16217_v12 }
 0xa73   :  { %v15157_v23 = vpop.f32.mrb[58].mxu0 }
 0xa74   :  { %v8916_v7 = vpop.f32.mrb[59].mxu0  ;;  %15379 = vmatmul.mubr.f32.gmra.mrb[80].mxu0 %v23906_v27  ;;  %v23938_v23 = vld [vmem:[#allocation122_spill] sm:$0xff]  ;;  %v23940_v27 = vld [vmem:[#allocation125_spill] sm:$0xff] }
 0xa75   :  { %15381 = vmatprep.mubr.f32.mxu0 %v23907_v22  ;;  %v23939_v7 = vld [vmem:[#allocation123_spill] sm:$0xff]  ;;  %v23941_v22 = vld [vmem:[#allocation126_spill] sm:$0xff] }
 0xa78   :  { %15382 = vmatmul.mubr.f32.gmra.mrb[148].mxu0 %v23908_v28 }
 0xa79   :  { %15384 = vmatprep.mubr.f32.mxu0 %v23909_v57 }
 0xa7b   :  { %v15163_v24 = vpop.f32.mrb[60].mxu0 }
 0xa7c   :  { %v8936_v38 = vpop.f32.mrb[61].mxu0  ;;  %15385 = vmatmul.mubr.f32.gmra.mrb[84].mxu0 %v23910_v41  ;;  %v23942_v24 = vld [vmem:[#allocation127_spill] sm:$0xff]  ;;  %v23944_v41 = vld [vmem:[#allocation36_spill] sm:$0xff] }
 0xa7d   :  { %15387 = vmatprep.mubr.f32.mxu0 %v23911_v55  ;;  %v23943_v38 = vld [vmem:[#allocation34_spill] sm:$0xff]  ;;  %v23945_v55 = vld [vmem:[#allocation37_spill] sm:$0xff] }
 0xa80   :  { %15388 = vmatmul.mubr.f32.gmra.mrb[150].mxu0 %v23912_v56 }
 0xa81   :  { %15390 = vmatprep.mubr.f32.mxu0 %v23913_v9 }
 0xa83   :  { %v15169_v16 = vpop.f32.mrb[62].mxu0 }
 0xa84   :  { %v8956_v61 = vpop.f32.mrb[63].mxu0  ;;  %15391 = vmatmul.mubr.f32.gmra.mrb[152].mxu0 %v23914_v63  ;;  %v23946_v16 = vld [vmem:[#allocation39_spill] sm:$0xff]  ;;  %v23948_v63 = vld [vmem:[#allocation136_spill] sm:$0xff] }
 0xa85   :  { %15393 = vmatprep.mubr.f32.mxu0 %v23915_v49  ;;  %v23947_v61 = vld [vmem:[#allocation135_spill] sm:$0xff] }
 0xa86   :  { %v23949_v49 = vld [vmem:[#allocation43_spill] sm:$0xff] }
 0xa88   :  { %15394 = vmatmul.mubr.f32.gmra.mrb[154].mxu0 %v23916_v20 }
 0xa89   :  { %15396 = vmatprep.mubr.f32.mxu0 %v23917_v31 }
 0xa8b   :  { %v15175_v52 = vpop.f32.mrb[66].mxu0 }
 0xa8c   :  { %v8976_v51 = vpop.f32.mrb[67].mxu0  ;;  %15397 = vmatmul.mubr.f32.gmra.mrb[156].mxu0 %v23918_v32  ;;  %v23950_v52 = vld [vmem:[#allocation45_spill] sm:$0xff]  ;;  %v23952_v32 = vld [vmem:[#allocation48_spill] sm:$0xff] }
 0xa8d   :  { %15399 = vmatprep.mubr.f32.mxu0 %v23919_v59  ;;  %v23951_v51 = vld [vmem:[#allocation46_spill] sm:$0xff]  ;;  %v23953_v59 = vld [vmem:[#allocation144_spill] sm:$0xff] }
 0xa90   :  { %15400 = vmatmul.mubr.f32.gmra.mrb[158].mxu0 %v23920_v35 }
 0xa91   :  { %15402 = vmatprep.mubr.f32.mxu0 %v23921_v14 }
 0xa93   :  { %v15181_v43 = vpop.f32.mrb[70].mxu0 }
 0xa94   :  { %v8996_v34 = vpop.f32.mrb[71].mxu0  ;;  %15403 = vmatmul.mubr.f32.gmra.mrb[230].mxu0 %v23922_v58  ;;  %v23954_v43 = vld [vmem:[#allocation145_spill] sm:$0xff] }
 0xa95   :  { %15405 = vmatprep.mubr.f32.mxu0 %v23923_v1  ;;  %v23955_v34 = vld [vmem:[#allocation147_spill] sm:$0xff] }
 0xa97   :  { %v15184_v30 = vpop.f32.mrb[74].mxu0 }
 0xa98   :  { %v9006_v46 = vpop.f32.mrb[75].mxu0  ;;  %15406 = vmatmul.mubr.f32.gmra.mrb[160].mxu0 %v23924_v36  ;;  %v23956_v30 = vld [vmem:[#allocation148_spill] sm:$0xff] }
 0xa99   :  { %15408 = vmatprep.mubr.f32.mxu0 %v23925_v42  ;;  %v23957_v46 = vld [vmem:[#allocation150_spill] sm:$0xff] }
 0xa9b   :  { %v15187_v2 = vpop.f32.mrb[78].mxu0 }
 0xa9c   :  { %v9016_v3 = vpop.f32.mrb[79].mxu0  ;;  %15409 = vmatmul.mubr.f32.gmra.mrb[100].mxu0 %v23926_v33  ;;  %v23958_v2 = vld [vmem:[#allocation151_spill] sm:$0xff] }
 0xa9d   :  { %15411 = vmatprep.mubr.f32.mxu0 %v23927_v13  ;;  %v23959_v3 = vld [vmem:[#allocation153_spill] sm:$0xff] }
 0xa9f   :  { %v15190_v4 = vpop.f32.mrb[82].mxu0 }
 0xaa0   :  { %v9026_v15 = vpop.f32.mrb[83].mxu0  ;;  %15412 = vmatmul.mubr.f32.gmra.mrb[162].mxu0 %v23928_v44  ;;  %v23960_v4 = vld [vmem:[#allocation156_spill] sm:$0xff] }
 0xaa1   :  { %15414 = vmatprep.mubr.f32.mxu0 %v23929_v39  ;;  %v23961_v15 = vld [vmem:[#allocation157_spill] sm:$0xff] }
 0xaa3   :  { %v15193_v54 = vpop.f32.mrb[86].mxu0 }
 0xaa4   :  { %v9036_v50 = vpop.f32.mrb[87].mxu0  ;;  %15415 = vmatmul.mubr.f32.gmra.mrb[104].mxu0 %v23930_v62  ;;  %v23962_v54 = vld [vmem:[#allocation159_spill] sm:$0xff]  ;;  %v23964_v62 = vld [vmem:[#allocation162_spill] sm:$0xff] }
 0xaa5   :  { %15417 = vmatprep.mubr.f32.mxu0 %v23931_v11  ;;  %v23963_v50 = vld [vmem:[#allocation160_spill] sm:$0xff]  ;;  %v23965_v11 = vld [vmem:[#allocation163_spill] sm:$0xff] }
 0xaa8   :  { %15418 = vmatmul.mubr.f32.gmra.mrb[164].mxu0 %v23932_v53 }
 0xaa9   :  { %15420 = vmatprep.mubr.f32.mxu0 %v23933_v17 }
 0xaab   :  { %v15231_v29 = vpop.f32.mrb[88].mxu0 }
 0xaac   :  { %v9219_v12 = vpop.f32.mrb[89].mxu0  ;;  %15421 = vmatmul.mubr.f32.gmra.mrb[108].mxu0 %v23934_v45  ;;  %v23966_v29 = vld [vmem:[#allocation165_spill] sm:$0xff]  ;;  %v23968_v45 = vld [vmem:[#allocation168_spill] sm:$0xff] }
 0xaad   :  { %15423 = vmatprep.mubr.f32.mxu0 %v23935_v19  ;;  %v23967_v12 = vld [vmem:[#allocation166_spill] sm:$0xff]  ;;  %v23969_v19 = vld [vmem:[#allocation169_spill] sm:$0xff] }
 0xab0   :  { %15424 = vmatmul.mubr.f32.gmra.mrb[166].mxu0 %v23936_v37 }
 0xab1   :  { %15426 = vmatprep.mubr.f32.mxu0 %v23937_v6 }
 0xab3   :  { %v15237_v40 = vpop.f32.mrb[90].mxu0 }
 0xab4   :  { %v9239_v10 = vpop.f32.mrb[91].mxu0  ;;  %15427 = vmatmul.mubr.f32.gmra.mrb[112].mxu0 %v23938_v23  ;;  %v23970_v40 = vld [vmem:[#allocation171_spill] sm:$0xff]  ;;  %v23972_v23 = vld [vmem:[#allocation174_spill] sm:$0xff] }
 0xab5   :  { %15429 = vmatprep.mubr.f32.mxu0 %v23939_v7  ;;  %v23971_v10 = vld [vmem:[#allocation172_spill] sm:$0xff]  ;;  %v23973_v7 = vld [vmem:[#allocation175_spill] sm:$0xff] }
 0xab8   :  { %15430 = vmatmul.mubr.f32.gmra.mrb[64].mxu0 %v23940_v27 }
 0xab9   :  { %15432 = vmatprep.mubr.f32.mxu0 %v23941_v22 }
 0xabb   :  { %v15243_v28 = vpop.f32.mrb[92].mxu0 }
 0xabc   :  { %v9259_v57 = vpop.f32.mrb[93].mxu0  ;;  %15433 = vmatmul.mubr.f32.gmra.mrb[116].mxu0 %v23942_v24  ;;  %v23974_v28 = vld [vmem:[#allocation177_spill] sm:$0xff]  ;;  %v23976_v24 = vld [vmem:[#allocation180_spill] sm:$0xff] }
 0xabd   :  { %15435 = vmatprep.mubr.f32.mxu0 %v23943_v38  ;;  %v23975_v57 = vld [vmem:[#allocation178_spill] sm:$0xff]  ;;  %v23977_v38 = vld [vmem:[#allocation181_spill] sm:$0xff] }
 0xac0   :  { %15436 = vmatmul.mubr.f32.gmra.mrb[168].mxu0 %v23944_v41 }
 0xac1   :  { %15438 = vmatprep.mubr.f32.mxu0 %v23945_v55 }
 0xac3   :  { %v15249_v56 = vpop.f32.mrb[94].mxu0 }
 0xac4   :  { %v9279_v9 = vpop.f32.mrb[95].mxu0  ;;  %15439 = vmatmul.mubr.f32.gmra.mrb[170].mxu0 %v23946_v16  ;;  %v23978_v56 = vld [vmem:[#allocation183_spill] sm:$0xff] }
 0xac5   :  { %15441 = vmatprep.mubr.f32.mxu0 %v23947_v61  ;;  %v10910_v9 = vld [vmem:[%s22208_s7 + $0x80] sm:$0xff]  ;;  %v10911_v16 = vld [vmem:[%s22208_s7 + $0x88] sm:$0xff] }
 0xac6   :  { %v10894_v61 = vld [vmem:[%s22208_s7] sm:$0xff] }
 0xac8   :  { %15442 = vmatmul.mubr.f32.gmra.mrb[172].mxu0 %v23948_v63  ;;  %v23979_v63 = vld [vmem:[#allocation184_spill] sm:$0xff] }
 0xac9   :  { %15444 = vmatprep.mubr.f32.mxu0 %v23949_v49  ;;  %v16221_v49 = vpack.c.bf16 %v10911_v16, %v10910_v9  ;;  %v24000_v16 = vld [vmem:[#allocation198_spill] sm:$0xff] }
 0xacb   :  { %v15255_v20 = vpop.f32.mrb[98].mxu0  ;;  %16222 = vmatprep.subr.bf16.mxu1 %v16221_v49 }
 0xacc   :  { %v9299_v31 = vpop.f32.mrb[99].mxu0  ;;  %15445 = vmatmul.mubr.f32.gmra.mrb[174].mxu0 %v23950_v52  ;;  %v10895_v20 = vld [vmem:[%s22208_s7 + $0x8] sm:$0xff] }
 0xacd   :  { %15447 = vmatprep.mubr.f32.mxu0 %v23951_v51  ;;  %v16223_v31 = vpack.c.bf16 %v10895_v20, %v10894_v61  ;;  %v23980_v52 = vld [vmem:[#allocation186_spill] sm:$0xff]  ;;  %v23981_v51 = vld [vmem:[#allocation187_spill] sm:$0xff]  ;;  %v24001_v20 = vld [vmem:[#allocation205_spill] sm:$0xff] }
 0xacf   :  { %16224 = vmatpush3.bf16.msra.mxu1 %v16223_v31  ;;  %v24002_v31 = vld [vmem:[#allocation204_spill] sm:$0xff] }
 0xad0   :  { %15448 = vmatmul.mubr.f32.gmra.mrb[176].mxu0 %v23952_v32 }
 0xad1   :  { %15482 = vmatprep.mubr.f32.mxu0 %v23953_v59 }
 0xad3   :  { %v15261_v35 = vpop.f32.mrb[102].mxu0 }
 0xad4   :  { %v9319_v14 = vpop.f32.mrb[103].mxu0  ;;  %15483 = vmatmul.mubr.f32.vlgmr.msra.gmra.mrb[208].mxu0 %v23954_v43  ;;  %v23982_v35 = vld [vmem:[#allocation189_spill] sm:$0xff]  ;;  %v23984_v43 = vld [vmem:[#allocation192_spill] sm:$0xff] }
 0xad5   :  { %15485 = vmatprep.mubr.f32.mxu0 %v23955_v34  ;;  %v23983_v14 = vld [vmem:[#allocation190_spill] sm:$0xff]  ;;  %v23985_v34 = vld [vmem:[#allocation193_spill] sm:$0xff] }
 0xad7   :  { %v15264_v58 = vpop.f32.mrb[106].mxu0 }
 0xad8   :  { %v9329_v1 = vpop.f32.mrb[107].mxu0  ;;  %15486 = vmatmul.mubr.f32.gmra.mrb[178].mxu0 %v23956_v30  ;;  %v23986_v30 = vld [vmem:[#allocation195_spill] sm:$0xff] }
 0xad9   :  { %15488 = vmatprep.mubr.f32.mxu0 %v23957_v46  ;;  %v23987_v46 = vld [vmem:[#allocation196_spill] sm:$0xff] }
 0xadb   :  { %v15267_v36 = vpop.f32.mrb[110].mxu0 }
 0xadc   :  { %v9339_v42 = vpop.f32.mrb[111].mxu0  ;;  %15489 = vmatmul.mubr.f32.gmra.mrb[68].mxu0 %v23958_v2  ;;  %v10913_v2 = vld [vmem:[%s22208_s7 + $0x98] sm:$0xff] }
 0xadd   :  { %15491 = vmatprep.mubr.f32.mxu0 %v23959_v3  ;;  %v10912_v42 = vld [vmem:[%s22208_s7 + $0x90] sm:$0xff] }
 0xadf   :  { %v15270_v33 = vpop.f32.mrb[114].mxu0 }
 0xae0   :  { %v9349_v13 = vpop.f32.mrb[115].mxu0  ;;  %15492 = vmatmul.mubr.f32.gmra.mrb[180].mxu0 %v23960_v4  ;;  %v23988_v33 = vld [vmem:[#allocation201_spill] sm:$0xff]  ;;  %v10896_v4 = vld [vmem:[%s22208_s7 + $0x10] sm:$0xff] }
 0xae1   :  { %15494 = vmatprep.mubr.f32.mxu0 %v23961_v15  ;;  %v16225_v13 = vpack.c.bf16 %v10913_v2, %v10912_v42  ;;  %v10897_v15 = vld [vmem:[%s22208_s7 + $0x18] sm:$0xff] }
 0xae2   :  { %v10921_v42 = vld [vmem:[%s22208_s7 + $0xd8] sm:$0xff] }
 0xae3   :  { %v15273_v44 = vpop.f32.mrb[118].mxu0  ;;  %16226 = vmatprep.subr.bf16.mxu1 %v16225_v13  ;;  %v10905_v13 = vld [vmem:[%s22208_s7 + $0x58] sm:$0xff] }
 0xae4   :  { %v9359_v39 = vpop.f32.mrb[119].mxu0  ;;  %15495 = vmatmul.mubr.f32.gmra.mrb[72].mxu0 %v23962_v54  ;;  %v16227_v44 = vpack.c.bf16 %v10897_v15, %v10896_v4 }
 0xae5   :  { %15497 = vmatprep.mubr.f32.mxu0 %v23963_v50  ;;  %v23989_v50 = vld [vmem:[#allocation213_spill] sm:$0xff] }
 0xae6   :  { %16228 = vmatpush3.bf16.msra.mxu1 %v16227_v44 }
 0xae8   :  { %15498 = vmatmul.mubr.f32.gmra.mrb[182].mxu0 %v23964_v62  ;;  %v23990_v62 = vld [vmem:[#allocation214_spill] sm:$0xff] }
 0xae9   :  { %15500 = vmatprep.mubr.f32.mxu0 %v23965_v11 }
 0xaeb   :  { %v15279_v53 = vpop.f32.mrb[120].mxu0 }
 0xaec   :  { %v9379_v17 = vpop.f32.mrb[121].mxu0  ;;  %15501 = vmatmul.mubr.f32.gmra.mrb[76].mxu0 %v23966_v29  ;;  %v23992_v29 = vld [vmem:[#allocation219_spill] sm:$0xff] }
 0xaed   :  { %15503 = vmatprep.mubr.f32.mxu0 %v23967_v12  ;;  %v23991_v17 = vld [vmem:[#allocation216_spill] sm:$0xff] }
 0xaf0   :  { %15504 = vmatmul.mubr.f32.gmra.mrb[184].mxu0 %v23968_v45 }
 0xaf1   :  { %15506 = vmatprep.mubr.f32.mxu0 %v23969_v19  ;;  %v23993_v19 = vld [vmem:[#allocation221_spill] sm:$0xff] }
 0xaf3   :  { %v15285_v37 = vpop.f32.mrb[122].mxu0 }
 0xaf4   :  { %v9399_v6 = vpop.f32.mrb[123].mxu0  ;;  %15507 = vmatmul.mubr.f32.gmra.mrb[80].mxu0 %v23970_v40  ;;  %v23995_v37 = vld [vmem:[#allocation129_spill] sm:$0xff] }
 0xaf5   :  { %15509 = vmatprep.mubr.f32.mxu0 %v23971_v10  ;;  %v23996_v6 = vld [vmem:[#allocation132_spill] sm:$0xff] }
 0xaf8   :  { %15510 = vmatmul.mubr.f32.gmra.mrb[186].mxu0 %v23972_v23  ;;  %v23997_v23 = vld [vmem:[#allocation133_spill] sm:$0xff] }
 0xaf9   :  { %15512 = vmatprep.mubr.f32.mxu0 %v23973_v7  ;;  %v10914_v7 = vld [vmem:[%s22208_s7 + $0xa0] sm:$0xff] }
 0xafb   :  { %v15291_v27 = vpop.f32.mrb[124].mxu0 }
 0xafc   :  { %v9419_v22 = vpop.f32.mrb[125].mxu0  ;;  %15513 = vmatmul.mubr.f32.gmra.mrb[84].mxu0 %v23974_v28  ;;  %v10915_v27 = vld [vmem:[%s22208_s7 + $0xa8] sm:$0xff]  ;;  %v10898_v28 = vld [vmem:[%s22208_s7 + $0x20] sm:$0xff] }
 0xafd   :  { %15515 = vmatprep.mubr.f32.mxu0 %v23975_v57  ;;  %v16229_v22 = vpack.c.bf16 %v10915_v27, %v10914_v7  ;;  %v10899_v57 = vld [vmem:[%s22208_s7 + $0x28] sm:$0xff]  ;;  %v10925_v7 = vld [vmem:[%s22208_s7 + $0xf8] sm:$0xff] }
 0xaff   :  { %16230 = vmatprep.subr.bf16.mxu1 %v16229_v22  ;;  %v10908_v22 = vld [vmem:[%s22208_s7 + $0x70] sm:$0xff] }
 0xb00   :  { %15516 = vmatmul.mubr.f32.gmra.mrb[96].mxu0 %v23976_v24  ;;  %v16231_v24 = vpack.c.bf16 %v10899_v57, %v10898_v28  ;;  %v10909_v28 = vld [vmem:[%s22208_s7 + $0x78] sm:$0xff] }
 0xb01   :  { %15518 = vmatprep.mubr.f32.mxu0 %v23977_v38  ;;  %v23998_v38 = vld [vmem:[#allocation22_spill] sm:$0xff]  ;;  %v16251_v57 = vpack.c.bf16 %v10909_v28, %v10908_v22 }
 0xb02   :  { %16232 = vmatpush3.bf16.msra.mxu1 %v16231_v24 }
 0xb03   :  { %v15297_v41 = vpop.f32.mrb[126].mxu0 }
 0xb04   :  { %v9439_v55 = vpop.f32.mrb[127].mxu0  ;;  %15519 = vmatmul.mubr.f32.gmra.mrb[188].mxu0 %v23978_v56 }
 0xb05   :  { %15521 = vmatprep.mubr.f32.mxu0 %v23979_v63 }
 0xb08   :  { %15522 = vmatmul.mubr.f32.gmra.mrb[190].mxu0 %v23980_v52 }
 0xb09   :  { %15524 = vmatprep.mubr.f32.mxu0 %v23981_v51  ;;  %v24004_v51 = vld [vmem:[#allocation139_spill] sm:$0xff] }
 0xb0b   :  { %v15303_v32 = vpop.f32.mrb[128].mxu0 }
 0xb0c   :  { %v9459_v59 = vpop.f32.mrb[129].mxu0  ;;  %15525 = vmatmul.mubr.f32.gmra.mrb[192].mxu0 %v23982_v35  ;;  %v10918_v32 = vld [vmem:[%s22208_s7 + $0xc0] sm:$0xff] }
 0xb0d   :  { %15527 = vmatprep.mubr.f32.mxu0 %v23983_v14  ;;  %v10919_v59 = vld [vmem:[%s22208_s7 + $0xc8] sm:$0xff]  ;;  %v24005_v35 = vld [vmem:[#allocation141_spill] sm:$0xff] }
 0xb0e   :  { %v16237_v14 = vpack.c.bf16 %v10919_v59, %v10918_v32 }
 0xb10   :  { %15528 = vmatmul.mubr.f32.gmra.mrb[194].mxu0 %v23984_v43  ;;  %v10903_v43 = vld [vmem:[%s22208_s7 + $0x48] sm:$0xff] }
 0xb11   :  { %15530 = vmatprep.mubr.f32.mxu0 %v23985_v34 }
 0xb13   :  { %v15309_v58 = vpop.f32.mrb[130].mxu0 }
 0xb14   :  { %v9479_v1 = vpop.f32.mrb[131].mxu0  ;;  %15531 = vmatmul.mubr.f32.gmra.mrb[230].mxu0 %v23986_v30  ;;  %v24006_v58 = vld [vmem:[#allocation142_spill] sm:$0xff] }
 0xb15   :  { %15533 = vmatprep.mubr.f32.mxu0 %v23987_v46 }
 0xb17   :  { %v15312_v36 = vpop.f32.mrb[132].mxu0 }
 0xb18   :  { %v9489_v3 = vpop.f32.mrb[133].mxu0  ;;  %15534 = vmatmul.mubr.f32.gmra.mrb[196].mxu0 %v23988_v33  ;;  %v10920_v36 = vld [vmem:[%s22208_s7 + $0xd0] sm:$0xff] }
 0xb19   :  { %15536 = vmatprep.mubr.f32.mxu0 %v23848_v48  ;;  %v23994_v48 = vld [vmem:[#allocation222_spill] sm:$0xff]  ;;  %v16241_v3 = vpack.c.bf16 %v10921_v42, %v10920_v36  ;;  %v10904_v33 = vld [vmem:[%s22208_s7 + $0x50] sm:$0xff] }
 0xb1a   :  { %v16243_v4 = vpack.c.bf16 %v10905_v13, %v10904_v33 }
 0xb1b   :  { %v15315_v39 = vpop.f32.mrb[134].mxu0 }
 0xb1c   :  { %v9499_v54 = vpop.f32.mrb[135].mxu0  ;;  %15537 = vmatmul.mubr.f32.gmra.mrb[100].mxu0 %v23989_v50 }
 0xb1d   :  { %15539 = vmatprep.mubr.f32.mxu0 %v23990_v62 }
 0xb1f   :  { %v15318_v11 = vpop.f32.mrb[136].mxu0 }
 0xb20   :  { %v9509_v53 = vpop.f32.mrb[137].mxu0  ;;  %15540 = vmatmul.mubr.f32.gmra.mrb[198].mxu0 %v23991_v17  ;;  %v10922_v17 = vld [vmem:[%s22208_s7 + $0xe0] sm:$0xff] }
 0xb21   :  { %15542 = vmatprep.mubr.f32.mxu0 %v23992_v29  ;;  %v10923_v29 = vld [vmem:[%s22208_s7 + $0xe8] sm:$0xff] }
 0xb23   :  { %v15321_v12 = vpop.f32.mrb[138].mxu0 }
 0xb24   :  { %v9519_v45 = vpop.f32.mrb[139].mxu0  ;;  %15543 = vmatmul.mubr.f32.gmra.mrb[104].mxu0 %v23993_v19  ;;  %v16245_v12 = vpack.c.bf16 %v10923_v29, %v10922_v17  ;;  %v10907_v19 = vld [vmem:[%s22208_s7 + $0x68] sm:$0xff] }
 0xb25   :  { %15545 = vmatprep.mubr.f32.mxu0 %v23994_v48  ;;  %v10906_v45 = vld [vmem:[%s22208_s7 + $0x60] sm:$0xff] }
 0xb26   :  { %v16247_v48 = vpack.c.bf16 %v10907_v19, %v10906_v45 }
 0xb28   :  { %15546 = vmatmul.mubr.f32.gmra.mrb[200].mxu0 %v23995_v37 }
 0xb29   :  { %15548 = vmatprep.mubr.f32.mxu0 %v23996_v6 }
 0xb2b   :  { %v15359_v40 = vpop.f32.mrb[140].mxu0 }
 0xb2c   :  { %v9604_v10 = vpop.f32.mrb[141].mxu0  ;;  %15549 = vmatmul.mubr.f32.gmra.mrb[108].mxu0 %v23997_v23  ;;  %v10924_v23 = vld [vmem:[%s22208_s7 + $0xf0] sm:$0xff] }
 0xb2d   :  { %15551 = vmatprep.mubr.f32.mxu0 %v23858_v8  ;;  %v23999_v8 = vld [vmem:[#allocation154_spill] sm:$0xff]  ;;  %v16249_v27 = vpack.c.bf16 %v10925_v7, %v10924_v23 }
 0xb30   :  { %15552 = vmatmul.mubr.f32.gmra.mrb[202].mxu0 %v23998_v38 }
 0xb31   :  { %15554 = vmatprep.mubr.f32.mxu0 %v23860_v18  ;;  %v10916_v18 = vld [vmem:[%s22208_s7 + $0xb0] sm:$0xff] }
 0xb33   :  { %v15365_v41 = vpop.f32.mrb[142].mxu0 }
 0xb34   :  { %v9624_v55 = vpop.f32.mrb[143].mxu0  ;;  %15555 = vmatmul.mubr.f32.gmra.mrb[112].mxu0 %v23861_v25  ;;  %v10917_v25 = vld [vmem:[%s22208_s7 + $0xb8] sm:$0xff]  ;;  %v10942_v41 = vld [vmem:[%s22208_s7 + $0x180] sm:$0xff] }
 0xb35   :  { %15557 = vmatprep.mubr.f32.mxu0 %v23862_v60  ;;  %v16233_v61 = vpack.c.bf16 %v10917_v25, %v10916_v18  ;;  %v10900_v60 = vld [vmem:[%s22208_s7 + $0x30] sm:$0xff]  ;;  %v10943_v55 = vld [vmem:[%s22208_s7 + $0x188] sm:$0xff] }
 0xb37   :  { %16234 = vmatprep.subr.bf16.mxu1 %v16233_v61 }
 0xb38   :  { %15558 = vmatmul.mubr.f32.gmra.mrb[204].mxu0 %v23999_v8 }
 0xb39   :  { %15560 = vmatprep.mubr.f32.mxu0 %v23864_v0  ;;  %v10901_v0 = vld [vmem:[%s22208_s7 + $0x38] sm:$0xff] }
 0xb3b   :  { %v15371_v56 = vpop.f32.mrb[144].mxu0 }
 0xb3c   :  { %v9644_v9 = vpop.f32.mrb[145].mxu0  ;;  %15561 = vmatmul.mubr.f32.gmra.mrb[116].mxu0 %v23865_v21  ;;  %v16235_v21 = vpack.c.bf16 %v10901_v0, %v10900_v60  ;;  %v16253_v56 = vpack.c.bf16 %v10943_v55, %v10942_v41 }
 0xb3d   :  { %15563 = vmatprep.mubr.f32.mxu0 %v24000_v16 }
 0xb3e   :  { %16236 = vmatpush3.bf16.msra.mxu1 %v16235_v21 }
 0xb3f   :  { %16238 = vmatprep.subr.bf16.mxu1 %v16237_v14  ;;  %v21994_v14 = vld [vmem:[%s22207_s6] ss:$0 sm:$0xff] }
 0xb40   :  { %15564 = vmatmul.mubr.f32.gmra.mrb[206].mxu0 %v21216_v47  ;;  %v24003_v47 = vld [vmem:[#allocation138_spill] sm:$0xff] }
 0xb41   :  { %15566 = vmatprep.mubr.f32.mxu0 %v23867_v5 }
 0xb43   :  { %v15377_v63 = vpop.f32.mrb[146].mxu0 }
 0xb44   :  { %v9664_v49 = vpop.f32.mrb[147].mxu0  ;;  %15567 = vmatmul.mubr.f32.gmra.mrb[210].mxu0 %v24001_v20 }
 0xb45   :  { %15569 = vmatprep.mubr.f32.mxu0 %v24002_v31  ;;  %v24007_v31 = vld [vmem:[#allocation211_spill] sm:$0xff] }
 0xb48   :  { %15570 = vmatmul.mubr.f32.gmra.mrb[212].mxu0 %v21241_v26  ;;  %v10902_v26 = vld [vmem:[%s22208_s7 + $0x40] sm:$0xff] }
 0xb49   :  { %15572 = vmatprep.mubr.f32.mxu0 %v24003_v47  ;;  %v16239_v34 = vpack.c.bf16 %v10903_v43, %v10902_v26  ;;  %v7776_v47 = vmul.f32 0.0, %v24007_v31 }
 0xb4b   :  { %v15383_v5 = vpop.f32.mrb[148].mxu0  ;;  %16240 = vmatpush3.bf16.msra.mxu1 %v16239_v34 }
 0xb4c   :  { %v9684_v52 = vpop.f32.mrb[149].mxu0  ;;  %15573 = vmatmul.mubr.f32.gmra.mrb[214].mxu0 %v24004_v51  ;;  %16242 = vmatprep.subr.bf16.mxu1 %v16241_v3 }
 0xb4d   :  { %15575 = vmatprep.mubr.f32.mxu0 %v24005_v35  ;;  %v24008_v52 = vld [vmem:[#allocation210_spill] sm:$0xff] }
 0xb4e   :  { %v7775_v51 = vmul.f32 0.0, %v24008_v52 }
 0xb4f   :  { %16244 = vmatpush3.bf16.msra.mxu1 %v16243_v4 }
 0xb50   :  { %15576 = vmatmul.mubr.f32.gmra.mrb[216].mxu0 %v24006_v58  ;;  %16246 = vmatprep.subr.bf16.mxu1 %v16245_v12 }
 0xb53   :  { %v15389_v1 = vpop.f32.mrb[150].mxu0  ;;  %16248 = vmatpush3.bf16.msra.mxu1 %v16247_v48 }
 0xb54   :  { %v9704_v30 = vpop.f32.mrb[151].mxu0  ;;  %16250 = vmatprep.subr.bf16.mxu1 %v16249_v27 }
 0xb57   :  { %v15392_v46 = vpop.f32.mrb[152].mxu0  ;;  %16252 = vmatpush3.bf16.msra.mxu1 %v16251_v57 }
 0xb58   :  { %v9714_v2 = vpop.f32.mrb[153].mxu0  ;;  %16254 = vmatprep.subr.bf16.mxu1 %v16253_v56 }
 0xb5b   :  { %v15395_v15 = vpop.f32.mrb[154].mxu0 }
 0xb5c   :  { %v9724_v44 = vpop.f32.mrb[155].mxu0 }
 0xb5f   :  { %v15398_v39 = vpop.f32.mrb[156].mxu0 }
 0xb60   :  { %v9734_v54 = vpop.f32.mrb[157].mxu0 }
 0xb63   :  { %v15401_v50 = vpop.f32.mrb[158].mxu0 }
 0xb64   :  { %v9744_v62 = vpop.f32.mrb[159].mxu0 }
 0xb6b   :  { %v15407_v11 = vpop.f32.mrb[160].mxu0 }
 0xb6c   :  { %v9764_v53 = vpop.f32.mrb[161].mxu0 }
 0xb73   :  { %v15413_v37 = vpop.f32.mrb[162].mxu0 }
 0xb74   :  { %v9784_v6 = vpop.f32.mrb[163].mxu0 }
 0xb7b   :  { %v15419_v40 = vpop.f32.mrb[164].mxu0 }
 0xb7c   :  { %v9804_v10 = vpop.f32.mrb[165].mxu0 }
 0xb83   :  { %v15425_v24 = vpop.f32.mrb[166].mxu0 }
 0xb84   :  { %v9824_v38 = vpop.f32.mrb[167].mxu0 }
 0xb8b   :  { %v15431_v8 = vpop.f32.mrb[64].mxu0 }
 0xb8c   :  { %v9844_v9 = vpop.f32.mrb[65].mxu0 }
 0xb93   :  { %v15437_v16 = vpop.f32.mrb[168].mxu0 }
 0xb94   :  { %v9864_v18 = vpop.f32.mrb[169].mxu0 }
 0xb97   :  { %v15440_v25 = vpop.f32.mrb[170].mxu0 }
 0xb98   :  { %v9874_v61 = vpop.f32.mrb[171].mxu0 }
 0xb9b   :  { %v15443_v60 = vpop.f32.mrb[172].mxu0 }
 0xb9c   :  { %v9884_v0 = vpop.f32.mrb[173].mxu0 }
 0xb9f   :  { %v15446_v21 = vpop.f32.mrb[174].mxu0 }
 0xba0   :  { %v9894_v63 = vpop.f32.mrb[175].mxu0 }
 0xba3   :  { %v15449_v49 = vpop.f32.mrb[176].mxu0 }
 0xba4   :  { %v9904_v20 = vpop.f32.mrb[177].mxu0 }
 0xba7   :  { %v15484_v5 = vpop.f32.mrb[208].mxu0 }
 0xba8   :  { %v16313_v32 = vadd.f32 %v15484_v5, %v7776_v47  ;;  %v9996_v59 = vpop.f32.mrb[209].mxu0 }
 0xba9   :  { %v16314_v35 = vadd.f32 %v9996_v59, %v7775_v51 }
 0xbaa   :  { %v10579_v34 = vadd.f32 %v16313_v32, %v21994_v14 }
 0xbab   :  { %v15487_v26 = vpop.f32.mrb[178].mxu0  ;;  %v10578_v58 = vadd.f32 %v16314_v35, %v21994_v14 }
 0xbac   :  { %v10006_v43 = vpop.f32.mrb[179].mxu0  ;;  %v10643_v42 = vmax.f32 %v10579_v34, 0.0 }
 0xbad   :  { %v10642_v3 = vmax.f32 %v10578_v58, 0.0 }
 0xbaf   :  { %v15490_v1 = vpop.f32.mrb[68].mxu0 }
 0xbb0   :  { %v10583_v30 = vadd.f32 %v15490_v1, %v21994_v14  ;;  %v10016_v46 = vpop.f32.mrb[69].mxu0 }
 0xbb1   :  { %v10582_v36 = vadd.f32 %v21994_v14, %v10016_v46 }
 0xbb2   :  { %v10647_v2 = vmax.f32 %v10583_v30, 0.0 }
 0xbb3   :  { %v10646_v33 = vmax.f32 %v10582_v36, 0.0  ;;  %v15493_v13 = vpop.f32.mrb[180].mxu0  ;;  %v24009_v36 = vld [vmem:[#allocation207_spill] sm:$0xff] }
 0xbb4   :  { %v10780_v4 = vmax.f32 %v10643_v42, %v10647_v2  ;;  %v10026_v15 = vpop.f32.mrb[181].mxu0  ;;  %v7808_v42 = vmul.f32 0.0, %v24009_v36 }
 0xbb5   :  { %v10779_v44 = vmax.f32 %v10642_v3, %v10646_v33  ;;  %v24010_v3 = vld [vmem:[#allocation217_spill] sm:$0xff] }
 0xbb6   :  { %v7807_v33 = vmul.f32 0.0, %v24010_v3 }
 0xbb7   :  { %v15496_v39 = vpop.f32.mrb[72].mxu0 }
 0xbb8   :  { %v10587_v54 = vadd.f32 %v15496_v39, %v21994_v14  ;;  %v10036_v50 = vpop.f32.mrb[73].mxu0 }
 0xbb9   :  { %v10586_v62 = vadd.f32 %v21994_v14, %v10036_v50 }
 0xbba   :  { %v10651_v11 = vmax.f32 %v10587_v54, 0.0 }
 0xbbb   :  { %v10650_v53 = vmax.f32 %v10586_v62, 0.0  ;;  %v15499_v17 = vpop.f32.mrb[182].mxu0 }
 0xbbc   :  { %v10789_v29 = vmax.f32 %v10780_v4, %v10651_v11  ;;  %v10046_v12 = vpop.f32.mrb[183].mxu0 }
 0xbbd   :  { %v22002_v45 = vmax.f32 %v10779_v44, %v10650_v53 }
 0xbbe   :  { %v10808_v19 = vrot.slane %v10789_v29, 2  ;;  %v10814_v37 = vrot.slane %v10789_v29, 4 }
 0xbbf   :  { %v15502_v48 = vpop.f32.mrb[76].mxu0 }
 0xbc0   :  { %v10056_v6 = vpop.f32.mrb[77].mxu0  ;;  %v10812_v40 = vmax.f32 %v22002_v45, %v10808_v19  ;;  %v10591_v27 = vadd.f32 %v15502_v48, %v21994_v14 }
 0xbc1   :  { %v10590_v22 = vadd.f32 %v21994_v14, %v10056_v6 }
 0xbc2   :  { %v22005_v10 = vmax.f32 %v10812_v40, %v10814_v37  ;;  %v10655_v41 = vmax.f32 %v10591_v27, 0.0 }
 0xbc3   :  { %v15505_v23 = vpop.f32.mrb[184].mxu0  ;;  %v10654_v8 = vmax.f32 %v10590_v22, 0.0 }
 0xbc4   :  { %v10066_v7 = vpop.f32.mrb[185].mxu0 }
 0xbc7   :  { %v15508_v28 = vpop.f32.mrb[80].mxu0 }
 0xbc8   :  { %v10595_v57 = vadd.f32 %v15508_v28, %v21994_v14  ;;  %v10076_v24 = vpop.f32.mrb[81].mxu0 }
 0xbc9   :  { %v10594_v38 = vadd.f32 %v21994_v14, %v10076_v24 }
 0xbca   :  { %v10659_v55 = vmax.f32 %v10595_v57, 0.0 }
 0xbcb   :  { %v10658_v56 = vmax.f32 %v10594_v38, 0.0  ;;  %v15511_v9 = vpop.f32.mrb[186].mxu0 }
 0xbcc   :  { %v10831_v16 = vmax.f32 %v10655_v41, %v10659_v55  ;;  %v10086_v18 = vpop.f32.mrb[187].mxu0 }
 0xbcd   :  { %v10830_v25 = vmax.f32 %v10654_v8, %v10658_v56  ;;  %v10794_v8 = vrot.slane %v22002_v45, 2 }
 0xbcf   :  { %v15514_v61 = vpop.f32.mrb[84].mxu0 }
 0xbd0   :  { %v10599_v60 = vadd.f32 %v15514_v61, %v21994_v14  ;;  %v10096_v0 = vpop.f32.mrb[85].mxu0 }
 0xbd1   :  { %v10598_v21 = vadd.f32 %v21994_v14, %v10096_v0  ;;  %v10798_v0 = vmax.f32 %v22002_v45, %v10794_v8 }
 0xbd2   :  { %v10663_v63 = vmax.f32 %v10599_v60, 0.0 }
 0xbd3   :  { %v10662_v49 = vmax.f32 %v10598_v21, 0.0  ;;  %v15517_v20 = vpop.f32.mrb[96].mxu0 }
 0xbd4   :  { %v10840_v31 = vmax.f32 %v10831_v16, %v10663_v63  ;;  %v10106_v47 = vpop.f32.mrb[97].mxu0  ;;  %v10926_v20 = vld [vmem:[%s22208_s7 + $0x100] sm:$0xff] }
 0xbd5   :  { %v22013_v5 = vmax.f32 %v10830_v25, %v10662_v49  ;;  %v10800_v47 = vrot.slane %v22002_v45, 4 }
 0xbd6   :  { %v10859_v52 = vrot.slane %v10840_v31, 2  ;;  %v10865_v32 = vrot.slane %v10840_v31, 4  ;;  %v10927_v31 = vld [vmem:[%s22208_s7 + $0x108] sm:$0xff] }
 0xbd7   :  { %v15520_v51 = vpop.f32.mrb[188].mxu0 }
 0xbd8   :  { %v10116_v59 = vpop.f32.mrb[189].mxu0  ;;  %v10863_v35 = vmax.f32 %v22013_v5, %v10859_v52 }
 0xbd9   :  { %v10945_v59 = vld [vmem:[%s22208_s7 + $0x198] sm:$0xff] }
 0xbda   :  { %v22016_v26 = vmax.f32 %v10863_v35, %v10865_v32  ;;  %v10944_v32 = vld [vmem:[%s22208_s7 + $0x190] sm:$0xff] }
 0xbdb   :  { %v15523_v43 = vpop.f32.mrb[190].mxu0  ;;  %v16257_v36 = vpack.c.bf16 %v10945_v59, %v10944_v32  ;;  %v10937_v32 = vld [vmem:[%s22208_s7 + $0x158] sm:$0xff] }
 0xbdc   :  { %v10126_v34 = vpop.f32.mrb[191].mxu0  ;;  %v10879_v43 = vrot.slane %v22005_v10, 6 }
 0xbdf   :  { %v15526_v58 = vpop.f32.mrb[192].mxu0 }
 0xbe0   :  { %v10136_v1 = vpop.f32.mrb[193].mxu0  ;;  %v10804_v58 = vmax.f32 %v10798_v0, %v10800_v47  ;;  %v10952_v0 = vld [vmem:[%s22208_s7 + $0x1d0] sm:$0xff] }
 0xbe3   :  { %v15529_v30 = vpop.f32.mrb[194].mxu0 }
 0xbe4   :  { %v10146_v46 = vpop.f32.mrb[195].mxu0  ;;  %v16255_v30 = vpack.c.bf16 %v10927_v31, %v10926_v20 }
 0xbe7   :  { %v15532_v2 = vpop.f32.mrb[230].mxu0 }
 0xbe8   :  { %v16315_v13 = vadd.f32 %v15532_v2, %v7808_v42  ;;  %v10156_v4 = vpop.f32.mrb[231].mxu0  ;;  %v10928_v42 = vld [vmem:[%s22208_s7 + $0x110] sm:$0xff]  ;;  %v10929_v2 = vld [vmem:[%s22208_s7 + $0x118] sm:$0xff] }
 0xbe9   :  { %v16316_v15 = vadd.f32 %v10156_v4, %v7807_v33  ;;  %v10947_v4 = vld [vmem:[%s22208_s7 + $0x1a8] sm:$0xff] }
 0xbea   :  { %v10611_v54 = vadd.f32 %v16315_v13, %v21994_v14  ;;  %v10946_v13 = vld [vmem:[%s22208_s7 + $0x1a0] sm:$0xff] }
 0xbeb   :  { %v15535_v44 = vpop.f32.mrb[196].mxu0  ;;  %v10610_v50 = vadd.f32 %v16316_v15, %v21994_v14 }
 0xbec   :  { %v10166_v39 = vpop.f32.mrb[197].mxu0  ;;  %v10675_v29 = vmax.f32 %v10611_v54, 0.0  ;;  %v16259_v54 = vpack.c.bf16 %v10929_v2, %v10928_v42 }
 0xbed   :  { %v10674_v19 = vmax.f32 %v10610_v50, 0.0 }
 0xbef   :  { %v15538_v62 = vpop.f32.mrb[100].mxu0 }
 0xbf0   :  { %v10615_v11 = vadd.f32 %v15538_v62, %v21994_v14  ;;  %v10176_v53 = vpop.f32.mrb[101].mxu0 }
 0xbf1   :  { %v10614_v17 = vadd.f32 %v21994_v14, %v10176_v53  ;;  %v10930_v53 = vld [vmem:[%s22208_s7 + $0x120] sm:$0xff] }
 0xbf2   :  { %v10679_v12 = vmax.f32 %v10615_v11, 0.0  ;;  %v16261_v11 = vpack.c.bf16 %v10947_v4, %v10946_v13  ;;  %v10956_v4 = vld [vmem:[%s22208_s7 + $0x1f0] sm:$0xff] }
 0xbf3   :  { %v10678_v48 = vmax.f32 %v10614_v17, 0.0  ;;  %v15541_v37 = vpop.f32.mrb[198].mxu0  ;;  %v10931_v17 = vld [vmem:[%s22208_s7 + $0x128] sm:$0xff] }
 0xbf4   :  { %v10782_v6 = vmax.f32 %v10675_v29, %v10679_v12  ;;  %v10186_v40 = vpop.f32.mrb[199].mxu0  ;;  %v10949_v37 = vld [vmem:[%s22208_s7 + $0x1b8] sm:$0xff] }
 0xbf5   :  { %v10781_v23 = vmax.f32 %v10674_v19, %v10678_v48  ;;  %v10948_v48 = vld [vmem:[%s22208_s7 + $0x1b0] sm:$0xff] }
 0xbf7   :  { %v15544_v7 = vpop.f32.mrb[104].mxu0 }
 0xbf8   :  { %v10619_v27 = vadd.f32 %v15544_v7, %v21994_v14  ;;  %v10196_v22 = vpop.f32.mrb[105].mxu0  ;;  %v16263_v7 = vpack.c.bf16 %v10931_v17, %v10930_v53 }
 0xbf9   :  { %v10618_v28 = vadd.f32 %v21994_v14, %v10196_v22  ;;  %v10932_v22 = vld [vmem:[%s22208_s7 + $0x130] sm:$0xff] }
 0xbfa   :  { %v10683_v57 = vmax.f32 %v10619_v27, 0.0  ;;  %v16265_v27 = vpack.c.bf16 %v10949_v37, %v10948_v48 }
 0xbfb   :  { %v10682_v24 = vmax.f32 %v10618_v28, 0.0  ;;  %v15547_v38 = vpop.f32.mrb[200].mxu0  ;;  %v10933_v28 = vld [vmem:[%s22208_s7 + $0x138] sm:$0xff] }
 0xbfc   :  { %v10791_v41 = vmax.f32 %v10782_v6, %v10683_v57  ;;  %v10206_v55 = vpop.f32.mrb[201].mxu0  ;;  %v10951_v38 = vld [vmem:[%s22208_s7 + $0x1c8] sm:$0xff] }
 0xbfd   :  { %v10790_v56 = vmax.f32 %v10781_v23, %v10682_v24  ;;  %v10950_v24 = vld [vmem:[%s22208_s7 + $0x1c0] sm:$0xff] }
 0xbfe   :  { %v10809_v9 = vrot.slane %v10791_v41, 2  ;;  %v10815_v25 = vrot.slane %v10791_v41, 4 }
 0xbff   :  { %v10795_v16 = vrot.slane %v10790_v56, 2  ;;  %v15550_v18 = vpop.f32.mrb[108].mxu0  ;;  %v10801_v63 = vrot.slane %v10790_v56, 4 }
 0xc00   :  { %v10216_v61 = vpop.f32.mrb[109].mxu0  ;;  %v10813_v60 = vmax.f32 %v10790_v56, %v10809_v9  ;;  %v10623_v45 = vadd.f32 %v15550_v18, %v21994_v14  ;;  %v10934_v18 = vld [vmem:[%s22208_s7 + $0x140] sm:$0xff] }
 0xc01   :  { %v10799_v21 = vmax.f32 %v10790_v56, %v10795_v16  ;;  %v10622_v3 = vadd.f32 %v21994_v14, %v10216_v61  ;;  %v16267_v56 = vpack.c.bf16 %v10933_v28, %v10932_v22  ;;  %v16269_v16 = vpack.c.bf16 %v10951_v38, %v10950_v24  ;;  %v11108_v22 = vld [vmem:[%s22210_s9 + $0x10] sm:$0xff]  ;;  %v11109_v24 = vld [vmem:[%s22210_s9 + $0x18] sm:$0xff] }
 0xc02   :  { %v10819_v49 = vmax.f32 %v10813_v60, %v10815_v25  ;;  %v10687_v50 = vmax.f32 %v10623_v45, 0.0  ;;  %v10935_v25 = vld [vmem:[%s22208_s7 + $0x148] sm:$0xff]  ;;  %v17038_v28 = vmov 0.0|0.0   ;;  %v16289_v38 = vpack.c.bf16 %v11109_v24, %v11108_v22 }
 0xc03   :  { %v15553_v52 = vpop.f32.mrb[202].mxu0  ;;  %v10805_v51 = vmax.f32 %v10799_v21, %v10801_v63  ;;  %v10686_v29 = vmax.f32 %v10622_v3, 0.0  ;;  %v16271_v31 = vpack.c.bf16 %v10935_v25, %v10934_v18  ;;  %v11114_v18 = vld [vmem:[%s22210_s9 + $0x40] sm:$0xff]  ;;  %v11115_v25 = vld [vmem:[%s22210_s9 + $0x48] sm:$0xff] }
 0xc04   :  { %v10226_v35 = vpop.f32.mrb[203].mxu0  ;;  %v10880_v34 = vrot.slane %v10819_v49, 5  ;;  %v10845_v49 = vrot.slane %v22013_v5, 2 }
 0xc05   :  { %v10873_v1 = vrot.slane %v10805_v51, 7  ;;  %v10936_v51 = vld [vmem:[%s22208_s7 + $0x150] sm:$0xff] }
 0xc06   :  { %v10881_v46 = vsel %vm10874_vm1, %v10880_v34, %v10879_v43  ;;  %v10954_v43 = vld [vmem:[%s22208_s7 + $0x1e0] sm:$0xff]  ;;  %v10955_v34 = vld [vmem:[%s22208_s7 + $0x1e8] sm:$0xff]  ;;  %v16275_v45 = vpack.c.bf16 %v10937_v32, %v10936_v51 }
 0xc07   :  { %v15556_v10 = vpop.f32.mrb[112].mxu0  ;;  %11029 = vmatprep.mubr.f32.mxu1 %v10881_v46  ;;  %v10875_v33 = vsel %vm10874_vm1, %v10873_v1, %v10804_v58  ;;  %v10849_v46 = vmax.f32 %v22013_v5, %v10845_v49  ;;  %v16277_v2 = vpack.c.bf16 %v10955_v34, %v10954_v43 }
 0xc08   :  { %v10627_v15 = vadd.f32 %v15556_v10, %v21994_v14  ;;  %v10236_v44 = vpop.f32.mrb[113].mxu0  ;;  %11030 = vmatmul.mubr.f32.vlgmr.msra.gmra.mrb[72].mxu1 %v10875_v33  ;;  %v10938_v10 = vld [vmem:[%s22208_s7 + $0x160] sm:$0xff]  ;;  %v10939_v33 = vld [vmem:[%s22208_s7 + $0x168] sm:$0xff] }
 0xc09   :  { %v10626_v39 = vadd.f32 %v21994_v14, %v10236_v44  ;;  %16256 = vmatpush3.bf16.msra.mxu1 %v16255_v30  ;;  %v10851_v44 = vrot.slane %v22013_v5, 4  ;;  %v10941_v5 = vld [vmem:[%s22208_s7 + $0x178] sm:$0xff] }
 0xc0a   :  { %v10691_v62 = vmax.f32 %v10627_v15, 0.0  ;;  %16258 = vmatprep.subr.bf16.mxu1 %v16257_v36  ;;  %v10957_v15 = vld [vmem:[%s22208_s7 + $0x1f8] sm:$0xff] }
 0xc0b   :  { %v10690_v12 = vmax.f32 %v10626_v39, 0.0  ;;  %v15559_v19 = vpop.f32.mrb[204].mxu0  ;;  %v10855_v53 = vmax.f32 %v10849_v46, %v10851_v44  ;;  %v11538_v46 = vld [vmem:[%s22211_s10] ss:$0 sm:$0xff] }
 0xc0c   :  { %v10833_v6 = vmax.f32 %v10687_v50, %v10691_v62  ;;  %v10246_v40 = vpop.f32.mrb[205].mxu0  ;;  %v10890_v50 = vrot.slane %v22016_v26, 6  ;;  %v10940_v19 = vld [vmem:[%s22208_s7 + $0x170] sm:$0xff] }
 0xc0d   :  { %v10832_v23 = vmax.f32 %v10686_v29, %v10690_v12  ;;  %16260 = vmatpush3.bf16.msra.mxu1 %v16259_v54  ;;  %v16281_v12 = vpack.c.bf16 %v10957_v15, %v10956_v4 }
 0xc0e   :  { %16262 = vmatprep.subr.bf16.mxu1 %v16261_v11  ;;  %v16279_v11 = vpack.c.bf16 %v10939_v33, %v10938_v10 }
 0xc0f   :  { %v15562_v57 = vpop.f32.mrb[116].mxu0 }
 0xc10   :  { %v10631_v41 = vadd.f32 %v15562_v57, %v21994_v14  ;;  %v10256_v55 = vpop.f32.mrb[117].mxu0 }
 0xc11   :  { %v10630_v8 = vadd.f32 %v21994_v14, %v10256_v55  ;;  %16264 = vmatpush3.bf16.msra.mxu1 %v16263_v7  ;;  %v10953_v14 = vld [vmem:[%s22208_s7 + $0x1d8] sm:$0xff]  ;;  %v11106_v7 = vld [vmem:[%s22210_s9] sm:$0xff]  ;;  %v11111_v55 = vld [vmem:[%s22210_s9 + $0x28] sm:$0xff] }
 0xc12   :  { %v10695_v9 = vmax.f32 %v10631_v41, 0.0  ;;  %16266 = vmatprep.subr.bf16.mxu1 %v16265_v27  ;;  %v16273_v52 = vpack.c.bf16 %v10953_v14, %v10952_v0  ;;  %v11107_v27 = vld [vmem:[%s22210_s9 + $0x8] sm:$0xff]  ;;  %v11110_v41 = vld [vmem:[%s22210_s9 + $0x20] sm:$0xff]  ;;  %v11117_v0 = vld [vmem:[%s22210_s9 + $0x58] sm:$0xff] }
 0xc13   :  { %v10694_v61 = vmax.f32 %v10630_v8, 0.0  ;;  %v15565_v60 = vpop.f32.mrb[206].mxu0  ;;  %v16286_v57 = vpack.c.bf16 %v11107_v27, %v11106_v7  ;;  %v16292_v8 = vpack.c.bf16 %v11111_v55, %v11110_v41 }
 0xc14   :  { %v10842_v21 = vmax.f32 %v10833_v6, %v10695_v9  ;;  %v10266_v63 = vpop.f32.mrb[207].mxu0  ;;  %v16283_v6 = vpack.c.bf16 %v10941_v5, %v10940_v19  ;;  %v11113_v9 = vld [vmem:[%s22210_s9 + $0x38] sm:$0xff]  ;;  %v11116_v60 = vld [vmem:[%s22210_s9 + $0x50] sm:$0xff] }
 0xc15   :  { %v10841_v20 = vmax.f32 %v10832_v23, %v10694_v61  ;;  %16268 = vmatpush3.bf16.msra.mxu1 %v16267_v56  ;;  %v11112_v56 = vld [vmem:[%s22210_s9 + $0x30] sm:$0xff]  ;;  %v16298_v61 = vpack.c.bf16 %v11115_v25, %v11114_v18  ;;  %v16301_v14 = vpack.c.bf16 %v11117_v0, %v11116_v60  ;;  %v11119_v63 = vld [vmem:[%s22210_s9 + $0x68] sm:$0xff] }
 0xc16   :  { %v10860_v47 = vrot.slane %v10842_v21, 2  ;;  %16270 = vmatprep.subr.bf16.mxu1 %v16269_v16  ;;  %v10866_v58 = vrot.slane %v10842_v21, 4  ;;  %v16295_v16 = vpack.c.bf16 %v11113_v9, %v11112_v56  ;;  %v11118_v21 = vld [vmem:[%s22210_s9 + $0x60] sm:$0xff] }
 0xc17   :  { %v10846_v59 = vrot.slane %v10841_v20, 2  ;;  %v15568_v35 = vpop.f32.mrb[210].mxu0  ;;  %v10852_v42 = vrot.slane %v10841_v20, 4  ;;  %v16304_v49 = vpack.c.bf16 %v11119_v63, %v11118_v21 }
 0xc18   :  { %v10276_v1 = vpop.f32.mrb[211].mxu0  ;;  %v10864_v30 = vmax.f32 %v10841_v20, %v10860_v47  ;;  %v11537_v35 = vld [vmem:[%s22209_s8] ss:$0 sm:$0xff] }
 0xc19   :  { %16272 = vmatpush3.bf16.msra.mxu1 %v16271_v31  ;;  %v10850_v36 = vmax.f32 %v10841_v20, %v10846_v59  ;;  %v11120_v20 = vld [vmem:[%s22210_s9 + $0x70] sm:$0xff]  ;;  %v11121_v31 = vld [vmem:[%s22210_s9 + $0x78] sm:$0xff] }
 0xc1a   :  { %16274 = vmatprep.subr.bf16.mxu1 %v16273_v52  ;;  %v10870_v3 = vmax.f32 %v10864_v30, %v10866_v58  ;;  %v16307_v47 = vpack.c.bf16 %v11121_v31, %v11120_v20  ;;  %v24011_v52 = vmov 0.0  }
 0xc1b   :  { %v15571_v13 = vpop.f32.mrb[212].mxu0  ;;  %v10856_v39 = vmax.f32 %v10850_v36, %v10852_v42 }
 0xc1c   :  { %v10286_v54 = vpop.f32.mrb[213].mxu0  ;;  %v10891_v62 = vrot.slane %v10870_v3, 5 }
 0xc1d   :  { %16276 = vmatpush3.bf16.msra.mxu1 %v16275_v45  ;;  %v10885_v17 = vrot.slane %v10856_v39, 7 }
 0xc1e   :  { %16278 = vmatprep.subr.bf16.mxu1 %v16277_v2  ;;  %v10892_v29 = vsel %vm10874_vm1, %v10891_v62, %v10890_v50 }
 0xc1f   :  { %v15574_v48 = vpop.f32.mrb[214].mxu0  ;;  %11099 = vmatprep.mubr.f32.mxu1 %v10892_v29  ;;  %v10886_v26 = vsel %vm10874_vm1, %v10885_v17, %v10855_v53 }
 0xc20   :  { %v10296_v37 = vpop.f32.mrb[215].mxu0 }
 0xc21   :  { %16280 = vmatpush3.bf16.msra.mxu1 %v16279_v11 }
 0xc22   :  { %16282 = vmatprep.subr.bf16.mxu1 %v16281_v12 }
 0xc23   :  { %v15577_v40 = vpop.f32.mrb[216].mxu0 }
 0xc24   :  { %v10306_v23 = vpop.f32.mrb[217].mxu0 }
 0xc25   :  { %16284 = vmatpush3.bf16.msra.mxu1 %v16283_v6 }
 0xc26   :  { %16285 = vmatprep.subr.bf16.mxu1 %v17038_v28 }
 0xc28   :  { %11100 = vmatmul.mubr.f32.vlgmr.msra.gmra.mrb[74].mxu1 %v10886_v26 }
 0xc29   :  { %16287 = vmatpush3.bf16.msra.mxu1 %v16286_v57  ;;  %15610 = vmatprep.mubr.msk.f32.mxu1 %vm17039_vm4, %v24011_v52 }
 0xc2a   :  { %16288 = vmatprep.subr.bf16.mxu1 %v17038_v28 }
 0xc2d   :  { %16290 = vmatpush3.bf16.msra.mxu1 %v16289_v38 }
 0xc2e   :  { %16291 = vmatprep.subr.bf16.mxu1 %v17038_v28 }
 0xc31   :  { %16293 = vmatpush3.bf16.msra.mxu1 %v16292_v8 }
 0xc32   :  { %16294 = vmatprep.subr.bf16.mxu1 %v17038_v28 }
 0xc35   :  { %16296 = vmatpush3.bf16.msra.mxu1 %v16295_v16 }
 0xc36   :  { %16297 = vmatprep.subr.bf16.mxu1 %v17038_v28 }
 0xc39   :  { %16299 = vmatpush3.bf16.msra.mxu1 %v16298_v61 }
 0xc3a   :  { %16300 = vmatprep.subr.bf16.mxu1 %v17038_v28 }
 0xc3d   :  { %16302 = vmatpush3.bf16.msra.mxu1 %v16301_v14 }
 0xc3e   :  { %16303 = vmatprep.subr.bf16.mxu1 %v17038_v28 }
 0xc41   :  { %16305 = vmatpush3.bf16.msra.mxu1 %v16304_v49 }
 0xc42   :  { %16306 = vmatprep.subr.bf16.mxu1 %v17038_v28 }
 0xc45   :  { %16308 = vmatpush3.bf16.msra.mxu1 %v16307_v47 }
 0xcdb   :  { %v13091_v51 = vpop.f32.mrb[72].mxu1 }
 0xcdc   :  { %v13092_v32 = vpop.f32.mrb[73].mxu1 }
 0xcdd   :  { %v13093_v59 = vadd.f32 %v13092_v32, %v13091_v51 }
 0xcdf   :  { %v11032_v58 = vadd.f32 %v13093_v59, %v11537_v35 }
 0xcfb   :  { %v13126_v43 = vpop.f32.mrb[74].mxu1 }
 0xcfc   :  { %v13127_v34 = vpop.f32.mrb[75].mxu1 }
 0xcfd   :  { %v13128_v1 = vadd.f32 %v13127_v34, %v13126_v43 }
 0xcff   :  { %v11102_v30 = vadd.f32 %v13128_v1, %v11032_v58 }
 0xd01   :  { %v11105_v45 = vmax.f32 %v11102_v30, 0.0 }
 0xd03   :  { %15611 = vmatmul.mubr.f32.vlgmr.msra.gmra.mrb[76].mxu1 %v11105_v45 }
 0xdd6   :  { %v11195_v36 = vpop.f32.mrb[76].mxu1 }
 0xdd7   :  { %v11196_v42 = vadd.f32 %v11538_v46, %v11195_v36  ;;  %v15612_v2 = vpop.f32.mrb[77].mxu1 }
 0xdd9   :  { %11199 = vst [vmem:[#allocation3] sm:$0x3] %v11196_v42 }
 0xdda   :  { %17024 = shalt.err (!%p17021_p4)
}
 0xddb   :  { %s17025_s17 = scalar_lea.hbm %s22212_s11, 32 }
 0xddc   :  { %p17026_p5 = scmp.ne.s32.totalorder %s22212_s11, %s17025_s17  ;;  %p17029_p6 = scmp.lt.u32.totalorder %s17025_s17, %s22212_s11 }
 0xdde   :  { %p17031_p7 = pnand %p17029_p6, %p17026_p5 }
 0xde0   :  { %17034 = shalt.err (!%p17031_p7)
}
 0xde1   :  { %11209 = dma.vmem_to_hbm [thread:$0]  %s11207_s14, 32, %s22212_s11, [#allocation4]  }
 0xde2   :  { %17035 = dma.done.wait [#allocation4], 32  }
 0xde3   :  { %17036 = vsyncadd [#allocation4], 4294967264 }
 0xde4   :  { %11213 = vsyncpa [#allocation4], 1 }

</bundles_post_ra>
